<compile_context>
chip_gen: v7x
topology: tpu7x:2x2x1
jax: 0.10.0
libtpu: 0.0.40
codegen_flags: <defaults>
</compile_context>

<pallas_src>
import math

import jax
import jax.numpy as jnp
from jax.experimental import pallas as pl
from jax.experimental.pallas import tpu as pltpu

_EPS = 1e-6
_HIGH = jax.lax.Precision.HIGHEST
_GROUPS = 32


# ------------------------------ kernel helpers ------------------------------ #

def _gn_swish(x, gamma, beta, avg):
    """GroupNorm(32, eps=1e-6, affine) + swish on a full (H, W, C) image, f32."""
    H, W, C = x.shape
    # per-channel sums (f32), then broadcast group mean/var via the tiny
    # precomputed block-diagonal averaging matrix (1/(group_size*H*W) folded in).
    sum_c = jnp.sum(x, axis=(0, 1)).reshape(1, C)
    mean_c = jnp.dot(sum_c, avg, precision=_HIGH,
                     preferred_element_type=jnp.float32)           # (1, C)
    d = x - mean_c.reshape(1, 1, C)
    ssq_c = jnp.sum(d * d, axis=(0, 1)).reshape(1, C)
    var_c = jnp.dot(ssq_c, avg, precision=_HIGH,
                    preferred_element_type=jnp.float32)            # (1, C)
    y = (d * jax.lax.rsqrt(var_c + _EPS).reshape(1, 1, C)
         * gamma.reshape(1, 1, C) + beta.reshape(1, 1, C))
    return y * jax.nn.sigmoid(y)                                   # swish (f32)


def _im2col9(pad_ref, y):
    """Zero-pad y into the VMEM scratch (in-kernel padding=1) and build the
    (H*W, 9*C) im2col patch matrix (f32)."""
    H, W, C = y.shape
    pad_ref[...] = jnp.zeros_like(pad_ref)                         # halo = 0
    pad_ref[pl.ds(1, H), pl.ds(1, W), :] = y
    xp = pad_ref[...]                                              # (H+2, W+2, C)
    cols = [xp[dy:dy + H, dx:dx + W, :].reshape(H * W, C)
            for dy in range(3) for dx in range(3)]
    return jnp.concatenate(cols, axis=-1)                          # (H*W, 9*C)


def _mm_bf16(patches_f32, w_ref):
    """bf16-input / f32-accumulate matmul on the MXU."""
    return jax.lax.dot_general(
        patches_f32.astype(jnp.bfloat16), w_ref[...],
        (((1,), (0,)), ((), ())), preferred_element_type=jnp.float32)


# -------------------------------- kernels ----------------------------------- #

def _resblock_same_kernel(x_ref, g1_ref, b1_ref, avg1_ref, w1_ref, bias1_ref,
                          g2_ref, b2_ref, avg2_ref, w2_ref, bias2_ref,
                          o_ref, pad1_ref, pad2_ref):
    """Fused ResBlock, in_channels == out_channels (identity residual)."""
    x = x_ref[0]                                                   # (H, W, Cin)
    H, W, _ = x.shape
    Cout = o_ref.shape[-1]
    y1 = _gn_swish(x, g1_ref[...], b1_ref[...], avg1_ref[...])
    h = (_mm_bf16(_im2col9(pad1_ref, y1), w1_ref).reshape(H, W, Cout)
         + bias1_ref[...].reshape(1, 1, Cout))
    y2 = _gn_swish(h, g2_ref[...], b2_ref[...], avg2_ref[...])
    acc = _mm_bf16(_im2col9(pad2_ref, y2), w2_ref)
    o_ref[0] = acc.reshape(H, W, Cout) + bias2_ref[...].reshape(1, 1, Cout) + x


def _resblock_proj_kernel(x_ref, g1_ref, b1_ref, avg1_ref, w1_ref, bias1_ref,
                          g2_ref, b2_ref, avg2_ref, w2_ref, bias2_ref,
                          o_ref, pad1_ref, pad2_ref):
    """Fused ResBlock, in_channels != out_channels: the 1x1 conv_out projection
    is folded into the second matmul as a 10th 'tap' (extra K columns); its
    bias is pre-added to bias2 in the wrapper."""
    x = x_ref[0]                                                   # (H, W, Cin)
    H, W, Cin = x.shape
    Cout = o_ref.shape[-1]
    y1 = _gn_swish(x, g1_ref[...], b1_ref[...], avg1_ref[...])
    h = (_mm_bf16(_im2col9(pad1_ref, y1), w1_ref).reshape(H, W, Cout)
         + bias1_ref[...].reshape(1, 1, Cout))
    y2 = _gn_swish(h, g2_ref[...], b2_ref[...], avg2_ref[...])
    p9 = _im2col9(pad2_ref, y2)                                    # (H*W, 9*Cout)
    xr = x.reshape(H * W, Cin)                                     # residual tap
    acc = _mm_bf16(jnp.concatenate([p9, xr], axis=-1), w2_ref)     # K = 9*Cout+Cin
    o_ref[0] = acc.reshape(H, W, Cout) + bias2_ref[...].reshape(1, 1, Cout)


# ------------------------------ pallas_call glue ----------------------------- #

def _group_avg_matrix(C, hw, groups=_GROUPS):
    gs = C // groups
    gidx = jnp.arange(C) // gs
    same = (gidx[:, None] == gidx[None, :]).astype(jnp.float32)
    return same / float(gs * hw)                                   # (C, C)


def _compiler_params():
    return pltpu.CompilerParams(dimension_semantics=("parallel",),
                                vmem_limit_bytes=32 * 1024 * 1024)


# NOTE / TODO(synk): one whole image per grid step (GroupNorm needs full-image
# statistics). For large H*W a two-pass, row-tiled variant would be required.

def res_block_forward(x_nchw, params):
    """ResBlock.forward — input/output NCHW like the PyTorch module."""
    # TODO(synk): the NCHW<->NHWC transposes are full HBM passes done by XLA
    # outside the kernel; keep the surrounding model NHWC to drop them.
    x = jnp.transpose(x_nchw, (0, 2, 3, 1))                        # NCHW -> NHWC
    B, H, W, Cin = x.shape
    Cout = params["w1"].shape[-1]

    avg1 = _group_avg_matrix(Cin, H * W)
    avg2 = _group_avg_matrix(Cout, H * W)
    w1_2d = params["w1"].reshape(9 * Cin, Cout).astype(jnp.bfloat16)
    w2_2d = params["w2"].reshape(9 * Cout, Cout)

    if "w_proj" in params:                                         # Cin != Cout
        w2_full = jnp.concatenate([w2_2d, params["w_proj"]],
                                  axis=0).astype(jnp.bfloat16)     # (9*Cout+Cin, Cout)
        bias2 = params["bias2"] + params["bias_proj"]
        kern = _resblock_proj_kernel
    else:                                                          # identity residual
        w2_full = w2_2d.astype(jnp.bfloat16)
        bias2 = params["bias2"]
        kern = _resblock_same_kernel

    full = lambda s: pl.BlockSpec(s, lambda b: (0,) * len(s))
    out = pl.pallas_call(
        kern,
        out_shape=jax.ShapeDtypeStruct((B, H, W, Cout), jnp.float32),
        grid=(B,),
        in_specs=[
            pl.BlockSpec((1, H, W, Cin), lambda b: (b, 0, 0, 0)),
            full((1, Cin)), full((1, Cin)), full((Cin, Cin)),
            full((9 * Cin, Cout)), full((1, Cout)),
            full((1, Cout)), full((1, Cout)), full((Cout, Cout)),
            full(tuple(w2_full.shape)), full((1, Cout)),
        ],
        out_specs=pl.BlockSpec((1, H, W, Cout), lambda b: (b, 0, 0, 0)),
        scratch_shapes=[pltpu.VMEM((H + 2, W + 2, Cin), jnp.float32),
                        pltpu.VMEM((H + 2, W + 2, Cout), jnp.float32)],
        compiler_params=_compiler_params(),
    )(x, params["g1"], params["b1"], avg1, w1_2d, params["bias1"],
      params["g2"], params["b2"], avg2, w2_full, bias2)
    return jnp.transpose(out, (0, 3, 1, 2))                        # NHWC -> NCHW


# ----------------------- deterministic parameter init ----------------------- #

def init_params(key, cin, cout):
    k1, k2, k3 = jax.random.split(key, 3)

    def conv_init(k, kh, kw, ci, co):                              # PyTorch-style init
        fan_in = ci * kh * kw
        bound = 1.0 / math.sqrt(fan_in)
        kw_, kb_ = jax.random.split(k)
        w = jax.random.uniform(kw_, (kh, kw, ci, co), jnp.float32, -bound, bound)
        b = jax.random.uniform(kb_, (1, co), jnp.float32, -bound, bound)
        return w, b

    w1, bias1 = conv_init(k1, 3, 3, cin, cout)
    w2, bias2 = conv_init(k2, 3, 3, cout, cout)
    params = {
        "g1": jnp.ones((1, cin), jnp.float32), "b1": jnp.zeros((1, cin), jnp.float32),
        "g2": jnp.ones((1, cout), jnp.float32), "b2": jnp.zeros((1, cout), jnp.float32),
        "w1": w1, "bias1": bias1, "w2": w2, "bias2": bias2,
    }
    if cin != cout:
        wp, bp = conv_init(k3, 1, 1, cin, cout)
        params["w_proj"] = wp.reshape(cin, cout)
        params["bias_proj"] = bp
    return params


# ------------------------------ pure-JAX reference -------------------------- #

def res_block_ref(x, params, cin, cout):
    def gn(v, gamma, beta, groups=_GROUPS, eps=_EPS):
        B, C, H, W = v.shape
        vr = v.reshape(B, groups, C // groups, H * W)
        mean = vr.mean(axis=(2, 3), keepdims=True)
        var = ((vr - mean) ** 2).mean(axis=(2, 3), keepdims=True)
        vn = ((vr - mean) / jnp.sqrt(var + eps)).reshape(B, C, H, W)
        return vn * gamma.reshape(1, C, 1, 1) + beta.reshape(1, C, 1, 1)

    def sw(v):
        return v * jax.nn.sigmoid(v)

    def conv(v, w, b, pad):
        y = jax.lax.conv_general_dilated(
            v, w, (1, 1), [(pad, pad), (pad, pad)],
            dimension_numbers=("NCHW", "HWIO", "NCHW"), precision=_HIGH)
        return y + b.reshape(1, -1, 1, 1)

    h = sw(gn(x, params["g1"], params["b1"]))
    h = conv(h, params["w1"], params["bias1"], 1)
    h = sw(gn(h, params["g2"], params["b2"]))
    h = conv(h, params["w2"], params["bias2"], 1)
    xin = x
    if cin != cout:
        xin = conv(x, params["w_proj"].reshape(1, 1, cin, cout),
                   params["bias_proj"], 0)
    return h + xin


# ----------------------------------- main ----------------------------------- #

if __name__ == "__main__":
    key = jax.random.PRNGKey(0)
    kx, kp1, kp2 = jax.random.split(key, 3)
    B, H, W = 2, 16, 16

    # Case 1: in_channels != out_channels (exercises the folded conv_out 1x1 proj)
    Cin, Cout = 32, 64
    x = jax.random.normal(kx, (B, Cin, H, W), jnp.float32)
    params = init_params(kp1, Cin, Cout)
    out = jax.block_until_ready(res_block_forward(x, params))
    ref = res_block_ref(x, params, Cin, Cout)
    assert out.shape == (B, Cout, H, W)
    # bf16 matmul inputs / f32 accumulation -> loosened tolerance vs f32 reference
    assert bool(jnp.allclose(out, ref, atol=5e-2, rtol=5e-2)), \
        float(jnp.max(jnp.abs(out - ref)))

    # Case 2: in_channels == out_channels (identity residual path)
    params2 = init_params(kp2, Cin, Cin)
    out2 = jax.block_until_ready(res_block_forward(x, params2))
    ref2 = res_block_ref(x, params2, Cin, Cin)
    assert bool(jnp.allclose(out2, ref2, atol=5e-2, rtol=5e-2)), \
        float(jnp.max(jnp.abs(out2 - ref2)))

    print("KERNEL_OK")
</pallas_src>

<mosaic_0001>
module attributes {stable_mosaic.version = 11 : i64} {
  func.func @_resblock_proj_kernel(%arg0: i32, %arg1: memref<1x16x16x32xf32, #tpu.memory_space<vmem>>, %arg2: memref<1x32xf32, #tpu.memory_space<vmem>>, %arg3: memref<1x32xf32, #tpu.memory_space<vmem>>, %arg4: memref<32x32xf32, #tpu.memory_space<vmem>>, %arg5: memref<288x64xbf16, #tpu.memory_space<vmem>>, %arg6: memref<1x64xf32, #tpu.memory_space<vmem>>, %arg7: memref<1x64xf32, #tpu.memory_space<vmem>>, %arg8: memref<1x64xf32, #tpu.memory_space<vmem>>, %arg9: memref<64x64xf32, #tpu.memory_space<vmem>>, %arg10: memref<608x64xbf16, #tpu.memory_space<vmem>>, %arg11: memref<1x64xf32, #tpu.memory_space<vmem>>, %arg12: memref<1x16x16x64xf32, #tpu.memory_space<vmem>>, %arg13: memref<18x18x32xf32, #tpu.memory_space<vmem>>, %arg14: memref<18x18x64xf32, #tpu.memory_space<vmem>>) attributes {dimension_semantics = [#tpu.dimension_semantics<parallel>], iteration_bounds = array<i64: 2>, scalar_prefetch = 0 : i64, scratch_operands = 2 : i64, tpu.core_type = #tpu.core_type<tc>, window_params = [{transform_indices = @transform_0, window_bounds = array<i64: 1, 16, 16, 32>}, {pipeline_mode = #tpu.pipeline_mode<synchronous>, transform_indices = @transform_1, window_bounds = array<i64: 1, 32>}, {pipeline_mode = #tpu.pipeline_mode<synchronous>, transform_indices = @transform_2, window_bounds = array<i64: 1, 32>}, {pipeline_mode = #tpu.pipeline_mode<synchronous>, transform_indices = @transform_3, window_bounds = array<i64: 32, 32>}, {pipeline_mode = #tpu.pipeline_mode<synchronous>, transform_indices = @transform_4, window_bounds = array<i64: 288, 64>}, {pipeline_mode = #tpu.pipeline_mode<synchronous>, transform_indices = @transform_5, window_bounds = array<i64: 1, 64>}, {pipeline_mode = #tpu.pipeline_mode<synchronous>, transform_indices = @transform_6, window_bounds = array<i64: 1, 64>}, {pipeline_mode = #tpu.pipeline_mode<synchronous>, transform_indices = @transform_7, window_bounds = array<i64: 1, 64>}, {pipeline_mode = #tpu.pipeline_mode<synchronous>, transform_indices = @transform_8, window_bounds = array<i64: 64, 64>}, {pipeline_mode = #tpu.pipeline_mode<synchronous>, transform_indices = @transform_9, window_bounds = array<i64: 608, 64>}, {pipeline_mode = #tpu.pipeline_mode<synchronous>, transform_indices = @transform_10, window_bounds = array<i64: 1, 64>}, {transform_indices = @transform_11, window_bounds = array<i64: 1, 16, 16, 64>}]} {
    %c0 = arith.constant 0 : index
    %c0_0 = arith.constant 0 : index
    %c0_1 = arith.constant 0 : index
    %c0_2 = arith.constant 0 : index
    %0 = vector.load %arg1[%c0, %c0_0, %c0_1, %c0_2] : memref<1x16x16x32xf32, #tpu.memory_space<vmem>>, vector<1x16x16x32xf32>
    %1 = vector.shape_cast %0 : vector<1x16x16x32xf32> to vector<16x16x32xf32>
    %c0_3 = arith.constant 0 : index
    %c0_4 = arith.constant 0 : index
    %2 = vector.load %arg2[%c0_3, %c0_4] : memref<1x32xf32, #tpu.memory_space<vmem>>, vector<1x32xf32>
    %c0_5 = arith.constant 0 : index
    %c0_6 = arith.constant 0 : index
    %3 = vector.load %arg3[%c0_5, %c0_6] : memref<1x32xf32, #tpu.memory_space<vmem>>, vector<1x32xf32>
    %c0_7 = arith.constant 0 : index
    %c0_8 = arith.constant 0 : index
    %4 = vector.load %arg4[%c0_7, %c0_8] : memref<32x32xf32, #tpu.memory_space<vmem>>, vector<32x32xf32>
    %cst = arith.constant dense<0.000000e+00> : vector<32xf32>
    %5 = vector.multi_reduction <add>, %1, %cst [0, 1] : vector<16x16x32xf32> to vector<32xf32>
    %6 = vector.shape_cast %5 : vector<32xf32> to vector<1x32xf32>
    %cst_9 = arith.constant dense<0.000000e+00> : vector<1x32xf32>
    %7 = tpu.matmul %6, %4, %cst_9 {dimension_numbers = #tpu.dot_dimension_numbers<[1], [0], [0], [1], [0, 0, 1, 1], [], []>, precision = #tpu.contract_precision<fp32>} : vector<1x32xf32>, vector<32x32xf32>, vector<1x32xf32> -> vector<1x32xf32>
    %8 = vector.shape_cast %7 : vector<1x32xf32> to vector<1x1x32xf32>
    %9 = vector.broadcast %8 : vector<1x1x32xf32> to vector<16x16x32xf32>
    %10 = arith.subf %1, %9 : vector<16x16x32xf32>
    %11 = arith.mulf %10, %10 : vector<16x16x32xf32>
    %cst_10 = arith.constant dense<0.000000e+00> : vector<32xf32>
    %12 = vector.multi_reduction <add>, %11, %cst_10 [0, 1] : vector<16x16x32xf32> to vector<32xf32>
    %13 = vector.shape_cast %12 : vector<32xf32> to vector<1x32xf32>
    %cst_11 = arith.constant dense<0.000000e+00> : vector<1x32xf32>
    %14 = tpu.matmul %13, %4, %cst_11 {dimension_numbers = #tpu.dot_dimension_numbers<[1], [0], [0], [1], [0, 0, 1, 1], [], []>, precision = #tpu.contract_precision<fp32>} : vector<1x32xf32>, vector<32x32xf32>, vector<1x32xf32> -> vector<1x32xf32>
    %cst_12 = arith.constant 9.99999997E-7 : f32
    %15 = vector.broadcast %cst_12 : f32 to vector<1x32xf32>
    %16 = arith.addf %14, %15 : vector<1x32xf32>
    %17 = math.rsqrt %16 : vector<1x32xf32>
    %18 = vector.shape_cast %17 : vector<1x32xf32> to vector<1x1x32xf32>
    %19 = vector.broadcast %18 : vector<1x1x32xf32> to vector<16x16x32xf32>
    %20 = arith.mulf %10, %19 : vector<16x16x32xf32>
    %21 = vector.shape_cast %2 : vector<1x32xf32> to vector<1x1x32xf32>
    %22 = vector.broadcast %21 : vector<1x1x32xf32> to vector<16x16x32xf32>
    %23 = arith.mulf %20, %22 : vector<16x16x32xf32>
    %24 = vector.shape_cast %3 : vector<1x32xf32> to vector<1x1x32xf32>
    %25 = vector.broadcast %24 : vector<1x1x32xf32> to vector<16x16x32xf32>
    %26 = arith.addf %23, %25 : vector<16x16x32xf32>
    %27 = arith.negf %26 : vector<16x16x32xf32>
    %28 = math.exp %27 : vector<16x16x32xf32>
    %cst_13 = arith.constant 1.000000e+00 : f32
    %29 = vector.broadcast %cst_13 : f32 to vector<16x16x32xf32>
    %30 = arith.addf %29, %28 : vector<16x16x32xf32>
    %31 = arith.divf %29, %30 : vector<16x16x32xf32>
    %32 = arith.mulf %26, %31 : vector<16x16x32xf32>
    %cst_14 = arith.constant 0.000000e+00 : f32
    %33 = vector.broadcast %cst_14 : f32 to vector<18x18x32xf32>
    %c0_15 = arith.constant 0 : index
    %c0_16 = arith.constant 0 : index
    %c0_17 = arith.constant 0 : index
    %34 = vector.load %arg13[%c0_15, %c0_16, %c0_17] : memref<18x18x32xf32, #tpu.memory_space<vmem>>, vector<18x18x32xf32>
    tpu.vector_store %arg13[%c0_15, %c0_16, %c0_17], %33 {strides = array<i32>} : memref<18x18x32xf32, #tpu.memory_space<vmem>>, vector<18x18x32xf32>,
    %c1 = arith.constant 1 : index
    %c1_18 = arith.constant 1 : index
    %c0_19 = arith.constant 0 : index
    %35 = vector.load %arg13[%c1, %c1_18, %c0_19] : memref<18x18x32xf32, #tpu.memory_space<vmem>>, vector<16x16x32xf32>
    tpu.vector_store %arg13[%c1, %c1_18, %c0_19], %32 {strides = array<i32>} : memref<18x18x32xf32, #tpu.memory_space<vmem>>, vector<16x16x32xf32>,
    %c0_20 = arith.constant 0 : index
    %c0_21 = arith.constant 0 : index
    %c0_22 = arith.constant 0 : index
    %36 = vector.load %arg13[%c0_20, %c0_21, %c0_22] : memref<18x18x32xf32, #tpu.memory_space<vmem>>, vector<18x18x32xf32>
    %37 = vector.extract_strided_slice %36 {offsets = [0, 0, 0], sizes = [16, 16, 32], strides = [1, 1, 1]} : vector<18x18x32xf32> to vector<16x16x32xf32>
    %38 = vector.shape_cast %37 : vector<16x16x32xf32> to vector<256x32xf32>
    %39 = vector.extract_strided_slice %36 {offsets = [0, 1, 0], sizes = [16, 16, 32], strides = [1, 1, 1]} : vector<18x18x32xf32> to vector<16x16x32xf32>
    %40 = vector.shape_cast %39 : vector<16x16x32xf32> to vector<256x32xf32>
    %41 = vector.extract_strided_slice %36 {offsets = [0, 2, 0], sizes = [16, 16, 32], strides = [1, 1, 1]} : vector<18x18x32xf32> to vector<16x16x32xf32>
    %42 = vector.shape_cast %41 : vector<16x16x32xf32> to vector<256x32xf32>
    %43 = vector.extract_strided_slice %36 {offsets = [1, 0, 0], sizes = [16, 16, 32], strides = [1, 1, 1]} : vector<18x18x32xf32> to vector<16x16x32xf32>
    %44 = vector.shape_cast %43 : vector<16x16x32xf32> to vector<256x32xf32>
    %45 = vector.extract_strided_slice %36 {offsets = [1, 1, 0], sizes = [16, 16, 32], strides = [1, 1, 1]} : vector<18x18x32xf32> to vector<16x16x32xf32>
    %46 = vector.shape_cast %45 : vector<16x16x32xf32> to vector<256x32xf32>
    %47 = vector.extract_strided_slice %36 {offsets = [1, 2, 0], sizes = [16, 16, 32], strides = [1, 1, 1]} : vector<18x18x32xf32> to vector<16x16x32xf32>
    %48 = vector.shape_cast %47 : vector<16x16x32xf32> to vector<256x32xf32>
    %49 = vector.extract_strided_slice %36 {offsets = [2, 0, 0], sizes = [16, 16, 32], strides = [1, 1, 1]} : vector<18x18x32xf32> to vector<16x16x32xf32>
    %50 = vector.shape_cast %49 : vector<16x16x32xf32> to vector<256x32xf32>
    %51 = vector.extract_strided_slice %36 {offsets = [2, 1, 0], sizes = [16, 16, 32], strides = [1, 1, 1]} : vector<18x18x32xf32> to vector<16x16x32xf32>
    %52 = vector.shape_cast %51 : vector<16x16x32xf32> to vector<256x32xf32>
    %53 = vector.extract_strided_slice %36 {offsets = [2, 2, 0], sizes = [16, 16, 32], strides = [1, 1, 1]} : vector<18x18x32xf32> to vector<16x16x32xf32>
    %54 = vector.shape_cast %53 : vector<16x16x32xf32> to vector<256x32xf32>
    %55 = tpu.concatenate %38, %40, %42, %44, %46, %48, %50, %52, %54 in 1 : vector<256x32xf32>, vector<256x32xf32>, vector<256x32xf32>, vector<256x32xf32>, vector<256x32xf32>, vector<256x32xf32>, vector<256x32xf32>, vector<256x32xf32>, vector<256x32xf32> -> vector<256x288xf32>
    %56 = arith.truncf %55 : vector<256x288xf32> to vector<256x288xbf16>
    %c0_23 = arith.constant 0 : index
    %c0_24 = arith.constant 0 : index
    %57 = vector.load %arg5[%c0_23, %c0_24] : memref<288x64xbf16, #tpu.memory_space<vmem>>, vector<288x64xbf16>
    %cst_25 = arith.constant dense<0.000000e+00> : vector<256x64xf32>
    %58 = tpu.matmul %56, %57, %cst_25 {dimension_numbers = #tpu.dot_dimension_numbers<[1], [0], [0], [1], [0, 0, 1, 1], [], []>} : vector<256x288xbf16>, vector<288x64xbf16>, vector<256x64xf32> -> vector<256x64xf32>
    %59 = vector.shape_cast %58 : vector<256x64xf32> to vector<16x16x64xf32>
    %c0_26 = arith.constant 0 : index
    %c0_27 = arith.constant 0 : index
    %60 = vector.load %arg6[%c0_26, %c0_27] : memref<1x64xf32, #tpu.memory_space<vmem>>, vector<1x64xf32>
    %61 = vector.shape_cast %60 : vector<1x64xf32> to vector<1x1x64xf32>
    %62 = vector.broadcast %61 : vector<1x1x64xf32> to vector<16x16x64xf32>
    %63 = arith.addf %59, %62 : vector<16x16x64xf32>
    %c0_28 = arith.constant 0 : index
    %c0_29 = arith.constant 0 : index
    %64 = vector.load %arg7[%c0_28, %c0_29] : memref<1x64xf32, #tpu.memory_space<vmem>>, vector<1x64xf32>
    %c0_30 = arith.constant 0 : index
    %c0_31 = arith.constant 0 : index
    %65 = vector.load %arg8[%c0_30, %c0_31] : memref<1x64xf32, #tpu.memory_space<vmem>>, vector<1x64xf32>
    %c0_32 = arith.constant 0 : index
    %c0_33 = arith.constant 0 : index
    %66 = vector.load %arg9[%c0_32, %c0_33] : memref<64x64xf32, #tpu.memory_space<vmem>>, vector<64x64xf32>
    %cst_34 = arith.constant dense<0.000000e+00> : vector<64xf32>
    %67 = vector.multi_reduction <add>, %63, %cst_34 [0, 1] : vector<16x16x64xf32> to vector<64xf32>
    %68 = vector.shape_cast %67 : vector<64xf32> to vector<1x64xf32>
    %cst_35 = arith.constant dense<0.000000e+00> : vector<1x64xf32>
    %69 = tpu.matmul %68, %66, %cst_35 {dimension_numbers = #tpu.dot_dimension_numbers<[1], [0], [0], [1], [0, 0, 1, 1], [], []>, precision = #tpu.contract_precision<fp32>} : vector<1x64xf32>, vector<64x64xf32>, vector<1x64xf32> -> vector<1x64xf32>
    %70 = vector.shape_cast %69 : vector<1x64xf32> to vector<1x1x64xf32>
    %71 = vector.broadcast %70 : vector<1x1x64xf32> to vector<16x16x64xf32>
    %72 = arith.subf %63, %71 : vector<16x16x64xf32>
    %73 = arith.mulf %72, %72 : vector<16x16x64xf32>
    %cst_36 = arith.constant dense<0.000000e+00> : vector<64xf32>
    %74 = vector.multi_reduction <add>, %73, %cst_36 [0, 1] : vector<16x16x64xf32> to vector<64xf32>
    %75 = vector.shape_cast %74 : vector<64xf32> to vector<1x64xf32>
    %cst_37 = arith.constant dense<0.000000e+00> : vector<1x64xf32>
    %76 = tpu.matmul %75, %66, %cst_37 {dimension_numbers = #tpu.dot_dimension_numbers<[1], [0], [0], [1], [0, 0, 1, 1], [], []>, precision = #tpu.contract_precision<fp32>} : vector<1x64xf32>, vector<64x64xf32>, vector<1x64xf32> -> vector<1x64xf32>
    %cst_38 = arith.constant 9.99999997E-7 : f32
    %77 = vector.broadcast %cst_38 : f32 to vector<1x64xf32>
    %78 = arith.addf %76, %77 : vector<1x64xf32>
    %79 = math.rsqrt %78 : vector<1x64xf32>
    %80 = vector.shape_cast %79 : vector<1x64xf32> to vector<1x1x64xf32>
    %81 = vector.broadcast %80 : vector<1x1x64xf32> to vector<16x16x64xf32>
    %82 = arith.mulf %72, %81 : vector<16x16x64xf32>
    %83 = vector.shape_cast %64 : vector<1x64xf32> to vector<1x1x64xf32>
    %84 = vector.broadcast %83 : vector<1x1x64xf32> to vector<16x16x64xf32>
    %85 = arith.mulf %82, %84 : vector<16x16x64xf32>
    %86 = vector.shape_cast %65 : vector<1x64xf32> to vector<1x1x64xf32>
    %87 = vector.broadcast %86 : vector<1x1x64xf32> to vector<16x16x64xf32>
    %88 = arith.addf %85, %87 : vector<16x16x64xf32>
    %89 = arith.negf %88 : vector<16x16x64xf32>
    %90 = math.exp %89 : vector<16x16x64xf32>
    %cst_39 = arith.constant 1.000000e+00 : f32
    %91 = vector.broadcast %cst_39 : f32 to vector<16x16x64xf32>
    %92 = arith.addf %91, %90 : vector<16x16x64xf32>
    %93 = arith.divf %91, %92 : vector<16x16x64xf32>
    %94 = arith.mulf %88, %93 : vector<16x16x64xf32>
    %cst_40 = arith.constant 0.000000e+00 : f32
    %95 = vector.broadcast %cst_40 : f32 to vector<18x18x64xf32>
    %c0_41 = arith.constant 0 : index
    %c0_42 = arith.constant 0 : index
    %c0_43 = arith.constant 0 : index
    %96 = vector.load %arg14[%c0_41, %c0_42, %c0_43] : memref<18x18x64xf32, #tpu.memory_space<vmem>>, vector<18x18x64xf32>
    tpu.vector_store %arg14[%c0_41, %c0_42, %c0_43], %95 {strides = array<i32>} : memref<18x18x64xf32, #tpu.memory_space<vmem>>, vector<18x18x64xf32>,
    %c1_44 = arith.constant 1 : index
    %c1_45 = arith.constant 1 : index
    %c0_46 = arith.constant 0 : index
    %97 = vector.load %arg14[%c1_44, %c1_45, %c0_46] : memref<18x18x64xf32, #tpu.memory_space<vmem>>, vector<16x16x64xf32>
    tpu.vector_store %arg14[%c1_44, %c1_45, %c0_46], %94 {strides = array<i32>} : memref<18x18x64xf32, #tpu.memory_space<vmem>>, vector<16x16x64xf32>,
    %c0_47 = arith.constant 0 : index
    %c0_48 = arith.constant 0 : index
    %c0_49 = arith.constant 0 : index
    %98 = vector.load %arg14[%c0_47, %c0_48, %c0_49] : memref<18x18x64xf32, #tpu.memory_space<vmem>>, vector<18x18x64xf32>
    %99 = vector.extract_strided_slice %98 {offsets = [0, 0, 0], sizes = [16, 16, 64], strides = [1, 1, 1]} : vector<18x18x64xf32> to vector<16x16x64xf32>
    %100 = vector.shape_cast %99 : vector<16x16x64xf32> to vector<256x64xf32>
    %101 = vector.extract_strided_slice %98 {offsets = [0, 1, 0], sizes = [16, 16, 64], strides = [1, 1, 1]} : vector<18x18x64xf32> to vector<16x16x64xf32>
    %102 = vector.shape_cast %101 : vector<16x16x64xf32> to vector<256x64xf32>
    %103 = vector.extract_strided_slice %98 {offsets = [0, 2, 0], sizes = [16, 16, 64], strides = [1, 1, 1]} : vector<18x18x64xf32> to vector<16x16x64xf32>
    %104 = vector.shape_cast %103 : vector<16x16x64xf32> to vector<256x64xf32>
    %105 = vector.extract_strided_slice %98 {offsets = [1, 0, 0], sizes = [16, 16, 64], strides = [1, 1, 1]} : vector<18x18x64xf32> to vector<16x16x64xf32>
    %106 = vector.shape_cast %105 : vector<16x16x64xf32> to vector<256x64xf32>
    %107 = vector.extract_strided_slice %98 {offsets = [1, 1, 0], sizes = [16, 16, 64], strides = [1, 1, 1]} : vector<18x18x64xf32> to vector<16x16x64xf32>
    %108 = vector.shape_cast %107 : vector<16x16x64xf32> to vector<256x64xf32>
    %109 = vector.extract_strided_slice %98 {offsets = [1, 2, 0], sizes = [16, 16, 64], strides = [1, 1, 1]} : vector<18x18x64xf32> to vector<16x16x64xf32>
    %110 = vector.shape_cast %109 : vector<16x16x64xf32> to vector<256x64xf32>
    %111 = vector.extract_strided_slice %98 {offsets = [2, 0, 0], sizes = [16, 16, 64], strides = [1, 1, 1]} : vector<18x18x64xf32> to vector<16x16x64xf32>
    %112 = vector.shape_cast %111 : vector<16x16x64xf32> to vector<256x64xf32>
    %113 = vector.extract_strided_slice %98 {offsets = [2, 1, 0], sizes = [16, 16, 64], strides = [1, 1, 1]} : vector<18x18x64xf32> to vector<16x16x64xf32>
    %114 = vector.shape_cast %113 : vector<16x16x64xf32> to vector<256x64xf32>
    %115 = vector.extract_strided_slice %98 {offsets = [2, 2, 0], sizes = [16, 16, 64], strides = [1, 1, 1]} : vector<18x18x64xf32> to vector<16x16x64xf32>
    %116 = vector.shape_cast %115 : vector<16x16x64xf32> to vector<256x64xf32>
    %117 = tpu.concatenate %100, %102, %104, %106, %108, %110, %112, %114, %116 in 1 : vector<256x64xf32>, vector<256x64xf32>, vector<256x64xf32>, vector<256x64xf32>, vector<256x64xf32>, vector<256x64xf32>, vector<256x64xf32>, vector<256x64xf32>, vector<256x64xf32> -> vector<256x576xf32>
    %118 = vector.shape_cast %1 : vector<16x16x32xf32> to vector<256x32xf32>
    %119 = tpu.concatenate %117, %118 in 1 : vector<256x576xf32>, vector<256x32xf32> -> vector<256x608xf32>
    %120 = arith.truncf %119 : vector<256x608xf32> to vector<256x608xbf16>
    %c0_50 = arith.constant 0 : index
    %c0_51 = arith.constant 0 : index
    %121 = vector.load %arg10[%c0_50, %c0_51] : memref<608x64xbf16, #tpu.memory_space<vmem>>, vector<608x64xbf16>
    %cst_52 = arith.constant dense<0.000000e+00> : vector<256x64xf32>
    %122 = tpu.matmul %120, %121, %cst_52 {dimension_numbers = #tpu.dot_dimension_numbers<[1], [0], [0], [1], [0, 0, 1, 1], [], []>} : vector<256x608xbf16>, vector<608x64xbf16>, vector<256x64xf32> -> vector<256x64xf32>
    %123 = vector.shape_cast %122 : vector<256x64xf32> to vector<16x16x64xf32>
    %c0_53 = arith.constant 0 : index
    %c0_54 = arith.constant 0 : index
    %124 = vector.load %arg11[%c0_53, %c0_54] : memref<1x64xf32, #tpu.memory_space<vmem>>, vector<1x64xf32>
    %125 = vector.shape_cast %124 : vector<1x64xf32> to vector<1x1x64xf32>
    %126 = vector.broadcast %125 : vector<1x1x64xf32> to vector<16x16x64xf32>
    %127 = arith.addf %123, %126 : vector<16x16x64xf32>
    %c0_55 = arith.constant 0 : index
    %c0_56 = arith.constant 0 : index
    %c0_57 = arith.constant 0 : index
    %c0_58 = arith.constant 0 : index
    %128 = vector.load %arg12[%c0_55, %c0_56, %c0_57, %c0_58] : memref<1x16x16x64xf32, #tpu.memory_space<vmem>>, vector<1x16x16x64xf32>
    %129 = vector.shape_cast %128 : vector<1x16x16x64xf32> to vector<16x16x64xf32>
    %130 = vector.shape_cast %127 : vector<16x16x64xf32> to vector<1x16x16x64xf32>
    tpu.vector_store %arg12[%c0_55, %c0_56, %c0_57, %c0_58], %130 {strides = array<i32>} : memref<1x16x16x64xf32, #tpu.memory_space<vmem>>, vector<1x16x16x64xf32>,
    return
  }
  func.func @transform_0(%arg0: i32) -> (i32, i32, i32, i32) {
    %c0_i32 = arith.constant 0 : i32
    %c0_i32_0 = arith.constant 0 : i32
    %c0_i32_1 = arith.constant 0 : i32
    %c0_i32_2 = arith.constant 0 : i32
    return %arg0, %c0_i32, %c0_i32_0, %c0_i32_1 : i32, i32, i32, i32
  }
  func.func @transform_1(%arg0: i32) -> (i32, i32) {
    %c0_i32 = arith.constant 0 : i32
    %c0_i32_0 = arith.constant 0 : i32
    %c0_i32_1 = arith.constant 0 : i32
    return %c0_i32, %c0_i32_0 : i32, i32
  }
  func.func @transform_2(%arg0: i32) -> (i32, i32) {
    %c0_i32 = arith.constant 0 : i32
    %c0_i32_0 = arith.constant 0 : i32
    %c0_i32_1 = arith.constant 0 : i32
    return %c0_i32, %c0_i32_0 : i32, i32
  }
  func.func @transform_3(%arg0: i32) -> (i32, i32) {
    %c0_i32 = arith.constant 0 : i32
    %c0_i32_0 = arith.constant 0 : i32
    %c0_i32_1 = arith.constant 0 : i32
    return %c0_i32, %c0_i32_0 : i32, i32
  }
  func.func @transform_4(%arg0: i32) -> (i32, i32) {
    %c0_i32 = arith.constant 0 : i32
    %c0_i32_0 = arith.constant 0 : i32
    %c0_i32_1 = arith.constant 0 : i32
    return %c0_i32, %c0_i32_0 : i32, i32
  }
  func.func @transform_5(%arg0: i32) -> (i32, i32) {
    %c0_i32 = arith.constant 0 : i32
    %c0_i32_0 = arith.constant 0 : i32
    %c0_i32_1 = arith.constant 0 : i32
    return %c0_i32, %c0_i32_0 : i32, i32
  }
  func.func @transform_6(%arg0: i32) -> (i32, i32) {
    %c0_i32 = arith.constant 0 : i32
    %c0_i32_0 = arith.constant 0 : i32
    %c0_i32_1 = arith.constant 0 : i32
    return %c0_i32, %c0_i32_0 : i32, i32
  }
  func.func @transform_7(%arg0: i32) -> (i32, i32) {
    %c0_i32 = arith.constant 0 : i32
    %c0_i32_0 = arith.constant 0 : i32
    %c0_i32_1 = arith.constant 0 : i32
    return %c0_i32, %c0_i32_0 : i32, i32
  }
  func.func @transform_8(%arg0: i32) -> (i32, i32) {
    %c0_i32 = arith.constant 0 : i32
    %c0_i32_0 = arith.constant 0 : i32
    %c0_i32_1 = arith.constant 0 : i32
    return %c0_i32, %c0_i32_0 : i32, i32
  }
  func.func @transform_9(%arg0: i32) -> (i32, i32) {
    %c0_i32 = arith.constant 0 : i32
    %c0_i32_0 = arith.constant 0 : i32
    %c0_i32_1 = arith.constant 0 : i32
    return %c0_i32, %c0_i32_0 : i32, i32
  }
  func.func @transform_10(%arg0: i32) -> (i32, i32) {
    %c0_i32 = arith.constant 0 : i32
    %c0_i32_0 = arith.constant 0 : i32
    %c0_i32_1 = arith.constant 0 : i32
    return %c0_i32, %c0_i32_0 : i32, i32
  }
  func.func @transform_11(%arg0: i32) -> (i32, i32, i32, i32) {
    %c0_i32 = arith.constant 0 : i32
    %c0_i32_0 = arith.constant 0 : i32
    %c0_i32_1 = arith.constant 0 : i32
    %c0_i32_2 = arith.constant 0 : i32
    return %arg0, %c0_i32, %c0_i32_0, %c0_i32_1 : i32, i32, i32, i32
  }
}

</mosaic_0001>

<bundles_post_ra>
// kernel: tpu_custom_call.1
= control target key start
LH: loop header
LB: loop body
LE: loop exit
PB: predicated region body
PF: predicated region fallthrough
CT: control target
= control target key end

     0   :  { %s15394_s0 = inlined_call_operand.vmem [shape: f32[2,16,16,32], index: 0, kind: input, shape index: {}]   ;;  %s15395_s1 = inlined_call_operand.vmem [shape: f32[1,32], index: 1, kind: input, shape index: {}]   ;;  %s15396_s2 = inlined_call_operand.vmem [shape: f32[1,32], index: 2, kind: input, shape index: {}]   ;;  %s15397_s3 = inlined_call_operand.hbm [shape: f32[32,32], index: 3, kind: input, shape index: {}]   ;;  %s15398_s4 = inlined_call_operand.vmem [shape: bf16[288,64], index: 4, kind: input, shape index: {}]   ;;  %s15399_s5 = inlined_call_operand.hbm [shape: f32[1,64], index: 5, kind: input, shape index: {}]   ;;  %s15400_s6 = inlined_call_operand.hbm [shape: f32[1,64], index: 6, kind: input, shape index: {}]   ;;  %s15401_s7 = inlined_call_operand.hbm [shape: f32[1,64], index: 7, kind: input, shape index: {}]   ;;  %s15402_s8 = inlined_call_operand.vmem [shape: f32[64,64], index: 8, kind: input, shape index: {}]   ;;  %s15403_s9 = inlined_call_operand.vmem [shape: bf16[608,64], index: 9, kind: input, shape index: {}]   ;;  %s15404_s10 = inlined_call_operand.vmem [shape: f32[1,64], index: 10, kind: input, shape index: {}]   ;;  %s15405_s11 = inlined_call_operand.hbm [shape: f32[2,16,16,64], index: 11, kind: output, shape index: {}]  }
   0x1   :  { %15566 = sst [smem:[#allocation77_spill]] %s15399_s5 }
   0x2   :  { %16 = vsyncpa [#allocation5], 0 }
   0x3   :  { %17 = vsyncpa [#allocation8], 0 }
   0x4   :  { %18 = vsyncpa [#allocation11], 0 }
   0x5   :  { %19 = vsyncpa [#allocation6], 0 }
   0x6   :  { %21 = vsyncpa [#allocation6 + $0x1], 0  ;;  %s10509_s17 = smov 0   ;;  %s10511_s18 = smov 0  }
   0x7   :  { %s10513_s19 = smov 0   ;;  %s10515_s20 = smov 0  }
   0x8 LB: > { %15567 = sst [smem:[#allocation17_spill]] %s10420_s17  ;;  %s10530_s21 = sadd.s32 4294967295, %s10432_s20   ;;  %s10432_s20 = sphi %s10515_s20, %s15852_s20   ;;  %s10428_s19 = sphi %s10513_s19, %s15854_s19   ;;  %s10424_s18 = sphi %s10511_s18, %s15856_s18   ;;  %s10420_s17 = sphi %s10509_s17, %s15855_s17  }
   0x9   : > { %15568 = sst [smem:[#allocation18_spill]] %s10428_s19  ;;  %s7536_s22 = sadd.s32 4294967294, %s10432_s20  }
   0xa   : > { %s10534_s23 = sadd.s32 1, %s10432_s20   ;;  %s270_s24 = sadd.s32 1, %s10428_s19 }
   0xb   : > { %15569 = sst [smem:[#allocation19_spill]] %s10534_s23  ;;  %s267_s25 = ssub.s32 %s10432_s20, %s10534_s23 }
   0xc   : > { %p280_p0 = scmp.ne.s32.totalorder %s10428_s19, %s10424_s18  ;;  %p268_p1 = scmp.eq.s32.totalorder %s267_s25, 0 }
   0xd   : > { %p281_p2 = scmp.eq.s32.totalorder %s10530_s21, 1  ;;  %p286_p3 = scmp.ne.s32.totalorder %s10424_s18, %s10420_s17 }
   0xe   : > { %p287_p4 = scmp.eq.s32.totalorder %s7536_s22, 1  ;;  %p7537_p7 = scmp.ge.s32.totalorder %s10432_s20, 1 }
   0xf   : > { %s10545_s26 = scalar_select %p268_p1, %s10428_s19, %s270_s24  }
  0x10   : > { %p10547_p5 = por %p281_p2, %p280_p0  ;;  %p10551_p6 = por %p287_p4, %p286_p3 }
  0x11   : > { %15570 = sst [smem:[#allocation20_spill]] %s10545_s26  ;;  %p294_p8 = scmp.lt.s32.totalorder %s10432_s20, 3 }
  0x12   : > { %s15571_s27 = scalar_select %p10547_p5, 1, 0 }
  0x13   : > { %s15572_s28 = scalar_select %p10551_p6, 1, 0 }
  0x14   : > { %p15409_p9 = scmp.eq.s32.totalorder %s10530_s21, 0  ;;  %p10558_p10 = pnand %p7537_p7, %p294_p8 }
  0x15   : > { %15573 = sst [smem:[#allocation21_spill]] %s15572_s28  ;;  %s10434_s30 = smov [#allocation7]  }
  0x16   : > { %s15574_s29 = scalar_select %p10558_p10, 1, 0 }
  0x17   : > { %s329_s12 = sshll.u32 %s10434_s30, 4  ;;  %p8975_p11 = pneg %p10558_p10  ;;  %s330_s12 = int_to_ptr.vmem [resolvable:$true] %s329_s12 }
  0x18   : > { %s10435_s13 = smov [#allocation4]   ;;  %s10436_s16 = smov [#allocation9]  }
  0x19   : > { %s312_s14 = sshll.u32 %s10435_s13, 4  ;;  %p10566_p12 = pnand %p15409_p9, %p8975_p11  ;;  %s10570_s14 = int_to_ptr.vmem [resolvable:$true] %s312_s14 }
  0x1a   : > { %s10572_s22 = sshll.u32 %s10436_s16, 4  ;;  %s15576_s5 = sld [smem:[#allocation77_spill]]  ;;  %s341_s22 = int_to_ptr.vmem [resolvable:$true] %s10572_s22 }
  0x1b   : > { %p10582_p0 = pneg %p10566_p12 }
  0x20   : > { %s10246_s30 = scalar_lea.hbm %s15576_s5, 16 }
  0x21   : > { %p10247_p13 = scmp.ne.s32.totalorder %s15576_s5, %s10246_s30  ;;  %p10253_p3 = scmp.lt.u32.totalorder %s10246_s30, %s15576_s5 }
  0x23   : > { %p10249_p1 = pnand %p10582_p0, %p10247_p13 }
  0x25   : > { %p10250_p2 = pneg %p10249_p1 }
  0x27   : > { %p10255_p4 = pnand %p10253_p3, %p10250_p2 }
  0x29   : > { %10258 = shalt.err (!%p10255_p4)
}
  0x2a   : > { %s10259_s24 = scalar_lea.vmem %s330_s12, 16  ;;  %s10266_s19 = scalar_lea.vmem %s330_s12, 32 }
  0x2b   : > { %p10260_p7 = scmp.ne.s32.totalorder %s330_s12, %s10259_s24  ;;  %p10267_p9 = scmp.lt.s32.totalorder %s330_s12, %s330_s12 }
  0x2c   : > { %p10268_p6 = scmp.lt.s32.totalorder %s10266_s19, %s10259_s24 }
  0x2d   : > { %p10262_p8 = pnand %p10260_p7, %p10582_p0 }
  0x2e   : > { %p10269_p5 = por %p10268_p6, %p10267_p9 }
  0x2f   : > { %p10263_p11 = pneg %p10262_p8 }
  0x31   : > { %p10270_p10 = pnand %p10269_p5, %p10263_p11 }
  0x33   : > { %10273 = shalt.err (!%p10270_p10)
}
  0x34   : > { %8981 = dma.hbm_to_vmem [thread:$0]  (!%p10566_p12), %s15576_s5, 16, %s330_s12, [#allocation8]  }
  0x35   : > { %s10274_s16 = scalar_lea.hbm %s15397_s3, 512 }
  0x36   : > { %p10275_p13 = scmp.ne.s32.totalorder %s15397_s3, %s10274_s16  ;;  %p10281_p5 = scmp.lt.u32.totalorder %s10274_s16, %s15397_s3 }
  0x38   : > { %p10277_p1 = pnand %p10275_p13, %p10582_p0 }
  0x3a   : > { %p10278_p6 = pneg %p10277_p1 }
  0x3c   : > { %p10283_p9 = pnand %p10281_p5, %p10278_p6 }
  0x3e   : > { %10286 = shalt.err (!%p10283_p9)
}
  0x3f   : > { %s10287_s12 = scalar_lea.vmem %s10570_s14, 512  ;;  %p10295_p4 = scmp.lt.s32.totalorder %s10570_s14, %s10570_s14 }
  0x40   : > { %p10288_p10 = scmp.ne.s32.totalorder %s10570_s14, %s10287_s12  ;;  %p10296_p7 = scmp.lt.s32.totalorder %s10287_s12, %s10287_s12 }
  0x42   : > { %p10290_p2 = pnand %p10288_p10, %p10582_p0  ;;  %p10297_p8 = por %p10296_p7, %p10295_p4 }
  0x44   : > { %p10291_p3 = pneg %p10290_p2 }
  0x46   : > { %p10298_p11 = pnand %p10297_p8, %p10291_p3 }
  0x48   : > { %10301 = shalt.err (!%p10298_p11)
}
  0x49   : > { %s10437_s17 = smov 128   ;;  %s10438_s28 = smov 8  }
  0x4a   : > { %8978 = dma.hbm_to_vmem [thread:$0]  (!%p10566_p12), %s15397_s3, 512, %s10570_s14, [#allocation5], %s10437_s17, %s10437_s17, %s10438_s28  }
  0x4b   : > { %s10302_s16 = scalar_lea.hbm %s15400_s6, 16 }
  0x4c   : > { %p10303_p13 = scmp.ne.s32.totalorder %s15400_s6, %s10302_s16  ;;  %p10309_p5 = scmp.lt.u32.totalorder %s10302_s16, %s15400_s6 }
  0x4e   : > { %p10305_p1 = pnand %p10303_p13, %p10582_p0 }
  0x50   : > { %p10306_p6 = pneg %p10305_p1 }
  0x52   : > { %p10311_p9 = pnand %p10309_p5, %p10306_p6 }
  0x54   : > { %10314 = shalt.err (!%p10311_p9)
}
  0x55   : > { %s10315_s26 = scalar_lea.vmem %s341_s22, 16  ;;  %s10322_s14 = scalar_lea.vmem %s341_s22, 32 }
  0x56   : > { %p10316_p10 = scmp.ne.s32.totalorder %s341_s22, %s10315_s26  ;;  %p10323_p4 = scmp.lt.s32.totalorder %s341_s22, %s341_s22 }
  0x57   : > { %p10324_p7 = scmp.lt.s32.totalorder %s10322_s14, %s10315_s26 }
  0x58   : > { %p10318_p2 = pnand %p10316_p10, %p10582_p0 }
  0x59   : > { %p10325_p8 = por %p10324_p7, %p10323_p4 }
  0x5a   : > { %p10319_p3 = pneg %p10318_p2 }
  0x5c   : > { %p10326_p11 = pnand %p10325_p8, %p10319_p3 }
  0x5e   : > { %10329 = shalt.err (!%p10326_p11)
}
  0x5f   : > { %8984 = dma.hbm_to_vmem [thread:$0]  (!%p10566_p12), %s15400_s6, 16, %s341_s22, [#allocation8]  }
  0x60   : > { %s10439_s5 = smov [#allocation10]   ;;  %s10330_s16 = scalar_lea.hbm %s15401_s7, 16 }
  0x61   : > { %s351_s25 = sshll.u32 %s10439_s5, 4  ;;  %p10331_p13 = scmp.ne.s32.totalorder %s15401_s7, %s10330_s16  ;;  %s352_s25 = int_to_ptr.vmem [resolvable:$true] %s351_s25 }
  0x62   : > { %p10337_p5 = scmp.lt.u32.totalorder %s10330_s16, %s15401_s7 }
  0x63   : > { %p10333_p1 = pnand %p10331_p13, %p10582_p0 }
  0x65   : > { %p10334_p6 = pneg %p10333_p1 }
  0x67   : > { %p10339_p9 = pnand %p10337_p5, %p10334_p6 }
  0x69   : > { %10342 = shalt.err (!%p10339_p9)
}
  0x6a   : > { %s10343_s22 = scalar_lea.vmem %s352_s25, 16  ;;  %s10350_s14 = scalar_lea.vmem %s352_s25, 32 }
  0x6b   : > { %p10344_p10 = scmp.ne.s32.totalorder %s352_s25, %s10343_s22  ;;  %p10351_p4 = scmp.lt.s32.totalorder %s352_s25, %s352_s25 }
  0x6c   : > { %p10352_p7 = scmp.lt.s32.totalorder %s10350_s14, %s10343_s22 }
  0x6d   : > { %p10346_p2 = pnand %p10344_p10, %p10582_p0 }
  0x6e   : > { %p10353_p8 = por %p10352_p7, %p10351_p4 }
  0x6f   : > { %p10347_p3 = pneg %p10346_p2 }
  0x71   : > { %p10354_p11 = pnand %p10353_p8, %p10347_p3 }
  0x73   : > { %10357 = shalt.err (!%p10354_p11)
}
  0x74   : > { %8987 = dma.hbm_to_vmem [thread:$0]  (!%p10566_p12), %s15401_s7, 16, %s352_s25, [#allocation11]  }
  0x75   : > { %p15578_p13 = scmp.ne.s32.totalorder %s15574_s29, 0 }
  0x77   : > { %381 = sbr.rel (%p15578_p13) target bundleno = 2756 (0xac4), region = 64 }
  0x7e   : > { %p15579_p1 = scmp.eq.s32.totalorder %s10530_s21, 0 }
  0x80   : > { %10403 = dma.done.wait (%p15579_p1), [#allocation5], 512   ;;  %p15580_p0 = pmov %p15579_p1 }
  0x82   : > { %10405 = vsyncadd (%p15580_p0), [#allocation5], 4294966784  ;;  %p15581_p6 = pmov %p15580_p0 }
  0x83   : > { %p15582_p5 = pmov %p15580_p0 }
  0x84   : > { %10407 = dma.done.wait (%p15581_p6), [#allocation8], 32  }
  0x85   : > { %10409 = vsyncadd (%p15582_p5), [#allocation8], 4294967264  ;;  %p15583_p9 = pmov %p15580_p0 }
  0x86   : > { %p15584_p12 = pmov %p15580_p0 }
  0x87   : > { %10411 = dma.done.wait (%p15583_p9), [#allocation11], 16  }
  0x88   : > { %10413 = vsyncadd (%p15584_p12), [#allocation11], 4294967280  ;;  %p433_p10 = scmp.lt.s32.totalorder %s10530_s21, 1  ;;  %v15421_v0 = vmov 0.0|0.0   ;;  %vm10441_vm0 = vmmov 0   ;;  %v15414_v1 = vmov 0.0  }
  0x89   : > { %8706 = vmatprep.subr.bf16.mxu0 %v15421_v0  ;;  %8279 = vmatprep.mubr.msk.f32.mxu0 %vm10441_vm0, %v15414_v1  ;;  %vm477_vm1 = vcmask 261120   ;;  %v473_v2 = vld [vmem:[#allocation4] sm:$0xff]  ;;  %v474_v3 = vld [vmem:[#allocation4 + $0x8] sm:$0xff]  ;;  %v475_v4 = vld [vmem:[#allocation4 + $0x10] sm:$0xff]  ;;  %s10443_s23 = smov 64   ;;  %vm1999_vm2 = vcmask 254976  }
  0x8a   : > { %s10677_s29 = scalar_select %p433_p10, %s10530_s21, 1  ;;  %1997 = vst.msk [vmem:[#allocation2] sm:$0xff] %vm477_vm1, %v15414_v1  ;;  %1998 = vst.msk [vmem:[#allocation2 + $0x8] sm:$0xff] %vm477_vm1, %v15414_v1  ;;  %8700 = vmatprep.subr.bf16.mxu1 %v15421_v0  ;;  %8268 = vmatprep.mubr.msk.f32.mxu1 %vm10441_vm0, %v15414_v1  ;;  %v551_v5 = vand.u32 4294901760, %v473_v2  ;;  %v554_v6 = vand.u32 4294901760, %v474_v3  ;;  %v476_v7 = vld [vmem:[#allocation4 + $0x18] sm:$0xff] }
  0x8b   : > { %2001 = vst.msk [vmem:[#allocation2 + $0x18] sm:$0xff] %vm477_vm1, %v15414_v1  ;;  %2002 = vst.msk [vmem:[#allocation2 + $0x20] sm:$0xff] %vm477_vm1, %v15414_v1  ;;  %v557_v8 = vand.u32 4294901760, %v475_v4  ;;  %v560_v11 = vand.u32 4294901760, %v476_v7  ;;  %vm2187_vm3 = vcmask 1046528   ;;  %vm2268_vm4 = vcmask 1045504  }
  0x8c   : > { %2004 = vst.msk [vmem:[#allocation2 + $0x30] sm:$0xff] %vm477_vm1, %v15414_v1  ;;  %2005 = vst.msk [vmem:[#allocation2 + $0x38] sm:$0xff] %vm477_vm1, %v15414_v1  ;;  %s7714_s15 = sshll.u32 %s10677_s29, 8  ;;  %v10773_v15 = vpack.c.bf16 %v554_v6, %v551_v5  ;;  %v10775_v16 = vsub.f32 %v473_v2, %v551_v5  ;;  %v10777_v17 = vsub.f32 %v474_v3, %v554_v6  ;;  %s10444_s30 = smov 32   ;;  %vm3047_vm5 = vcmask 523264  }
  0x8d   : > { %2007 = vst.msk [vmem:[#allocation2 + $0x48] sm:$0xff] %vm477_vm1, %v15414_v1  ;;  %2008 = vst.msk [vmem:[#allocation2 + $0x50] sm:$0xff] %vm477_vm1, %v15414_v1  ;;  %s10758_s25 = scalar_lea.vmem %s15394_s0, %s7714_s15  ;;  %v10779_v18 = vsub.f32 %v475_v4, %v557_v8  ;;  %v10784_v20 = vsub.f32 %v476_v7, %v560_v11  ;;  %v10802_v29 = vpack.c.bf16 %v560_v11, %v557_v8  ;;  %s10445_s28 = smov 96   ;;  %vm3080_vm6 = vcmask 785408  }
  0x8e   : > { %2010 = vst.msk [vmem:[#allocation2 + $0x60] sm:$0xff] %vm477_vm1, %v15414_v1  ;;  %2011 = vst.msk [vmem:[#allocation2 + $0x68] sm:$0xff] %vm477_vm1, %v15414_v1  ;;  %v10761_v9 = vld [vmem:[%s10758_s25] sm:$0xff]  ;;  %v10764_v10 = vld [vmem:[%s10758_s25 + $0x8] sm:$0xff]  ;;  %v632_v24 = vand.u32 4294901760, %v10775_v16  ;;  %v639_v25 = vand.u32 4294901760, %v10777_v17  ;;  %v10799_v28 = vpack.c.bf16 %v10777_v17, %v10775_v16  ;;  %8702 = vmatpush3.bf16.msra.mxu1 %v10773_v15 }
  0x8f   : > { %2013 = vst.msk [vmem:[#allocation2 + $0x78] sm:$0xff] %vm477_vm1, %v15414_v1  ;;  %2014 = vst.msk [vmem:[#allocation2 + $0x80] sm:$0xff] %vm477_vm1, %v15414_v1  ;;  %v10767_v12 = vld [vmem:[%s10758_s25 + $0x10] sm:$0xff]  ;;  %v478_v13 = vsel %vm477_vm1, %v10761_v9, 0.0  ;;  %v479_v14 = vsel %vm477_vm1, %v10764_v10, 0.0  ;;  %v10782_v19 = vld [vmem:[%s10758_s25 + $0x18] sm:$0xff]  ;;  %8703 = vmatprep.subr.bf16.mxu1 %v15421_v0  ;;  %v10856_v53 = vpack.c.bf16 %v10784_v20, %v10779_v18 }
  0x90   : > { %2016 = vst.msk [vmem:[#allocation2 + $0x90] sm:$0xff] %vm477_vm1, %v15414_v1  ;;  %2017 = vst.msk [vmem:[#allocation2 + $0x98] sm:$0xff] %vm477_vm1, %v15414_v1  ;;  %v10787_v21 = vld [vmem:[%s10758_s25 + $0x20] sm:$0xff]  ;;  %v480_v22 = vadd.f32 %v479_v14, %v478_v13  ;;  %v481_v23 = vsel %vm477_vm1, %v10767_v12, 0.0  ;;  %v646_v26 = vand.u32 4294901760, %v10779_v18  ;;  %v10795_v27 = vld [vmem:[%s10758_s25 + $0x28] sm:$0xff]  ;;  %v633_v34 = vsub.f32 %v10775_v16, %v632_v24 }
  0x91   : > { %2019 = vst.msk [vmem:[#allocation2 + $0xa8] sm:$0xff] %vm477_vm1, %v15414_v1  ;;  %2020 = vst.msk [vmem:[#allocation2 + $0xb0] sm:$0xff] %vm477_vm1, %v15414_v1  ;;  %v653_v30 = vand.u32 4294901760, %v10784_v20  ;;  %v10806_v31 = vld [vmem:[%s10758_s25 + $0x30] sm:$0xff]  ;;  %v483_v33 = vsel %vm477_vm1, %v10782_v19, 0.0  ;;  %v640_v35 = vsub.f32 %v10777_v17, %v639_v25  ;;  %v10821_v37 = vld [vmem:[%s10758_s25 + $0x38] sm:$0xff] }
  0x92   : > { %2022 = vst.msk [vmem:[#allocation2 + $0xc0] sm:$0xff] %vm477_vm1, %v15414_v1  ;;  %2023 = vst.msk [vmem:[#allocation2 + $0xc8] sm:$0xff] %vm477_vm1, %v15414_v1  ;;  %v482_v32 = vadd.f32 %v481_v23, %v480_v22  ;;  %v647_v36 = vsub.f32 %v10779_v18, %v646_v26  ;;  %v10824_v38 = vld [vmem:[%s10758_s25 + $0x40] sm:$0xff]  ;;  %v10827_v39 = vld [vmem:[%s10758_s25 + $0x48] sm:$0xff]  ;;  %v485_v40 = vsel %vm477_vm1, %v10787_v21, 0.0  ;;  %v487_v46 = vsel %vm477_vm1, %v10795_v27, 0.0  ;;  %8705 = vmatpush3.bf16.msra.mxu1 %v10802_v29 }
  0x93   : > { %2025 = vst.msk [vmem:[#allocation2 + $0xd8] sm:$0xff] %vm477_vm1, %v15414_v1  ;;  %2026 = vst.msk [vmem:[#allocation2 + $0xe0] sm:$0xff] %vm477_vm1, %v15414_v1  ;;  %v654_v41 = vsub.f32 %v10784_v20, %v653_v30  ;;  %v10835_v42 = vld [vmem:[%s10758_s25 + $0x50] sm:$0xff]  ;;  %v10838_v43 = vld [vmem:[%s10758_s25 + $0x58] sm:$0xff]  ;;  %v634_v47 = vand.u32 4294901760, %v633_v34  ;;  %v641_v48 = vand.u32 4294901760, %v640_v35  ;;  %8736 = vmatprep.subr.bf16.mxu1 %v15421_v0 }
  0x94   : > { %2028 = vst.msk [vmem:[#allocation2 + $0xf0] sm:$0xff] %vm477_vm1, %v15414_v1  ;;  %2029 = vst.msk [vmem:[#allocation2 + $0xf8] sm:$0xff] %vm477_vm1, %v15414_v1  ;;  %v10841_v44 = vld [vmem:[%s10758_s25 + $0x60] sm:$0xff]  ;;  %v484_v45 = vadd.f32 %v483_v33, %v482_v32  ;;  %v648_v49 = vand.u32 4294901760, %v647_v36  ;;  %v10846_v50 = vld [vmem:[%s10758_s25 + $0x68] sm:$0xff]  ;;  %v489_v63 = vsel %vm477_vm1, %v10806_v31, 0.0 }
  0x95   : > { %2031 = vst.msk [vmem:[#allocation2 + $0x108] sm:$0xff] %vm477_vm1, %v15414_v1  ;;  %2032 = vst.msk [vmem:[#allocation2 + $0x110] sm:$0xff] %vm477_vm1, %v15414_v1  ;;  %v10849_v51 = vld [vmem:[%s10758_s25 + $0x70] sm:$0xff]  ;;  %v10852_v52 = vld [vmem:[%s10758_s25 + $0x78] sm:$0xff]  ;;  %v655_v54 = vand.u32 4294901760, %v654_v41  ;;  %v10869_v59 = vpack.c.bf16 %v641_v48, %v634_v47  ;;  %v491_v2 = vsel %vm477_vm1, %v10821_v37, 0.0 }
  0x96   : > { %2034 = vst.msk [vmem:[#allocation2 + $0x120] sm:$0xff] %vm477_vm1, %v15414_v1  ;;  %2035 = vst.msk [vmem:[#allocation2 + $0x128] sm:$0xff] %vm477_vm1, %v15414_v1  ;;  %v10860_v55 = vld [vmem:[%s10758_s25 + $0x80] sm:$0xff]  ;;  %v10863_v56 = vld [vmem:[%s10758_s25 + $0x88] sm:$0xff]  ;;  %v486_v58 = vadd.f32 %v485_v40, %v484_v45  ;;  %v493_v7 = vsel %vm477_vm1, %v10824_v38, 0.0  ;;  %v495_v8 = vsel %vm477_vm1, %v10827_v39, 0.0 }
  0x97   : > { %2037 = vst.msk [vmem:[#allocation2 + $0x138] sm:$0xff] %vm477_vm1, %v15414_v1  ;;  %2038 = vst.msk [vmem:[#allocation2 + $0x140] sm:$0xff] %vm477_vm1, %v15414_v1  ;;  %v10866_v57 = vld [vmem:[%s10758_s25 + $0x90] sm:$0xff]  ;;  %v10872_v60 = vld [vmem:[%s10758_s25 + $0x98] sm:$0xff]  ;;  %v497_v11 = vsel %vm477_vm1, %v10835_v42, 0.0  ;;  %8708 = vmatpush3.bf16.msra.mxu0 %v10869_v59  ;;  %v10900_v13 = vpack.c.bf16 %v655_v54, %v648_v49  ;;  %v499_v22 = vsel %vm477_vm1, %v10838_v43, 0.0 }
  0x98   : > { %2040 = vst.msk [vmem:[#allocation2 + $0x150] sm:$0xff] %vm477_vm1, %v15414_v1  ;;  %2041 = vst.msk [vmem:[#allocation2 + $0x158] sm:$0xff] %vm477_vm1, %v15414_v1  ;;  %v10875_v61 = vld [vmem:[%s10758_s25 + $0xa0] sm:$0xff]  ;;  %v10878_v62 = vld [vmem:[%s10758_s25 + $0xa8] sm:$0xff]  ;;  %v488_v6 = vadd.f32 %v487_v46, %v486_v58  ;;  %v501_v23 = vsel %vm477_vm1, %v10841_v44, 0.0  ;;  %v503_v32 = vsel %vm477_vm1, %v10846_v50, 0.0  ;;  %8709 = vmatprep.subr.bf16.mxu0 %v15421_v0 }
  0x99   : > { %2043 = vst.msk [vmem:[#allocation2 + $0x168] sm:$0xff] %vm477_vm1, %v15414_v1  ;;  %2044 = vst.msk [vmem:[#allocation2 + $0x170] sm:$0xff] %vm477_vm1, %v15414_v1  ;;  %v10885_v3 = vld [vmem:[%s10758_s25 + $0xb0] sm:$0xff]  ;;  %v10888_v4 = vld [vmem:[%s10758_s25 + $0xb8] sm:$0xff]  ;;  %v505_v35 = vsel %vm477_vm1, %v10849_v51, 0.0  ;;  %v507_v36 = vsel %vm477_vm1, %v10852_v52, 0.0 }
  0x9a   : > { %2046 = vst.msk [vmem:[#allocation2 + $0x180] sm:$0xff] %vm477_vm1, %v15414_v1  ;;  %2047 = vst.msk [vmem:[#allocation2 + $0x188] sm:$0xff] %vm477_vm1, %v15414_v1  ;;  %v10891_v5 = vld [vmem:[%s10758_s25 + $0xc0] sm:$0xff]  ;;  %v10903_v14 = vld [vmem:[%s10758_s25 + $0xc8] sm:$0xff]  ;;  %v490_v34 = vadd.f32 %v489_v63, %v488_v6  ;;  %v509_v40 = vsel %vm477_vm1, %v10860_v55, 0.0  ;;  %v511_v41 = vsel %vm477_vm1, %v10863_v56, 0.0 }
  0x9b   : > { %2049 = vst.msk [vmem:[#allocation2 + $0x198] sm:$0xff] %vm477_vm1, %v15414_v1  ;;  %2050 = vst.msk [vmem:[#allocation2 + $0x1a0] sm:$0xff] %vm477_vm1, %v15414_v1  ;;  %v10913_v33 = vld [vmem:[%s10758_s25 + $0xd0] sm:$0xff]  ;;  %v513_v45 = vsel %vm477_vm1, %v10866_v57, 0.0  ;;  %v515_v46 = vsel %vm477_vm1, %v10872_v60, 0.0  ;;  %v517_v47 = vsel %vm477_vm1, %v10875_v61, 0.0  ;;  %8711 = vmatpush3.bf16.msra.mxu0 %v10900_v13 }
  0x9c   : > { %15585 = vst [vmem:[#allocation22_spill] sm:$0xff] %v10869_v59  ;;  %15586 = vst [vmem:[#allocation23_spill] sm:$0xff] %v10888_v4  ;;  %v492_v48 = vadd.f32 %v491_v2, %v490_v34  ;;  %v519_v49 = vsel %vm477_vm1, %v10878_v62, 0.0  ;;  %v521_v54 = vsel %vm477_vm1, %v10885_v3, 0.0  ;;  %v523_v58 = vsel %vm477_vm1, %v10888_v4, 0.0  ;;  %8712 = vmatprep.subr.bf16.mxu0 %v15421_v0  ;;  %s7715_s24 = sshll.u32 %s10530_s21, 12 }
  0x9d   : > { %15587 = vst [vmem:[#allocation24_spill] sm:$0xff] %v10891_v5  ;;  %15588 = vst [vmem:[#allocation25_spill] sm:$0xff] %v10900_v13  ;;  %v525_v63 = vsel %vm477_vm1, %v10891_v5, 0.0  ;;  %v527_v6 = vsel %vm477_vm1, %v10903_v14, 0.0  ;;  %v529_v2 = vsel %vm477_vm1, %v10913_v33, 0.0  ;;  %v10946_v34 = vpack.c.bf16 %v639_v25, %v632_v24  ;;  %p15848_p3 = scmp.ne.s32.totalorder %s15571_s27, 0 }
  0x9e   : > { %15589 = vst [vmem:[#allocation26_spill] sm:$0xff] %v10903_v14  ;;  %15590 = vst [vmem:[#allocation27_spill] sm:$0xff] %v10913_v33  ;;  %v494_v1 = vadd.f32 %v493_v7, %v492_v48  ;;  %v10953_v13 = vpack.c.bf16 %v653_v30, %v646_v26  ;;  %v10956_v26 = vld [vmem:[%s10758_s25 + $0xd8] sm:$0xff]  ;;  %v10959_v30 = vld [vmem:[%s10758_s25 + $0xe0] sm:$0xff]  ;;  %vm5445_vm7 = vcmask 517120   ;;  %s10446_s22 = smov [#allocation12]  }
  0x9f   : > { %s10362_s14 = sshll.u32 %s10446_s22, 4  ;;  %s10363_s14 = int_to_ptr.vmem [resolvable:$false] %s10362_s14 }
  0xa0   : > { %v496_v59 = vadd.f32 %v495_v8, %v494_v1  ;;  %s10364_s17 = scalar_lea.vmem %s10363_s14, 8192 }
  0xa2   : > { %v498_v14 = vadd.f32 %v497_v11, %v496_v59  ;;  %v10964_v11 = vld [vmem:[%s10758_s25 + $0xe8] sm:$0xff] }
  0xa4   : > { %v500_v33 = vadd.f32 %v499_v22, %v498_v14  ;;  %v10969_v22 = vld [vmem:[%s10758_s25 + $0xf0] sm:$0xff] }
  0xa6   : > { %v502_v5 = vadd.f32 %v501_v23, %v500_v33 }
  0xa8   : > { %v504_v16 = vadd.f32 %v503_v32, %v502_v5  ;;  %v531_v5 = vsel %vm477_vm1, %v10956_v26, 0.0  ;;  %v535_v32 = vsel %vm477_vm1, %v10964_v11, 0.0 }
  0xaa   : > { %v506_v17 = vadd.f32 %v505_v35, %v504_v16  ;;  %v537_v35 = vsel %vm477_vm1, %v10969_v22, 0.0 }
  0xac   : > { %v508_v24 = vadd.f32 %v507_v36, %v506_v17  ;;  %v15591_v17 = vmov 0.0  }
  0xad   : > { %2000 = vst.msk [vmem:[#allocation2 + $0x10] sm:$0x3] %vm1999_vm2, %v15591_v17  ;;  %2003 = vst.msk [vmem:[#allocation2 + $0x28] sm:$0x3] %vm1999_vm2, %v15591_v17 }
  0xae   : > { %v510_v25 = vadd.f32 %v509_v40, %v508_v24  ;;  %v15592_v24 = vmov 0.0|0.0   ;;  %2006 = vst.msk [vmem:[#allocation2 + $0x40] sm:$0x3] %vm1999_vm2, %v15591_v17  ;;  %2009 = vst.msk [vmem:[#allocation2 + $0x58] sm:$0x3] %vm1999_vm2, %v15591_v17 }
  0xaf   : > { %2012 = vst.msk [vmem:[#allocation2 + $0x70] sm:$0x3] %vm1999_vm2, %v15591_v17  ;;  %2015 = vst.msk [vmem:[#allocation2 + $0x88] sm:$0x3] %vm1999_vm2, %v15591_v17 }
  0xb0   : > { %v512_v0 = vadd.f32 %v511_v41, %v510_v25  ;;  %2018 = vst.msk [vmem:[#allocation2 + $0xa0] sm:$0x3] %vm1999_vm2, %v15591_v17  ;;  %2021 = vst.msk [vmem:[#allocation2 + $0xb8] sm:$0x3] %vm1999_vm2, %v15591_v17 }
  0xb1   : > { %2024 = vst.msk [vmem:[#allocation2 + $0xd0] sm:$0x3] %vm1999_vm2, %v15591_v17  ;;  %2027 = vst.msk [vmem:[#allocation2 + $0xe8] sm:$0x3] %vm1999_vm2, %v15591_v17 }
  0xb2   : > { %v514_v7 = vadd.f32 %v513_v45, %v512_v0  ;;  %v533_v0 = vsel %vm477_vm1, %v10959_v30, 0.0  ;;  %2030 = vst.msk [vmem:[#allocation2 + $0x100] sm:$0x3] %vm1999_vm2, %v15591_v17  ;;  %2033 = vst.msk [vmem:[#allocation2 + $0x118] sm:$0x3] %vm1999_vm2, %v15591_v17 }
  0xb3   : > { %2036 = vst.msk [vmem:[#allocation2 + $0x130] sm:$0x3] %vm1999_vm2, %v15591_v17  ;;  %2039 = vst.msk [vmem:[#allocation2 + $0x148] sm:$0x3] %vm1999_vm2, %v15591_v17 }
  0xb4   : > { %v516_v48 = vadd.f32 %v515_v46, %v514_v7  ;;  %2042 = vst.msk [vmem:[#allocation2 + $0x160] sm:$0x3] %vm1999_vm2, %v15591_v17  ;;  %2045 = vst.msk [vmem:[#allocation2 + $0x178] sm:$0x3] %vm1999_vm2, %v15591_v17 }
  0xb5   : > { %2048 = vst.msk [vmem:[#allocation2 + $0x190] sm:$0x3] %vm1999_vm2, %v15591_v17  ;;  %2051 = vst.msk [vmem:[#allocation2 + $0x1a8] sm:$0x3] %vm1999_vm2, %v15591_v17 }
  0xb6   : > { %v518_v18 = vadd.f32 %v517_v47, %v516_v48  ;;  %5443 = vst.msk [vmem:[#allocation3] sm:$0xff] %vm3047_vm5, %v15591_v17  ;;  %5444 = vst.msk [vmem:[#allocation3 + $0x8] sm:$0xff] %vm3047_vm5, %v15591_v17 }
  0xb7   : > { %5447 = vst.msk [vmem:[#allocation3 + $0x18] sm:$0xff] %vm3047_vm5, %v15591_v17  ;;  %5448 = vst.msk [vmem:[#allocation3 + $0x20] sm:$0xff] %vm3047_vm5, %v15591_v17 }
  0xb8   : > { %v520_v20 = vadd.f32 %v519_v49, %v518_v18  ;;  %5450 = vst.msk [vmem:[#allocation3 + $0x30] sm:$0xff] %vm3047_vm5, %v15591_v17  ;;  %5451 = vst.msk [vmem:[#allocation3 + $0x38] sm:$0xff] %vm3047_vm5, %v15591_v17 }
  0xb9   : > { %5453 = vst.msk [vmem:[#allocation3 + $0x48] sm:$0xff] %vm3047_vm5, %v15591_v17  ;;  %5454 = vst.msk [vmem:[#allocation3 + $0x50] sm:$0xff] %vm3047_vm5, %v15591_v17 }
  0xba   : > { %v522_v4 = vadd.f32 %v521_v54, %v520_v20  ;;  %5456 = vst.msk [vmem:[#allocation3 + $0x60] sm:$0xff] %vm3047_vm5, %v15591_v17  ;;  %5457 = vst.msk [vmem:[#allocation3 + $0x68] sm:$0xff] %vm3047_vm5, %v15591_v17 }
  0xbb   : > { %5459 = vst.msk [vmem:[#allocation3 + $0x78] sm:$0xff] %vm3047_vm5, %v15591_v17  ;;  %5460 = vst.msk [vmem:[#allocation3 + $0x80] sm:$0xff] %vm3047_vm5, %v15591_v17 }
  0xbc   : > { %v524_v1 = vadd.f32 %v523_v58, %v522_v4  ;;  %v10974_v4 = vld [vmem:[%s10758_s25 + $0xf8] sm:$0xff]  ;;  %5462 = vst.msk [vmem:[#allocation3 + $0x90] sm:$0xff] %vm3047_vm5, %v15591_v17  ;;  %5463 = vst.msk [vmem:[#allocation3 + $0x98] sm:$0xff] %vm3047_vm5, %v15591_v17 }
  0xbd   : > { %v539_v40 = vsel %vm477_vm1, %v10974_v4, 0.0  ;;  %5465 = vst.msk [vmem:[#allocation3 + $0xa8] sm:$0xff] %vm3047_vm5, %v15591_v17  ;;  %5466 = vst.msk [vmem:[#allocation3 + $0xb0] sm:$0xff] %vm3047_vm5, %v15591_v17 }
  0xbe   : > { %v526_v59 = vadd.f32 %v525_v63, %v524_v1  ;;  %v1035_v1 = vlaneseq  ;;  %5468 = vst.msk [vmem:[#allocation3 + $0xc0] sm:$0xff] %vm3047_vm5, %v15591_v17  ;;  %5469 = vst.msk [vmem:[#allocation3 + $0xc8] sm:$0xff] %vm3047_vm5, %v15591_v17 }
  0xbf   : > { %5471 = vst.msk [vmem:[#allocation3 + $0xd8] sm:$0xff] %vm3047_vm5, %v15591_v17  ;;  %5472 = vst.msk [vmem:[#allocation3 + $0xe0] sm:$0xff] %vm3047_vm5, %v15591_v17 }
  0xc0   : > { %v528_v8 = vadd.f32 %v527_v6, %v526_v59  ;;  %5474 = vst.msk [vmem:[#allocation3 + $0xf0] sm:$0xff] %vm3047_vm5, %v15591_v17  ;;  %5475 = vst.msk [vmem:[#allocation3 + $0xf8] sm:$0xff] %vm3047_vm5, %v15591_v17 }
  0xc1   : > { %5477 = vst.msk [vmem:[#allocation3 + $0x108] sm:$0xff] %vm3047_vm5, %v15591_v17  ;;  %5478 = vst.msk [vmem:[#allocation3 + $0x110] sm:$0xff] %vm3047_vm5, %v15591_v17 }
  0xc2   : > { %v530_v14 = vadd.f32 %v529_v2, %v528_v8  ;;  %5480 = vst.msk [vmem:[#allocation3 + $0x120] sm:$0xff] %vm3047_vm5, %v15591_v17  ;;  %5481 = vst.msk [vmem:[#allocation3 + $0x128] sm:$0xff] %vm3047_vm5, %v15591_v17 }
  0xc3   : > { %5483 = vst.msk [vmem:[#allocation3 + $0x138] sm:$0xff] %vm3047_vm5, %v15591_v17  ;;  %5484 = vst.msk [vmem:[#allocation3 + $0x140] sm:$0xff] %vm3047_vm5, %v15591_v17 }
  0xc4   : > { %v532_v23 = vadd.f32 %v531_v5, %v530_v14  ;;  %v1036_v5 = vshrl.u32 %v1035_v1, 7  ;;  %5486 = vst.msk [vmem:[#allocation3 + $0x150] sm:$0xff] %vm3047_vm5, %v15591_v17  ;;  %5487 = vst.msk [vmem:[#allocation3 + $0x158] sm:$0xff] %vm3047_vm5, %v15591_v17 }
  0xc5   : > { %5489 = vst.msk [vmem:[#allocation3 + $0x168] sm:$0xff] %vm3047_vm5, %v15591_v17  ;;  %5490 = vst.msk [vmem:[#allocation3 + $0x170] sm:$0xff] %vm3047_vm5, %v15591_v17 }
  0xc6   : > { %v534_v33 = vadd.f32 %v533_v0, %v532_v23  ;;  %v11010_v0 = vsub.s32 0, %v1036_v5  ;;  %5492 = vst.msk [vmem:[#allocation3 + $0x180] sm:$0xff] %vm3047_vm5, %v15591_v17  ;;  %5493 = vst.msk [vmem:[#allocation3 + $0x188] sm:$0xff] %vm3047_vm5, %v15591_v17 }
  0xc7   : > { %5495 = vst.msk [vmem:[#allocation3 + $0x198] sm:$0xff] %vm3047_vm5, %v15591_v17  ;;  %5496 = vst.msk [vmem:[#allocation3 + $0x1a0] sm:$0xff] %vm3047_vm5, %v15591_v17 }
  0xc8   : > { %v536_v36 = vadd.f32 %v535_v32, %v534_v33  ;;  %15593 = vst [vmem:[#allocation28_spill] sm:$0xff] %v11010_v0 }
  0xca   : > { %v538_v41 = vadd.f32 %v537_v35, %v536_v36 }
  0xcc   : > { %v540_v45 = vadd.f32 %v539_v40, %v538_v41 }
  0xce   : > { %v541_v46 = vrot.slane %v540_v45, 4 }
  0xd0   : > { %v542_v47 = vadd.f32 %v541_v46, %v540_v45 }
  0xd2   : > { %v543_v49 = vrot.slane %v542_v47, 2 }
  0xd4   : > { %v544_v54 = vadd.f32 %v543_v49, %v542_v47 }
  0xd6   : > { %v545_v58 = vrot.slane %v544_v54, 1 }
  0xd8   : > { %v546_v63 = vadd.f32 %v545_v58, %v544_v54 }
  0xda   : > { %v548_v6 = vsel %vm477_vm1, %v546_v63, 0 }
  0xdb   : > { %v619_v2 = vand.u32 4294901760, %v548_v6 }
  0xdd   : > { %8280 = vmatmul.mubr.f32.vlgmr.msra.gmra.mrb[0].mxu0 %v619_v2  ;;  %v620_v16 = vsub.f32 %v548_v6, %v619_v2 }
  0xde   : > { %8714 = vmatpush3.bf16.msra.mxu0 %v10799_v28  ;;  %8290 = vmatprep.mubr.msk.f32.mxu0 %vm10441_vm0, %v15591_v17 }
  0xdf   : > { %8715 = vmatprep.subr.bf16.mxu0 %v15592_v24  ;;  %v621_v25 = vand.u32 4294901760, %v620_v16 }
  0xe1   : > { %v622_v7 = vsub.f32 %v620_v16, %v621_v25 }
  0xe2   : > { %8717 = vmatpush3.bf16.msra.mxu0 %v10856_v53 }
  0xe3   : > { %8718 = vmatprep.subr.bf16.mxu0 %v15592_v24  ;;  %v623_v48 = vand.u32 4294901760, %v622_v7 }
  0xe5   : > { %8291 = vmatmul.mubr.f32.vlgmr.msra.gmra.mrb[0].mxu0 %v620_v16  ;;  %8269 = vmatmul.mubr.f32.vlgmr.msra.gmra.mrb[0].mxu1 %v623_v48 }
  0xe6   : > { %8720 = vmatpush3.bf16.msra.mxu0 %v10773_v15  ;;  %8301 = vmatprep.mubr.msk.f32.mxu0 %vm10441_vm0, %v15591_v17 }
  0xe7   : > { %8721 = vmatprep.subr.bf16.mxu0 %v15592_v24  ;;  %8738 = vmatpush3.bf16.msra.mxu1 %v10773_v15 }
  0xe8   : > { %8739 = vmatprep.subr.bf16.mxu1 %v15592_v24  ;;  %8334 = vmatprep.mubr.msk.f32.mxu1 %vm10441_vm0, %v15591_v17 }
  0xea   : > { %8723 = vmatpush3.bf16.msra.mxu0 %v10802_v29 }
  0xeb   : > { %8724 = vmatprep.subr.bf16.mxu0 %v15592_v24  ;;  %8741 = vmatpush3.bf16.msra.mxu1 %v10802_v29 }
  0xec   : > { %8742 = vmatprep.subr.bf16.mxu1 %v15592_v24 }
  0xed   : > { %8302 = vmatmul.mubr.f32.vlgmr.msra.gmra.mrb[0].mxu0 %v621_v25 }
  0xee   : > { %8726 = vmatpush3.bf16.msra.mxu0 %v10946_v34  ;;  %8312 = vmatprep.mubr.msk.f32.mxu0 %vm10441_vm0, %v15591_v17 }
  0xef   : > { %8727 = vmatprep.subr.bf16.mxu0 %v15592_v24 }
  0xf2   : > { %8729 = vmatpush3.bf16.msra.mxu0 %v10953_v13 }
  0xf3   : > { %8730 = vmatprep.subr.bf16.mxu0 %v15592_v24 }
  0xf5   : > { %8313 = vmatmul.mubr.f32.vlgmr.msra.gmra.mrb[0].mxu0 %v619_v2 }
  0xf6   : > { %8732 = vmatpush3.bf16.msra.mxu0 %v10773_v15  ;;  %8323 = vmatprep.mubr.msk.f32.mxu0 %vm10441_vm0, %v15591_v17 }
  0xf7   : > { %8733 = vmatprep.subr.bf16.mxu0 %v15592_v24 }
  0xfa   : > { %8735 = vmatpush3.bf16.msra.mxu0 %v10802_v29 }
  0xfd   : > { %8324 = vmatmul.mubr.f32.vlgmr.msra.gmra.mrb[0].mxu0 %v619_v2 }
 0x1b8   : > { %v625_v18 = vpop.f32.mrb[0].mxu1 }
 0x1b9   : > { %v8270_v20 = vpop.f32.mrb[1].mxu1 }
 0x1d0   : > { %v1031_v59 = vpop.f32.mrb[0].mxu0 }
 0x1d1   : > { %v8916_v8 = vadd.f32 %v1031_v59, %v625_v18  ;;  %v8325_v14 = vpop.f32.mrb[1].mxu0 }
 0x1d3   : > { %v11013_v23 = vrot.slane %v8916_v8, %v11010_v0 }
 0x1d5   : > { %v11017_v32 = vsub.f32 %v10761_v9, %v11013_v23  ;;  %v11021_v33 = vsub.f32 %v10764_v10, %v11013_v23  ;;  %v11025_v35 = vsub.f32 %v10767_v12, %v11013_v23  ;;  %v11029_v36 = vsub.f32 %v10782_v19, %v11013_v23 }
 0x1d6   : > { %v11037_v9 = vsub.f32 %v10787_v21, %v11013_v23  ;;  %v11043_v12 = vsub.f32 %v10795_v27, %v11013_v23  ;;  %v11051_v49 = vsub.f32 %v10806_v31, %v11013_v23  ;;  %v11058_v27 = vsub.f32 %v10821_v37, %v11013_v23 }
 0x1d7   : > { %v1071_v40 = vmul.f32 %v11017_v32, %v11017_v32  ;;  %v1072_v41 = vmul.f32 %v11021_v33, %v11021_v33  ;;  %v1073_v10 = vmul.f32 %v11025_v35, %v11025_v35  ;;  %v1074_v19 = vmul.f32 %v11029_v36, %v11029_v36 }
 0x1d8   : > { %v1075_v21 = vmul.f32 %v11037_v9, %v11037_v9  ;;  %v1076_v63 = vmul.f32 %v11043_v12, %v11043_v12  ;;  %v11065_v31 = vsub.f32 %v10824_v38, %v11013_v23  ;;  %v1077_v16 = vmul.f32 %v11051_v49, %v11051_v49 }
 0x1d9   : > { %v1103_v45 = vsel %vm477_vm1, %v1071_v40, 0.0  ;;  %v1104_v46 = vsel %vm477_vm1, %v1072_v41, 0.0  ;;  %v1106_v54 = vsel %vm477_vm1, %v1073_v10, 0.0  ;;  %v1108_v6 = vsel %vm477_vm1, %v1074_v19, 0.0 }
 0x1da   : > { %v1105_v47 = vadd.f32 %v1104_v46, %v1103_v45  ;;  %v1110_v25 = vsel %vm477_vm1, %v1075_v21, 0.0  ;;  %v11072_v37 = vsub.f32 %v10827_v39, %v11013_v23  ;;  %v1078_v48 = vmul.f32 %v11058_v27, %v11058_v27 }
 0x1db   : > { %v1112_v18 = vsel %vm477_vm1, %v1076_v63, 0.0  ;;  %v11079_v38 = vsub.f32 %v10835_v42, %v11013_v23  ;;  %v1079_v1 = vmul.f32 %v11065_v31, %v11065_v31  ;;  %v1114_v59 = vsel %vm477_vm1, %v1077_v16, 0.0 }
 0x1dc   : > { %v1107_v58 = vadd.f32 %v1106_v54, %v1105_v47  ;;  %v11086_v39 = vsub.f32 %v10838_v43, %v11013_v23  ;;  %v1080_v5 = vmul.f32 %v11072_v37, %v11072_v37  ;;  %v1116_v14 = vsel %vm477_vm1, %v1078_v48, 0.0 }
 0x1dd   : > { %v11093_v42 = vsub.f32 %v10841_v44, %v11013_v23  ;;  %v1081_v41 = vmul.f32 %v11079_v38, %v11079_v38  ;;  %v1118_v10 = vsel %vm477_vm1, %v1079_v1, 0.0  ;;  %v11100_v43 = vsub.f32 %v10846_v50, %v11013_v23 }
 0x1de   : > { %v1109_v2 = vadd.f32 %v1108_v6, %v1107_v58  ;;  %v1082_v45 = vmul.f32 %v11086_v39, %v11086_v39  ;;  %v1120_v46 = vsel %vm477_vm1, %v1080_v5, 0.0  ;;  %v11107_v44 = vsub.f32 %v10849_v51, %v11013_v23 }
 0x1df   : > { %v1083_v21 = vmul.f32 %v11093_v42, %v11093_v42  ;;  %v1122_v54 = vsel %vm477_vm1, %v1081_v41, 0.0  ;;  %v11114_v50 = vsub.f32 %v10852_v52, %v11013_v23  ;;  %v1084_v63 = vmul.f32 %v11100_v43, %v11100_v43 }
 0x1e0   : > { %v1111_v7 = vadd.f32 %v1110_v25, %v1109_v2  ;;  %v1124_v6 = vsel %vm477_vm1, %v1082_v45, 0.0  ;;  %v11121_v51 = vsub.f32 %v10860_v55, %v11013_v23  ;;  %v1085_v16 = vmul.f32 %v11107_v44, %v11107_v44 }
 0x1e1   : > { %v1126_v25 = vsel %vm477_vm1, %v1083_v21, 0.0  ;;  %v11128_v52 = vsub.f32 %v10863_v56, %v11013_v23  ;;  %v1086_v48 = vmul.f32 %v11114_v50, %v11114_v50  ;;  %v11135_v55 = vsub.f32 %v10866_v57, %v11013_v23 }
 0x1e2   : > { %v1113_v20 = vadd.f32 %v1112_v18, %v1111_v7  ;;  %v1128_v18 = vsel %vm477_vm1, %v1084_v63, 0.0  ;;  %v1087_v1 = vmul.f32 %v11121_v51, %v11121_v51  ;;  %v11142_v56 = vsub.f32 %v10872_v60, %v11013_v23  ;;  %v15594_v63 = vld [vmem:[#allocation23_spill] sm:$0xff] }
 0x1e3   : > { %v1088_v5 = vmul.f32 %v11128_v52, %v11128_v52  ;;  %v11149_v57 = vsub.f32 %v10875_v61, %v11013_v23  ;;  %v1089_v41 = vmul.f32 %v11135_v55, %v11135_v55  ;;  %v11156_v60 = vsub.f32 %v10878_v62, %v11013_v23 }
 0x1e4   : > { %v1115_v8 = vadd.f32 %v1114_v59, %v1113_v20  ;;  %v1130_v59 = vsel %vm477_vm1, %v1085_v16, 0.0  ;;  %v1090_v45 = vmul.f32 %v11142_v56, %v11142_v56  ;;  %v11163_v61 = vsub.f32 %v10885_v3, %v11013_v23 }
 0x1e5   : > { %v1091_v21 = vmul.f32 %v11149_v57, %v11149_v57  ;;  %v11170_v62 = vsub.f32 %v15594_v63, %v11013_v23 }
 0x1e6   : > { %v1117_v40 = vadd.f32 %v1116_v14, %v1115_v8  ;;  %v1132_v14 = vsel %vm477_vm1, %v1086_v48, 0.0 }
 0x1e7   : > { %v1142_v48 = vsel %vm477_vm1, %v1091_v21, 0.0 }
 0x1e8   : > { %v1119_v19 = vadd.f32 %v1118_v10, %v1117_v40  ;;  %v1134_v10 = vsel %vm477_vm1, %v1087_v1, 0.0 }
 0x1ea   : > { %v1121_v47 = vadd.f32 %v1120_v46, %v1119_v19  ;;  %v1136_v46 = vsel %vm477_vm1, %v1088_v5, 0.0 }
 0x1ec   : > { %v1123_v58 = vadd.f32 %v1122_v54, %v1121_v47  ;;  %v1138_v54 = vsel %vm477_vm1, %v1089_v41, 0.0 }
 0x1ee   : > { %v1125_v2 = vadd.f32 %v1124_v6, %v1123_v58  ;;  %v1092_v6 = vmul.f32 %v11156_v60, %v11156_v60 }
 0x1f0   : > { %v1127_v7 = vadd.f32 %v1126_v25, %v1125_v2  ;;  %v1140_v2 = vsel %vm477_vm1, %v1090_v45, 0.0  ;;  %v15595_v25 = vld [vmem:[#allocation24_spill] sm:$0xff]  ;;  %v11198_v45 = vsub.f32 %v10956_v26, %v11013_v23  ;;  %v11212_v26 = vsub.f32 %v10964_v11, %v11013_v23 }
 0x1f1   : > { %v11177_v3 = vsub.f32 %v15595_v25, %v11013_v23  ;;  %v11226_v11 = vsub.f32 %v10974_v4, %v11013_v23 }
 0x1f2   : > { %v1129_v20 = vadd.f32 %v1128_v18, %v1127_v7  ;;  %v1093_v7 = vmul.f32 %v11163_v61, %v11163_v61 }
 0x1f3   : > { %v1095_v41 = vmul.f32 %v11177_v3, %v11177_v3 }
 0x1f4   : > { %v1131_v8 = vadd.f32 %v1130_v59, %v1129_v20  ;;  %v15596_v20 = vld [vmem:[#allocation26_spill] sm:$0xff]  ;;  %v1094_v59 = vmul.f32 %v11170_v62, %v11170_v62 }
 0x1f5   : > { %v11184_v1 = vsub.f32 %v15596_v20, %v11013_v23  ;;  %v1150_v63 = vsel %vm477_vm1, %v1095_v41, 0.0  ;;  %v1100_v20 = vmul.f32 %v11212_v26, %v11212_v26  ;;  %v1102_v41 = vmul.f32 %v11226_v11, %v11226_v11 }
 0x1f6   : > { %v1133_v40 = vadd.f32 %v1132_v14, %v1131_v8  ;;  %v1144_v8 = vsel %vm477_vm1, %v1092_v6, 0.0  ;;  %v15597_v14 = vld [vmem:[#allocation27_spill] sm:$0xff] }
 0x1f8   : > { %v1135_v19 = vadd.f32 %v1134_v10, %v1133_v40  ;;  %v11191_v40 = vsub.f32 %v15597_v14, %v11013_v23  ;;  %v1146_v10 = vsel %vm477_vm1, %v1093_v7, 0.0 }
 0x1fa   : > { %v1137_v47 = vadd.f32 %v1136_v46, %v1135_v19  ;;  %v1096_v46 = vmul.f32 %v11184_v1, %v11184_v1 }
 0x1fc   : > { %v1139_v58 = vadd.f32 %v1138_v54, %v1137_v47  ;;  %v1148_v47 = vsel %vm477_vm1, %v1094_v59, 0.0  ;;  %v11205_v54 = vsub.f32 %v10959_v30, %v11013_v23  ;;  %v11219_v30 = vsub.f32 %v10969_v22, %v11013_v23 }
 0x1fe   : > { %v1141_v16 = vadd.f32 %v1140_v2, %v1139_v58  ;;  %v1097_v58 = vmul.f32 %v11191_v40, %v11191_v40  ;;  %v1098_v2 = vmul.f32 %v11198_v45, %v11198_v45  ;;  %v1099_v7 = vmul.f32 %v11205_v54, %v11205_v54 }
 0x1ff   : > { %v1101_v22 = vmul.f32 %v11219_v30, %v11219_v30 }
 0x200   : > { %v1143_v18 = vadd.f32 %v1142_v48, %v1141_v16  ;;  %v1152_v16 = vsel %vm477_vm1, %v1096_v46, 0.0  ;;  %v1154_v48 = vsel %vm477_vm1, %v1097_v58, 0.0  ;;  %v1156_v59 = vsel %vm477_vm1, %v1098_v2, 0.0 }
 0x201   : > { %v1162_v4 = vsel %vm477_vm1, %v1101_v22, 0.0  ;;  %v1164_v46 = vsel %vm477_vm1, %v1102_v41, 0.0  ;;  %v15599_v22 = vld [vmem:[#allocation25_spill] sm:$0xff] }
 0x202   : > { %v1145_v5 = vadd.f32 %v1144_v8, %v1143_v18 }
 0x204   : > { %v1147_v19 = vadd.f32 %v1146_v10, %v1145_v5  ;;  %v1158_v5 = vsel %vm477_vm1, %v1099_v7, 0.0  ;;  %v1160_v10 = vsel %vm477_vm1, %v1100_v20, 0.0 }
 0x206   : > { %v1149_v21 = vadd.f32 %v1148_v47, %v1147_v19 }
 0x208   : > { %v1151_v6 = vadd.f32 %v1150_v63, %v1149_v21 }
 0x20a   : > { %v1153_v25 = vadd.f32 %v1152_v16, %v1151_v6 }
 0x20c   : > { %v1155_v18 = vadd.f32 %v1154_v48, %v1153_v25 }
 0x20e   : > { %v1157_v8 = vadd.f32 %v1156_v59, %v1155_v18 }
 0x210   : > { %v1159_v14 = vadd.f32 %v1158_v5, %v1157_v8  ;;  %v15598_v8 = vld [vmem:[#allocation22_spill] sm:$0xff] }
 0x212   : > { %v1161_v19 = vadd.f32 %v1160_v10, %v1159_v14  ;;  %v2087_v10 = vld [vmem:[#allocation2 + $0x10] sm:$0x3] }
 0x214   : > { %v1163_v23 = vadd.f32 %v1162_v4, %v1161_v19  ;;  %v2191_v4 = vrot.slane %v2087_v10, 1 }
 0x216   : > { %v1165_v47 = vadd.f32 %v1164_v46, %v1163_v23  ;;  %v2272_v46 = vrot.slane %v2087_v10, 2 }
 0x218   : > { %v1166_v21 = vrot.slane %v1165_v47, 4 }
 0x21a   : > { %v1167_v58 = vadd.f32 %v1166_v21, %v1165_v47 }
 0x21c   : > { %v1168_v63 = vrot.slane %v1167_v58, 2 }
 0x21e   : > { %v1169_v6 = vadd.f32 %v1168_v63, %v1167_v58 }
 0x220   : > { %v1170_v2 = vrot.slane %v1169_v6, 1 }
 0x222   : > { %v1171_v16 = vadd.f32 %v1170_v2, %v1169_v6  ;;  %v9857_v6 = vld [vmem:[%s15398_s4 + $0x80] sm:$0xff]   ;;  %v9858_v2 = vld [vmem:[%s15398_s4 + $0x88] sm:$0xff]  }
 0x224   : > { %v1173_v25 = vsel %vm477_vm1, %v1171_v16, 0 }
 0x225   : > { %v1244_v7 = vand.u32 4294901760, %v1173_v25 }
 0x227   : > { %v1245_v48 = vsub.f32 %v1173_v25, %v1244_v7 }
 0x229   : > { %v1246_v18 = vand.u32 4294901760, %v1245_v48 }
 0x22b   : > { %v1247_v59 = vsub.f32 %v1245_v48, %v1246_v18 }
 0x22d   : > { %v1248_v20 = vand.u32 4294901760, %v1247_v59 }
 0x22f   : > { %8335 = vmatmul.mubr.f32.vlgmr.msra.gmra.mrb[2].mxu1 %v1248_v20 }
 0x230   : > { %8744 = vmatpush3.bf16.msra.mxu1 %v15598_v8  ;;  %8345 = vmatprep.mubr.msk.f32.mxu1 %vm10441_vm0, %v15591_v17 }
 0x231   : > { %8745 = vmatprep.subr.bf16.mxu1 %v15592_v24 }
 0x234   : > { %8747 = vmatpush3.bf16.msra.mxu1 %v15599_v22  ;;  %v11331_v22 = vld [vmem:[%s15395_s1] ss:$0 sm:$0xff] }
 0x235   : > { %8748 = vmatprep.subr.bf16.mxu1 %v15592_v24 }
 0x237   : > { %8346 = vmatmul.mubr.f32.vlgmr.msra.gmra.mrb[2].mxu1 %v1244_v7 }
 0x238   : > { %8750 = vmatpush3.bf16.msra.mxu1 %v10799_v28  ;;  %8356 = vmatprep.mubr.msk.f32.mxu1 %vm10441_vm0, %v15591_v17  ;;  %v2136_v28 = vld [vmem:[#allocation2 + $0x198] sm:$0xff] }
 0x239   : > { %8751 = vmatprep.subr.bf16.mxu1 %v15592_v24 }
 0x23c   : > { %8753 = vmatpush3.bf16.msra.mxu1 %v10856_v53  ;;  %v2137_v53 = vld [vmem:[#allocation2 + $0x1a0] sm:$0xff] }
 0x23d   : > { %8754 = vmatprep.subr.bf16.mxu1 %v15592_v24 }
 0x23f   : > { %8357 = vmatmul.mubr.f32.vlgmr.msra.gmra.mrb[2].mxu1 %v1245_v48 }
 0x240   : > { %8756 = vmatpush3.bf16.msra.mxu1 %v10773_v15  ;;  %8367 = vmatprep.mubr.msk.f32.mxu1 %vm10441_vm0, %v15591_v17 }
 0x241   : > { %8757 = vmatprep.subr.bf16.mxu1 %v15592_v24 }
 0x244   : > { %8759 = vmatpush3.bf16.msra.mxu1 %v10802_v29 }
 0x245   : > { %8760 = vmatprep.subr.bf16.mxu1 %v15592_v24 }
 0x247   : > { %8368 = vmatmul.mubr.f32.vlgmr.msra.gmra.mrb[2].mxu1 %v1246_v18 }
 0x248   : > { %8762 = vmatpush3.bf16.msra.mxu1 %v10946_v34  ;;  %8378 = vmatprep.mubr.msk.f32.mxu1 %vm10441_vm0, %v15591_v17  ;;  %v9047_v34 = vpack.i.bf16 %v2137_v53, %v2136_v28 }
 0x249   : > { %8763 = vmatprep.subr.bf16.mxu1 %v15592_v24 }
 0x24a   : > { %9048 = vrot.lane.b32.xlu0 %v9047_v34, %s10443_s23 }
 0x24c   : > { %8765 = vmatpush3.bf16.msra.mxu1 %v10953_v13 }
 0x24d   : > { %8766 = vmatprep.subr.bf16.mxu1 %v15592_v24 }
 0x24f   : > { %8379 = vmatmul.mubr.f32.vlgmr.msra.gmra.mrb[2].mxu1 %v1244_v7 }
 0x250   : > { %8768 = vmatpush3.bf16.msra.mxu1 %v10773_v15  ;;  %8389 = vmatprep.mubr.msk.f32.mxu1 %vm10441_vm0, %v15591_v17  ;;  %v2085_v15 = vld [vmem:[#allocation2] sm:$0xff] }
 0x251   : > { %8769 = vmatprep.subr.bf16.mxu1 %v15592_v24  ;;  %v2188_v13 = vrot.slane %v2085_v15, 1  ;;  %v2269_v14 = vrot.slane %v2085_v15, 2 }
 0x254   : > { %8771 = vmatpush3.bf16.msra.mxu1 %v10802_v29  ;;  %v2086_v29 = vld [vmem:[#allocation2 + $0x8] sm:$0xff] }
 0x255   : > { %v2189_v5 = vrot.slane %v2086_v29, 1  ;;  %v2270_v41 = vrot.slane %v2086_v29, 2  ;;  %8392 = vmatprep.subr.bf16.mxu1 %v9857_v6 }
 0x257   : > { %8390 = vmatmul.mubr.f32.vlgmr.msra.gmra.mrb[2].mxu1 %v1244_v7  ;;  %v2190_v19 = vsel %vm2187_vm3, %v2188_v13, %v2189_v5  ;;  %v2271_v23 = vsel %vm2268_vm4, %v2269_v14, %v2270_v41  ;;  %v2192_v47 = vsel %vm2187_vm3, %v2189_v5, %v2191_v4  ;;  %v2273_v21 = vsel %vm2268_vm4, %v2270_v41, %v2272_v46 }
 0x258   : > { %v9052_v58 = vpack.i.bf16 %v2192_v47, %v2190_v19  ;;  %v9057_v63 = vpack.i.bf16 %v2273_v21, %v2271_v23  ;;  %8393 = vmatpush3.bf16.msra.mxu1 %v9857_v6 }
 0x259   : > { %8394 = vmatprep.subr.bf16.mxu1 %v9858_v2 }
 0x25a   : > { %9053 = vrot.lane.b32.xlu0 %v9052_v58, %s10444_s30  ;;  %9058 = vrot.lane.b32.xlu1 %v9057_v63, %s10443_s23 }
 0x25c   : > { %8395 = vmatpush3.bf16.msra.mxu1 %v9858_v2 }
 0x25d   : > { %8772 = vmatprep.subr.bf16.mxu1 %v15592_v24 }
 0x32a   : > { %v1656_v16 = vpop.f32.mrb[2].mxu1 }
 0x32b   : > { %v8917_v25 = vadd.f32 1e-06, %v1656_v16  ;;  %v8391_v7 = vpop.f32.mrb[3].mxu1 }
 0x32d   : > { %9913 = vrsqrt.f32 %v8917_v25 }
 0x337   : > { %v9914_v48 = vpop.eup %9913 }
 0x338   : > { %v11320_v18 = vrot.slane %v9914_v48, %v11010_v0 }
 0x33a   : > { %v1682_v59 = vmul.f32 %v11320_v18, %v11128_v52  ;;  %v1683_v20 = vmul.f32 %v11320_v18, %v11135_v55  ;;  %v1684_v8 = vmul.f32 %v11320_v18, %v11142_v56  ;;  %v1685_v28 = vmul.f32 %v11320_v18, %v11149_v57  ;;  %v11349_v57 = vld [vmem:[%s15396_s2] ss:$0 sm:$0xff] }
 0x33b   : > { %v1686_v53 = vmul.f32 %v11320_v18, %v11156_v60  ;;  %v1687_v52 = vmul.f32 %v11320_v18, %v11163_v61  ;;  %v1688_v55 = vmul.f32 %v11320_v18, %v11170_v62  ;;  %v1689_v56 = vmul.f32 %v11320_v18, %v11177_v3 }
 0x33c   : > { %v1720_v34 = vmul.f32 %v11331_v22, %v1682_v59  ;;  %v1721_v15 = vmul.f32 %v11331_v22, %v1683_v20  ;;  %v1722_v29 = vmul.f32 %v11331_v22, %v1684_v8  ;;  %v1690_v60 = vmul.f32 %v11320_v18, %v11184_v1 }
 0x33d   : > { %v1723_v61 = vmul.f32 %v11331_v22, %v1685_v28  ;;  %v1724_v62 = vmul.f32 %v11331_v22, %v1686_v53  ;;  %v1691_v3 = vmul.f32 %v11320_v18, %v11191_v40  ;;  %v1725_v13 = vmul.f32 %v11331_v22, %v1687_v52 }
 0x33e   : > { %v1692_v5 = vmul.f32 %v11320_v18, %v11198_v45  ;;  %v1693_v14 = vmul.f32 %v11320_v18, %v11205_v54  ;;  %v1726_v41 = vmul.f32 %v11331_v22, %v1688_v55  ;;  %v1727_v10 = vmul.f32 %v11331_v22, %v1689_v56 }
 0x33f   : > { %v11365_v1 = vadd.f32 %v11349_v57, %v1720_v34  ;;  %v11368_v19 = vadd.f32 %v11349_v57, %v1721_v15  ;;  %v11371_v40 = vadd.f32 %v11349_v57, %v1722_v29  ;;  %v11374_v4 = vadd.f32 %v11349_v57, %v1723_v61 }
 0x340   : > { %v1694_v45 = vmul.f32 %v11320_v18, %v11212_v26  ;;  %v1728_v54 = vmul.f32 %v11331_v22, %v1690_v60  ;;  %v11380_v23 = vadd.f32 %v11349_v57, %v1724_v62  ;;  %v1695_v46 = vmul.f32 %v11320_v18, %v11219_v30 }
 0x341   : > { %v1696_v47 = vmul.f32 %v11320_v18, %v11226_v11  ;;  %v1729_v21 = vmul.f32 %v11331_v22, %v1691_v3  ;;  %v11388_v58 = vadd.f32 %v11349_v57, %v1725_v13  ;;  %v1730_v63 = vmul.f32 %v11331_v22, %v1692_v5 }
 0x342   : > { %v1731_v26 = vmul.f32 %v11331_v22, %v1693_v14  ;;  %v11393_v6 = vadd.f32 %v11349_v57, %v1726_v41  ;;  %v7570_v2 = vmul.f32 -1.442695, %v11365_v1  ;;  %v11397_v16 = vadd.f32 %v11349_v57, %v1727_v10 }
 0x343   : > { %v7571_v30 = vmul.f32 -1.442695, %v11368_v19  ;;  %v7572_v11 = vmul.f32 -1.442695, %v11371_v40  ;;  %v7573_v25 = vmul.f32 -1.442695, %v11374_v4  ;;  %v1732_v7 = vmul.f32 %v11331_v22, %v1694_v45 }
 0x344   : > { %v11404_v48 = vadd.f32 %v11349_v57, %v1728_v54  ;;  %v7574_v59 = vmul.f32 -1.442695, %v11380_v23  ;;  %9915 = vpow2.f32 %v7570_v2  ;;  %v1733_v20 = vmul.f32 %v11331_v22, %v1695_v46 }
 0x345   : > { %v11409_v8 = vadd.f32 %v11349_v57, %v1729_v21  ;;  %v7575_v28 = vmul.f32 -1.442695, %v11388_v58  ;;  %9917 = vpow2.f32 %v7571_v30  ;;  %v1734_v53 = vmul.f32 %v11331_v22, %v1696_v47 }
 0x346   : > { %v11414_v52 = vadd.f32 %v11349_v57, %v1730_v63  ;;  %v7576_v55 = vmul.f32 -1.442695, %v11393_v6  ;;  %9919 = vpow2.f32 %v7572_v11  ;;  %v11418_v56 = vadd.f32 %v11349_v57, %v1731_v26 }
 0x347   : > { %v7577_v34 = vmul.f32 -1.442695, %v11397_v16  ;;  %9921 = vpow2.f32 %v7573_v25  ;;  %v11422_v15 = vadd.f32 %v11349_v57, %v1732_v7  ;;  %v7578_v29 = vmul.f32 -1.442695, %v11404_v48 }
 0x348   : > { %9923 = vpow2.f32 %v7574_v59  ;;  %v11426_v60 = vadd.f32 %v11349_v57, %v1733_v20  ;;  %v7579_v61 = vmul.f32 -1.442695, %v11409_v8  ;;  %v11430_v62 = vadd.f32 %v11349_v57, %v1734_v53 }
 0x349   : > { %9925 = vpow2.f32 %v7575_v28  ;;  %v7580_v3 = vmul.f32 -1.442695, %v11414_v52  ;;  %v1669_v13 = vmul.f32 %v11320_v18, %v11037_v9  ;;  %v7581_v5 = vmul.f32 -1.442695, %v11418_v56 }
 0x34a   : > { %9927 = vpow2.f32 %v7576_v55  ;;  %v7582_v14 = vmul.f32 -1.442695, %v11422_v15  ;;  %v1670_v41 = vmul.f32 %v11320_v18, %v11043_v12  ;;  %v7583_v10 = vmul.f32 -1.442695, %v11426_v60 }
 0x34b   : > { %9929 = vpow2.f32 %v7577_v34  ;;  %v7584_v54 = vmul.f32 -1.442695, %v11430_v62  ;;  %v1707_v46 = vmul.f32 %v11331_v22, %v1669_v13  ;;  %v1667_v9 = vmul.f32 %v11320_v18, %v11025_v35 }
 0x34c   : > { %9931 = vpow2.f32 %v7578_v29  ;;  %v1668_v63 = vmul.f32 %v11320_v18, %v11029_v36  ;;  %v1708_v2 = vmul.f32 %v11331_v22, %v1670_v41  ;;  %v1671_v25 = vmul.f32 %v11320_v18, %v11051_v49 }
 0x34d   : > { %9933 = vpow2.f32 %v7579_v61  ;;  %v1672_v35 = vmul.f32 %v11320_v18, %v11058_v27  ;;  %v11452_v20 = vadd.f32 %v11349_v57, %v1707_v46  ;;  %v1705_v36 = vmul.f32 %v11331_v22, %v1667_v9 }
 0x34e   : > { %v9916_v45 = vpop.eup %9915  ;;  %9935 = vpow2.f32 %v7580_v3  ;;  %v1706_v55 = vmul.f32 %v11331_v22, %v1668_v63  ;;  %v11457_v49 = vadd.f32 %v11349_v57, %v1708_v2  ;;  %v1709_v3 = vmul.f32 %v11331_v22, %v1671_v25 }
 0x34f   : > { %v9918_v47 = vpop.eup %9917  ;;  %9937 = vpow2.f32 %v7581_v5  ;;  %v1886_v21 = vadd.f32 1.0, %v9916_v45  ;;  %v1710_v13 = vmul.f32 %v11331_v22, %v1672_v35  ;;  %v7557_v41 = vmul.f32 -1.442695, %v11452_v20 }
 0x350   : > { %v9920_v26 = vpop.eup %9919  ;;  %9939 = vpow2.f32 %v7582_v14  ;;  %v1887_v12 = vadd.f32 1.0, %v9918_v47  ;;  %v11466_v46 = vadd.f32 %v11349_v57, %v1706_v55  ;;  %v1665_v9 = vmul.f32 %v11320_v18, %v11017_v32 }
 0x351   : > { %v9922_v30 = vpop.eup %9921  ;;  %9941 = vpow2.f32 %v7583_v10  ;;  %v1888_v11 = vadd.f32 1.0, %v9920_v26  ;;  %v11463_v10 = vadd.f32 %v11349_v57, %v1705_v36  ;;  %v7558_v63 = vmul.f32 -1.442695, %v11457_v49 }
 0x352   : > { %v9924_v7 = vpop.eup %9923  ;;  %9943 = vpow2.f32 %v7584_v54  ;;  %v1889_v59 = vadd.f32 1.0, %v9922_v30  ;;  %v1666_v26 = vmul.f32 %v11320_v18, %v11021_v33  ;;  %v11474_v30 = vadd.f32 %v11349_v57, %v1709_v3 }
 0x353   : > { %v9926_v28 = vpop.eup %9925  ;;  %v1890_v53 = vadd.f32 1.0, %v9924_v7  ;;  %9945 = vrcp.f32 %v1886_v21  ;;  %v7555_v32 = vmul.f32 -1.442695, %v11463_v10  ;;  %v1673_v7 = vmul.f32 %v11320_v18, %v11065_v31 }
 0x354   : > { %v9928_v34 = vpop.eup %9927  ;;  %v1891_v29 = vadd.f32 1.0, %v9926_v28  ;;  %9947 = vrcp.f32 %v1887_v12  ;;  %v1703_v33 = vmul.f32 %v11331_v22, %v1665_v9  ;;  %v1674_v28 = vmul.f32 %v11320_v18, %v11072_v37 }
 0x355   : > { %v9930_v27 = vpop.eup %9929  ;;  %v1892_v61 = vadd.f32 1.0, %v9928_v34  ;;  %9949 = vrcp.f32 %v1888_v11  ;;  %v11477_v11 = vadd.f32 %v11349_v57, %v1710_v13  ;;  %v1704_v34 = vmul.f32 %v11331_v22, %v1666_v26 }
 0x356   : > { %v9932_v5 = vpop.eup %9931  ;;  %v1893_v14 = vadd.f32 1.0, %v9930_v27  ;;  %9951 = vrcp.f32 %v1889_v59  ;;  %v7556_v31 = vmul.f32 -1.442695, %v11466_v46  ;;  %v1676_v3 = vmul.f32 %v11320_v18, %v11086_v39 }
 0x357   : > { %v9934_v45 = vpop.eup %9933  ;;  %v1894_v54 = vadd.f32 1.0, %v9932_v5  ;;  %9953 = vrcp.f32 %v1890_v53  ;;  %v7559_v37 = vmul.f32 -1.442695, %v11474_v30  ;;  %v1711_v5 = vmul.f32 %v11331_v22, %v1673_v7 }
 0x358   : > { %v9936_v47 = vpop.eup %9935  ;;  %v1895_v21 = vadd.f32 1.0, %v9934_v45  ;;  %9955 = vrcp.f32 %v1891_v29  ;;  %v1675_v29 = vmul.f32 %v11320_v18, %v11079_v38  ;;  %v11496_v38 = vadd.f32 %v11349_v57, %v1703_v33 }
 0x359   : > { %v9938_v12 = vpop.eup %9937  ;;  %v1896_v2 = vadd.f32 1.0, %v9936_v47  ;;  %9957 = vrcp.f32 %v1892_v61 }
 0x35a   : > { %v9940_v25 = vpop.eup %9939  ;;  %v1897_v35 = vadd.f32 1.0, %v9938_v12  ;;  %9959 = vrcp.f32 %v1893_v14  ;;  %v1677_v14 = vmul.f32 %v11320_v18, %v11093_v42  ;;  %v1713_v26 = vmul.f32 %v11331_v22, %v1675_v29 }
 0x35b   : > { %v9942_v59 = vpop.eup %9941  ;;  %v1898_v36 = vadd.f32 1.0, %v9940_v25  ;;  %9961 = vrcp.f32 %v1894_v54  ;;  %v1712_v54 = vmul.f32 %v11331_v22, %v1674_v28  ;;  %v7553_v33 = vmul.f32 -1.442695, %v11496_v38 }
 0x35c   : > { %v9944_v53 = vpop.eup %9943  ;;  %v1899_v55 = vadd.f32 1.0, %v9942_v59  ;;  %9963 = vrcp.f32 %v1895_v21  ;;  %v11502_v21 = vadd.f32 %v11349_v57, %v1704_v34  ;;  %v1715_v7 = vmul.f32 %v11331_v22, %v1677_v14 }
 0x35d   : > { %v9946_v27 = vpop.eup %9945  ;;  %v1900_v61 = vadd.f32 1.0, %v9944_v53  ;;  %9965 = vrcp.f32 %v1896_v2  ;;  %v1714_v2 = vmul.f32 %v11331_v22, %v1676_v3 }
 0x35e   : > { %v9948_v13 = vpop.eup %9947  ;;  %9967 = vrcp.f32 %v1897_v35  ;;  %v1982_v9 = vmul.f32 %v9946_v27, %v11365_v1  ;;  %v7554_v53 = vmul.f32 -1.442695, %v11502_v21  ;;  %v11538_v29 = vadd.f32 %v11349_v57, %v1715_v7 }
 0x35f   : > { %v9950_v45 = vpop.eup %9949  ;;  %9969 = vrcp.f32 %v1898_v36  ;;  %v1983_v25 = vmul.f32 %v9948_v13, %v11368_v19  ;;  %v7560_v36 = vmul.f32 -1.442695, %v11477_v11  ;;  %v11519_v19 = vadd.f32 %v11349_v57, %v1712_v54 }
 0x360   : > { %v9952_v47 = vpop.eup %9951  ;;  %9971 = vrcp.f32 %v1899_v55  ;;  %v1984_v39 = vmul.f32 %v9950_v45, %v11371_v40  ;;  %2070 = vst.msk [vmem:[#allocation2 + $0xe1] sm:$0xff] %vm477_vm1, %v1982_v9  ;;  %v11512_v40 = vadd.f32 %v11349_v57, %v1711_v5  ;;  %v11532_v55 = vadd.f32 %v11349_v57, %v1714_v2 }
 0x361   : > { %v9954_v12 = vpop.eup %9953  ;;  %9973 = vrcp.f32 %v1900_v61  ;;  %v1985_v42 = vmul.f32 %v9952_v47, %v11374_v4  ;;  %2071 = vst.msk [vmem:[#allocation2 + $0xf1] sm:$0xff] %vm477_vm1, %v1983_v25  ;;  %v7562_v61 = vmul.f32 -1.442695, %v11519_v19  ;;  %v1678_v54 = vmul.f32 %v11320_v18, %v11100_v43 }
 0x362   : > { %v9956_v1 = vpop.eup %9955  ;;  %v1986_v35 = vmul.f32 %v9954_v12, %v11380_v23  ;;  %9975 = vpow2.f32 %v7557_v41  ;;  %2072 = vst.msk [vmem:[#allocation2 + $0xf9] sm:$0xff] %vm477_vm1, %v1984_v39  ;;  %v1679_v39 = vmul.f32 %v11320_v18, %v11107_v44 }
 0x363   : > { %v9958_v59 = vpop.eup %9957  ;;  %v1987_v4 = vmul.f32 %v9956_v1, %v11388_v58  ;;  %9977 = vpow2.f32 %v7558_v63  ;;  %2073 = vst.msk [vmem:[#allocation2 + $0x109] sm:$0xff] %vm477_vm1, %v1985_v42  ;;  %v11526_v58 = vadd.f32 %v11349_v57, %v1713_v26  ;;  %v1681_v42 = vmul.f32 %v11320_v18, %v11121_v51 }
 0x364   : > { %v9960_v23 = vpop.eup %9959  ;;  %v1988_v41 = vmul.f32 %v9958_v59, %v11393_v6  ;;  %2074 = vst.msk [vmem:[#allocation2 + $0x111] sm:$0xff] %vm477_vm1, %v1986_v35  ;;  %9979 = vpow2.f32 %v7555_v32  ;;  %v7561_v32 = vmul.f32 -1.442695, %v11512_v40  ;;  %v1716_v44 = vmul.f32 %v11331_v22, %v1678_v54 }
 0x365   : > { %v9962_v63 = vpop.eup %9961  ;;  %v1989_v28 = vmul.f32 %v9960_v23, %v11397_v16  ;;  %2075 = vst.msk [vmem:[#allocation2 + $0x121] sm:$0xff] %vm477_vm1, %v1987_v4  ;;  %9981 = vpow2.f32 %v7556_v31  ;;  %v1719_v51 = vmul.f32 %v11331_v22, %v1681_v42 }
 0x366   : > { %v9964_v6 = vpop.eup %9963  ;;  %v1990_v34 = vmul.f32 %v9962_v63, %v11404_v48  ;;  %2076 = vst.msk [vmem:[#allocation2 + $0x129] sm:$0xff] %vm477_vm1, %v1988_v41  ;;  %9983 = vpow2.f32 %v7559_v37  ;;  %v7563_v48 = vmul.f32 -1.442695, %v11526_v58  ;;  %v11571_v41 = vadd.f32 %v11349_v57, %v1716_v44 }
 0x367   : > { %v9966_v16 = vpop.eup %9965  ;;  %v1991_v27 = vmul.f32 %v9964_v6, %v11409_v8  ;;  %2077 = vst.msk [vmem:[#allocation2 + $0x139] sm:$0xff] %vm477_vm1, %v1989_v28  ;;  %9985 = vpow2.f32 %v7560_v36  ;;  %v7564_v8 = vmul.f32 -1.442695, %v11532_v55 }
 0x368   : > { %v9968_v31 = vpop.eup %9967  ;;  %v1992_v3 = vmul.f32 %v9966_v16, %v11414_v52  ;;  %2078 = vst.msk [vmem:[#allocation2 + $0x141] sm:$0xff] %vm477_vm1, %v1990_v34  ;;  %9987 = vpow2.f32 %v7553_v33  ;;  %v7565_v52 = vmul.f32 -1.442695, %v11538_v29 }
 0x369   : > { %v9970_v13 = vpop.eup %9969  ;;  %v1993_v37 = vmul.f32 %v9968_v31, %v11418_v56  ;;  %2079 = vst.msk [vmem:[#allocation2 + $0x151] sm:$0xff] %vm477_vm1, %v1991_v27  ;;  %9989 = vpow2.f32 %v7554_v53  ;;  %v11581_v31 = vadd.f32 %v11349_v57, %v1719_v51 }
 0x36a   : > { %v9972_v5 = vpop.eup %9971  ;;  %v1994_v14 = vmul.f32 %v9970_v13, %v11422_v15  ;;  %2080 = vst.msk [vmem:[#allocation2 + $0x159] sm:$0xff] %vm477_vm1, %v1992_v3  ;;  %9991 = vpow2.f32 %v7561_v32 }
 0x36b   : > { %v9974_v45 = vpop.eup %9973  ;;  %v1995_v9 = vmul.f32 %v9972_v5, %v11426_v60  ;;  %2081 = vst.msk [vmem:[#allocation2 + $0x169] sm:$0xff] %vm477_vm1, %v1993_v37  ;;  %9993 = vpow2.f32 %v7562_v61  ;;  %v1680_v60 = vmul.f32 %v11320_v18, %v11114_v50  ;;  %v1717_v50 = vmul.f32 %v11331_v22, %v1679_v39 }
 0x36c   : > { %v9976_v56 = vpop.eup %9975  ;;  %v1996_v47 = vmul.f32 %v9974_v45, %v11430_v62  ;;  %2082 = vst.msk [vmem:[#allocation2 + $0x171] sm:$0xff] %vm477_vm1, %v1994_v14  ;;  %9995 = vpow2.f32 %v7563_v48  ;;  %v7566_v61 = vmul.f32 -1.442695, %v11571_v41 }
 0x36d   : > { %v9978_v15 = vpop.eup %9977  ;;  %v1873_v26 = vadd.f32 1.0, %v9976_v56  ;;  %2083 = vst.msk [vmem:[#allocation2 + $0x181] sm:$0xff] %vm477_vm1, %v1995_v9  ;;  %9997 = vpow2.f32 %v7564_v8  ;;  %v1718_v4 = vmul.f32 %v11331_v22, %v1680_v60  ;;  %v11574_v6 = vadd.f32 %v11349_v57, %v1717_v50 }
 0x36e   : > { %v9980_v43 = vpop.eup %9979  ;;  %v1874_v12 = vadd.f32 1.0, %v9978_v15  ;;  %2084 = vst.msk [vmem:[#allocation2 + $0x189] sm:$0xff] %vm477_vm1, %v1996_v47  ;;  %9999 = vpow2.f32 %v7565_v52 }
 0x36f   : > { %v9982_v62 = vpop.eup %9981  ;;  %10001 = vrcp.f32 %v1873_v26  ;;  %v1871_v2 = vadd.f32 1.0, %v9980_v43  ;;  %v11577_v16 = vadd.f32 %v11349_v57, %v1718_v4  ;;  %v7567_v8 = vmul.f32 -1.442695, %v11574_v6  ;;  %v11921_v0 = vld [vmem:[#allocation2 + $0x148] sm:$0x3] }
 0x370   : > { %v9984_v25 = vpop.eup %9983  ;;  %10003 = vrcp.f32 %v1874_v12  ;;  %v1872_v1 = vadd.f32 1.0, %v9982_v62  ;;  %v7569_v57 = vmul.f32 -1.442695, %v11581_v31  ;;  %15610 = vst [vmem:[#allocation33_spill] sm:$0xff] %v11921_v0 }
 0x371   : > { %v9986_v35 = vpop.eup %9985  ;;  %10005 = vrcp.f32 %v1871_v2  ;;  %v1875_v7 = vadd.f32 1.0, %v9984_v25  ;;  %v7568_v52 = vmul.f32 -1.442695, %v11577_v16 }
 0x372   : > { %v9988_v59 = vpop.eup %9987  ;;  %10007 = vrcp.f32 %v1872_v1  ;;  %v1876_v36 = vadd.f32 1.0, %v9986_v35 }
 0x373   : > { %v9990_v23 = vpop.eup %9989  ;;  %10009 = vrcp.f32 %v1875_v7  ;;  %v1869_v18 = vadd.f32 1.0, %v9988_v59 }
 0x374   : > { %v9992_v33 = vpop.eup %9991  ;;  %10011 = vrcp.f32 %v1876_v36  ;;  %v1870_v63 = vadd.f32 1.0, %v9990_v23 }
 0x375   : > { %v9994_v28 = vpop.eup %9993  ;;  %10013 = vrcp.f32 %v1869_v18  ;;  %v1877_v53 = vadd.f32 1.0, %v9992_v33 }
 0x376   : > { %v9996_v34 = vpop.eup %9995  ;;  %10015 = vrcp.f32 %v1870_v63  ;;  %v1878_v32 = vadd.f32 1.0, %v9994_v28 }
 0x377   : > { %v9998_v22 = vpop.eup %9997  ;;  %10017 = vrcp.f32 %v1877_v53  ;;  %v1879_v27 = vadd.f32 1.0, %v9996_v34 }
 0x378   : > { %v10000_v3 = vpop.eup %9999  ;;  %10019 = vrcp.f32 %v1878_v32  ;;  %v1880_v48 = vadd.f32 1.0, %v9998_v22 }
 0x379   : > { %v10002_v13 = vpop.eup %10001  ;;  %10021 = vrcp.f32 %v1879_v27  ;;  %v1881_v37 = vadd.f32 1.0, %v10000_v3 }
 0x37a   : > { %v10004_v5 = vpop.eup %10003  ;;  %v1969_v14 = vmul.f32 %v10002_v13, %v11452_v20  ;;  %10023 = vrcp.f32 %v1880_v48 }
 0x37b   : > { %v10006_v45 = vpop.eup %10005  ;;  %v1970_v54 = vmul.f32 %v10004_v5, %v11457_v49  ;;  %10025 = vpow2.f32 %v7566_v61 }
 0x37c   : > { %v10008_v9 = vpop.eup %10007  ;;  %2057 = vst.msk [vmem:[#allocation2 + $0x49] sm:$0xff] %vm477_vm1, %v1969_v14  ;;  %v1967_v56 = vmul.f32 %v10006_v45, %v11463_v10  ;;  %10027 = vrcp.f32 %v1881_v37 }
 0x37d   : > { %v10010_v47 = vpop.eup %10009  ;;  %2058 = vst.msk [vmem:[#allocation2 + $0x51] sm:$0xff] %vm477_vm1, %v1970_v54  ;;  %v1968_v20 = vmul.f32 %v10008_v9, %v11466_v46  ;;  %10029 = vpow2.f32 %v7567_v8 }
 0x37e   : > { %v10012_v15 = vpop.eup %10011  ;;  %2055 = vst.msk [vmem:[#allocation2 + $0x31] sm:$0xff] %vm477_vm1, %v1967_v56  ;;  %v1971_v49 = vmul.f32 %v10010_v47, %v11474_v30  ;;  %10031 = vpow2.f32 %v7568_v52 }
 0x37f   : > { %v10014_v39 = vpop.eup %10013  ;;  %2056 = vst.msk [vmem:[#allocation2 + $0x39] sm:$0xff] %vm477_vm1, %v1968_v20  ;;  %v1972_v26 = vmul.f32 %v10012_v15, %v11477_v11  ;;  %10033 = vpow2.f32 %v7569_v57 }
 0x380   : > { %v10016_v10 = vpop.eup %10015  ;;  %2059 = vst.msk [vmem:[#allocation2 + $0x61] sm:$0xff] %vm477_vm1, %v1971_v49  ;;  %v1965_v43 = vmul.f32 %v10014_v39, %v11496_v38 }
 0x381   : > { %v10018_v60 = vpop.eup %10017  ;;  %2060 = vst.msk [vmem:[#allocation2 + $0x69] sm:$0xff] %vm477_vm1, %v1972_v26  ;;  %v1966_v46 = vmul.f32 %v10016_v10, %v11502_v21 }
 0x382   : > { %v10020_v12 = vpop.eup %10019  ;;  %2053 = vst.msk [vmem:[#allocation2 + $0x19] sm:$0xff] %vm477_vm1, %v1965_v43  ;;  %v1973_v30 = vmul.f32 %v10018_v60, %v11512_v40 }
 0x383   : > { %v10022_v62 = vpop.eup %10021  ;;  %v11602_v42 = vld [vmem:[#allocation2 + $0x48] sm:$0xff]  ;;  %2054 = vst.msk [vmem:[#allocation2 + $0x21] sm:$0xff] %vm477_vm1, %v1966_v46  ;;  %v1974_v11 = vmul.f32 %v10020_v12, %v11519_v19 }
 0x384   : > { %v10024_v2 = vpop.eup %10023  ;;  %v11606_v44 = vld [vmem:[#allocation2 + $0x50] sm:$0xff]  ;;  %v2284_v38 = vrot.slane %v11602_v42, 2  ;;  %v11609_v25 = vld [vmem:[#allocation2 + $0x58] sm:$0x3]  ;;  %2061 = vst.msk [vmem:[#allocation2 + $0x79] sm:$0xff] %vm477_vm1, %v1973_v30  ;;  %v1975_v21 = vmul.f32 %v10022_v62, %v11526_v58 }
 0x385   : > { %v10026_v1 = vpop.eup %10025  ;;  %v2285_v40 = vrot.slane %v11606_v44, 2  ;;  %v11616_v35 = vpack.i.bf16 %v11606_v44, %v11602_v42  ;;  %v11618_v7 = vld [vmem:[#allocation2 + $0x30] sm:$0xff]  ;;  %v2287_v19 = vrot.slane %v11609_v25, 2  ;;  %2062 = vst.msk [vmem:[#allocation2 + $0x81] sm:$0xff] %vm477_vm1, %v1974_v11  ;;  %v1976_v50 = vmul.f32 %v10024_v2, %v11532_v55 }
 0x386   : > { %v10028_v59 = vpop.eup %10027  ;;  %v11623_v4 = vld [vmem:[#allocation2 + $0x38] sm:$0xff]  ;;  %v11625_v36 = vld [vmem:[#allocation2 + $0x40] sm:$0x3]  ;;  %v2279_v58 = vrot.slane %v11618_v7, 2  ;;  %2063 = vst.msk [vmem:[#allocation2 + $0x91] sm:$0xff] %vm477_vm1, %v1975_v21  ;;  %v1882_v23 = vadd.f32 1.0, %v10026_v1 }
 0x387   : > { %v10030_v51 = vpop.eup %10029  ;;  %9073 = vrot.lane.b32.xlu0 %v11616_v35, %s10443_s23  ;;  %v9062_v18 = vpack.i.bf16 %v11623_v4, %v11618_v7  ;;  %v2280_v33 = vrot.slane %v11623_v4, 2  ;;  %v2282_v55 = vrot.slane %v11625_v36, 2  ;;  %v11635_v63 = vld [vmem:[#allocation2 + $0x60] sm:$0xff]  ;;  %v11638_v28 = vsel %vm2268_vm4, %v2284_v38, %v2285_v40  ;;  %2064 = vst.msk [vmem:[#allocation2 + $0x99] sm:$0xff] %vm477_vm1, %v1976_v50 }
 0x388   : > { %v10032_v53 = vpop.eup %10031  ;;  %v11641_v34 = vld [vmem:[#allocation2 + $0x68] sm:$0xff]  ;;  %v11644_v32 = vsel %vm2268_vm4, %v2285_v40, %v2287_v19  ;;  %v11646_v22 = vld [vmem:[#allocation2 + $0x70] sm:$0x3]  ;;  %v2289_v27 = vrot.slane %v11635_v63, 2  ;;  %10035 = vrcp.f32 %v1882_v23  ;;  %v1977_v54 = vmul.f32 %v10028_v59, %v11538_v29 }
 0x389   : > { %v10034_v61 = vpop.eup %10033  ;;  %9063 = vrot.lane.b32.xlu1 %v9062_v18, %s10443_s23  ;;  %v2281_v3 = vsel %vm2268_vm4, %v2279_v58, %v2280_v33  ;;  %v2283_v48 = vsel %vm2268_vm4, %v2280_v33, %v2282_v55  ;;  %v9082_v13 = vpack.i.bf16 %v11641_v34, %v11635_v63  ;;  %v3214_v37 = vpack.c.bf16 %v11644_v32, %v11638_v28  ;;  %v11656_v8 = vld [vmem:[#allocation2 + $0x18] sm:$0xff] }
 0x38a   : > { %v3211_v5 = vpack.c.bf16 %v2283_v48, %v2281_v3  ;;  %v11658_v14 = vld [vmem:[#allocation2 + $0x20] sm:$0xff]  ;;  %v2290_v52 = vrot.slane %v11641_v34, 2  ;;  %v2292_v45 = vrot.slane %v11646_v22, 2  ;;  %v1883_v56 = vadd.f32 1.0, %v10030_v51  ;;  %2065 = vst.msk [vmem:[#allocation2 + $0xa9] sm:$0xff] %vm477_vm1, %v1977_v54  ;;  %v11742_v54 = vld [vmem:[#allocation2 + $0xf8] sm:$0xff] }
 0x38b   : > { %9083 = vrot.lane.b32.xlu0 %v9082_v13, %s10443_s23  ;;  %v9067_v57 = vpack.i.bf16 %v11658_v14, %v11656_v8  ;;  %v11666_v9 = vld [vmem:[#allocation2 + $0x78] sm:$0xff]  ;;  %v1884_v47 = vadd.f32 1.0, %v10032_v53  ;;  %v1885_v26 = vadd.f32 1.0, %v10034_v61  ;;  %v11701_v58 = vpack.i.bf16 %v2283_v48, %v2281_v3  ;;  %15601 = vst [vmem:[#allocation24_spill] sm:$0xff] %v11742_v54 }
 0x38c   : > { %8396 = vmatprep.mubr.msk.bf16.mxu1 %vm477_vm1, %v3211_v5  ;;  %v2291_v20 = vsel %vm2268_vm4, %v2289_v27, %v2290_v52  ;;  %v2293_v15 = vsel %vm2268_vm4, %v2290_v52, %v2292_v45  ;;  %v11671_v49 = vld [vmem:[#allocation2 + $0x80] sm:$0xff]  ;;  %v11673_v39 = vld [vmem:[#allocation2 + $0x88] sm:$0x3]  ;;  %v2294_v29 = vrot.slane %v11666_v9, 2  ;;  %10037 = vrcp.f32 %v1883_v56  ;;  %v11740_v45 = vld [vmem:[#allocation2 + $0xf0] sm:$0xff] }
 0x38d   : > { %8397 = vmatmul.mubr.msk.bf16.vlgmr.msra.gmra.mrb[4].mxu1 %vm477_vm1, %v3214_v37  ;;  %9068 = vrot.lane.b32.xlu1 %v9067_v57, %s10445_s28  ;;  %v3217_v10 = vpack.c.bf16 %v2293_v15, %v2291_v20  ;;  %v9092_v43 = vpack.i.bf16 %v11671_v49, %v11666_v9  ;;  %v11681_v60 = vld [vmem:[#allocation2 + $0x90] sm:$0xff]  ;;  %v2295_v46 = vrot.slane %v11671_v49, 2  ;;  %v2297_v12 = vrot.slane %v11673_v39, 2  ;;  %15600 = vst [vmem:[#allocation23_spill] sm:$0xff] %v11740_v45  ;;  %v11744_v56 = vld [vmem:[#allocation2 + $0x100] sm:$0x3] }
 0x38e   : > { %v11685_v30 = vld [vmem:[#allocation2 + $0x98] sm:$0xff]  ;;  %v11687_v62 = vld [vmem:[#allocation2 + $0xa0] sm:$0x3]  ;;  %v2299_v11 = vrot.slane %v11681_v60, 2  ;;  %10039 = vrcp.f32 %v1884_v47  ;;  %v11718_v61 = vpack.i.bf16 %v2293_v15, %v2291_v20  ;;  %15602 = vst [vmem:[#allocation26_spill] sm:$0xff] %v11744_v56 }
 0x38f   : > { %8400 = vmatprep.mubr.msk.bf16.mxu1 %vm477_vm1, %v3217_v10  ;;  %9093 = vrot.lane.b32.xlu0 %v9092_v43, %s10443_s23  ;;  %v2300_v2 = vrot.slane %v11685_v30, 2  ;;  %v2296_v38 = vsel %vm2268_vm4, %v2294_v29, %v2295_v46  ;;  %v2298_v21 = vsel %vm2268_vm4, %v2295_v46, %v2297_v12  ;;  %v2302_v1 = vrot.slane %v11687_v62, 2  ;;  %v11749_v20 = vld [vmem:[#allocation2 + $0xe8] sm:$0x3] }
 0x390   : > { %v9102_v40 = vpack.i.bf16 %v11685_v30, %v11681_v60  ;;  %10041 = vrcp.f32 %v1885_v26  ;;  %v3220_v23 = vpack.c.bf16 %v2298_v21, %v2296_v38  ;;  %v11728_v5 = vpack.i.bf16 %v2298_v21, %v2296_v38  ;;  %v11760_v12 = vld [vmem:[#allocation2 + $0x108] sm:$0xff] }
 0x391   : > { %9078 = vrot.lane.b32.xlu1 %v9062_v18, %s10445_s28  ;;  %v2301_v19 = vsel %vm2268_vm4, %v2299_v11, %v2300_v2  ;;  %v2303_v59 = vsel %vm2268_vm4, %v2300_v2, %v2302_v1  ;;  %v11712_v18 = vpack.i.bf16 %v11644_v32, %v11638_v28  ;;  %v11714_v53 = vld [vmem:[#allocation2 + $0xa8] sm:$0xff]  ;;  %v2319_v29 = vrot.slane %v11740_v45, 2  ;;  %15603 = vst [vmem:[#allocation27_spill] sm:$0xff] %v11760_v12 }
 0x392   : > { %v10036_v50 = vpop.eup %10035  ;;  %v3223_v33 = vpack.c.bf16 %v2303_v59, %v2301_v19  ;;  %v2304_v48 = vrot.slane %v11714_v53, 2  ;;  %v11746_v47 = vpack.i.bf16 %v2303_v59, %v2301_v19  ;;  %v2320_v26 = vrot.slane %v11742_v54, 2  ;;  %v11776_v59 = vld [vmem:[#allocation2 + $0x110] sm:$0xff] }
 0x393   : > { %9103 = vrot.lane.b32.xlu0 %v9102_v40, %s10443_s23  ;;  %v1978_v51 = vmul.f32 %v10036_v50, %v11571_v41  ;;  %v2322_v46 = vrot.slane %v11744_v56, 2  ;;  %v2317_v38 = vrot.slane %v11749_v20, 2  ;;  %15604 = vst [vmem:[#allocation22_spill] sm:$0xff] %v11776_v59  ;;  %v11981_v56 = vld [vmem:[#allocation2 + $0x188] sm:$0xff] }
 0x395   : > { %8401 = vmatmul.mubr.msk.bf16.gmra.mrb[8].mxu1 %vm477_vm1, %v3220_v23  ;;  %9088 = vrot.lane.b32.xlu1 %v11616_v35, %s10445_s28  ;;  %2066 = vst.msk [vmem:[#allocation2 + $0xb1] sm:$0xff] %vm477_vm1, %v1978_v51 }
 0x396   : > { %8404 = vmatprep.mubr.msk.bf16.mxu1 %vm477_vm1, %v3223_v33  ;;  %v10038_v55 = vpop.eup %10037  ;;  %v11781_v33 = vsel %vm2268_vm4, %v2319_v29, %v2320_v26  ;;  %v11815_v29 = vld [vmem:[#allocation2 + $0x130] sm:$0x3] }
 0x397   : > { %v1979_v41 = vmul.f32 %v10038_v55, %v11574_v6  ;;  %15605 = vst [vmem:[#allocation25_spill] sm:$0xff] %v11781_v33  ;;  %v11783_v55 = vld [vmem:[#allocation2 + $0x118] sm:$0x3]  ;;  %15608 = vst [vmem:[#allocation31_spill] sm:$0xff] %v11815_v29 }
 0x398   : > { %v10040_v27 = vpop.eup %10039  ;;  %15606 = vst [vmem:[#allocation29_spill] sm:$0xff] %v11783_v55 }
 0x399   : > { %9098 = vrot.lane.b32.xlu1 %v9082_v13, %s10445_s28  ;;  %v1980_v35 = vmul.f32 %v10040_v27, %v11577_v16  ;;  %2067 = vst.msk [vmem:[#allocation2 + $0xc1] sm:$0xff] %vm477_vm1, %v1979_v41  ;;  %v2324_v41 = vrot.slane %v11760_v12, 2 }
 0x39a   : > { %v10042_v3 = vpop.eup %10041 }
 0x39b   : > { %v1981_v32 = vmul.f32 %v10042_v3, %v11581_v31  ;;  %2068 = vst.msk [vmem:[#allocation2 + $0xc9] sm:$0xff] %vm477_vm1, %v1980_v35  ;;  %v11794_v35 = vsel %vm2268_vm4, %v2320_v26, %v2322_v46  ;;  %v2327_v46 = vrot.slane %v11783_v55, 2 }
 0x39c   : > { %v11723_v37 = vld [vmem:[#allocation2 + $0xb0] sm:$0xff]  ;;  %v11725_v28 = vld [vmem:[#allocation2 + $0xb8] sm:$0x3]  ;;  %15607 = vst [vmem:[#allocation30_spill] sm:$0xff] %v11794_v35 }
 0x39d   : > { %v9112_v6 = vpack.i.bf16 %v11723_v37, %v11714_v53  ;;  %v2305_v13 = vrot.slane %v11723_v37, 2  ;;  %v2307_v16 = vrot.slane %v11725_v28, 2  ;;  %9108 = vrot.lane.b32.xlu1 %v9092_v43, %s10445_s28  ;;  %2069 = vst.msk [vmem:[#allocation2 + $0xd9] sm:$0xff] %vm477_vm1, %v1981_v32  ;;  %v9860_v32 = vld [vmem:[%s15398_s4] sm:$0xff]  }
 0x39f   : > { %9113 = vrot.lane.b32.xlu0 %v9112_v6, %s10443_s23  ;;  %v2306_v52 = vsel %vm2268_vm4, %v2304_v48, %v2305_v13  ;;  %v2308_v31 = vsel %vm2268_vm4, %v2305_v13, %v2307_v16  ;;  %v9859_v48 = vld [vmem:[%s15398_s4 + $0x40] sm:$0xff]  }
 0x3a0   : > { %v3226_v57 = vpack.c.bf16 %v2308_v31, %v2306_v52  ;;  %v11751_v15 = vld [vmem:[#allocation2 + $0xc0] sm:$0xff]  ;;  %v11756_v10 = vpack.i.bf16 %v2308_v31, %v2306_v52  ;;  %v11812_v31 = vld [vmem:[#allocation2 + $0x128] sm:$0xff]  ;;  %7776 = vmatprep.subr.bf16.mxu0 %v9859_v48 }
 0x3a1   : > { %9118 = vrot.lane.b32.xlu1 %v9102_v40, %s10445_s28  ;;  %v2309_v43 = vrot.slane %v11751_v15, 2  ;;  %v11810_v52 = vld [vmem:[#allocation2 + $0x120] sm:$0xff]  ;;  %7777 = vmatpush3.bf16.msra.mxu0 %v9860_v32  ;;  %v9861_v48 = vld [vmem:[%s15398_s4 + $0x48] sm:$0xff]  }
 0x3a2   : > { %8405 = vmatmul.mubr.msk.bf16.gmra.mrb[12].mxu1 %vm477_vm1, %v3226_v57  ;;  %v11762_v11 = vld [vmem:[#allocation2 + $0xc8] sm:$0xff]  ;;  %v11764_v2 = vld [vmem:[#allocation2 + $0xd0] sm:$0x3]  ;;  %v2325_v57 = vrot.slane %v11776_v59, 2  ;;  %7778 = vmatprep.subr.bf16.mxu0 %v9861_v48 }
 0x3a3   : > { %v9122_v21 = vpack.i.bf16 %v11762_v11, %v11751_v15  ;;  %v2310_v1 = vrot.slane %v11762_v11, 2  ;;  %v2312_v40 = vrot.slane %v11764_v2, 2  ;;  %v9862_v32 = vld [vmem:[%s15398_s4 + $0x8] sm:$0xff]  }
 0x3a4   : > { %v11771_v19 = vld [vmem:[#allocation2 + $0xd8] sm:$0xff]  ;;  %v11773_v50 = vld [vmem:[#allocation2 + $0xe0] sm:$0xff]  ;;  %v11961_v48 = vld [vmem:[#allocation2 + $0x168] sm:$0xff] }
 0x3a5   : > { %9128 = vrot.lane.b32.xlu1 %v9112_v6, %s10445_s28  ;;  %v2314_v23 = vrot.slane %v11771_v19, 2  ;;  %v2315_v51 = vrot.slane %v11773_v50, 2  ;;  %9123 = vrot.lane.b32.xlu0 %v9122_v21, %s10443_s23  ;;  %v11788_v27 = vsel %vm2268_vm4, %v2309_v43, %v2310_v1  ;;  %v11791_v3 = vsel %vm2268_vm4, %v2310_v1, %v2312_v40  ;;  %v11826_v1 = vld [vmem:[#allocation2 + $0x138] sm:$0xff] }
 0x3a6   : > { %v3229_v6 = vpack.c.bf16 %v11791_v3, %v11788_v27  ;;  %v9132_v26 = vpack.i.bf16 %v11773_v50, %v11771_v19  ;;  %v2329_v40 = vrot.slane %v11810_v52, 2  ;;  %v11925_v17 = vpack.i.bf16 %v11791_v3, %v11788_v27  ;;  %v11941_v27 = vld [vmem:[#allocation2 + $0x160] sm:$0x3]  ;;  %7779 = vmatpush3.bf16.msra.mxu0 %v9862_v32 }
 0x3a7   : > { %v11805_v13 = vsel %vm2268_vm4, %v2314_v23, %v2315_v51  ;;  %v11808_v16 = vsel %vm2268_vm4, %v2315_v51, %v2317_v38  ;;  %v3235_v38 = vpack.c.bf16 %v11794_v35, %v11781_v33  ;;  %v2332_v23 = vrot.slane %v11815_v29, 2  ;;  %v11833_v51 = vld [vmem:[#allocation2 + $0x140] sm:$0xff]  ;;  %15613 = vst [vmem:[#allocation36_spill] sm:$0xff] %v11941_v27 }
 0x3a8   : > { %v3232_v43 = vpack.c.bf16 %v11808_v16, %v11805_v13  ;;  %8408 = vmatprep.mubr.msk.bf16.mxu1 %vm477_vm1, %v3229_v6  ;;  %v9142_v6 = vpack.i.bf16 %v11742_v54, %v11740_v45  ;;  %v11928_v29 = vsel %vm2268_vm4, %v2325_v57, %v2327_v46  ;;  %v11933_v35 = vpack.i.bf16 %v11808_v16, %v11805_v13 }
 0x3a9   : > { %9138 = vrot.lane.b32.xlu1 %v9122_v21, %s10445_s28  ;;  %9133 = vrot.lane.b32.xlu0 %v9132_v26, %s10443_s23  ;;  %v2330_v21 = vrot.slane %v11812_v31, 2  ;;  %15611 = vst [vmem:[#allocation34_spill] sm:$0xff] %v11928_v29  ;;  %v2334_v33 = vrot.slane %v11826_v1, 2  ;;  %v2335_v55 = vrot.slane %v11833_v51, 2  ;;  %v2337_v16 = vrot.slane %v11921_v0, 2 }
 0x3aa   : > { %8409 = vmatmul.mubr.msk.bf16.gmra.mrb[16].mxu1 %vm477_vm1, %v3232_v43  ;;  %v11919_v43 = vsel %vm2268_vm4, %v2324_v41, %v2325_v57  ;;  %15612 = vst [vmem:[#allocation35_spill] sm:$0xff] %v11933_v35  ;;  %v11937_v41 = vld [vmem:[#allocation2 + $0x158] sm:$0xff]  ;;  %v9863_v57 = vld [vmem:[%s15398_s4 + $0x50] sm:$0xff]   ;;  %v9152_v46 = vpack.i.bf16 %v11776_v59, %v11760_v12  ;;  %v2342_v35 = vrot.slane %v11941_v27, 2 }
 0x3ab   : > { %8412 = vmatprep.mubr.msk.bf16.mxu1 %vm477_vm1, %v3235_v38  ;;  %15609 = vst [vmem:[#allocation32_spill] sm:$0xff] %v11919_v43  ;;  %v11935_v38 = vld [vmem:[#allocation2 + $0x150] sm:$0xff]  ;;  %v11945_v3 = vsel %vm2268_vm4, %v2329_v40, %v2330_v21  ;;  %v11948_v13 = vsel %vm2268_vm4, %v2330_v21, %v2332_v23  ;;  %v3238_v40 = vpack.c.bf16 %v11928_v29, %v11919_v43  ;;  %v11965_v23 = vld [vmem:[#allocation2 + $0x178] sm:$0x3]  ;;  %v2340_v0 = vrot.slane %v11937_v41, 2  ;;  %v11974_v43 = vld [vmem:[#allocation2 + $0x180] sm:$0xff] }
 0x3ac   : > { %15614 = vst [vmem:[#allocation37_spill] sm:$0xff] %v11945_v3  ;;  %15615 = vst [vmem:[#allocation38_spill] sm:$0xff] %v11948_v13  ;;  %v11963_v21 = vld [vmem:[#allocation2 + $0x170] sm:$0xff]  ;;  %v2339_v32 = vrot.slane %v11935_v38, 2  ;;  %7780 = vmatprep.subr.bf16.mxu0 %v9863_v57  ;;  %v3241_v59 = vpack.c.bf16 %v11948_v13, %v11945_v3  ;;  %v2336_v29 = vsel %vm2268_vm4, %v2334_v33, %v2335_v55  ;;  %v2344_v57 = vrot.slane %v11961_v48, 2  ;;  %v9865_v33 = vld [vmem:[%s15398_s4 + $0x58] sm:$0xff]  }
 0x3ad   : > { %9148 = vrot.lane.b32.xlu1 %v9132_v26, %s10445_s28  ;;  %9143 = vrot.lane.b32.xlu0 %v9142_v6, %s10443_s23  ;;  %v9864_v26 = vld [vmem:[%s15398_s4 + $0x10] sm:$0xff]   ;;  %15616 = vst [vmem:[#allocation39_spill] sm:$0xff] %v11965_v23  ;;  %v2345_v27 = vrot.slane %v11963_v21, 2  ;;  %v2347_v13 = vrot.slane %v11965_v23, 2  ;;  %v2390_v23 = vrot.slane %v11981_v56, 2  ;;  %v2389_v3 = vrot.slane %v11974_v43, 2 }
 0x3ae   : > { %v11976_v12 = vld [vmem:[#allocation2 + $0x190] sm:$0x3]  ;;  %7781 = vmatpush3.bf16.msra.mxu0 %v9864_v26  ;;  %v9866_v26 = vld [vmem:[%s15398_s4 + $0x18] sm:$0xff]  }
 0x3af   : > { %15617 = vst [vmem:[#allocation40_spill] sm:$0xff] %v11976_v12  ;;  %7782 = vmatprep.subr.bf16.mxu0 %v9865_v33  ;;  %v2392_v54 = vrot.slane %v11976_v12, 2  ;;  %v9172_v33 = vpack.i.bf16 %v11833_v51, %v11826_v1 }
 0x3b1   : > { %9158 = vrot.lane.b32.xlu1 %v9142_v6, %s10445_s28  ;;  %9153 = vrot.lane.b32.xlu0 %v9152_v46, %s10443_s23  ;;  %v2338_v6 = vsel %vm2268_vm4, %v2335_v55, %v2337_v16  ;;  %v9162_v55 = vpack.i.bf16 %v11812_v31, %v11810_v52  ;;  %v2341_v16 = vsel %vm2268_vm4, %v2339_v32, %v2340_v0 }
 0x3b2   : > { %8413 = vmatmul.mubr.msk.bf16.gmra.mrb[20].mxu1 %vm477_vm1, %v3238_v40  ;;  %v2343_v40 = vsel %vm2268_vm4, %v2340_v0, %v2342_v35  ;;  %v12001_v45 = vpack.i.bf16 %v2338_v6, %v2336_v29  ;;  %7783 = vmatpush3.bf16.msra.mxu0 %v9866_v26  ;;  %v9867_v0 = vld [vmem:[%s15398_s4 + $0x60] sm:$0xff]   ;;  %v3244_v26 = vpack.c.bf16 %v2338_v6, %v2336_v29  ;;  %v9869_v29 = vld [vmem:[%s15398_s4 + $0x68] sm:$0xff]  }
 0x3b3   : > { %8416 = vmatprep.mubr.msk.bf16.mxu1 %vm477_vm1, %v3241_v59  ;;  %v2346_v59 = vsel %vm2268_vm4, %v2344_v57, %v2345_v27  ;;  %v9868_v35 = vld [vmem:[%s15398_s4 + $0x20] sm:$0xff]   ;;  %v12012_v32 = vpack.i.bf16 %v2343_v40, %v2341_v16  ;;  %v3247_v12 = vpack.c.bf16 %v2343_v40, %v2341_v16  ;;  %7784 = vmatprep.subr.bf16.mxu0 %v9867_v0  ;;  %v9870_v6 = vld [vmem:[%s15398_s4 + $0x28] sm:$0xff]   ;;  %v2194_v16 = vrot.slane %v11658_v14, 1  ;;  %v9872_v0 = vld [vmem:[%s15398_s4 + $0x30] sm:$0xff]  }
 0x3b5   : > { %9168 = vrot.lane.b32.xlu1 %v9152_v46, %s10445_s28  ;;  %9163 = vrot.lane.b32.xlu0 %v9162_v55, %s10443_s23  ;;  %v2348_v46 = vsel %vm2268_vm4, %v2345_v27, %v2347_v13  ;;  %v12018_v27 = vsel %vm2268_vm4, %v2389_v3, %v2390_v23  ;;  %v12021_v13 = vsel %vm2268_vm4, %v2390_v23, %v2392_v54  ;;  %v2090_v3 = vld [vmem:[#allocation2 + $0x28] sm:$0x3] }
 0x3b6   : > { %15618 = vst [vmem:[#allocation41_spill] sm:$0xff] %v12018_v27  ;;  %15619 = vst [vmem:[#allocation42_spill] sm:$0xff] %v12021_v13  ;;  %7785 = vmatpush3.bf16.msra.mxu0 %v9868_v35  ;;  %v12023_v57 = vpack.i.bf16 %v2348_v46, %v2346_v59  ;;  %v9182_v54 = vpack.i.bf16 %v11937_v41, %v11935_v38  ;;  %v2196_v40 = vrot.slane %v2090_v3, 1  ;;  %v2277_v23 = vrot.slane %v2090_v3, 2 }
 0x3b7   : > { %7786 = vmatprep.subr.bf16.mxu0 %v9869_v29  ;;  %v9192_v35 = vpack.i.bf16 %v11963_v21, %v11961_v48  ;;  %v2274_v29 = vrot.slane %v11656_v8, 2 }
 0x3b8   : > { %15620 = vst [vmem:[#allocation43_spill] sm:$0xff] %v12023_v57  ;;  %v9873_v57 = vld [vmem:[%s15398_s4 + $0x78] sm:$0xff]   ;;  %v12071_v3 = vsel %vm2187_vm3, %v2194_v16, %v2196_v40  ;;  %v2201_v40 = vrot.slane %v11625_v36, 1 }
 0x3b9   : > { %9178 = vrot.lane.b32.xlu1 %v9162_v55, %s10445_s28  ;;  %9173 = vrot.lane.b32.xlu0 %v9172_v33, %s10443_s23  ;;  %v2193_v55 = vrot.slane %v11656_v8, 1 }
 0x3ba   : > { %8417 = vmatmul.mubr.msk.bf16.gmra.mrb[24].mxu1 %vm477_vm1, %v3244_v26  ;;  %7787 = vmatpush3.bf16.msra.mxu0 %v9870_v6  ;;  %v3253_v26 = vpack.c.bf16 %v12021_v13, %v12018_v27  ;;  %v2275_v6 = vrot.slane %v11658_v14, 2  ;;  %v2198_v27 = vrot.slane %v11618_v7, 1  ;;  %v12090_v13 = vld [vmem:[#allocation2 + $0x1a8] sm:$0x3] }
 0x3bb   : > { %8420 = vmatprep.mubr.msk.bf16.mxu1 %vm477_vm1, %v3247_v12  ;;  %v9871_v12 = vld [vmem:[%s15398_s4 + $0x70] sm:$0xff]   ;;  %v12068_v14 = vsel %vm2187_vm3, %v2193_v55, %v2194_v16  ;;  %v2199_v16 = vrot.slane %v11623_v4, 1 }
 0x3bc   : > { %7788 = vmatprep.subr.bf16.mxu0 %v9871_v12  ;;  %v9874_v12 = vld [vmem:[%s15398_s4 + $0x38] sm:$0xff]   ;;  %v2276_v55 = vsel %vm2268_vm4, %v2274_v29, %v2275_v6 }
 0x3bd   : > { %9188 = vrot.lane.b32.xlu1 %v9172_v33, %s10445_s28  ;;  %9183 = vrot.lane.b32.xlu0 %v9182_v54, %s10443_s23  ;;  %v3250_v33 = vpack.c.bf16 %v2348_v46, %v2346_v59  ;;  %v12060_v59 = vld [vmem:[#allocation2 + $0x1a0] sm:$0xff]  ;;  %v12099_v4 = vsel %vm2187_vm3, %v2198_v27, %v2199_v16  ;;  %v12102_v36 = vsel %vm2187_vm3, %v2199_v16, %v2201_v40  ;;  %v2204_v27 = vrot.slane %v11606_v44, 1 }
 0x3be   : > { %v2398_v46 = vrot.slane %v12060_v59, 1  ;;  %7789 = vmatpush3.bf16.msra.mxu0 %v9872_v0  ;;  %v9227_v0 = vpack.i.bf16 %v12071_v3, %v12068_v14  ;;  %v2208_v44 = vrot.slane %v11635_v63, 1 }
 0x3bf   : > { %7790 = vmatprep.subr.bf16.mxu0 %v9873_v57 }
 0x3c1   : > { %9198 = vrot.lane.b32.xlu1 %v9182_v54, %s10445_s28  ;;  %9193 = vrot.lane.b32.xlu0 %v9192_v35, %s10443_s23  ;;  %v12063_v54 = vld [vmem:[#allocation2 + $0x198] sm:$0xff] }
 0x3c2   : > { %8421 = vmatmul.mubr.msk.bf16.gmra.mrb[28].mxu1 %vm477_vm1, %v3250_v33  ;;  %v2397_v8 = vrot.slane %v12063_v54, 1  ;;  %v12078_v33 = vpack.i.bf16 %v11981_v56, %v11974_v43  ;;  %7791 = vmatpush3.bf16.msra.mxu0 %v9874_v12  ;;  %v2206_v12 = vrot.slane %v11609_v25, 1  ;;  %v2209_v25 = vrot.slane %v11641_v34, 1 }
 0x3c3   : > { %8424 = vmatprep.mubr.msk.bf16.mxu1 %vm477_vm1, %v3253_v26  ;;  %v2278_v26 = vsel %vm2268_vm4, %v2275_v6, %v2277_v23  ;;  %v2400_v23 = vrot.slane %v12090_v13, 1  ;;  %8844 = vmatprep.subr.bf16.mxu0 %v15592_v24  ;;  %v9217_v6 = vpack.i.bf16 %v12102_v36, %v12099_v4  ;;  %v2213_v34 = vrot.slane %v11666_v9, 1  ;;  %v15637_v24 = vld [vmem:[#allocation32_spill] sm:$0xff] }
 0x3c4   : > { %v12093_v7 = vsel %vm2187_vm3, %v2397_v8, %v2398_v46  ;;  %v9212_v57 = vpack.i.bf16 %v2278_v26, %v2276_v55  ;;  %v2203_v8 = vrot.slane %v11602_v42, 1  ;;  %v12122_v55 = vsel %vm2187_vm3, %v2204_v27, %v2206_v12 }
 0x3c5   : > { %9208 = vrot.lane.b32.xlu1 %v9192_v35, %s10445_s28  ;;  %9203 = vrot.lane.b32.xlu0 %v12078_v33, %s10443_s23  ;;  %v12106_v35 = vsel %vm2187_vm3, %v2398_v46, %v2400_v23  ;;  %v2211_v26 = vrot.slane %v11646_v22, 1  ;;  %v12136_v16 = vsel %vm2187_vm3, %v2208_v44, %v2209_v25  ;;  %v2214_v22 = vrot.slane %v11671_v49, 1 }
 0x3c6   : > { %v12119_v46 = vsel %vm2187_vm3, %v2203_v8, %v2204_v27  ;;  %v2218_v49 = vrot.slane %v11681_v60, 1  ;;  %v12185_v8 = vpop.permute.xlu0 %9048  ;;  %v2231_v44 = vrot.slane %v11764_v2, 1  ;;  %v2233_v2 = vrot.slane %v11771_v19, 1  ;;  %v15623_v19 = vld [vmem:[#allocation23_spill] sm:$0xff] }
 0x3c7   : > { %v9237_v42 = vpack.i.bf16 %v12122_v55, %v12119_v46  ;;  %v12139_v40 = vsel %vm2187_vm3, %v2209_v25, %v2211_v26  ;;  %15621 = vst [vmem:[#allocation44_spill] sm:$0xff] %v12185_v8  ;;  %v15638_v8 = vld [vmem:[#allocation34_spill] sm:$0xff] }
 0x3c8   : > { %v9257_v63 = vpack.i.bf16 %v12139_v40, %v12136_v16 }
 0x3c9   : > { %9228 = vrot.lane.b32.xlu1 %v9227_v0, %s10444_s30  ;;  %9213 = vrot.lane.b32.xlu0 %v9212_v57, %s10444_s30  ;;  %v12153_v0 = vsel %vm2187_vm3, %v2213_v34, %v2214_v22  ;;  %v2236_v34 = vrot.slane %v11749_v20, 1 }
 0x3cd   : > { %9233 = vrot.lane.b32.xlu1 %v9212_v57, %s10443_s23  ;;  %9218 = vrot.lane.b32.xlu0 %v9217_v6, %s10445_s28 }
 0x3d1   : > { %9248 = vrot.lane.b32.xlu1 %v9217_v6, %s10444_s30  ;;  %9223 = vrot.lane.b32.xlu0 %v11701_v58, %s10444_s30 }
 0x3d5   : > { %9253 = vrot.lane.b32.xlu1 %v11701_v58, %s10443_s23  ;;  %9238 = vrot.lane.b32.xlu0 %v9237_v42, %s10445_s28  ;;  %v2216_v58 = vrot.slane %v11673_v39, 1  ;;  %v2219_v39 = vrot.slane %v11685_v30, 1  ;;  %v2223_v30 = vrot.slane %v11714_v53, 1 }
 0x3d7   : > { %v12156_v57 = vsel %vm2187_vm3, %v2214_v22, %v2216_v58  ;;  %v12170_v23 = vsel %vm2187_vm3, %v2218_v49, %v2219_v39 }
 0x3d8   : > { %v9277_v9 = vpack.i.bf16 %v12156_v57, %v12153_v0 }
 0x3d9   : > { %9268 = vrot.lane.b32.xlu1 %v9237_v42, %s10444_s30  ;;  %9243 = vrot.lane.b32.xlu0 %v11712_v18, %s10444_s30  ;;  %v2229_v42 = vrot.slane %v11762_v11, 1 }
 0x3db   : > { %v12213_v26 = vsel %vm2187_vm3, %v2229_v42, %v2231_v44 }
 0x3dd   : > { %9273 = vrot.lane.b32.xlu1 %v11712_v18, %s10443_s23  ;;  %9258 = vrot.lane.b32.xlu0 %v9257_v63, %s10445_s28  ;;  %v2221_v18 = vrot.slane %v11687_v62, 1  ;;  %v2224_v62 = vrot.slane %v11723_v37, 1  ;;  %v12200_v37 = vpop.permute.xlu0 %9053 }
 0x3df   : > { %v12173_v6 = vsel %vm2187_vm3, %v2219_v39, %v2221_v18  ;;  %v12189_v27 = vsel %vm2187_vm3, %v2223_v30, %v2224_v62  ;;  %v15624_v39 = vld [vmem:[#allocation24_spill] sm:$0xff] }
 0x3e0   : > { %v9297_v60 = vpack.i.bf16 %v12173_v6, %v12170_v23  ;;  %v2239_v18 = vrot.slane %v15624_v39, 1 }
 0x3e1   : > { %9288 = vrot.lane.b32.xlu1 %v9257_v63, %s10444_s30  ;;  %9263 = vrot.lane.b32.xlu0 %v11718_v61, %s10444_s30  ;;  %v2234_v63 = vrot.slane %v11773_v50, 1  ;;  %v2238_v50 = vrot.slane %v15623_v19, 1  ;;  %v15631_v19 = vld [vmem:[#allocation29_spill] sm:$0xff] }
 0x3e3   : > { %v12238_v49 = vsel %vm2187_vm3, %v2234_v63, %v2236_v34  ;;  %v15630_v34 = vld [vmem:[#allocation22_spill] sm:$0xff] }
 0x3e5   : > { %9293 = vrot.lane.b32.xlu1 %v11718_v61, %s10443_s23  ;;  %9278 = vrot.lane.b32.xlu0 %v9277_v9, %s10445_s28  ;;  %v2226_v61 = vrot.slane %v11725_v28, 1  ;;  %v12202_v28 = vpop.permute.xlu1 %9058 }
 0x3e7   : > { %v12192_v12 = vsel %vm2187_vm3, %v2224_v62, %v2226_v61 }
 0x3e8   : > { %v9317_v53 = vpack.i.bf16 %v12192_v12, %v12189_v27 }
 0x3e9   : > { %9308 = vrot.lane.b32.xlu1 %v9277_v9, %s10444_s30  ;;  %9283 = vrot.lane.b32.xlu0 %v11728_v5, %s10444_s30  ;;  %v12235_v9 = vsel %vm2187_vm3, %v2233_v2, %v2234_v63  ;;  %v15629_v2 = vld [vmem:[#allocation27_spill] sm:$0xff] }
 0x3ea   : > { %15622 = vst [vmem:[#allocation45_spill] sm:$0xff] %v12235_v9  ;;  %v9357_v20 = vpack.i.bf16 %v12238_v49, %v12235_v9  ;;  %v2243_v63 = vrot.slane %v15629_v2, 1 }
 0x3ed   : > { %9313 = vrot.lane.b32.xlu1 %v11728_v5, %s10443_s23  ;;  %9298 = vrot.lane.b32.xlu0 %v9297_v60, %s10445_s28  ;;  %v2228_v5 = vrot.slane %v11751_v15, 1 }
 0x3ef   : > { %v12210_v25 = vsel %vm2187_vm3, %v2228_v5, %v2229_v42 }
 0x3f0   : > { %v9337_v11 = vpack.i.bf16 %v12213_v26, %v12210_v25 }
 0x3f1   : > { %9328 = vrot.lane.b32.xlu1 %v9297_v60, %s10444_s30  ;;  %9303 = vrot.lane.b32.xlu0 %v11746_v47, %s10444_s30  ;;  %v15625_v60 = vld [vmem:[#allocation26_spill] sm:$0xff] }
 0x3f2   : > { %v2241_v30 = vrot.slane %v15625_v60, 1  ;;  %v15633_v60 = vld [vmem:[#allocation30_spill] sm:$0xff] }
 0x3f4   : > { %v12261_v5 = vsel %vm2187_vm3, %v2239_v18, %v2241_v30 }
 0x3f5   : > { %9333 = vrot.lane.b32.xlu1 %v11746_v47, %s10443_s23  ;;  %9318 = vrot.lane.b32.xlu0 %v9317_v53, %s10445_s28  ;;  %15627 = vst [vmem:[#allocation24_spill] sm:$0xff] %v12261_v5 }
 0x3f9   : > { %9348 = vrot.lane.b32.xlu1 %v9317_v53, %s10444_s30  ;;  %9323 = vrot.lane.b32.xlu0 %v11756_v10, %s10444_s30  ;;  %v12217_v47 = vpop.permute.xlu0 %9073  ;;  %v12258_v53 = vsel %vm2187_vm3, %v2238_v50, %v2239_v18  ;;  %v2246_v50 = vrot.slane %v15631_v19, 1  ;;  %v15632_v18 = vld [vmem:[#allocation25_spill] sm:$0xff] }
 0x3fa   : > { %15626 = vst [vmem:[#allocation23_spill] sm:$0xff] %v12258_v53  ;;  %v9377_v44 = vpack.i.bf16 %v12261_v5, %v12258_v53  ;;  %v9382_v30 = vpack.i.bf16 %v15633_v60, %v15632_v18  ;;  %v2248_v18 = vrot.slane %v11810_v52, 1  ;;  %v9402_v53 = vpack.i.bf16 %v15638_v8, %v15637_v24  ;;  %v15643_v5 = vld [vmem:[#allocation38_spill] sm:$0xff] }
 0x3fb   : > { %v12219_v15 = vpop.permute.xlu1 %9063  ;;  %v2253_v24 = vrot.slane %v11826_v1, 1  ;;  %v2254_v8 = vrot.slane %v11833_v51, 1 }
 0x3fd   : > { %9353 = vrot.lane.b32.xlu1 %v11756_v10, %s10443_s23  ;;  %9338 = vrot.lane.b32.xlu0 %v9337_v11, %s10445_s28  ;;  %v12231_v58 = vpop.permute.xlu0 %9083 }
 0x3ff   : > { %v12229_v22 = vpop.permute.xlu1 %9068 }
 0x401   : > { %9368 = vrot.lane.b32.xlu1 %v9337_v11, %s10444_s30  ;;  %9343 = vrot.lane.b32.xlu0 %v11925_v17, %s10444_s30  ;;  %v12252_v62 = vpop.permute.xlu0 %9093 }
 0x403   : > { %v12242_v10 = vpop.permute.xlu1 %9078 }
 0x405   : > { %9373 = vrot.lane.b32.xlu1 %v11925_v17, %s10443_s23  ;;  %9358 = vrot.lane.b32.xlu0 %v9357_v20, %s10445_s28  ;;  %v15628_v17 = vld [vmem:[#allocation35_spill] sm:$0xff]  ;;  %v12269_v11 = vpop.permute.xlu0 %9103 }
 0x407   : > { %v12254_v61 = vpop.permute.xlu1 %9088 }
 0x409   : > { %9388 = vrot.lane.b32.xlu1 %v9357_v20, %s10444_s30  ;;  %9363 = vrot.lane.b32.xlu0 %v15628_v17, %s10444_s30  ;;  %v2244_v20 = vrot.slane %v15630_v34, 1 }
 0x40b   : > { %v12265_v42 = vpop.permute.xlu1 %9098  ;;  %v12283_v29 = vsel %vm2187_vm3, %v2243_v63, %v2244_v20  ;;  %v15636_v63 = vld [vmem:[#allocation31_spill] sm:$0xff] }
 0x40c   : > { %15634 = vst [vmem:[#allocation26_spill] sm:$0xff] %v12283_v29  ;;  %v2251_v60 = vrot.slane %v15636_v63, 1 }
 0x40d   : > { %9393 = vrot.lane.b32.xlu1 %v15628_v17, %s10443_s23  ;;  %9378 = vrot.lane.b32.xlu0 %v9377_v44, %s10445_s28  ;;  %v12286_v17 = vsel %vm2187_vm3, %v2244_v20, %v2246_v50 }
 0x40e   : > { %15635 = vst [vmem:[#allocation35_spill] sm:$0xff] %v12286_v17  ;;  %v9397_v19 = vpack.i.bf16 %v12286_v17, %v12283_v29  ;;  %v15642_v17 = vld [vmem:[#allocation37_spill] sm:$0xff] }
 0x40f   : > { %v12277_v39 = vpop.permute.xlu1 %9108  ;;  %v9422_v9 = vpack.i.bf16 %v15643_v5, %v15642_v17  ;;  %v2258_v5 = vrot.slane %v11935_v38, 1  ;;  %v2259_v17 = vrot.slane %v11937_v41, 1 }
 0x411   : > { %9408 = vrot.lane.b32.xlu1 %v9377_v44, %s10444_s30  ;;  %9383 = vrot.lane.b32.xlu0 %v9382_v30, %s10444_s30  ;;  %v12289_v2 = vpop.permute.xlu0 %9113  ;;  %v2249_v44 = vrot.slane %v11812_v31, 1 }
 0x413   : > { %v12291_v34 = vpop.permute.xlu1 %9118  ;;  %v12308_v29 = vsel %vm2187_vm3, %v2248_v18, %v2249_v44  ;;  %v12311_v52 = vsel %vm2187_vm3, %v2249_v44, %v2251_v60 }
 0x414   : > { %15639 = vst [vmem:[#allocation27_spill] sm:$0xff] %v12308_v29  ;;  %15640 = vst [vmem:[#allocation22_spill] sm:$0xff] %v12311_v52  ;;  %v9417_v63 = vpack.i.bf16 %v12311_v52, %v12308_v29  ;;  %v12333_v29 = vsel %vm2187_vm3, %v2253_v24, %v2254_v8  ;;  %v12356_v52 = vsel %vm2187_vm3, %v2258_v5, %v2259_v17  ;;  %v2264_v5 = vrot.slane %v11963_v21, 1 }
 0x415   : > { %9413 = vrot.lane.b32.xlu1 %v9382_v30, %s10443_s23  ;;  %9398 = vrot.lane.b32.xlu0 %v9397_v19, %s10445_s28  ;;  %15644 = vst [vmem:[#allocation29_spill] sm:$0xff] %v12333_v29  ;;  %15647 = vst [vmem:[#allocation30_spill] sm:$0xff] %v12356_v52  ;;  %v2402_v21 = vrot.slane %v12063_v54, 2  ;;  %v9056_v54 = vunpack.i.h.bf16 %v12200_v37 }
 0x417   : > { %v12300_v20 = vpop.permute.xlu1 %9128  ;;  %v12302_v50 = vpop.permute.xlu0 %9123 }
 0x419   : > { %9428 = vrot.lane.b32.xlu1 %v9397_v19, %s10444_s30  ;;  %9403 = vrot.lane.b32.xlu0 %v9402_v53, %s10444_s30  ;;  %v15641_v19 = vld [vmem:[#allocation33_spill] sm:$0xff] }
 0x41a   : > { %v2256_v18 = vrot.slane %v15641_v19, 1 }
 0x41b   : > { %v12314_v31 = vpop.permute.xlu1 %9138  ;;  %v12316_v30 = vpop.permute.xlu0 %9133 }
 0x41c   : > { %v12336_v1 = vsel %vm2187_vm3, %v2254_v8, %v2256_v18 }
 0x41d   : > { %9433 = vrot.lane.b32.xlu1 %v9402_v53, %s10443_s23  ;;  %9418 = vrot.lane.b32.xlu0 %v9417_v63, %s10445_s28  ;;  %15645 = vst [vmem:[#allocation25_spill] sm:$0xff] %v12336_v1  ;;  %v9437_v19 = vpack.i.bf16 %v12336_v1, %v12333_v29 }
 0x41f   : > { %v12325_v44 = vpop.permute.xlu1 %9148  ;;  %v12327_v60 = vpop.permute.xlu0 %9143 }
 0x421   : > { %9448 = vrot.lane.b32.xlu1 %v9417_v63, %s10444_s30  ;;  %9423 = vrot.lane.b32.xlu0 %v9422_v9, %s10444_s30  ;;  %v15646_v63 = vld [vmem:[#allocation36_spill] sm:$0xff] }
 0x422   : > { %v2261_v24 = vrot.slane %v15646_v63, 1  ;;  %v15650_v63 = vld [vmem:[#allocation39_spill] sm:$0xff] }
 0x423   : > { %v12339_v51 = vpop.permute.xlu1 %9158  ;;  %v12341_v53 = vpop.permute.xlu0 %9153 }
 0x424   : > { %v12359_v29 = vsel %vm2187_vm3, %v2259_v17, %v2261_v24  ;;  %v2266_v17 = vrot.slane %v15650_v63, 1 }
 0x425   : > { %9453 = vrot.lane.b32.xlu1 %v9422_v9, %s10443_s23  ;;  %9438 = vrot.lane.b32.xlu0 %v9437_v19, %s10445_s28  ;;  %15648 = vst [vmem:[#allocation31_spill] sm:$0xff] %v12359_v29  ;;  %v9457_v9 = vpack.i.bf16 %v12359_v29, %v12356_v52 }
 0x426   : > { %v12384_v52 = vsel %vm2187_vm3, %v2264_v5, %v2266_v17  ;;  %v15657_v17 = vld [vmem:[#allocation40_spill] sm:$0xff] }
 0x427   : > { %v12350_v8 = vpop.permute.xlu1 %9168  ;;  %v12352_v18 = vpop.permute.xlu0 %9163  ;;  %15654 = vst [vmem:[#allocation38_spill] sm:$0xff] %v12384_v52  ;;  %v2355_v29 = vrot.slane %v15657_v17, 1  ;;  %v15662_v17 = vld [vmem:[#allocation43_spill] sm:$0xff] }
 0x429   : > { %9468 = vrot.lane.b32.xlu1 %v9437_v19, %s10444_s30  ;;  %9443 = vrot.lane.b32.xlu0 %v12001_v45, %s10444_s30  ;;  %v2263_v19 = vrot.slane %v11961_v48, 1  ;;  %v2403_v48 = vrot.slane %v12060_v59, 2 }
 0x42b   : > { %v12363_v38 = vpop.permute.xlu1 %9178  ;;  %v12365_v41 = vpop.permute.xlu0 %9173 }
 0x42c   : > { %15649 = vst [vmem:[#allocation32_spill] sm:$0xff] %v12365_v41  ;;  %v12381_v41 = vsel %vm2187_vm3, %v2263_v19, %v2264_v5  ;;  %v2352_v19 = vrot.slane %v11974_v43, 1  ;;  %v2353_v5 = vrot.slane %v11981_v56, 1 }
 0x42d   : > { %9473 = vrot.lane.b32.xlu1 %v12001_v45, %s10443_s23  ;;  %9458 = vrot.lane.b32.xlu0 %v9457_v9, %s10445_s28  ;;  %15653 = vst [vmem:[#allocation37_spill] sm:$0xff] %v12381_v41 }
 0x42e   : > { %v12411_v43 = vsel %vm2187_vm3, %v2352_v19, %v2353_v5  ;;  %v12414_v56 = vsel %vm2187_vm3, %v2353_v5, %v2355_v29  ;;  %v9060_v29 = vunpack.i.l.bf16 %v12202_v28 }
 0x42f   : > { %v12375_v24 = vpop.permute.xlu1 %9188  ;;  %v12377_v1 = vpop.permute.xlu0 %9183  ;;  %15660 = vst [vmem:[#allocation47_spill] sm:$0xff] %v12411_v43  ;;  %15661 = vst [vmem:[#allocation48_spill] sm:$0xff] %v12414_v56 }
 0x430   : > { %15651 = vst [vmem:[#allocation34_spill] sm:$0xff] %v12375_v24  ;;  %15652 = vst [vmem:[#allocation33_spill] sm:$0xff] %v12377_v1  ;;  %v10176_v1 = vld [vmem:[#allocation2] sm:$0xff] }
 0x431   : > { %9488 = vrot.lane.b32.xlu1 %v9457_v9, %s10444_s30  ;;  %9463 = vrot.lane.b32.xlu0 %v12012_v32, %s10444_s30  ;;  %v9477_v9 = vpack.i.bf16 %v12384_v52, %v12381_v41 }
 0x433   : > { %v12388_v45 = vpop.permute.xlu1 %9198  ;;  %v12392_v63 = vpop.permute.xlu0 %9193 }
 0x434   : > { %15655 = vst [vmem:[#allocation36_spill] sm:$0xff] %v12388_v45  ;;  %15656 = vst [vmem:[#allocation39_spill] sm:$0xff] %v12392_v63  ;;  %v2405_v45 = vrot.slane %v12090_v13, 2  ;;  %v9055_v63 = vunpack.i.l.bf16 %v12200_v37  ;;  %v9061_v37 = vunpack.i.h.bf16 %v12202_v28 }
 0x435   : > { %9493 = vrot.lane.b32.xlu1 %v12012_v32, %s10443_s23  ;;  %9478 = vrot.lane.b32.xlu0 %v9477_v9, %s10445_s28  ;;  %v2404_v32 = vsel %vm2268_vm4, %v2402_v21, %v2403_v48  ;;  %v9497_v21 = vpack.i.bf16 %v12414_v56, %v12411_v43  ;;  %v9066_v56 = vunpack.i.h.bf16 %v12219_v15 }
 0x436   : > { %v2406_v13 = vsel %vm2268_vm4, %v2403_v48, %v2405_v45  ;;  %v3015_v19 = vsel %vm477_vm1, %v10176_v1, %v9055_v63  ;;  %v9071_v45 = vunpack.i.h.bf16 %v12229_v22  ;;  %v9070_v48 = vunpack.i.l.bf16 %v12229_v22 }
 0x437   : > { %v12403_v59 = vpop.permute.xlu1 %9208  ;;  %v12407_v41 = vpop.permute.xlu0 %9203  ;;  %v3048_v22 = vsel %vm3047_vm5, %v3015_v19, %v9060_v29  ;;  %v10178_v29 = vld [vmem:[#allocation2 + $0x18] sm:$0xff] }
 0x438   : > { %15658 = vst [vmem:[#allocation40_spill] sm:$0xff] %v12403_v59  ;;  %15659 = vst [vmem:[#allocation46_spill] sm:$0xff] %v12407_v41  ;;  %v3256_v59 = vpack.c.bf16 %v2406_v13, %v2404_v32  ;;  %v10175_v41 = vld [vmem:[#allocation2 + $0x8] sm:$0xff] }
 0x439   : > { %9513 = vrot.lane.b32.xlu1 %v9477_v9, %s10444_s30  ;;  %9483 = vrot.lane.b32.xlu0 %v15662_v17, %s10444_s30  ;;  %v3016_v9 = vsel %vm477_vm1, %v10175_v41, %v9056_v54  ;;  %v15663_v54 = vmov 0.0  }
 0x43a   : > { %8425 = vmatmul.mubr.msk.bf16.gmra.mrb[32].mxu1 %vm477_vm1, %v3256_v59 }
 0x43b   : > { %v9229_v52 = vpop.permute.xlu1 %9228  ;;  %v9214_v5 = vpop.permute.xlu0 %9213  ;;  %8444 = vmatprep.mubr.msk.f32.mxu1 %vm10441_vm0, %v15663_v54  ;;  %v9065_v54 = vunpack.i.l.bf16 %v12219_v15 }
 0x43c   : > { %v9216_v32 = vunpack.i.h.bf16 %v9214_v5  ;;  %v9215_v41 = vunpack.i.l.bf16 %v9214_v5  ;;  %v9231_v28 = vunpack.i.h.bf16 %v9229_v52  ;;  %v9230_v1 = vunpack.i.l.bf16 %v9229_v52 }
 0x43d   : > { %9518 = vrot.lane.b32.xlu1 %v15662_v17, %s10443_s23  ;;  %9498 = vrot.lane.b32.xlu0 %v9497_v21, %s10445_s28  ;;  %v3049_v5 = vsel %vm3047_vm5, %v3016_v9, %v9061_v37  ;;  %v10177_v37 = vld [vmem:[#allocation2 + $0x20] sm:$0xff] }
 0x43e   : > { %v3114_v13 = vsel %vm477_vm1, %v12071_v3, %v9216_v32  ;;  %v3113_v59 = vsel %vm477_vm1, %v12068_v14, %v9215_v41  ;;  %v3082_v52 = vsel %vm3080_vm6, %v3049_v5, %v9071_v45  ;;  %v3081_v3 = vsel %vm3080_vm6, %v3048_v22, %v9070_v48  ;;  %v15664_v41 = vld [vmem:[#allocation42_spill] sm:$0xff] }
 0x43f   : > { %v9234_v63 = vpop.permute.xlu1 %9233  ;;  %v9219_v21 = vpop.permute.xlu0 %9218  ;;  %v3018_v9 = vsel %vm477_vm1, %v10177_v37, %v9231_v28  ;;  %v3017_v15 = vsel %vm477_vm1, %v10178_v29, %v9230_v1  ;;  %v3145_v24 = vsel %vm3047_vm5, %v3113_v59, %v9065_v54  ;;  %v9080_v28 = vunpack.i.l.bf16 %v12242_v10 }
 0x440   : > { %v9236_v17 = vunpack.i.h.bf16 %v9234_v63  ;;  %v9235_v43 = vunpack.i.l.bf16 %v9234_v63  ;;  %v9221_v32 = vunpack.i.h.bf16 %v9219_v21  ;;  %v9220_v14 = vunpack.i.l.bf16 %v9219_v21  ;;  %v15665_v63 = vld [vmem:[#allocation41_spill] sm:$0xff] }
 0x441   : > { %9523 = vrot.lane.b32.xlu1 %v12078_v33, %s10445_s28  ;;  %v15666_v19 = vpack.i.bf16 %v15664_v41, %v15665_v63  ;;  %v3146_v33 = vsel %vm3047_vm5, %v3114_v13, %v9066_v56  ;;  %v9081_v41 = vunpack.i.h.bf16 %v12242_v10  ;;  %v3209_v54 = vpack.c.bf16 %v3082_v52, %v3081_v3 }
 0x442   : > { %v3177_v48 = vsel %vm3080_vm6, %v3145_v24, %v9220_v14  ;;  %v3178_v22 = vsel %vm3080_vm6, %v3146_v33, %v9221_v32  ;;  %v3050_v5 = vsel %vm3047_vm5, %v3017_v15, %v9235_v43  ;;  %v3051_v21 = vsel %vm3047_vm5, %v3018_v9, %v9236_v17  ;;  %v10179_v33 = vld [vmem:[#allocation2 + $0x38] sm:$0xff] }
 0x443   : > { %9503 = vrot.lane.b32.xlu0 %v15666_v19, %s10444_s30  ;;  %v9249_v45 = vpop.permute.xlu1 %9248  ;;  %v9224_v63 = vpop.permute.xlu0 %9223  ;;  %v3210_v19 = vpack.c.bf16 %v3178_v22, %v3177_v48  ;;  %v15667_v56 = vpack.i.bf16 %v12106_v35, %v12093_v7  ;;  %v3083_v43 = vsel %vm3080_vm6, %v3050_v5, %v9080_v28  ;;  %v3084_v59 = vsel %vm3080_vm6, %v3051_v21, %v9081_v41  ;;  %v10180_v48 = vld [vmem:[#allocation2 + $0x30] sm:$0xff] }
 0x444   : > { %v9226_v1 = vunpack.i.h.bf16 %v9224_v63  ;;  %v9225_v37 = vunpack.i.l.bf16 %v9224_v63  ;;  %v9251_v24 = vunpack.i.h.bf16 %v9249_v45  ;;  %v9250_v13 = vunpack.i.l.bf16 %v9249_v45 }
 0x445   : > { %3481 = vmatprep.mubr.bf16.mxu0 %v3210_v19  ;;  %v9076_v7 = vunpack.i.h.bf16 %v12217_v47  ;;  %v9075_v35 = vunpack.i.l.bf16 %v12217_v47  ;;  %v3212_v15 = vpack.c.bf16 %v3084_v59, %v3083_v43  ;;  %v9091_v63 = vunpack.i.h.bf16 %v12254_v61 }
 0x446   : > { %v3116_v10 = vsel %vm477_vm1, %v12102_v36, %v9226_v1  ;;  %v3115_v32 = vsel %vm477_vm1, %v12099_v4, %v9225_v37  ;;  %3482 = vmatmul.mubr.bf16.vlgmr.msra.gmra.mrb[4].mxu0 %v3209_v54  ;;  %v3020_v45 = vsel %vm477_vm1, %v10179_v33, %v9251_v24  ;;  %v3019_v36 = vsel %vm477_vm1, %v10180_v48, %v9250_v13  ;;  %v10181_v33 = vld [vmem:[#allocation2 + $0x50] sm:$0xff]  ;;  %v10182_v48 = vld [vmem:[#allocation2 + $0x48] sm:$0xff] }
 0x447   : > { %9508 = vrot.lane.b32.xlu0 %v15667_v56, %s10445_s28  ;;  %v9254_v17 = vpop.permute.xlu1 %9253  ;;  %v9239_v14 = vpop.permute.xlu0 %9238  ;;  %v3147_v22 = vsel %vm3047_vm5, %v3115_v32, %v9075_v35  ;;  %v3148_v4 = vsel %vm3047_vm5, %v3116_v10, %v9076_v7  ;;  %v9090_v19 = vunpack.i.l.bf16 %v12254_v61  ;;  %v9085_v7 = vunpack.i.l.bf16 %v12231_v58  ;;  %s15340_s28 = scalar_lea.hbm %s15405_s11, %s7715_s24 }
 0x448   : > { %v9256_v52 = vunpack.i.h.bf16 %v9254_v17  ;;  %v9255_v3 = vunpack.i.l.bf16 %v9254_v17  ;;  %v9241_v9 = vunpack.i.h.bf16 %v9239_v14  ;;  %v9240_v29 = vunpack.i.l.bf16 %v9239_v14 }
 0x44a   : > { %v3179_v21 = vsel %vm3080_vm6, %v3147_v22, %v9240_v29  ;;  %v3180_v41 = vsel %vm3080_vm6, %v3148_v4, %v9241_v9  ;;  %v3052_v47 = vsel %vm3047_vm5, %v3019_v36, %v9255_v3  ;;  %v3053_v28 = vsel %vm3047_vm5, %v3020_v45, %v9256_v52 }
 0x44b   : > { %v9269_v5 = vpop.permute.xlu1 %9268  ;;  %v9244_v1 = vpop.permute.xlu0 %9243  ;;  %v3213_v37 = vpack.c.bf16 %v3180_v41, %v3179_v21  ;;  %v3085_v43 = vsel %vm3080_vm6, %v3052_v47, %v9090_v19  ;;  %v3086_v59 = vsel %vm3080_vm6, %v3053_v28, %v9091_v63  ;;  %v9086_v3 = vunpack.i.h.bf16 %v12231_v58 }
 0x44c   : > { %v9246_v54 = vunpack.i.h.bf16 %v9244_v1  ;;  %v9245_v56 = vunpack.i.l.bf16 %v9244_v1  ;;  %v9271_v24 = vunpack.i.h.bf16 %v9269_v5  ;;  %v9270_v13 = vunpack.i.l.bf16 %v9269_v5 }
 0x44d   : > { %3489 = vmatprep.mubr.bf16.mxu0 %v3213_v37  ;;  %v3215_v29 = vpack.c.bf16 %v3086_v59, %v3085_v43  ;;  %v9101_v21 = vunpack.i.h.bf16 %v12265_v42  ;;  %v9100_v41 = vunpack.i.l.bf16 %v12265_v42 }
 0x44e   : > { %v3118_v10 = vsel %vm477_vm1, %v12122_v55, %v9246_v54  ;;  %v3117_v32 = vsel %vm477_vm1, %v12119_v46, %v9245_v56  ;;  %3490 = vmatmul.mubr.bf16.gmra.mrb[8].mxu0 %v3212_v15  ;;  %v3022_v45 = vsel %vm477_vm1, %v10181_v33, %v9271_v24  ;;  %v3021_v55 = vsel %vm477_vm1, %v10182_v48, %v9270_v13 }
 0x44f   : > { %v9274_v17 = vpop.permute.xlu1 %9273  ;;  %v9259_v35 = vpop.permute.xlu0 %9258  ;;  %v3149_v36 = vsel %vm3047_vm5, %v3117_v32, %v9085_v7  ;;  %v3150_v46 = vsel %vm3047_vm5, %v3118_v10, %v9086_v3  ;;  %v9095_v10 = vunpack.i.l.bf16 %v12252_v62  ;;  %v10183_v7 = vld [vmem:[#allocation2 + $0x68] sm:$0xff] }
 0x450   : > { %v9276_v61 = vunpack.i.h.bf16 %v9274_v17  ;;  %v9275_v52 = vunpack.i.l.bf16 %v9274_v17  ;;  %v9261_v14 = vunpack.i.h.bf16 %v9259_v35  ;;  %v9260_v9 = vunpack.i.l.bf16 %v9259_v35 }
 0x451   : > { %v9096_v17 = vunpack.i.h.bf16 %v12252_v62 }
 0x452   : > { %v3181_v22 = vsel %vm3080_vm6, %v3149_v36, %v9260_v9  ;;  %v3182_v4 = vsel %vm3080_vm6, %v3150_v46, %v9261_v14  ;;  %v3054_v58 = vsel %vm3047_vm5, %v3021_v55, %v9275_v52  ;;  %v3055_v5 = vsel %vm3047_vm5, %v3022_v45, %v9276_v61  ;;  %v10184_v14 = vld [vmem:[#allocation2 + $0x60] sm:$0xff] }
 0x453   : > { %v9289_v15 = vpop.permute.xlu1 %9288  ;;  %v9264_v47 = vpop.permute.xlu0 %9263  ;;  %v3216_v28 = vpack.c.bf16 %v3182_v4, %v3181_v22  ;;  %v3087_v54 = vsel %vm3080_vm6, %v3054_v58, %v9100_v41  ;;  %v3088_v56 = vsel %vm3080_vm6, %v3055_v5, %v9101_v21  ;;  %v9111_v55 = vunpack.i.h.bf16 %v12277_v39 }
 0x454   : > { %v9266_v63 = vunpack.i.h.bf16 %v9264_v47  ;;  %v9265_v19 = vunpack.i.l.bf16 %v9264_v47  ;;  %v9291_v1 = vunpack.i.h.bf16 %v9289_v15  ;;  %v9290_v37 = vunpack.i.l.bf16 %v9289_v15 }
 0x455   : > { %3497 = vmatprep.mubr.bf16.mxu0 %v3216_v28  ;;  %v3218_v3 = vpack.c.bf16 %v3088_v56, %v3087_v54  ;;  %v9110_v36 = vunpack.i.l.bf16 %v12277_v39  ;;  %v9105_v54 = vunpack.i.l.bf16 %v12269_v11 }
 0x456   : > { %v3120_v13 = vsel %vm477_vm1, %v12139_v40, %v9266_v63  ;;  %v3119_v43 = vsel %vm477_vm1, %v12136_v16, %v9265_v19  ;;  %3498 = vmatmul.mubr.bf16.gmra.mrb[12].mxu0 %v3215_v29  ;;  %v3024_v35 = vsel %vm477_vm1, %v10183_v7, %v9291_v1  ;;  %v3023_v40 = vsel %vm477_vm1, %v10184_v14, %v9290_v37 }
 0x457   : > { %v9294_v24 = vpop.permute.xlu1 %9293  ;;  %v9279_v32 = vpop.permute.xlu0 %9278  ;;  %v3151_v9 = vsel %vm3047_vm5, %v3119_v43, %v9095_v10  ;;  %v3152_v16 = vsel %vm3047_vm5, %v3120_v13, %v9096_v17  ;;  %v9106_v37 = vunpack.i.h.bf16 %v12269_v11  ;;  %v10186_v17 = vld [vmem:[#allocation2 + $0x78] sm:$0xff] }
 0x458   : > { %v9296_v42 = vunpack.i.h.bf16 %v9294_v24  ;;  %v9295_v59 = vunpack.i.l.bf16 %v9294_v24  ;;  %v9281_v61 = vunpack.i.h.bf16 %v9279_v32  ;;  %v9280_v52 = vunpack.i.l.bf16 %v9279_v32 }
 0x45a   : > { %v3183_v33 = vsel %vm3080_vm6, %v3151_v9, %v9280_v52  ;;  %v3184_v45 = vsel %vm3080_vm6, %v3152_v16, %v9281_v61  ;;  %v3056_v62 = vsel %vm3047_vm5, %v3023_v40, %v9295_v59  ;;  %v3057_v48 = vsel %vm3047_vm5, %v3024_v35, %v9296_v42 }
 0x45b   : > { %v9309_v29 = vpop.permute.xlu1 %9308  ;;  %v9284_v46 = vpop.permute.xlu0 %9283  ;;  %v3219_v15 = vpack.c.bf16 %v3184_v45, %v3183_v33  ;;  %v3089_v21 = vsel %vm3080_vm6, %v3056_v62, %v9110_v36  ;;  %v3090_v41 = vsel %vm3080_vm6, %v3057_v48, %v9111_v55  ;;  %v9121_v40 = vunpack.i.h.bf16 %v12291_v34 }
 0x45c   : > { %v9286_v22 = vunpack.i.h.bf16 %v9284_v46  ;;  %v9285_v4 = vunpack.i.l.bf16 %v9284_v46  ;;  %v9311_v58 = vunpack.i.h.bf16 %v9309_v29  ;;  %v9310_v5 = vunpack.i.l.bf16 %v9309_v29 }
 0x45d   : > { %3505 = vmatprep.mubr.bf16.mxu0 %v3219_v15  ;;  %v3221_v42 = vpack.c.bf16 %v3090_v41, %v3089_v21  ;;  %v9120_v9 = vunpack.i.l.bf16 %v12291_v34  ;;  %v9115_v21 = vunpack.i.l.bf16 %v12289_v2 }
 0x45e   : > { %v3122_v28 = vsel %vm477_vm1, %v12156_v57, %v9286_v22  ;;  %v3121_v63 = vsel %vm477_vm1, %v12153_v0, %v9285_v4  ;;  %3506 = vmatmul.mubr.bf16.gmra.mrb[16].mxu0 %v3218_v3  ;;  %v10185_v57 = vld [vmem:[#allocation2 + $0x80] sm:$0xff]  ;;  %v3025_v10 = vsel %vm477_vm1, %v10186_v17, %v9310_v5  ;;  %v9116_v5 = vunpack.i.h.bf16 %v12289_v2 }
 0x45f   : > { %v9314_v47 = vpop.permute.xlu1 %9313  ;;  %v9299_v56 = vpop.permute.xlu0 %9298  ;;  %v3026_v0 = vsel %vm477_vm1, %v10185_v57, %v9311_v58  ;;  %v3153_v32 = vsel %vm3047_vm5, %v3121_v63, %v9105_v54  ;;  %v3154_v61 = vsel %vm3047_vm5, %v3122_v28, %v9106_v37  ;;  %v10188_v37 = vld [vmem:[#allocation2 + $0x90] sm:$0xff] }
 0x460   : > { %v9316_v39 = vunpack.i.h.bf16 %v9314_v47  ;;  %v9315_v19 = vunpack.i.l.bf16 %v9314_v47  ;;  %v12524_v1 = vpop.f32.mrb[4].mxu1  ;;  %v9301_v13 = vunpack.i.h.bf16 %v9299_v56  ;;  %v9300_v43 = vunpack.i.l.bf16 %v9299_v56 }
 0x461   : > { %v12528_v24 = vpop.f32.mrb[5].mxu1 }
 0x462   : > { %v12530_v59 = vpop.f32.mrb[6].mxu1  ;;  %v3185_v3 = vsel %vm3080_vm6, %v3153_v32, %v9300_v43  ;;  %v3186_v7 = vsel %vm3080_vm6, %v3154_v61, %v9301_v13  ;;  %v3058_v35 = vsel %vm3047_vm5, %v3025_v10, %v9315_v19  ;;  %v3059_v14 = vsel %vm3047_vm5, %v3026_v0, %v9316_v39 }
 0x463   : > { %v9329_v52 = vpop.permute.xlu1 %9328  ;;  %v12536_v11 = vpop.f32.mrb[7].mxu1  ;;  %v3222_v29 = vpack.c.bf16 %v3186_v7, %v3185_v3  ;;  %v3091_v55 = vsel %vm3080_vm6, %v3058_v35, %v9120_v9  ;;  %v3092_v36 = vsel %vm3080_vm6, %v3059_v14, %v9121_v40  ;;  %v9131_v10 = vunpack.i.h.bf16 %v12300_v20 }
 0x464   : > { %v9304_v16 = vpop.permute.xlu0 %9303  ;;  %v9331_v62 = vunpack.i.h.bf16 %v9329_v52  ;;  %v9330_v48 = vunpack.i.l.bf16 %v9329_v52  ;;  %v3224_v39 = vpack.c.bf16 %v3092_v36, %v3091_v55  ;;  %v9130_v32 = vunpack.i.l.bf16 %v12300_v20 }
 0x465   : > { %v9306_v33 = vunpack.i.h.bf16 %v9304_v16  ;;  %v9305_v45 = vunpack.i.l.bf16 %v9304_v16  ;;  %3513 = vmatprep.mubr.bf16.mxu0 %v3222_v29 }
 0x466   : > { %3514 = vmatmul.mubr.bf16.gmra.mrb[20].mxu0 %v3221_v42  ;;  %v3027_v54 = vsel %vm477_vm1, %v10188_v37, %v9330_v48  ;;  %v9125_v48 = vunpack.i.l.bf16 %v12302_v50 }
 0x467   : > { %v9334_v46 = vpop.permute.xlu1 %9333  ;;  %v3124_v15 = vsel %vm477_vm1, %v12173_v6, %v9306_v33  ;;  %v3123_v22 = vsel %vm477_vm1, %v12170_v23, %v9305_v45  ;;  %v10187_v6 = vld [vmem:[#allocation2 + $0x98] sm:$0xff] }
 0x468   : > { %v9336_v34 = vunpack.i.h.bf16 %v9334_v46  ;;  %v9335_v4 = vunpack.i.l.bf16 %v9334_v46  ;;  %v12550_v58 = vpop.f32.mrb[8].mxu1  ;;  %v9319_v41 = vpop.permute.xlu0 %9318  ;;  %v3028_v23 = vsel %vm477_vm1, %v10187_v6, %v9331_v62  ;;  %v3155_v56 = vsel %vm3047_vm5, %v3123_v22, %v9115_v21  ;;  %v10189_v22 = vld [vmem:[#allocation2 + $0xb0] sm:$0xff] }
 0x469   : > { %v12554_v47 = vpop.f32.mrb[9].mxu1  ;;  %v9321_v28 = vunpack.i.h.bf16 %v9319_v41  ;;  %v9320_v63 = vunpack.i.l.bf16 %v9319_v41  ;;  %v3156_v13 = vsel %vm3047_vm5, %v3124_v15, %v9116_v5  ;;  %v9126_v62 = vunpack.i.h.bf16 %v12302_v50 }
 0x46a   : > { %v12556_v19 = vpop.f32.mrb[10].mxu1  ;;  %v3060_v0 = vsel %vm3047_vm5, %v3027_v54, %v9335_v4  ;;  %v3061_v17 = vsel %vm3047_vm5, %v3028_v23, %v9336_v34  ;;  %v10190_v4 = vld [vmem:[#allocation2 + $0xa8] sm:$0xff]  ;;  %v9140_v6 = vunpack.i.l.bf16 %v12314_v31 }
 0x46b   : > { %v9349_v43 = vpop.permute.xlu1 %9348  ;;  %v12562_v2 = vpop.f32.mrb[11].mxu1  ;;  %v3187_v42 = vsel %vm3080_vm6, %v3155_v56, %v9320_v63  ;;  %v3188_v57 = vsel %vm3080_vm6, %v3156_v13, %v9321_v28  ;;  %v3093_v40 = vsel %vm3080_vm6, %v3060_v0, %v9130_v32  ;;  %v3094_v9 = vsel %vm3080_vm6, %v3061_v17, %v9131_v10 }
 0x46c   : > { %v9324_v61 = vpop.permute.xlu0 %9323  ;;  %v3225_v52 = vpack.c.bf16 %v3188_v57, %v3187_v42  ;;  %v9351_v35 = vunpack.i.h.bf16 %v9349_v43  ;;  %v9350_v14 = vunpack.i.l.bf16 %v9349_v43  ;;  %v3227_v15 = vpack.c.bf16 %v3094_v9, %v3093_v40 }
 0x46d   : > { %v9326_v3 = vunpack.i.h.bf16 %v9324_v61  ;;  %v9325_v7 = vunpack.i.l.bf16 %v9324_v61 }
 0x46e   : > { %3521 = vmatprep.mubr.bf16.mxu0 %v3225_v52  ;;  %v3030_v34 = vsel %vm477_vm1, %v10189_v22, %v9351_v35  ;;  %v9136_v35 = vunpack.i.h.bf16 %v12316_v30  ;;  %v9150_v22 = vunpack.i.l.bf16 %v12325_v44 }
 0x46f   : > { %v9354_v16 = vpop.permute.xlu1 %9353  ;;  %v3126_v29 = vsel %vm477_vm1, %v12192_v12, %v9326_v3  ;;  %v3125_v33 = vsel %vm477_vm1, %v12189_v27, %v9325_v7  ;;  %3522 = vmatmul.mubr.bf16.gmra.mrb[24].mxu0 %v3224_v39  ;;  %v3029_v12 = vsel %vm477_vm1, %v10190_v4, %v9350_v14  ;;  %v9141_v39 = vunpack.i.h.bf16 %v12314_v31 }
 0x470   : > { %v9356_v20 = vunpack.i.h.bf16 %v9354_v16  ;;  %v9355_v45 = vunpack.i.l.bf16 %v9354_v16  ;;  %v9339_v55 = vpop.permute.xlu0 %9338  ;;  %v3157_v5 = vsel %vm3047_vm5, %v3125_v33, %v9125_v48  ;;  %v3158_v27 = vsel %vm3047_vm5, %v3126_v29, %v9126_v62  ;;  %v10191_v33 = vld [vmem:[#allocation2 + $0xc8] sm:$0xff] }
 0x471   : > { %v9341_v36 = vunpack.i.h.bf16 %v9339_v55  ;;  %v9340_v46 = vunpack.i.l.bf16 %v9339_v55  ;;  %v9135_v14 = vunpack.i.l.bf16 %v12316_v30 }
 0x472   : > { %v3062_v50 = vsel %vm3047_vm5, %v3029_v12, %v9355_v45  ;;  %v3063_v63 = vsel %vm3047_vm5, %v3030_v34, %v9356_v20 }
 0x473   : > { %v9369_v21 = vpop.permute.xlu1 %9368  ;;  %v3189_v41 = vsel %vm3080_vm6, %v3157_v5, %v9340_v46  ;;  %v3190_v28 = vsel %vm3080_vm6, %v3158_v27, %v9341_v36  ;;  %v3095_v17 = vsel %vm3080_vm6, %v3062_v50, %v9140_v6  ;;  %v3096_v10 = vsel %vm3080_vm6, %v3063_v63, %v9141_v39 }
 0x474   : > { %v9344_v23 = vpop.permute.xlu0 %9343  ;;  %v3228_v37 = vpack.c.bf16 %v3190_v28, %v3189_v41  ;;  %v9371_v57 = vunpack.i.h.bf16 %v9369_v21  ;;  %v9370_v0 = vunpack.i.l.bf16 %v9369_v21  ;;  %v3230_v29 = vpack.c.bf16 %v3096_v10, %v3095_v17 }
 0x475   : > { %v12588_v54 = vpop.f32.mrb[12].mxu1  ;;  %v9346_v56 = vunpack.i.h.bf16 %v9344_v23  ;;  %v9345_v13 = vunpack.i.l.bf16 %v9344_v23 }
 0x476   : > { %v12590_v43 = vpop.f32.mrb[13].mxu1  ;;  %3529 = vmatprep.mubr.bf16.mxu0 %v3228_v37  ;;  %v3032_v20 = vsel %vm477_vm1, %v10191_v33, %v9371_v57  ;;  %v9146_v57 = vunpack.i.h.bf16 %v12327_v60 }
 0x477   : > { %v12592_v42 = vpop.f32.mrb[14].mxu1  ;;  %v9374_v32 = vpop.permute.xlu1 %9373  ;;  %v3128_v31 = vsel %vm477_vm1, %v12213_v26, %v9346_v56  ;;  %v3127_v61 = vsel %vm477_vm1, %v12210_v25, %v9345_v13  ;;  %3530 = vmatmul.mubr.bf16.gmra.mrb[28].mxu0 %v3227_v15  ;;  %v10192_v26 = vld [vmem:[#allocation2 + $0xc0] sm:$0xff]  ;;  %v9151_v15 = vunpack.i.h.bf16 %v12325_v44 }
 0x478   : > { %v12600_v52 = vpop.f32.mrb[15].mxu1  ;;  %v9376_v3 = vunpack.i.h.bf16 %v9374_v32  ;;  %v9375_v7 = vunpack.i.l.bf16 %v9374_v32  ;;  %v9359_v40 = vpop.permute.xlu0 %9358  ;;  %v3031_v45 = vsel %vm477_vm1, %v10192_v26, %v9370_v0  ;;  %v3159_v25 = vsel %vm3047_vm5, %v3127_v61, %v9135_v14  ;;  %v15668_v44 = vld [vmem:[#allocation45_spill] sm:$0xff] }
 0x479   : > { %v9361_v9 = vunpack.i.h.bf16 %v9359_v40  ;;  %v9360_v16 = vunpack.i.l.bf16 %v9359_v40  ;;  %v3160_v62 = vsel %vm3047_vm5, %v3128_v31, %v9136_v35  ;;  %v9145_v0 = vunpack.i.l.bf16 %v12327_v60 }
 0x47a   : > { %v3064_v30 = vsel %vm3047_vm5, %v3031_v45, %v9375_v7  ;;  %v3065_v46 = vsel %vm3047_vm5, %v3032_v20, %v9376_v3  ;;  %v10193_v3 = vld [vmem:[#allocation2 + $0xe0] sm:$0xff]  ;;  %v10194_v7 = vld [vmem:[#allocation2 + $0xd8] sm:$0xff]  ;;  %v9161_v20 = vunpack.i.h.bf16 %v12339_v51  ;;  %v9160_v26 = vunpack.i.l.bf16 %v12339_v51  ;;  %v15670_v51 = vld [vmem:[#allocation23_spill] sm:$0xff] }
 0x47b   : > { %v9389_v48 = vpop.permute.xlu1 %9388  ;;  %v3191_v55 = vsel %vm3080_vm6, %v3159_v25, %v9360_v16  ;;  %v3192_v36 = vsel %vm3080_vm6, %v3160_v62, %v9361_v9  ;;  %v3097_v50 = vsel %vm3080_vm6, %v3064_v30, %v9150_v22  ;;  %v3098_v63 = vsel %vm3080_vm6, %v3065_v46, %v9151_v15 }
 0x47c   : > { %v9364_v34 = vpop.permute.xlu0 %9363  ;;  %v3231_v4 = vpack.c.bf16 %v3192_v36, %v3191_v55  ;;  %v9391_v41 = vunpack.i.h.bf16 %v9389_v48  ;;  %v9390_v28 = vunpack.i.l.bf16 %v9389_v48  ;;  %v3233_v61 = vpack.c.bf16 %v3098_v63, %v3097_v50 }
 0x47d   : > { %v9366_v12 = vunpack.i.h.bf16 %v9364_v34  ;;  %v9365_v5 = vunpack.i.l.bf16 %v9364_v34  ;;  %v12614_v27 = vpop.f32.mrb[16].mxu1  ;;  %v9156_v63 = vunpack.i.h.bf16 %v12341_v53 }
 0x47e   : > { %3537 = vmatprep.mubr.bf16.mxu0 %v3231_v4  ;;  %v12616_v21 = vpop.f32.mrb[17].mxu1  ;;  %v3033_v35 = vsel %vm477_vm1, %v10194_v7, %v9390_v28  ;;  %v15669_v4 = vld [vmem:[#allocation24_spill] sm:$0xff] }
 0x47f   : > { %v9394_v39 = vpop.permute.xlu1 %9393  ;;  %v3130_v6 = vsel %vm477_vm1, %v12238_v49, %v9366_v12  ;;  %v3129_v23 = vsel %vm477_vm1, %v15668_v44, %v9365_v5  ;;  %3538 = vmatmul.mubr.bf16.gmra.mrb[32].mxu0 %v3230_v29  ;;  %v12624_v37 = vpop.f32.mrb[18].mxu1  ;;  %v3034_v49 = vsel %vm477_vm1, %v10193_v3, %v9391_v41 }
 0x480   : > { %v9396_v56 = vunpack.i.h.bf16 %v9394_v39  ;;  %v9395_v13 = vunpack.i.l.bf16 %v9394_v39  ;;  %v9379_v17 = vpop.permute.xlu0 %9378  ;;  %v12628_v10 = vpop.f32.mrb[19].mxu1  ;;  %v3161_v14 = vsel %vm3047_vm5, %v3129_v23, %v9145_v0  ;;  %v3162_v40 = vsel %vm3047_vm5, %v3130_v6, %v9146_v57  ;;  %v10195_v57 = vld [vmem:[#allocation2 + $0xf8] sm:$0xff] }
 0x481   : > { %v9381_v32 = vunpack.i.h.bf16 %v9379_v17  ;;  %v9380_v31 = vunpack.i.l.bf16 %v9379_v17  ;;  %v9155_v39 = vunpack.i.l.bf16 %v12341_v53  ;;  %v10196_v17 = vld [vmem:[#allocation2 + $0xf0] sm:$0xff] }
 0x482   : > { %v3066_v29 = vsel %vm3047_vm5, %v3033_v35, %v9395_v13  ;;  %v3067_v33 = vsel %vm3047_vm5, %v3034_v49, %v9396_v56 }
 0x483   : > { %v9409_v9 = vpop.permute.xlu1 %9408  ;;  %v3193_v16 = vsel %vm3080_vm6, %v3161_v14, %v9380_v31  ;;  %v3194_v60 = vsel %vm3080_vm6, %v3162_v40, %v9381_v32  ;;  %v3099_v15 = vsel %vm3080_vm6, %v3066_v29, %v9160_v26  ;;  %v3100_v22 = vsel %vm3080_vm6, %v3067_v33, %v9161_v20 }
 0x484   : > { %v9384_v45 = vpop.permute.xlu0 %9383  ;;  %v3234_v25 = vpack.c.bf16 %v3194_v60, %v3193_v16  ;;  %v9411_v30 = vunpack.i.h.bf16 %v9409_v9  ;;  %v9410_v46 = vunpack.i.l.bf16 %v9409_v9  ;;  %v3236_v13 = vpack.c.bf16 %v3100_v22, %v3099_v15 }
 0x485   : > { %v9386_v62 = vunpack.i.h.bf16 %v9384_v45  ;;  %v9385_v48 = vunpack.i.l.bf16 %v9384_v45  ;;  %v12640_v55 = vpop.f32.mrb[20].mxu1  ;;  %v9171_v14 = vunpack.i.h.bf16 %v12350_v8  ;;  %v9170_v40 = vunpack.i.l.bf16 %v12350_v8  ;;  %v15672_v8 = vld [vmem:[#allocation26_spill] sm:$0xff] }
 0x486   : > { %3545 = vmatprep.mubr.bf16.mxu0 %v3234_v25  ;;  %v12642_v36 = vpop.f32.mrb[21].mxu1  ;;  %v3036_v0 = vsel %vm477_vm1, %v10195_v57, %v9411_v30  ;;  %v3035_v32 = vsel %vm477_vm1, %v10196_v17, %v9410_v46  ;;  %v15671_v30 = vld [vmem:[#allocation35_spill] sm:$0xff] }
 0x487   : > { %v9414_v34 = vpop.permute.xlu1 %9413  ;;  %v3132_v12 = vsel %vm477_vm1, %v15669_v4, %v9386_v62  ;;  %v3131_v5 = vsel %vm477_vm1, %v15670_v51, %v9385_v48  ;;  %3546 = vmatmul.mubr.bf16.gmra.mrb[36].mxu0 %v3233_v61  ;;  %v12650_v41 = vpop.f32.mrb[22].mxu1  ;;  %v9165_v51 = vunpack.i.l.bf16 %v12352_v18 }
 0x488   : > { %v9416_v28 = vunpack.i.h.bf16 %v9414_v34  ;;  %v9415_v50 = vunpack.i.l.bf16 %v9414_v34  ;;  %v9399_v6 = vpop.permute.xlu0 %9398  ;;  %v12654_v44 = vpop.f32.mrb[23].mxu1  ;;  %v3163_v31 = vsel %vm3047_vm5, %v3131_v5, %v9155_v39  ;;  %v3164_v61 = vsel %vm3047_vm5, %v3132_v12, %v9156_v63 }
 0x489   : > { %v9401_v23 = vunpack.i.h.bf16 %v9399_v6  ;;  %v9400_v56 = vunpack.i.l.bf16 %v9399_v6  ;;  %v9166_v12 = vunpack.i.h.bf16 %v12352_v18  ;;  %v10197_v6 = vld [vmem:[#allocation2 + $0x110] sm:$0xff] }
 0x48a   : > { %v3068_v7 = vsel %vm3047_vm5, %v3035_v32, %v9415_v50  ;;  %v3069_v35 = vsel %vm3047_vm5, %v3036_v0, %v9416_v28 }
 0x48b   : > { %v9429_v3 = vpop.permute.xlu1 %9428  ;;  %v3195_v49 = vsel %vm3080_vm6, %v3163_v31, %v9400_v56  ;;  %v3196_v53 = vsel %vm3080_vm6, %v3164_v61, %v9401_v23  ;;  %v3101_v25 = vsel %vm3080_vm6, %v3068_v7, %v9170_v40  ;;  %v3102_v62 = vsel %vm3080_vm6, %v3069_v35, %v9171_v14  ;;  %v10198_v56 = vld [vmem:[#allocation2 + $0x108] sm:$0xff] }
 0x48c   : > { %v9404_v9 = vpop.permute.xlu0 %9403  ;;  %v3237_v16 = vpack.c.bf16 %v3196_v53, %v3195_v49  ;;  %v9431_v26 = vunpack.i.h.bf16 %v9429_v3  ;;  %v9430_v45 = vunpack.i.l.bf16 %v9429_v3  ;;  %v3239_v39 = vpack.c.bf16 %v3102_v62, %v3101_v25  ;;  %v15673_v25 = vld [vmem:[#allocation22_spill] sm:$0xff] }
 0x48d   : > { %v9406_v60 = vunpack.i.h.bf16 %v9404_v9  ;;  %v9405_v29 = vunpack.i.l.bf16 %v9404_v9  ;;  %v12666_v33 = vpop.f32.mrb[24].mxu1  ;;  %v9181_v3 = vunpack.i.h.bf16 %v12363_v38  ;;  %v9180_v49 = vunpack.i.l.bf16 %v12363_v38  ;;  %v15674_v38 = vld [vmem:[#allocation27_spill] sm:$0xff] }
 0x48e   : > { %3553 = vmatprep.mubr.bf16.mxu0 %v3237_v16  ;;  %v12668_v20 = vpop.f32.mrb[25].mxu1  ;;  %v3038_v23 = vsel %vm477_vm1, %v10197_v6, %v9431_v26  ;;  %v10199_v6 = vld [vmem:[#allocation2 + $0x128] sm:$0xff] }
 0x48f   : > { %v9434_v48 = vpop.permute.xlu1 %9433  ;;  %v3134_v46 = vsel %vm477_vm1, %v15671_v30, %v9406_v60  ;;  %v3133_v15 = vsel %vm477_vm1, %v15672_v8, %v9405_v29  ;;  %3554 = vmatmul.mubr.bf16.gmra.mrb[40].mxu0 %v3236_v13  ;;  %v12676_v22 = vpop.f32.mrb[26].mxu1  ;;  %v3037_v13 = vsel %vm477_vm1, %v10198_v56, %v9430_v45  ;;  %v10200_v56 = vld [vmem:[#allocation2 + $0x120] sm:$0xff] }
 0x490   : > { %v9436_v34 = vunpack.i.h.bf16 %v9434_v48  ;;  %v9435_v4 = vunpack.i.l.bf16 %v9434_v48  ;;  %v9419_v5 = vpop.permute.xlu0 %9418  ;;  %v12680_v28 = vpop.f32.mrb[27].mxu1  ;;  %v3165_v57 = vsel %vm3047_vm5, %v3133_v15, %v9165_v51  ;;  %v3166_v0 = vsel %vm3047_vm5, %v3134_v46, %v9166_v12  ;;  %v15675_v15 = vld [vmem:[#allocation32_spill] sm:$0xff] }
 0x491   : > { %v9421_v50 = vunpack.i.h.bf16 %v9419_v5  ;;  %v9420_v63 = vunpack.i.l.bf16 %v9419_v5 }
 0x492   : > { %v3070_v31 = vsel %vm3047_vm5, %v3037_v13, %v9435_v4  ;;  %v3071_v61 = vsel %vm3047_vm5, %v3038_v23, %v9436_v34  ;;  %v9176_v34 = vunpack.i.h.bf16 %v15675_v15  ;;  %v9175_v4 = vunpack.i.l.bf16 %v15675_v15  ;;  %v15679_v15 = vld [vmem:[#allocation33_spill] sm:$0xff] }
 0x493   : > { %v9449_v17 = vpop.permute.xlu1 %9448  ;;  %v3197_v32 = vsel %vm3080_vm6, %v3165_v57, %v9420_v63  ;;  %v3198_v18 = vsel %vm3080_vm6, %v3166_v0, %v9421_v50  ;;  %v3103_v29 = vsel %vm3080_vm6, %v3070_v31, %v9180_v49  ;;  %v3104_v26 = vsel %vm3080_vm6, %v3071_v61, %v9181_v3  ;;  %v15676_v61 = vld [vmem:[#allocation34_spill] sm:$0xff] }
 0x494   : > { %v9424_v53 = vpop.permute.xlu0 %9423  ;;  %v3240_v7 = vpack.c.bf16 %v3198_v18, %v3197_v32  ;;  %v9451_v16 = vunpack.i.h.bf16 %v9449_v17  ;;  %v9450_v60 = vunpack.i.l.bf16 %v9449_v17  ;;  %v3242_v63 = vpack.c.bf16 %v3104_v26, %v3103_v29 }
 0x495   : > { %v9426_v35 = vunpack.i.h.bf16 %v9424_v53  ;;  %v9425_v14 = vunpack.i.l.bf16 %v9424_v53  ;;  %v12692_v40 = vpop.f32.mrb[28].mxu1  ;;  %v9191_v3 = vunpack.i.h.bf16 %v15676_v61  ;;  %v9190_v49 = vunpack.i.l.bf16 %v15676_v61  ;;  %v15680_v61 = vld [vmem:[#allocation36_spill] sm:$0xff] }
 0x496   : > { %3561 = vmatprep.mubr.bf16.mxu0 %v3240_v7  ;;  %v12694_v9 = vpop.f32.mrb[29].mxu1  ;;  %v3040_v23 = vsel %vm477_vm1, %v10199_v6, %v9451_v16 }
 0x497   : > { %v9454_v45 = vpop.permute.xlu1 %9453  ;;  %v3136_v62 = vsel %vm477_vm1, %v15673_v25, %v9426_v35  ;;  %v3135_v48 = vsel %vm477_vm1, %v15674_v38, %v9425_v14  ;;  %3562 = vmatmul.mubr.bf16.gmra.mrb[44].mxu0 %v3239_v39  ;;  %v12702_v30 = vpop.f32.mrb[30].mxu1  ;;  %v3039_v39 = vsel %vm477_vm1, %v10200_v56, %v9450_v60  ;;  %v15677_v25 = vld [vmem:[#allocation25_spill] sm:$0xff] }
 0x498   : > { %v9456_v46 = vunpack.i.h.bf16 %v9454_v45  ;;  %v9455_v8 = vunpack.i.l.bf16 %v9454_v45  ;;  %v9439_v12 = vpop.permute.xlu0 %9438  ;;  %v12706_v51 = vpop.f32.mrb[31].mxu1  ;;  %v3167_v13 = vsel %vm3047_vm5, %v3135_v48, %v9175_v4  ;;  %v3168_v57 = vsel %vm3047_vm5, %v3136_v62, %v9176_v34  ;;  %v15678_v38 = vld [vmem:[#allocation29_spill] sm:$0xff] }
 0x499   : > { %v9441_v5 = vunpack.i.h.bf16 %v9439_v12  ;;  %v9440_v50 = vunpack.i.l.bf16 %v9439_v12  ;;  %v9186_v34 = vunpack.i.h.bf16 %v15679_v15  ;;  %v9185_v4 = vunpack.i.l.bf16 %v15679_v15 }
 0x49a   : > { %v3072_v18 = vsel %vm3047_vm5, %v3039_v39, %v9455_v8  ;;  %v3073_v31 = vsel %vm3047_vm5, %v3040_v23, %v9456_v46  ;;  %v10201_v23 = vld [vmem:[#allocation2 + $0x140] sm:$0xff]  ;;  %v10202_v39 = vld [vmem:[#allocation2 + $0x138] sm:$0xff] }
 0x49b   : > { %v9469_v0 = vpop.permute.xlu1 %9468  ;;  %v3199_v17 = vsel %vm3080_vm6, %v3167_v13, %v9440_v50  ;;  %v3200_v32 = vsel %vm3080_vm6, %v3168_v57, %v9441_v5  ;;  %v3105_v29 = vsel %vm3080_vm6, %v3072_v18, %v9190_v49  ;;  %v3106_v26 = vsel %vm3080_vm6, %v3073_v31, %v9191_v3 }
 0x49c   : > { %v9444_v53 = vpop.permute.xlu0 %9443  ;;  %v3243_v7 = vpack.c.bf16 %v3200_v32, %v3199_v17  ;;  %v9471_v16 = vunpack.i.h.bf16 %v9469_v0  ;;  %v9470_v60 = vunpack.i.l.bf16 %v9469_v0  ;;  %v3245_v6 = vpack.c.bf16 %v3106_v26, %v3105_v29  ;;  %v15681_v26 = vld [vmem:[#allocation31_spill] sm:$0xff] }
 0x49d   : > { %v9446_v35 = vunpack.i.h.bf16 %v9444_v53  ;;  %v9445_v14 = vunpack.i.l.bf16 %v9444_v53  ;;  %v9201_v3 = vunpack.i.h.bf16 %v15680_v61  ;;  %v9200_v49 = vunpack.i.l.bf16 %v15680_v61 }
 0x49e   : > { %3569 = vmatprep.mubr.bf16.mxu0 %v3243_v7  ;;  %v3042_v56 = vsel %vm477_vm1, %v10201_v23, %v9471_v16  ;;  %v3041_v13 = vsel %vm477_vm1, %v10202_v39, %v9470_v60 }
 0x49f   : > { %v9474_v45 = vpop.permute.xlu1 %9473  ;;  %v3138_v62 = vsel %vm477_vm1, %v15677_v25, %v9446_v35  ;;  %v3137_v48 = vsel %vm477_vm1, %v15678_v38, %v9445_v14  ;;  %3570 = vmatmul.mubr.bf16.gmra.mrb[48].mxu0 %v3242_v63  ;;  %v15682_v25 = vld [vmem:[#allocation30_spill] sm:$0xff] }
 0x4a0   : > { %v9476_v46 = vunpack.i.h.bf16 %v9474_v45  ;;  %v9475_v8 = vunpack.i.l.bf16 %v9474_v45  ;;  %v9459_v12 = vpop.permute.xlu0 %9458  ;;  %v3169_v57 = vsel %vm3047_vm5, %v3137_v48, %v9185_v4  ;;  %v3170_v63 = vsel %vm3047_vm5, %v3138_v62, %v9186_v34 }
 0x4a1   : > { %v9461_v5 = vunpack.i.h.bf16 %v9459_v12  ;;  %v9460_v50 = vunpack.i.l.bf16 %v9459_v12 }
 0x4a2   : > { %v3074_v18 = vsel %vm3047_vm5, %v3041_v13, %v9475_v8  ;;  %v3075_v31 = vsel %vm3047_vm5, %v3042_v56, %v9476_v46  ;;  %v15683_v46 = vmov 0.0   ;;  %v15684_v8 = vld [vmem:[#allocation39_spill] sm:$0xff] }
 0x4a3   : > { %v9489_v0 = vpop.permute.xlu1 %9488  ;;  %v3201_v17 = vsel %vm3080_vm6, %v3169_v57, %v9460_v50  ;;  %v3202_v32 = vsel %vm3080_vm6, %v3170_v63, %v9461_v5  ;;  %v3107_v16 = vsel %vm3080_vm6, %v3074_v18, %v9200_v49  ;;  %v3108_v60 = vsel %vm3080_vm6, %v3075_v31, %v9201_v3  ;;  %5449 = vst.msk [vmem:[#allocation3 + $0x28] sm:$0x3] %vm5445_vm7, %v15683_v46  ;;  %v10203_v57 = vld [vmem:[#allocation2 + $0x158] sm:$0xff] }
 0x4a4   : > { %v9464_v53 = vpop.permute.xlu0 %9463  ;;  %v3246_v7 = vpack.c.bf16 %v3202_v32, %v3201_v17  ;;  %v9491_v38 = vunpack.i.h.bf16 %v9489_v0  ;;  %v9490_v48 = vunpack.i.l.bf16 %v9489_v0  ;;  %5446 = vst.msk [vmem:[#allocation3 + $0x10] sm:$0x3] %vm5445_vm7, %v15683_v46  ;;  %5452 = vst.msk [vmem:[#allocation3 + $0x40] sm:$0x3] %vm5445_vm7, %v15683_v46  ;;  %v9196_v15 = vunpack.i.h.bf16 %v15684_v8  ;;  %v10204_v0 = vld [vmem:[#allocation2 + $0x150] sm:$0xff] }
 0x4a5   : > { %v9466_v35 = vunpack.i.h.bf16 %v9464_v53  ;;  %v9465_v14 = vunpack.i.l.bf16 %v9464_v53  ;;  %5455 = vst.msk [vmem:[#allocation3 + $0x58] sm:$0x3] %vm5445_vm7, %v15683_v46  ;;  %5458 = vst.msk [vmem:[#allocation3 + $0x70] sm:$0x3] %vm5445_vm7, %v15683_v46  ;;  %v9195_v34 = vunpack.i.l.bf16 %v15684_v8  ;;  %v3248_v39 = vpack.c.bf16 %v3108_v60, %v3107_v16  ;;  %v15685_v53 = vld [vmem:[#allocation40_spill] sm:$0xff] }
 0x4a6   : > { %3577 = vmatprep.mubr.bf16.mxu0 %v3246_v7  ;;  %5461 = vst.msk [vmem:[#allocation3 + $0x88] sm:$0x3] %vm5445_vm7, %v15683_v46  ;;  %5464 = vst.msk [vmem:[#allocation3 + $0xa0] sm:$0x3] %vm5445_vm7, %v15683_v46  ;;  %v3044_v63 = vsel %vm477_vm1, %v10203_v57, %v9491_v38  ;;  %v3043_v17 = vsel %vm477_vm1, %v10204_v0, %v9490_v48  ;;  %v9211_v7 = vunpack.i.h.bf16 %v15685_v53  ;;  %v15688_v48 = vld [vmem:[#allocation46_spill] sm:$0xff] }
 0x4a7   : > { %v9494_v29 = vpop.permute.xlu1 %9493  ;;  %v3140_v45 = vsel %vm477_vm1, %v15681_v26, %v9466_v35  ;;  %v3139_v62 = vsel %vm477_vm1, %v15682_v25, %v9465_v14  ;;  %3578 = vmatmul.mubr.bf16.gmra.mrb[52].mxu0 %v3245_v6  ;;  %5467 = vst.msk [vmem:[#allocation3 + $0xb8] sm:$0x3] %vm5445_vm7, %v15683_v46  ;;  %5470 = vst.msk [vmem:[#allocation3 + $0xd0] sm:$0x3] %vm5445_vm7, %v15683_v46  ;;  %v9210_v35 = vunpack.i.l.bf16 %v15685_v53  ;;  %v9206_v8 = vunpack.i.h.bf16 %v15688_v48  ;;  %v10205_v53 = vld [vmem:[#allocation2 + $0x170] sm:$0xff] }
 0x4a8   : > { %5473 = vst.msk [vmem:[#allocation3 + $0xe8] sm:$0x3] %vm5445_vm7, %v15683_v46  ;;  %5476 = vst.msk [vmem:[#allocation3 + $0x100] sm:$0x3] %vm5445_vm7, %v15683_v46  ;;  %v9479_v4 = vpop.permute.xlu0 %9478  ;;  %v9496_v12 = vunpack.i.h.bf16 %v9494_v29  ;;  %v9495_v5 = vunpack.i.l.bf16 %v9494_v29  ;;  %v3171_v23 = vsel %vm3047_vm5, %v3139_v62, %v9195_v34  ;;  %v3172_v56 = vsel %vm3047_vm5, %v3140_v45, %v9196_v15  ;;  %v15686_v29 = vld [vmem:[#allocation38_spill] sm:$0xff]  ;;  %v15687_v45 = vld [vmem:[#allocation37_spill] sm:$0xff] }
 0x4a9   : > { %5479 = vst.msk [vmem:[#allocation3 + $0x118] sm:$0x3] %vm5445_vm7, %v15683_v46  ;;  %5482 = vst.msk [vmem:[#allocation3 + $0x130] sm:$0x3] %vm5445_vm7, %v15683_v46  ;;  %v9481_v50 = vunpack.i.h.bf16 %v9479_v4  ;;  %v9480_v6 = vunpack.i.l.bf16 %v9479_v4  ;;  %v9205_v15 = vunpack.i.l.bf16 %v15688_v48 }
 0x4aa   : > { %5485 = vst.msk [vmem:[#allocation3 + $0x148] sm:$0x3] %vm5445_vm7, %v15683_v46  ;;  %5488 = vst.msk [vmem:[#allocation3 + $0x160] sm:$0x3] %vm5445_vm7, %v15683_v46  ;;  %v3076_v3 = vsel %vm3047_vm5, %v3043_v17, %v9495_v5  ;;  %v3077_v49 = vsel %vm3047_vm5, %v3044_v63, %v9496_v12 }
 0x4ab   : > { %5491 = vst.msk [vmem:[#allocation3 + $0x178] sm:$0x3] %vm5445_vm7, %v15683_v46  ;;  %5494 = vst.msk [vmem:[#allocation3 + $0x190] sm:$0x3] %vm5445_vm7, %v15683_v46  ;;  %v9514_v13 = vpop.permute.xlu1 %9513  ;;  %v3203_v32 = vsel %vm3080_vm6, %v3171_v23, %v9480_v6  ;;  %v3204_v18 = vsel %vm3080_vm6, %v3172_v56, %v9481_v50  ;;  %v3109_v62 = vsel %vm3080_vm6, %v3076_v3, %v9210_v35 }
 0x4ac   : > { %5497 = vst.msk [vmem:[#allocation3 + $0x1a8] sm:$0x3] %vm5445_vm7, %v15683_v46  ;;  %v9484_v31 = vpop.permute.xlu0 %9483  ;;  %v3249_v61 = vpack.c.bf16 %v3204_v18, %v3203_v32  ;;  %v3110_v38 = vsel %vm3080_vm6, %v3077_v49, %v9211_v7  ;;  %v9516_v5 = vunpack.i.h.bf16 %v9514_v13  ;;  %v9515_v50 = vunpack.i.l.bf16 %v9514_v13  ;;  %v10206_v7 = vld [vmem:[#allocation2 + $0x168] sm:$0xff] }
 0x4ad   : > { %v9486_v14 = vunpack.i.h.bf16 %v9484_v31  ;;  %v9485_v16 = vunpack.i.l.bf16 %v9484_v31  ;;  %v3251_v56 = vpack.c.bf16 %v3110_v38, %v3109_v62 }
 0x4ae   : > { %3585 = vmatprep.mubr.bf16.mxu0 %v3249_v61  ;;  %v3046_v13 = vsel %vm477_vm1, %v10205_v53, %v9516_v5  ;;  %v3045_v35 = vsel %vm477_vm1, %v10206_v7, %v9515_v50 }
 0x4af   : > { %v9519_v60 = vpop.permute.xlu1 %9518  ;;  %v3142_v26 = vsel %vm477_vm1, %v15686_v29, %v9486_v14  ;;  %v3141_v25 = vsel %vm477_vm1, %v15687_v45, %v9485_v16  ;;  %3586 = vmatmul.mubr.bf16.gmra.mrb[56].mxu0 %v3248_v39  ;;  %v15689_v14 = vld [vmem:[#allocation48_spill] sm:$0xff]  ;;  %v15690_v29 = vld [vmem:[#allocation47_spill] sm:$0xff] }
 0x4b0   : > { %v9499_v34 = vpop.permute.xlu0 %9498  ;;  %v3173_v6 = vsel %vm3047_vm5, %v3141_v25, %v9205_v15  ;;  %v3174_v23 = vsel %vm3047_vm5, %v3142_v26, %v9206_v8  ;;  %v9521_v0 = vunpack.i.h.bf16 %v9519_v60  ;;  %v9520_v17 = vunpack.i.l.bf16 %v9519_v60  ;;  %v15691_v25 = vld [vmem:[#allocation44_spill] sm:$0xff] }
 0x4b1   : > { %v9501_v4 = vunpack.i.h.bf16 %v9499_v34  ;;  %v9500_v12 = vunpack.i.l.bf16 %v9499_v34  ;;  %v9051_v62 = vunpack.i.h.bf16 %v15691_v25  ;;  %v9050_v38 = vunpack.i.l.bf16 %v15691_v25 }
 0x4b2   : > { %v3078_v60 = vsel %vm3047_vm5, %v3045_v35, %v9520_v17  ;;  %v3079_v45 = vsel %vm3047_vm5, %v3046_v13, %v9521_v0 }
 0x4b3   : > { %v9524_v57 = vpop.permute.xlu1 %9523  ;;  %v3205_v39 = vsel %vm3080_vm6, %v3173_v6, %v9500_v12  ;;  %v3206_v63 = vsel %vm3080_vm6, %v3174_v23, %v9501_v4 }
 0x4b4   : > { %v3252_v18 = vpack.c.bf16 %v3206_v63, %v3205_v39  ;;  %v9526_v31 = vunpack.i.h.bf16 %v9524_v57  ;;  %v9525_v61 = vunpack.i.l.bf16 %v9524_v57  ;;  %v12823_v57 = vld [vmem:[%s15402_s8] sm:$0xff]  ;;  %v12828_v39 = vld [vmem:[%s15402_s8 + $0x8] sm:$0xff] }
 0x4b5   : > { %v9504_v32 = vpop.permute.xlu0 %9503  ;;  %v3893_v63 = vand.u32 4294901760, %v12823_v57  ;;  %v3896_v0 = vand.u32 4294901760, %v12828_v39 }
 0x4b6   : > { %v9506_v3 = vunpack.i.h.bf16 %v9504_v32  ;;  %v9505_v49 = vunpack.i.l.bf16 %v9504_v32  ;;  %3593 = vmatprep.mubr.bf16.mxu0 %v3252_v18  ;;  %v3111_v8 = vsel %vm3080_vm6, %v3078_v60, %v9525_v61  ;;  %v3112_v15 = vsel %vm3080_vm6, %v3079_v45, %v9526_v31  ;;  %v12845_v18 = vld [vmem:[%s15402_s8 + $0x10] sm:$0xff]  ;;  %v12850_v31 = vld [vmem:[%s15402_s8 + $0x18] sm:$0xff] }
 0x4b7   : > { %3594 = vmatmul.mubr.bf16.gmra.mrb[60].mxu0 %v3251_v56  ;;  %v3254_v23 = vpack.c.bf16 %v3112_v15, %v3111_v8  ;;  %v12836_v17 = vpack.c.bf16 %v3896_v0, %v3893_v63  ;;  %v15693_v32 = vmov 0.0|0.0   ;;  %v3899_v61 = vand.u32 4294901760, %v12845_v18 }
 0x4b8   : > { %v3144_v16 = vsel %vm477_vm1, %v15689_v14, %v9506_v3  ;;  %v3143_v26 = vsel %vm477_vm1, %v15690_v29, %v9505_v49  ;;  %v3902_v3 = vand.u32 4294901760, %v12850_v31 }
 0x4b9   : > { %v9509_v48 = vpop.permute.xlu0 %9508  ;;  %v3175_v12 = vsel %vm3047_vm5, %v3143_v26, %v9050_v38  ;;  %v3176_v5 = vsel %vm3047_vm5, %v3144_v16, %v9051_v62  ;;  %15692 = vst [vmem:[#allocation43_spill] sm:$0xff] %v12836_v17  ;;  %8774 = vmatpush3.bf16.msra.mxu1 %v12836_v17  ;;  %8846 = vmatpush3.bf16.msra.mxu0 %v12836_v17 }
 0x4ba   : > { %v9511_v34 = vunpack.i.h.bf16 %v9509_v48  ;;  %v9510_v4 = vunpack.i.l.bf16 %v9509_v48  ;;  %8775 = vmatprep.subr.bf16.mxu1 %v15693_v32  ;;  %8847 = vmatprep.subr.bf16.mxu0 %v15693_v32  ;;  %v12858_v49 = vpack.c.bf16 %v3902_v3, %v3899_v61 }
 0x4bc   : > { %v3207_v50 = vsel %vm3080_vm6, %v3175_v12, %v9510_v4  ;;  %v3208_v6 = vsel %vm3080_vm6, %v3176_v5, %v9511_v34  ;;  %15694 = vst [vmem:[#allocation42_spill] sm:$0xff] %v12858_v49 }
 0x4bd   : > { %v3255_v56 = vpack.c.bf16 %v3208_v6, %v3207_v50  ;;  %8777 = vmatpush3.bf16.msra.mxu1 %v12858_v49  ;;  %8849 = vmatpush3.bf16.msra.mxu0 %v12858_v49 }
 0x4be   : > { %8778 = vmatprep.subr.bf16.mxu1 %v15693_v32  ;;  %8850 = vmatprep.subr.bf16.mxu0 %v15693_v32 }
 0x4bf   : > { %3601 = vmatprep.mubr.bf16.mxu0 %v3255_v56 }
 0x4c0   : > { %3602 = vmatmul.mubr.bf16.gmra.mrb[64].mxu0 %v3254_v23 }
 0x4c1   : > { %8558 = vmatprep.mubr.msk.f32.mxu0 %vm10441_vm0, %v15683_v46 }
 0x50d   : > { %v12860_v53 = vpop.f32.mrb[32].mxu1 }
 0x50e   : > { %v12862_v13 = vpop.f32.mrb[33].mxu1 }
 0x50f   : > { %v12868_v7 = vpop.f32.mrb[34].mxu1 }
 0x510   : > { %v12870_v35 = vpop.f32.mrb[35].mxu1 }
 0x519   : > { %v7792_v14 = vpop.f32.mrb[4].mxu0 }
 0x51a   : > { %v7793_v16 = vpop.f32.mrb[5].mxu0 }
 0x51b   : > { %v7794_v29 = vadd.f32 %v7793_v16, %v7792_v14  ;;  %v7795_v26 = vpop.f32.mrb[6].mxu0  ;;  %v3816_v16 = vld [vmem:[%s15402_s8 + $0x20] sm:$0xff] }
 0x51c   : > { %v7796_v60 = vpop.f32.mrb[7].mxu0 }
 0x51d   : > { %v3645_v45 = vadd.f32 %v7794_v29, %v12528_v24  ;;  %v7797_v25 = vadd.f32 %v7796_v60, %v7795_v26  ;;  %v3905_v29 = vand.u32 4294901760, %v3816_v16 }
 0x51f   : > { %v3648_v62 = vadd.f32 %v7797_v25, %v12536_v11  ;;  %v12960_v49 = vsub.f32 %v3816_v16, %v3905_v29 }
 0x521   : > { %v7798_v38 = vpop.f32.mrb[8].mxu0 }
 0x522   : > { %v7799_v48 = vpop.f32.mrb[9].mxu0 }
 0x523   : > { %v7800_v8 = vadd.f32 %v7799_v48, %v7798_v38  ;;  %v7801_v15 = vpop.f32.mrb[10].mxu0 }
 0x524   : > { %v7802_v34 = vpop.f32.mrb[11].mxu0 }
 0x525   : > { %v12875_v4 = vadd.f32 %v12524_v1, %v7800_v8  ;;  %v7803_v12 = vadd.f32 %v7802_v34, %v7801_v15  ;;  %v3817_v1 = vld [vmem:[%s15402_s8 + $0x28] sm:$0xff] }
 0x526   : > { %v3908_v26 = vand.u32 4294901760, %v3817_v1 }
 0x527   : > { %v12878_v5 = vadd.f32 %v12530_v59, %v7803_v12  ;;  %v3818_v59 = vld [vmem:[%s15402_s8 + $0x30] sm:$0xff] }
 0x528   : > { %v3911_v60 = vand.u32 4294901760, %v3818_v59  ;;  %v12898_v48 = vpack.c.bf16 %v3908_v26, %v3905_v29 }
 0x529   : > { %v7804_v50 = vpop.f32.mrb[12].mxu0 }
 0x52a   : > { %v7805_v6 = vpop.f32.mrb[13].mxu0  ;;  %15695 = vst [vmem:[#allocation41_spill] sm:$0xff] %v12898_v48  ;;  %8780 = vmatpush3.bf16.msra.mxu1 %v12898_v48  ;;  %8852 = vmatpush3.bf16.msra.mxu0 %v12898_v48  ;;  %v12976_v29 = vsub.f32 %v3818_v59, %v3911_v60 }
 0x52b   : > { %v7806_v23 = vadd.f32 %v7805_v6, %v7804_v50  ;;  %v7807_v56 = vpop.f32.mrb[14].mxu0  ;;  %8781 = vmatprep.subr.bf16.mxu1 %v15693_v32  ;;  %8853 = vmatprep.subr.bf16.mxu0 %v15693_v32 }
 0x52c   : > { %v7808_v24 = vpop.f32.mrb[15].mxu0 }
 0x52d   : > { %v12881_v14 = vadd.f32 %v7806_v23, %v12554_v47  ;;  %v7809_v11 = vadd.f32 %v7808_v24, %v7807_v56  ;;  %v3819_v47 = vld [vmem:[%s15402_s8 + $0x38] sm:$0xff]  ;;  %v12912_v56 = vsub.f32 %v12823_v57, %v3893_v63  ;;  %v12917_v24 = vsub.f32 %v12828_v39, %v3896_v0  ;;  %v12928_v57 = vld [vmem:[#allocation7] ss:$0 sm:$0xff] }
 0x52e   : > { %v3914_v38 = vand.u32 4294901760, %v3819_v47  ;;  %v12933_v39 = vsub.f32 %v12845_v18, %v3899_v61  ;;  %v12949_v61 = vadd.f32 %v12928_v57, %v3645_v45 }
 0x52f   : > { %v12896_v25 = vadd.f32 %v7809_v11, %v12562_v2 }
 0x530   : > { %v12901_v34 = vpack.c.bf16 %v3914_v38, %v3911_v60 }
 0x531   : > { %v7810_v8 = vpop.f32.mrb[16].mxu0 }
 0x532   : > { %v7811_v15 = vpop.f32.mrb[17].mxu0  ;;  %15696 = vst [vmem:[#allocation45_spill] sm:$0xff] %v12901_v34  ;;  %8783 = vmatpush3.bf16.msra.mxu1 %v12901_v34  ;;  %8855 = vmatpush3.bf16.msra.mxu0 %v12901_v34  ;;  %v12952_v34 = vadd.f32 %v12928_v57, %v3648_v62  ;;  %v12969_v62 = vadd.f32 %v12928_v57, %v12875_v4 }
 0x533   : > { %v7812_v12 = vadd.f32 %v7811_v15, %v7810_v8  ;;  %v7813_v50 = vpop.f32.mrb[18].mxu0  ;;  %8784 = vmatprep.subr.bf16.mxu1 %v15693_v32  ;;  %v15475_v8 = vand.u32 4294901760, %v12917_v24  ;;  %8856 = vmatprep.subr.bf16.mxu0 %v15693_v32 }
 0x534   : > { %v7814_v6 = vpop.f32.mrb[19].mxu0  ;;  %v3821_v4 = vsel %vm3047_vm5, %v12952_v34, 0.0  ;;  %v3823_v59 = vsel %vm3047_vm5, %v12969_v62, 0.0 }
 0x535   : > { %v12907_v2 = vadd.f32 %v12550_v58, %v7812_v12  ;;  %v7815_v23 = vadd.f32 %v7814_v6, %v7813_v50  ;;  %v15474_v58 = vand.u32 4294901760, %v12912_v56  ;;  %v3986_v15 = vsub.f32 %v12917_v24, %v15475_v8 }
 0x536   : > { %v15482_v50 = vand.u32 4294901760, %v12933_v39 }
 0x537   : > { %v12922_v11 = vadd.f32 %v12556_v19, %v7815_v23  ;;  %v12938_v19 = vsub.f32 %v12850_v31, %v3902_v3  ;;  %v3979_v0 = vsub.f32 %v12912_v56, %v15474_v58  ;;  %v3987_v23 = vand.u32 4294901760, %v3986_v15 }
 0x538   : > { %v3993_v8 = vsub.f32 %v12933_v39, %v15482_v50  ;;  %v15485_v50 = vand.u32 4294901760, %v12960_v49 }
 0x539   : > { %v7816_v63 = vpop.f32.mrb[20].mxu0  ;;  %v15486_v18 = vand.u32 4294901760, %v12938_v19  ;;  %v3980_v3 = vand.u32 4294901760, %v3979_v0  ;;  %v12965_v0 = vsub.f32 %v3817_v1, %v3908_v26  ;;  %v12983_v26 = vsub.f32 %v3819_v47, %v3914_v38 }
 0x53a   : > { %v7817_v12 = vpop.f32.mrb[21].mxu0  ;;  %v3994_v15 = vand.u32 4294901760, %v3993_v8  ;;  %v4007_v1 = vsub.f32 %v12960_v49, %v15485_v50  ;;  %v12998_v38 = vadd.f32 %v12928_v57, %v12878_v5 }
 0x53b   : > { %v7818_v6 = vadd.f32 %v7817_v12, %v7816_v63  ;;  %v7819_v31 = vpop.f32.mrb[22].mxu0  ;;  %v4000_v48 = vsub.f32 %v12938_v19, %v15486_v18  ;;  %v12963_v12 = vpack.c.bf16 %v3987_v23, %v3980_v3  ;;  %v15484_v16 = vand.u32 4294901760, %v12965_v0 }
 0x53c   : > { %v7820_v58 = vpop.f32.mrb[23].mxu0  ;;  %v4008_v8 = vand.u32 4294901760, %v4007_v1  ;;  %v15487_v47 = vand.u32 4294901760, %v12983_v26 }
 0x53d   : > { %v3677_v45 = vadd.f32 %v7818_v6, %v12590_v43  ;;  %v7821_v63 = vadd.f32 %v7820_v58, %v7819_v31  ;;  %v4001_v17 = vand.u32 4294901760, %v4000_v48  ;;  %v15488_v58 = vand.u32 4294901760, %v12976_v29 }
 0x53e   : > { %v4028_v1 = vsub.f32 %v12983_v26, %v15487_v47  ;;  %v13022_v47 = vpack.c.bf16 %v12938_v19, %v12933_v39 }
 0x53f   : > { %v12973_v32 = vadd.f32 %v7821_v63, %v12600_v52  ;;  %v12978_v43 = vpack.c.bf16 %v4001_v17, %v3994_v15  ;;  %v4014_v52 = vsub.f32 %v12965_v0, %v15484_v16  ;;  %v3820_v17 = vsel %vm3047_vm5, %v12949_v61, 0.0 }
 0x540   : > { %v4021_v23 = vsub.f32 %v12976_v29, %v15488_v58  ;;  %v3822_v63 = vadd.f32 %v3821_v4, %v3820_v17  ;;  %v13005_v15 = vadd.f32 %v12928_v57, %v12881_v14  ;;  %v4029_v18 = vand.u32 4294901760, %v4028_v1 }
 0x541   : > { %v4015_v3 = vand.u32 4294901760, %v4014_v52  ;;  %v13015_v4 = vpack.c.bf16 %v12917_v24, %v12912_v56  ;;  %v3825_v14 = vsel %vm3047_vm5, %v12998_v38, 0.0 }
 0x542   : > { %v7822_v48 = vpop.f32.mrb[24].mxu0  ;;  %v4022_v52 = vand.u32 4294901760, %v4021_v23 }
 0x543   : > { %v7823_v60 = vpop.f32.mrb[25].mxu0 }
 0x544   : > { %v7824_v6 = vadd.f32 %v7823_v60, %v7822_v48  ;;  %v7825_v31 = vpop.f32.mrb[26].mxu0  ;;  %v13011_v48 = vpack.c.bf16 %v4015_v3, %v4008_v8  ;;  %v3824_v60 = vadd.f32 %v3823_v59, %v3822_v63  ;;  %v13030_v59 = vadd.f32 %v12928_v57, %v12896_v25 }
 0x545   : > { %v7826_v16 = vpop.f32.mrb[27].mxu0  ;;  %v13034_v3 = vadd.f32 %v12928_v57, %v12907_v2  ;;  %v13047_v2 = vadd.f32 %v12928_v57, %v12922_v11 }
 0x546   : > { %v3685_v5 = vadd.f32 %v12588_v54, %v7824_v6  ;;  %v7827_v50 = vadd.f32 %v7826_v16, %v7825_v31  ;;  %v13024_v54 = vpack.c.bf16 %v4029_v18, %v4022_v52  ;;  %v3827_v16 = vsel %vm3047_vm5, %v13005_v15, 0.0 }
 0x547   : > { %v3826_v6 = vadd.f32 %v3825_v14, %v3824_v60  ;;  %15697 = vst [vmem:[#allocation24_spill] sm:$0xff] %v13034_v3  ;;  %v13038_v18 = vpack.c.bf16 %v12965_v0, %v12960_v49  ;;  %v3829_v1 = vsel %vm3047_vm5, %v13030_v59, 0.0  ;;  %v3831_v60 = vsel %vm3047_vm5, %v13034_v3, 0.0  ;;  %15698 = vst [vmem:[#allocation23_spill] sm:$0xff] %v13047_v2 }
 0x548   : > { %v3688_v17 = vadd.f32 %v12592_v42, %v7827_v50 }
 0x549   : > { %v3828_v23 = vadd.f32 %v3827_v16, %v3826_v6  ;;  %v13055_v6 = vadd.f32 %v12928_v57, %v3677_v45 }
 0x54a   : > { %v7828_v8 = vpop.f32.mrb[28].mxu0 }
 0x54b   : > { %v7829_v31 = vpop.f32.mrb[29].mxu0  ;;  %v3830_v16 = vadd.f32 %v3829_v1, %v3828_v23  ;;  %15699 = vst [vmem:[#allocation35_spill] sm:$0xff] %v13055_v6 }
 0x54c   : > { %v7830_v42 = vadd.f32 %v7829_v31, %v7828_v8  ;;  %v7831_v50 = vpop.f32.mrb[30].mxu0  ;;  %v13052_v8 = vpack.c.bf16 %v12983_v26, %v12976_v29 }
 0x54d   : > { %v7832_v63 = vpop.f32.mrb[31].mxu0 }
 0x54e   : > { %v3693_v25 = vadd.f32 %v7830_v42, %v12616_v21  ;;  %v7833_v52 = vadd.f32 %v7832_v63, %v7831_v50  ;;  %v3832_v21 = vadd.f32 %v3831_v60, %v3830_v16  ;;  %v3833_v50 = vsel %vm3047_vm5, %v13047_v2, 0.0 }
 0x54f   : > { %v13067_v60 = vadd.f32 %v12928_v57, %v3685_v5 }
 0x550   : > { %v3696_v14 = vadd.f32 %v7833_v52, %v12628_v10  ;;  %v3835_v10 = vsel %vm3047_vm5, %v13055_v6, 0.0  ;;  %v13063_v52 = vadd.f32 %v12928_v57, %v12973_v32  ;;  %v3834_v1 = vadd.f32 %v3833_v50, %v3832_v21 }
 0x551   : > { %v3839_v6 = vsel %vm3047_vm5, %v13067_v60, 0.0  ;;  %v13075_v32 = vadd.f32 %v12928_v57, %v3688_v17  ;;  %v13078_v5 = vadd.f32 %v12928_v57, %v3693_v25 }
 0x552   : > { %v7834_v31 = vpop.f32.mrb[32].mxu0  ;;  %v3836_v2 = vadd.f32 %v3835_v10, %v3834_v1 }
 0x553   : > { %v7835_v42 = vpop.f32.mrb[33].mxu0  ;;  %v3841_v10 = vsel %vm3047_vm5, %v13075_v32, 0.0  ;;  %v3843_v17 = vsel %vm3047_vm5, %v13078_v5, 0.0 }
 0x554   : > { %v7836_v63 = vadd.f32 %v7835_v42, %v7834_v31  ;;  %v7837_v58 = vpop.f32.mrb[34].mxu0  ;;  %v3837_v31 = vsel %vm3047_vm5, %v13063_v52, 0.0 }
 0x555   : > { %v7838_v11 = vpop.f32.mrb[35].mxu0  ;;  %v3838_v21 = vadd.f32 %v3837_v31, %v3836_v2 }
 0x556   : > { %v3701_v23 = vadd.f32 %v12614_v27, %v7836_v63  ;;  %v7839_v45 = vadd.f32 %v7838_v11, %v7837_v58 }
 0x557   : > { %v3840_v11 = vadd.f32 %v3839_v6, %v3838_v21 }
 0x558   : > { %v3704_v16 = vadd.f32 %v12624_v37, %v7839_v45  ;;  %v13090_v25 = vadd.f32 %v12928_v57, %v3701_v23 }
 0x559   : > { %v3842_v1 = vadd.f32 %v3841_v10, %v3840_v11 }
 0x55a   : > { %v7840_v42 = vpop.f32.mrb[36].mxu0  ;;  %v3847_v23 = vsel %vm3047_vm5, %v13090_v25, 0.0  ;;  %v13104_v11 = vadd.f32 %v12928_v57, %v3704_v16 }
 0x55b   : > { %v7841_v3 = vpop.f32.mrb[37].mxu0  ;;  %v3844_v6 = vadd.f32 %v3843_v17, %v3842_v1  ;;  %v15702_v17 = vand.u32 4294901760, %v12933_v39  ;;  %v15705_v39 = vand.u32 4294901760, %v12965_v0  ;;  %v15706_v0 = vand.u32 4294901760, %v12976_v29 }
 0x55c   : > { %v7842_v27 = vadd.f32 %v7841_v3, %v7840_v42  ;;  %v7843_v58 = vpop.f32.mrb[38].mxu0  ;;  %v13087_v3 = vadd.f32 %v12928_v57, %v3696_v14  ;;  %v15701_v14 = vand.u32 4294901760, %v12917_v24 }
 0x55d   : > { %v7844_v50 = vpop.f32.mrb[39].mxu0 }
 0x55e   : > { %v3709_v37 = vadd.f32 %v7842_v27, %v12642_v36  ;;  %v7845_v63 = vadd.f32 %v7844_v50, %v7843_v58  ;;  %v3845_v58 = vsel %vm3047_vm5, %v13087_v3, 0.0  ;;  %v15700_v50 = vand.u32 4294901760, %v12912_v56 }
 0x55f   : > { %v3846_v1 = vadd.f32 %v3845_v58, %v3844_v6 }
 0x560   : > { %v3712_v45 = vadd.f32 %v7845_v63, %v12654_v44  ;;  %v13099_v63 = vpack.c.bf16 %v15701_v14, %v15700_v50  ;;  %v13114_v56 = vadd.f32 %v12928_v57, %v3709_v37 }
 0x562   : > { %v7846_v2 = vpop.f32.mrb[40].mxu0  ;;  %v3851_v6 = vsel %vm3047_vm5, %v13114_v56, 0.0  ;;  %v13127_v37 = vadd.f32 %v12928_v57, %v3712_v45 }
 0x563   : > { %v7847_v31 = vpop.f32.mrb[41].mxu0 }
 0x564   : > { %v7848_v36 = vadd.f32 %v7847_v31, %v7846_v2  ;;  %v7849_v42 = vpop.f32.mrb[42].mxu0  ;;  %v15703_v2 = vand.u32 4294901760, %v12938_v19  ;;  %v3848_v31 = vadd.f32 %v3847_v23, %v3846_v1  ;;  %v3853_v45 = vsel %vm3047_vm5, %v13127_v37, 0.0 }
 0x565   : > { %v7850_v27 = vpop.f32.mrb[43].mxu0 }
 0x566   : > { %v3717_v44 = vadd.f32 %v12640_v55, %v7848_v36  ;;  %v7851_v21 = vadd.f32 %v7850_v27, %v7849_v42  ;;  %v13111_v55 = vpack.c.bf16 %v15703_v2, %v15702_v17  ;;  %v3849_v42 = vsel %vm3047_vm5, %v13104_v11, 0.0 }
 0x567   : > { %v3850_v14 = vadd.f32 %v3849_v42, %v3848_v31  ;;  %v15707_v17 = vand.u32 4294901760, %v12983_v26 }
 0x568   : > { %v3720_v10 = vadd.f32 %v12650_v41, %v7851_v21  ;;  %v15704_v41 = vand.u32 4294901760, %v12960_v49  ;;  %v13131_v23 = vadd.f32 %v12928_v57, %v3717_v44 }
 0x569   : > { %v13138_v2 = vpack.c.bf16 %v15707_v17, %v15706_v0  ;;  %v3852_v1 = vadd.f32 %v3851_v6, %v3850_v14 }
 0x56a   : > { %v7852_v24 = vpop.f32.mrb[44].mxu0  ;;  %v13122_v21 = vpack.c.bf16 %v15705_v39, %v15704_v41  ;;  %v13145_v44 = vadd.f32 %v12928_v57, %v3720_v10 }
 0x56b   : > { %v7853_v36 = vpop.f32.mrb[45].mxu0  ;;  %v3854_v42 = vadd.f32 %v3853_v45, %v3852_v1 }
 0x56c   : > { %v7854_v16 = vadd.f32 %v7853_v36, %v7852_v24  ;;  %v7855_v27 = vpop.f32.mrb[46].mxu0  ;;  %v3857_v39 = vsel %vm3047_vm5, %v13145_v44, 0.0 }
 0x56d   : > { %v7856_v19 = vpop.f32.mrb[47].mxu0 }
 0x56e   : > { %v3725_v58 = vadd.f32 %v7854_v16, %v12668_v20  ;;  %v7857_v50 = vadd.f32 %v7856_v19, %v7855_v27  ;;  %v3855_v20 = vsel %vm3047_vm5, %v13131_v23, 0.0 }
 0x56f   : > { %v3856_v41 = vadd.f32 %v3855_v20, %v3854_v42 }
 0x570   : > { %v3728_v49 = vadd.f32 %v7857_v50, %v12680_v28  ;;  %v13148_v26 = vadd.f32 %v12928_v57, %v3725_v58 }
 0x571   : > { %v3858_v14 = vadd.f32 %v3857_v39, %v3856_v41 }
 0x572   : > { %v7858_v24 = vpop.f32.mrb[48].mxu0  ;;  %v3859_v10 = vsel %vm3047_vm5, %v13148_v26, 0.0  ;;  %v13157_v6 = vadd.f32 %v12928_v57, %v3728_v49 }
 0x573   : > { %v7859_v36 = vpop.f32.mrb[49].mxu0  ;;  %v3860_v1 = vadd.f32 %v3859_v10, %v3858_v14 }
 0x574   : > { %v7860_v31 = vadd.f32 %v7859_v36, %v7858_v24  ;;  %v7861_v28 = vpop.f32.mrb[50].mxu0  ;;  %v3861_v24 = vsel %vm3047_vm5, %v13157_v6, 0.0 }
 0x575   : > { %v7862_v29 = vpop.f32.mrb[51].mxu0 }
 0x576   : > { %v3733_v16 = vadd.f32 %v12666_v33, %v7860_v31  ;;  %v7863_v27 = vadd.f32 %v7862_v29, %v7861_v28  ;;  %v3862_v28 = vadd.f32 %v3861_v24, %v3860_v1 }
 0x578   : > { %v3736_v19 = vadd.f32 %v12676_v22, %v7863_v27  ;;  %v13160_v58 = vadd.f32 %v12928_v57, %v3733_v16 }
 0x57a   : > { %v7864_v50 = vpop.f32.mrb[52].mxu0  ;;  %v3863_v49 = vsel %vm3047_vm5, %v13160_v58, 0.0  ;;  %v13168_v20 = vadd.f32 %v12928_v57, %v3736_v19 }
 0x57b   : > { %v7865_v0 = vpop.f32.mrb[53].mxu0  ;;  %v3864_v16 = vadd.f32 %v3863_v49, %v3862_v28 }
 0x57c   : > { %v7866_v33 = vadd.f32 %v7865_v0, %v7864_v50  ;;  %v7867_v17 = vpop.f32.mrb[54].mxu0  ;;  %v3865_v41 = vsel %vm3047_vm5, %v13168_v20, 0.0 }
 0x57d   : > { %v7868_v45 = vpop.f32.mrb[55].mxu0  ;;  %v3866_v0 = vadd.f32 %v3865_v41, %v3864_v16 }
 0x57e   : > { %v3741_v22 = vadd.f32 %v7866_v33, %v12694_v9  ;;  %v7869_v36 = vadd.f32 %v7868_v45, %v7867_v17 }
 0x580   : > { %v3744_v31 = vadd.f32 %v7869_v36, %v12706_v51  ;;  %v13172_v42 = vadd.f32 %v12928_v57, %v3741_v22 }
 0x582   : > { %v7870_v29 = vpop.f32.mrb[56].mxu0  ;;  %v3867_v50 = vsel %vm3047_vm5, %v13172_v42, 0.0  ;;  %v13179_v19 = vadd.f32 %v12928_v57, %v3744_v31 }
 0x583   : > { %v7871_v27 = vpop.f32.mrb[57].mxu0  ;;  %v3868_v1 = vadd.f32 %v3867_v50, %v3866_v0 }
 0x584   : > { %v7872_v9 = vadd.f32 %v7871_v27, %v7870_v29  ;;  %v7873_v39 = vpop.f32.mrb[58].mxu0  ;;  %v3869_v45 = vsel %vm3047_vm5, %v13179_v19, 0.0 }
 0x585   : > { %v7874_v10 = vpop.f32.mrb[59].mxu0  ;;  %v3870_v28 = vadd.f32 %v3869_v45, %v3868_v1 }
 0x586   : > { %v3749_v51 = vadd.f32 %v12692_v40, %v7872_v9  ;;  %v7875_v14 = vadd.f32 %v7874_v10, %v7873_v39 }
 0x588   : > { %v13183_v33 = vadd.f32 %v12928_v57, %v3749_v51  ;;  %v3752_v17 = vadd.f32 %v12702_v30, %v7875_v14 }
 0x58a   : > { %v7876_v24 = vpop.f32.mrb[60].mxu0  ;;  %v3871_v36 = vsel %vm3047_vm5, %v13183_v33, 0.0  ;;  %v13191_v49 = vadd.f32 %v12928_v57, %v3752_v17 }
 0x58b   : > { %v7877_v22 = vpop.f32.mrb[61].mxu0  ;;  %v3872_v30 = vadd.f32 %v3871_v36, %v3870_v28 }
 0x58c   : > { %v7878_v40 = vadd.f32 %v7877_v22, %v7876_v24  ;;  %v7879_v31 = vpop.f32.mrb[62].mxu0  ;;  %v3873_v41 = vsel %vm3047_vm5, %v13191_v49, 0.0 }
 0x58d   : > { %v7880_v29 = vpop.f32.mrb[63].mxu0  ;;  %v3874_v14 = vadd.f32 %v3873_v41, %v3872_v30 }
 0x58e   : > { %v7881_v16 = vadd.f32 %v7880_v29, %v7879_v31  ;;  %v3757_v27 = vadd.f32 %v7878_v40, %v12862_v13 }
 0x590   : > { %v13197_v9 = vadd.f32 %v12928_v57, %v3757_v27  ;;  %v3760_v39 = vadd.f32 %v7881_v16, %v12870_v35 }
 0x592   : > { %v3875_v10 = vsel %vm3047_vm5, %v13197_v9, 0.0  ;;  %v13203_v50 = vadd.f32 %v12928_v57, %v3760_v39 }
 0x593   : > { %v7882_v51 = vpop.f32.mrb[64].mxu0  ;;  %v3876_v1 = vadd.f32 %v3875_v10, %v3874_v14 }
 0x594   : > { %v7883_v0 = vpop.f32.mrb[65].mxu0  ;;  %v3877_v24 = vsel %vm3047_vm5, %v13203_v50, 0.0 }
 0x595   : > { %v7884_v17 = vadd.f32 %v7883_v0, %v7882_v51  ;;  %v7885_v13 = vpop.f32.mrb[66].mxu0  ;;  %v3878_v31 = vadd.f32 %v3877_v24, %v3876_v1  ;;  %v15709_v24 = vld [vmem:[#allocation43_spill] sm:$0xff] }
 0x596   : > { %v7886_v45 = vpop.f32.mrb[67].mxu0 }
 0x597   : > { %v3765_v22 = vadd.f32 %v12860_v53, %v7884_v17  ;;  %v7887_v36 = vadd.f32 %v7886_v45, %v7885_v13 }
 0x599   : > { %v13209_v35 = vadd.f32 %v12928_v57, %v3765_v22  ;;  %v3768_v40 = vadd.f32 %v12868_v7, %v7887_v36  ;;  %v15710_v22 = vld [vmem:[#allocation42_spill] sm:$0xff]  ;;  %v15711_v36 = vld [vmem:[#allocation41_spill] sm:$0xff] }
 0x59b   : > { %v3879_v28 = vsel %vm3047_vm5, %v13209_v35, 0.0  ;;  %v13215_v29 = vadd.f32 %v12928_v57, %v3768_v40  ;;  %v15708_v57 = vmov 0.0|0.0   ;;  %v15712_v40 = vld [vmem:[#allocation45_spill] sm:$0xff] }
 0x59c   : > { %v3880_v16 = vadd.f32 %v3879_v28, %v3878_v31 }
 0x59d   : > { %v3881_v27 = vsel %vm3047_vm5, %v13215_v29, 0.0 }
 0x59e   : > { %v3882_v30 = vadd.f32 %v3881_v27, %v3880_v16  ;;  %v15713_v16 = vld [vmem:[#allocation28_spill] sm:$0xff] }
 0x5a0   : > { %v3883_v41 = vrot.slane %v3882_v30, 4 }
 0x5a2   : > { %v3884_v53 = vadd.f32 %v3883_v41, %v3882_v30 }
 0x5a4   : > { %v3885_v39 = vrot.slane %v3884_v53, 2 }
 0x5a6   : > { %v3886_v10 = vadd.f32 %v3885_v39, %v3884_v53 }
 0x5a8   : > { %v3887_v51 = vrot.slane %v3886_v10, 1 }
 0x5aa   : > { %v3888_v14 = vadd.f32 %v3887_v51, %v3886_v10 }
 0x5ac   : > { %v3890_v7 = vsel %vm3047_vm5, %v3888_v14, 0 }
 0x5ad   : > { %v3965_v0 = vand.u32 4294901760, %v3890_v7 }
 0x5af   : > { %v3966_v17 = vsub.f32 %v3890_v7, %v3965_v0 }
 0x5b1   : > { %v3967_v13 = vand.u32 4294901760, %v3966_v17 }
 0x5b3   : > { %v3968_v1 = vsub.f32 %v3966_v17, %v3967_v13 }
 0x5b5   : > { %v3969_v45 = vand.u32 4294901760, %v3968_v1 }
 0x5b7   : > { %8445 = vmatmul.mubr.f32.vlgmr.msra.gmra.mrb[36].mxu1 %v3969_v45 }
 0x5b8   : > { %8786 = vmatpush3.bf16.msra.mxu1 %v12963_v12  ;;  %8463 = vmatprep.mubr.msk.f32.mxu1 %vm10441_vm0, %v15683_v46 }
 0x5b9   : > { %8787 = vmatprep.subr.bf16.mxu1 %v15708_v57 }
 0x5bc   : > { %8789 = vmatpush3.bf16.msra.mxu1 %v12978_v43 }
 0x5bd   : > { %8790 = vmatprep.subr.bf16.mxu1 %v15708_v57 }
 0x5c0   : > { %8792 = vmatpush3.bf16.msra.mxu1 %v13011_v48 }
 0x5c1   : > { %8793 = vmatprep.subr.bf16.mxu1 %v15708_v57 }
 0x5c4   : > { %8795 = vmatpush3.bf16.msra.mxu1 %v13024_v54 }
 0x5c5   : > { %8796 = vmatprep.subr.bf16.mxu1 %v15708_v57 }
 0x5c7   : > { %8464 = vmatmul.mubr.f32.vlgmr.msra.gmra.mrb[36].mxu1 %v3965_v0 }
 0x5c8   : > { %8798 = vmatpush3.bf16.msra.mxu1 %v13015_v4  ;;  %8482 = vmatprep.mubr.msk.f32.mxu1 %vm10441_vm0, %v15683_v46 }
 0x5c9   : > { %8799 = vmatprep.subr.bf16.mxu1 %v15708_v57 }
 0x5cc   : > { %8801 = vmatpush3.bf16.msra.mxu1 %v13022_v47 }
 0x5cd   : > { %8802 = vmatprep.subr.bf16.mxu1 %v15708_v57 }
 0x5d0   : > { %8804 = vmatpush3.bf16.msra.mxu1 %v13038_v18 }
 0x5d1   : > { %8805 = vmatprep.subr.bf16.mxu1 %v15708_v57 }
 0x5d4   : > { %8807 = vmatpush3.bf16.msra.mxu1 %v13052_v8 }
 0x5d5   : > { %8808 = vmatprep.subr.bf16.mxu1 %v15708_v57 }
 0x5d7   : > { %8483 = vmatmul.mubr.f32.vlgmr.msra.gmra.mrb[36].mxu1 %v3966_v17  ;;  %v15714_v17 = vld [vmem:[#allocation24_spill] sm:$0xff] }
 0x5d8   : > { %8810 = vmatpush3.bf16.msra.mxu1 %v15709_v24  ;;  %8501 = vmatprep.mubr.msk.f32.mxu1 %vm10441_vm0, %v15683_v46 }
 0x5d9   : > { %8811 = vmatprep.subr.bf16.mxu1 %v15708_v57 }
 0x5dc   : > { %8813 = vmatpush3.bf16.msra.mxu1 %v15710_v22 }
 0x5dd   : > { %8814 = vmatprep.subr.bf16.mxu1 %v15708_v57 }
 0x5e0   : > { %8816 = vmatpush3.bf16.msra.mxu1 %v15711_v36 }
 0x5e1   : > { %8817 = vmatprep.subr.bf16.mxu1 %v15708_v57 }
 0x5e4   : > { %8819 = vmatpush3.bf16.msra.mxu1 %v15712_v40 }
 0x5e5   : > { %8820 = vmatprep.subr.bf16.mxu1 %v15708_v57 }
 0x5e7   : > { %8502 = vmatmul.mubr.f32.vlgmr.msra.gmra.mrb[36].mxu1 %v3967_v13 }
 0x5e8   : > { %8822 = vmatpush3.bf16.msra.mxu1 %v13099_v63  ;;  %8520 = vmatprep.mubr.msk.f32.mxu1 %vm10441_vm0, %v15683_v46 }
 0x5e9   : > { %8823 = vmatprep.subr.bf16.mxu1 %v15708_v57 }
 0x5ec   : > { %8825 = vmatpush3.bf16.msra.mxu1 %v13111_v55 }
 0x5ed   : > { %8826 = vmatprep.subr.bf16.mxu1 %v15708_v57 }
 0x5f0   : > { %8828 = vmatpush3.bf16.msra.mxu1 %v13122_v21 }
 0x5f1   : > { %8829 = vmatprep.subr.bf16.mxu1 %v15708_v57 }
 0x5f4   : > { %8831 = vmatpush3.bf16.msra.mxu1 %v13138_v2 }
 0x5f5   : > { %8832 = vmatprep.subr.bf16.mxu1 %v15708_v57 }
 0x5f7   : > { %8521 = vmatmul.mubr.f32.vlgmr.msra.gmra.mrb[36].mxu1 %v3965_v0 }
 0x5f8   : > { %8834 = vmatpush3.bf16.msra.mxu1 %v15709_v24  ;;  %8539 = vmatprep.mubr.msk.f32.mxu1 %vm10441_vm0, %v15683_v46 }
 0x5f9   : > { %8835 = vmatprep.subr.bf16.mxu1 %v15708_v57 }
 0x5fc   : > { %8837 = vmatpush3.bf16.msra.mxu1 %v15710_v22 }
 0x5fd   : > { %8838 = vmatprep.subr.bf16.mxu1 %v15708_v57 }
 0x600   : > { %8840 = vmatpush3.bf16.msra.mxu1 %v15711_v36 }
 0x601   : > { %8841 = vmatprep.subr.bf16.mxu1 %v15708_v57 }
 0x604   : > { %8843 = vmatpush3.bf16.msra.mxu1 %v15712_v40 }
 0x607   : > { %8540 = vmatmul.mubr.f32.vlgmr.msra.gmra.mrb[36].mxu1 %v3965_v0 }
 0x6da   : > { %v4425_v31 = vpop.f32.mrb[36].mxu1 }
 0x6db   : > { %v8541_v28 = vpop.f32.mrb[37].mxu1  ;;  %v13270_v27 = vrot.slane %v4425_v31, %v15713_v16 }
 0x6dd   : > { %v13274_v30 = vsub.f32 %v12949_v61, %v13270_v27  ;;  %v13278_v41 = vsub.f32 %v12952_v34, %v13270_v27  ;;  %v13282_v53 = vsub.f32 %v12969_v62, %v13270_v27  ;;  %v13286_v39 = vsub.f32 %v12998_v38, %v13270_v27 }
 0x6de   : > { %v13294_v61 = vsub.f32 %v13005_v15, %v13270_v27  ;;  %v13300_v62 = vsub.f32 %v13030_v59, %v13270_v27  ;;  %v13308_v13 = vsub.f32 %v15714_v17, %v13270_v27  ;;  %v15715_v59 = vld [vmem:[#allocation23_spill] sm:$0xff] }
 0x6df   : > { %v4465_v10 = vmul.f32 %v13274_v30, %v13274_v30  ;;  %v4466_v51 = vmul.f32 %v13278_v41, %v13278_v41  ;;  %v4467_v34 = vmul.f32 %v13282_v53, %v13282_v53  ;;  %v4468_v38 = vmul.f32 %v13286_v39, %v13286_v39 }
 0x6e0   : > { %v4469_v15 = vmul.f32 %v13294_v61, %v13294_v61  ;;  %v13315_v31 = vsub.f32 %v15715_v59, %v13270_v27  ;;  %v4470_v28 = vmul.f32 %v13300_v62, %v13300_v62  ;;  %v4471_v17 = vmul.f32 %v13308_v13, %v13308_v13 }
 0x6e1   : > { %v4497_v14 = vsel %vm3047_vm5, %v4465_v10, 0.0  ;;  %v4498_v7 = vsel %vm3047_vm5, %v4466_v51, 0.0  ;;  %v4500_v1 = vsel %vm3047_vm5, %v4467_v34, 0.0  ;;  %v4502_v10 = vsel %vm3047_vm5, %v4468_v38, 0.0 }
 0x6e2   : > { %v4499_v0 = vadd.f32 %v4498_v7, %v4497_v14  ;;  %v15716_v14 = vld [vmem:[#allocation35_spill] sm:$0xff]  ;;  %v4504_v34 = vsel %vm3047_vm5, %v4469_v15, 0.0  ;;  %v4472_v59 = vmul.f32 %v13315_v31, %v13315_v31  ;;  %v4506_v38 = vsel %vm3047_vm5, %v4470_v28, 0.0 }
 0x6e3   : > { %v13322_v7 = vsub.f32 %v15716_v14, %v13270_v27  ;;  %v4508_v15 = vsel %vm3047_vm5, %v4471_v17, 0.0 }
 0x6e4   : > { %v4501_v45 = vadd.f32 %v4500_v1, %v4499_v0  ;;  %v13329_v1 = vsub.f32 %v13063_v52, %v13270_v27  ;;  %v13343_v52 = vsub.f32 %v13075_v32, %v13270_v27  ;;  %v4510_v28 = vsel %vm3047_vm5, %v4472_v59, 0.0 }
 0x6e5   : > { %v4473_v14 = vmul.f32 %v13322_v7, %v13322_v7  ;;  %v13357_v32 = vsub.f32 %v13087_v3, %v13270_v27  ;;  %v13371_v3 = vsub.f32 %v13104_v11, %v13270_v27  ;;  %v13385_v11 = vsub.f32 %v13127_v37, %v13270_v27 }
 0x6e6   : > { %v4503_v51 = vadd.f32 %v4502_v10, %v4501_v45  ;;  %v13336_v10 = vsub.f32 %v13067_v60, %v13270_v27  ;;  %v13350_v60 = vsub.f32 %v13078_v5, %v13270_v27  ;;  %v13364_v5 = vsub.f32 %v13090_v25, %v13270_v27 }
 0x6e7   : > { %v4512_v17 = vsel %vm3047_vm5, %v4473_v14, 0.0  ;;  %v13378_v25 = vsub.f32 %v13114_v56, %v13270_v27  ;;  %v13392_v56 = vsub.f32 %v13131_v23, %v13270_v27  ;;  %v13399_v37 = vsub.f32 %v13145_v44, %v13270_v27 }
 0x6e8   : > { %v4505_v0 = vadd.f32 %v4504_v34, %v4503_v51  ;;  %v4474_v34 = vmul.f32 %v13329_v1, %v13329_v1  ;;  %v13406_v23 = vsub.f32 %v13148_v26, %v13270_v27  ;;  %v13413_v44 = vsub.f32 %v13157_v6, %v13270_v27 }
 0x6e9   : > { %v13420_v26 = vsub.f32 %v13160_v58, %v13270_v27  ;;  %v13427_v6 = vsub.f32 %v13168_v20, %v13270_v27  ;;  %v13434_v58 = vsub.f32 %v13172_v42, %v13270_v27  ;;  %v13441_v20 = vsub.f32 %v13179_v19, %v13270_v27 }
 0x6ea   : > { %v4507_v45 = vadd.f32 %v4506_v38, %v4505_v0  ;;  %v4475_v38 = vmul.f32 %v13336_v10, %v13336_v10  ;;  %v4514_v59 = vsel %vm3047_vm5, %v4474_v34, 0.0  ;;  %v13448_v42 = vsub.f32 %v13183_v33, %v13270_v27 }
 0x6eb   : > { %15717 = vst [vmem:[#allocation26_spill] sm:$0xff] %v13434_v58  ;;  %15718 = vst [vmem:[#allocation22_spill] sm:$0xff] %v13441_v20  ;;  %v13455_v19 = vsub.f32 %v13191_v49, %v13270_v27  ;;  %v13462_v33 = vsub.f32 %v13197_v9, %v13270_v27  ;;  %v13469_v49 = vsub.f32 %v13203_v50, %v13270_v27 }
 0x6ec   : > { %v4509_v51 = vadd.f32 %v4508_v15, %v4507_v45  ;;  %v4476_v15 = vmul.f32 %v13343_v52, %v13343_v52  ;;  %v4516_v14 = vsel %vm3047_vm5, %v4475_v38, 0.0  ;;  %15719 = vst [vmem:[#allocation27_spill] sm:$0xff] %v13448_v42  ;;  %v13476_v9 = vsub.f32 %v13209_v35, %v13270_v27 }
 0x6ed   : > { %15720 = vst [vmem:[#allocation32_spill] sm:$0xff] %v13455_v19  ;;  %15721 = vst [vmem:[#allocation34_spill] sm:$0xff] %v13462_v33  ;;  %v13483_v50 = vsub.f32 %v13215_v29, %v13270_v27 }
 0x6ee   : > { %v4511_v0 = vadd.f32 %v4510_v28, %v4509_v51  ;;  %v4477_v28 = vmul.f32 %v13350_v60, %v13350_v60  ;;  %v4518_v34 = vsel %vm3047_vm5, %v4476_v15, 0.0  ;;  %15722 = vst [vmem:[#allocation25_spill] sm:$0xff] %v13469_v49  ;;  %15723 = vst [vmem:[#allocation29_spill] sm:$0xff] %v13476_v9  ;;  %v4495_v35 = vmul.f32 %v13476_v9, %v13476_v9 }
 0x6ef   : > { %15724 = vst [vmem:[#allocation33_spill] sm:$0xff] %v13483_v50 }
 0x6f0   : > { %v4513_v45 = vadd.f32 %v4512_v17, %v4511_v0  ;;  %v4478_v17 = vmul.f32 %v13357_v32, %v13357_v32  ;;  %v4520_v38 = vsel %vm3047_vm5, %v4477_v28, 0.0  ;;  %v4556_v29 = vsel %vm3047_vm5, %v4495_v35, 0.0 }
 0x6f2   : > { %v4515_v51 = vadd.f32 %v4514_v59, %v4513_v45  ;;  %v4479_v59 = vmul.f32 %v13364_v5, %v13364_v5  ;;  %v4522_v15 = vsel %vm3047_vm5, %v4478_v17, 0.0 }
 0x6f4   : > { %v4517_v0 = vadd.f32 %v4516_v14, %v4515_v51  ;;  %v4480_v14 = vmul.f32 %v13371_v3, %v13371_v3  ;;  %v4524_v28 = vsel %vm3047_vm5, %v4479_v59, 0.0 }
 0x6f6   : > { %v4519_v45 = vadd.f32 %v4518_v34, %v4517_v0  ;;  %v4481_v34 = vmul.f32 %v13378_v25, %v13378_v25  ;;  %v4526_v17 = vsel %vm3047_vm5, %v4480_v14, 0.0 }
 0x6f8   : > { %v4521_v51 = vadd.f32 %v4520_v38, %v4519_v45  ;;  %v4482_v38 = vmul.f32 %v13385_v11, %v13385_v11  ;;  %v4528_v59 = vsel %vm3047_vm5, %v4481_v34, 0.0 }
 0x6fa   : > { %v4523_v0 = vadd.f32 %v4522_v15, %v4521_v51  ;;  %v4483_v15 = vmul.f32 %v13392_v56, %v13392_v56  ;;  %v4530_v14 = vsel %vm3047_vm5, %v4482_v38, 0.0 }
 0x6fc   : > { %v4525_v45 = vadd.f32 %v4524_v28, %v4523_v0  ;;  %v4484_v28 = vmul.f32 %v13399_v37, %v13399_v37  ;;  %v4532_v34 = vsel %vm3047_vm5, %v4483_v15, 0.0 }
 0x6fe   : > { %v4527_v51 = vadd.f32 %v4526_v17, %v4525_v45  ;;  %v4485_v17 = vmul.f32 %v13406_v23, %v13406_v23  ;;  %v4534_v38 = vsel %vm3047_vm5, %v4484_v28, 0.0 }
 0x700   : > { %v4529_v0 = vadd.f32 %v4528_v59, %v4527_v51  ;;  %v4486_v59 = vmul.f32 %v13413_v44, %v13413_v44  ;;  %v4536_v15 = vsel %vm3047_vm5, %v4485_v17, 0.0 }
 0x702   : > { %v4531_v45 = vadd.f32 %v4530_v14, %v4529_v0  ;;  %v4487_v14 = vmul.f32 %v13420_v26, %v13420_v26  ;;  %v4538_v28 = vsel %vm3047_vm5, %v4486_v59, 0.0 }
 0x704   : > { %v4533_v51 = vadd.f32 %v4532_v34, %v4531_v45  ;;  %v4488_v34 = vmul.f32 %v13427_v6, %v13427_v6  ;;  %v4540_v17 = vsel %vm3047_vm5, %v4487_v14, 0.0 }
 0x706   : > { %v4535_v0 = vadd.f32 %v4534_v38, %v4533_v51  ;;  %v4489_v38 = vmul.f32 %v13434_v58, %v13434_v58  ;;  %v4542_v59 = vsel %vm3047_vm5, %v4488_v34, 0.0 }
 0x708   : > { %v4537_v45 = vadd.f32 %v4536_v15, %v4535_v0  ;;  %v4490_v15 = vmul.f32 %v13441_v20, %v13441_v20  ;;  %v4544_v14 = vsel %vm3047_vm5, %v4489_v38, 0.0 }
 0x70a   : > { %v4539_v51 = vadd.f32 %v4538_v28, %v4537_v45  ;;  %v4491_v28 = vmul.f32 %v13448_v42, %v13448_v42  ;;  %v4546_v34 = vsel %vm3047_vm5, %v4490_v15, 0.0 }
 0x70c   : > { %v4541_v0 = vadd.f32 %v4540_v17, %v4539_v51  ;;  %v4492_v17 = vmul.f32 %v13455_v19, %v13455_v19  ;;  %v4548_v38 = vsel %vm3047_vm5, %v4491_v28, 0.0  ;;  %v4496_v28 = vmul.f32 %v13483_v50, %v13483_v50 }
 0x70e   : > { %v4543_v45 = vadd.f32 %v4542_v59, %v4541_v0  ;;  %v4493_v59 = vmul.f32 %v13462_v33, %v13462_v33  ;;  %v4550_v15 = vsel %vm3047_vm5, %v4492_v17, 0.0 }
 0x710   : > { %v4545_v51 = vadd.f32 %v4544_v14, %v4543_v45  ;;  %v4494_v14 = vmul.f32 %v13469_v49, %v13469_v49  ;;  %v4558_v49 = vsel %vm3047_vm5, %v4496_v28, 0.0 }
 0x712   : > { %v4547_v0 = vadd.f32 %v4546_v34, %v4545_v51  ;;  %v4552_v34 = vsel %vm3047_vm5, %v4493_v59, 0.0 }
 0x714   : > { %v4549_v45 = vadd.f32 %v4548_v38, %v4547_v0  ;;  %v4554_v0 = vsel %vm3047_vm5, %v4494_v14, 0.0 }
 0x716   : > { %v4551_v51 = vadd.f32 %v4550_v15, %v4549_v45 }
 0x718   : > { %v4553_v19 = vadd.f32 %v4552_v34, %v4551_v51 }
 0x71a   : > { %v4555_v38 = vadd.f32 %v4554_v0, %v4553_v19 }
 0x71c   : > { %v4557_v27 = vadd.f32 %v4556_v29, %v4555_v38  ;;  %v15725_v29 = vld [vmem:[#allocation26_spill] sm:$0xff] }
 0x71e   : > { %v4559_v33 = vadd.f32 %v4558_v49, %v4557_v27  ;;  %v15726_v27 = vld [vmem:[#allocation22_spill] sm:$0xff] }
 0x720   : > { %v4560_v17 = vrot.slane %v4559_v33, 4 }
 0x722   : > { %v4561_v45 = vadd.f32 %v4560_v17, %v4559_v33 }
 0x724   : > { %v4562_v15 = vrot.slane %v4561_v45, 2 }
 0x726   : > { %v4563_v42 = vadd.f32 %v4562_v15, %v4561_v45 }
 0x728   : > { %v4564_v9 = vrot.slane %v4563_v42, 1 }
 0x72a   : > { %v4565_v20 = vadd.f32 %v4564_v9, %v4563_v42 }
 0x72c   : > { %v4567_v59 = vsel %vm3047_vm5, %v4565_v20, 0 }
 0x72d   : > { %v4642_v51 = vand.u32 4294901760, %v4567_v59 }
 0x72f   : > { %v4643_v34 = vsub.f32 %v4567_v59, %v4642_v51 }
 0x731   : > { %v4644_v50 = vand.u32 4294901760, %v4643_v34 }
 0x733   : > { %v4645_v58 = vsub.f32 %v4643_v34, %v4644_v50 }
 0x735   : > { %v4646_v14 = vand.u32 4294901760, %v4645_v58 }
 0x737   : > { %8559 = vmatmul.mubr.f32.vlgmr.msra.gmra.mrb[2].mxu0 %v4646_v14 }
 0x738   : > { %8858 = vmatpush3.bf16.msra.mxu0 %v12963_v12  ;;  %8577 = vmatprep.mubr.msk.f32.mxu0 %vm10441_vm0, %v15683_v46  ;;  %v5531_v12 = vld [vmem:[#allocation3] sm:$0xff] }
 0x739   : > { %8859 = vmatprep.subr.bf16.mxu0 %v15708_v57 }
 0x73c   : > { %8861 = vmatpush3.bf16.msra.mxu0 %v12978_v43  ;;  %v5532_v43 = vld [vmem:[#allocation3 + $0x8] sm:$0xff] }
 0x73d   : > { %8862 = vmatprep.subr.bf16.mxu0 %v15708_v57 }
 0x740   : > { %8864 = vmatpush3.bf16.msra.mxu0 %v13011_v48  ;;  %v5633_v48 = vrot.slane %v5531_v12, 1 }
 0x741   : > { %8865 = vmatprep.subr.bf16.mxu0 %v15708_v57 }
 0x744   : > { %8867 = vmatpush3.bf16.msra.mxu0 %v13024_v54 }
 0x745   : > { %8868 = vmatprep.subr.bf16.mxu0 %v15708_v57 }
 0x747   : > { %8578 = vmatmul.mubr.f32.vlgmr.msra.gmra.mrb[2].mxu0 %v4642_v51 }
 0x748   : > { %8870 = vmatpush3.bf16.msra.mxu0 %v13015_v4  ;;  %8596 = vmatprep.mubr.msk.f32.mxu0 %vm10441_vm0, %v15683_v46  ;;  %v5634_v4 = vrot.slane %v5532_v43, 1 }
 0x749   : > { %8871 = vmatprep.subr.bf16.mxu0 %v15708_v57 }
 0x74c   : > { %8873 = vmatpush3.bf16.msra.mxu0 %v13022_v47  ;;  %v5533_v47 = vld [vmem:[#allocation3 + $0x10] sm:$0x3] }
 0x74d   : > { %8874 = vmatprep.subr.bf16.mxu0 %v15708_v57  ;;  %v5636_v54 = vrot.slane %v5533_v47, 1 }
 0x750   : > { %8876 = vmatpush3.bf16.msra.mxu0 %v13038_v18  ;;  %v5637_v18 = vsel %vm2187_vm3, %v5634_v4, %v5636_v54 }
 0x751   : > { %8877 = vmatprep.subr.bf16.mxu0 %v15708_v57 }
 0x754   : > { %8879 = vmatpush3.bf16.msra.mxu0 %v13052_v8 }
 0x755   : > { %8880 = vmatprep.subr.bf16.mxu0 %v15708_v57 }
 0x757   : > { %8597 = vmatmul.mubr.f32.vlgmr.msra.gmra.mrb[2].mxu0 %v4643_v34  ;;  %v15727_v34 = vld [vmem:[#allocation27_spill] sm:$0xff] }
 0x758   : > { %8882 = vmatpush3.bf16.msra.mxu0 %v15709_v24  ;;  %8615 = vmatprep.mubr.msk.f32.mxu0 %vm10441_vm0, %v15683_v46 }
 0x759   : > { %8883 = vmatprep.subr.bf16.mxu0 %v15708_v57 }
 0x75c   : > { %8885 = vmatpush3.bf16.msra.mxu0 %v15710_v22 }
 0x75d   : > { %8886 = vmatprep.subr.bf16.mxu0 %v15708_v57 }
 0x760   : > { %8888 = vmatpush3.bf16.msra.mxu0 %v15711_v36 }
 0x761   : > { %8889 = vmatprep.subr.bf16.mxu0 %v15708_v57 }
 0x764   : > { %8891 = vmatpush3.bf16.msra.mxu0 %v15712_v40 }
 0x765   : > { %8892 = vmatprep.subr.bf16.mxu0 %v15708_v57 }
 0x767   : > { %8616 = vmatmul.mubr.f32.vlgmr.msra.gmra.mrb[2].mxu0 %v4644_v50 }
 0x768   : > { %8894 = vmatpush3.bf16.msra.mxu0 %v13099_v63  ;;  %8634 = vmatprep.mubr.msk.f32.mxu0 %vm10441_vm0, %v15683_v46 }
 0x769   : > { %8895 = vmatprep.subr.bf16.mxu0 %v15708_v57 }
 0x76c   : > { %8897 = vmatpush3.bf16.msra.mxu0 %v13111_v55 }
 0x76d   : > { %8898 = vmatprep.subr.bf16.mxu0 %v15708_v57 }
 0x770   : > { %8900 = vmatpush3.bf16.msra.mxu0 %v13122_v21 }
 0x771   : > { %8901 = vmatprep.subr.bf16.mxu0 %v15708_v57 }
 0x774   : > { %8903 = vmatpush3.bf16.msra.mxu0 %v13138_v2 }
 0x775   : > { %8904 = vmatprep.subr.bf16.mxu0 %v15708_v57 }
 0x777   : > { %8635 = vmatmul.mubr.f32.vlgmr.msra.gmra.mrb[2].mxu0 %v4642_v51 }
 0x778   : > { %8906 = vmatpush3.bf16.msra.mxu0 %v15709_v24  ;;  %8653 = vmatprep.mubr.msk.f32.mxu0 %vm10441_vm0, %v15683_v46  ;;  %v5635_v46 = vsel %vm2187_vm3, %v5633_v48, %v5634_v4 }
 0x779   : > { %8907 = vmatprep.subr.bf16.mxu0 %v15708_v57  ;;  %v9532_v8 = vpack.i.bf16 %v5637_v18, %v5635_v46  ;;  %v15728_v46 = vld [vmem:[#allocation32_spill] sm:$0xff] }
 0x77b   : > { %9533 = vrot.lane.b32.xlu1 %v9532_v8, %s10443_s23 }
 0x77c   : > { %8909 = vmatpush3.bf16.msra.mxu0 %v15710_v22 }
 0x77d   : > { %8910 = vmatprep.subr.bf16.mxu0 %v15708_v57 }
 0x780   : > { %8912 = vmatpush3.bf16.msra.mxu0 %v15711_v36  ;;  %v13556_v36 = vld [vmem:[#allocation9] ss:$0 sm:$0xff] }
 0x781   : > { %8913 = vmatprep.subr.bf16.mxu0 %v15708_v57 }
 0x784   : > { %8915 = vmatpush3.bf16.msra.mxu0 %v15712_v40 }
 0x787   : > { %8654 = vmatmul.mubr.f32.vlgmr.msra.gmra.mrb[2].mxu0 %v4642_v51 }
 0x85a   : > { %v5102_v63 = vpop.f32.mrb[2].mxu0 }
 0x85b   : > { %v8655_v55 = vpop.f32.mrb[3].mxu0  ;;  %v8918_v21 = vadd.f32 1e-06, %v5102_v63 }
 0x85c   : > { %v15729_v55 = vld [vmem:[#allocation34_spill] sm:$0xff] }
 0x85d   : > { %10043 = vrsqrt.f32 %v8918_v21 }
 0x867   : > { %v10044_v2 = vpop.eup %10043 }
 0x868   : > { %v13550_v57 = vrot.slane %v10044_v2, %v15713_v16  ;;  %v15730_v2 = vld [vmem:[#allocation25_spill] sm:$0xff] }
 0x86a   : > { %v5111_v24 = vmul.f32 %v13550_v57, %v13274_v30  ;;  %v5112_v22 = vmul.f32 %v13550_v57, %v13278_v41  ;;  %v5113_v40 = vmul.f32 %v13550_v57, %v13282_v53  ;;  %v5114_v58 = vmul.f32 %v13550_v57, %v13286_v39 }
 0x86b   : > { %v5115_v20 = vmul.f32 %v13550_v57, %v13294_v61  ;;  %v5116_v16 = vmul.f32 %v13550_v57, %v13300_v62  ;;  %v5117_v30 = vmul.f32 %v13550_v57, %v13308_v13  ;;  %v5118_v41 = vmul.f32 %v13550_v57, %v13315_v31  ;;  %v13576_v61 = vld [vmem:[#allocation10] ss:$0 sm:$0xff] }
 0x86c   : > { %v5119_v42 = vmul.f32 %v13550_v57, %v13322_v7  ;;  %v5120_v53 = vmul.f32 %v13550_v57, %v13329_v1  ;;  %v5149_v39 = vmul.f32 %v13556_v36, %v5111_v24  ;;  %v5150_v19 = vmul.f32 %v13556_v36, %v5112_v22 }
 0x86d   : > { %v5121_v62 = vmul.f32 %v13550_v57, %v13336_v10  ;;  %v5122_v13 = vmul.f32 %v13550_v57, %v13343_v52  ;;  %v5123_v31 = vmul.f32 %v13550_v57, %v13350_v60  ;;  %v5151_v7 = vmul.f32 %v13556_v36, %v5113_v40 }
 0x86e   : > { %v5124_v1 = vmul.f32 %v13550_v57, %v13357_v32  ;;  %v5125_v33 = vmul.f32 %v13550_v57, %v13364_v5  ;;  %v5126_v49 = vmul.f32 %v13550_v57, %v13371_v3  ;;  %v5152_v9 = vmul.f32 %v13556_v36, %v5114_v58 }
 0x86f   : > { %v5127_v10 = vmul.f32 %v13550_v57, %v13378_v25  ;;  %v5128_v52 = vmul.f32 %v13550_v57, %v13385_v11  ;;  %v5129_v60 = vmul.f32 %v13550_v57, %v13392_v56  ;;  %v5153_v50 = vmul.f32 %v13556_v36, %v5115_v20 }
 0x870   : > { %v5130_v32 = vmul.f32 %v13550_v57, %v13399_v37  ;;  %v5154_v5 = vmul.f32 %v13556_v36, %v5116_v16  ;;  %v13603_v3 = vadd.f32 %v13576_v61, %v5149_v39  ;;  %v13606_v35 = vadd.f32 %v13576_v61, %v5150_v19 }
 0x871   : > { %v5131_v25 = vmul.f32 %v13550_v57, %v13406_v23  ;;  %v5132_v11 = vmul.f32 %v13550_v57, %v13413_v44  ;;  %v5155_v56 = vmul.f32 %v13556_v36, %v5117_v30  ;;  %v13614_v28 = vadd.f32 %v13576_v61, %v5151_v7 }
 0x872   : > { %v13618_v37 = vmul.f32 %v13550_v57, %v13420_v26  ;;  %v13622_v0 = vmul.f32 %v13550_v57, %v13427_v6  ;;  %v5156_v38 = vmul.f32 %v13556_v36, %v5118_v41  ;;  %v13626_v23 = vadd.f32 %v13576_v61, %v5152_v9 }
 0x873   : > { %v13630_v44 = vmul.f32 %v13550_v57, %v15725_v29  ;;  %v13634_v17 = vmul.f32 %v13550_v57, %v15726_v27  ;;  %v5157_v26 = vmul.f32 %v13556_v36, %v5119_v42  ;;  %v13638_v45 = vadd.f32 %v13576_v61, %v5153_v50 }
 0x874   : > { %v5158_v6 = vmul.f32 %v13556_v36, %v5120_v53  ;;  %v13642_v15 = vadd.f32 %v13576_v61, %v5154_v5  ;;  %v7622_v59 = vmul.f32 -1.442695, %v13603_v3  ;;  %v7623_v51 = vmul.f32 -1.442695, %v13606_v35  ;;  %v15731_v53 = vld [vmem:[#allocation29_spill] sm:$0xff] }
 0x875   : > { %v13648_v14 = vmul.f32 %v13550_v57, %v15727_v34  ;;  %v5159_v12 = vmul.f32 %v13556_v36, %v5121_v62  ;;  %v13652_v43 = vadd.f32 %v13576_v61, %v5155_v56  ;;  %v7624_v47 = vmul.f32 -1.442695, %v13614_v28 }
 0x876   : > { %v5160_v48 = vmul.f32 %v13556_v36, %v5122_v13  ;;  %v13657_v4 = vadd.f32 %v13576_v61, %v5156_v38  ;;  %10045 = vpow2.f32 %v7622_v59  ;;  %v7625_v54 = vmul.f32 -1.442695, %v13626_v23  ;;  %v15732_v13 = vld [vmem:[#allocation33_spill] sm:$0xff] }
 0x877   : > { %v13662_v18 = vmul.f32 %v13550_v57, %v15728_v46  ;;  %v13665_v8 = vadd.f32 %v13576_v61, %v5157_v26  ;;  %10047 = vpow2.f32 %v7623_v51  ;;  %v7626_v63 = vmul.f32 -1.442695, %v13638_v45 }
 0x878   : > { %v13670_v21 = vmul.f32 %v13550_v57, %v15729_v55  ;;  %v13674_v24 = vmul.f32 %v13550_v57, %v15730_v2  ;;  %v13677_v22 = vadd.f32 %v13576_v61, %v5158_v6  ;;  %v7627_v40 = vmul.f32 -1.442695, %v13642_v15 }
 0x879   : > { %v5161_v58 = vmul.f32 %v13556_v36, %v5123_v31  ;;  %v13682_v20 = vadd.f32 %v13576_v61, %v5159_v12  ;;  %v7628_v16 = vmul.f32 -1.442695, %v13652_v43  ;;  %10049 = vpow2.f32 %v7624_v47 }
 0x87a   : > { %v5162_v30 = vmul.f32 %v13556_v36, %v5124_v1  ;;  %v13687_v41 = vadd.f32 %v13576_v61, %v5160_v48  ;;  %v7629_v42 = vmul.f32 -1.442695, %v13657_v4  ;;  %10051 = vpow2.f32 %v7625_v54 }
 0x87b   : > { %v13692_v39 = vmul.f32 %v13550_v57, %v15731_v53  ;;  %v5163_v19 = vmul.f32 %v13556_v36, %v5125_v33  ;;  %v7630_v62 = vmul.f32 -1.442695, %v13665_v8  ;;  %10053 = vpow2.f32 %v7626_v63 }
 0x87c   : > { %v13698_v31 = vmul.f32 %v13550_v57, %v15732_v13  ;;  %v5164_v7 = vmul.f32 %v13556_v36, %v5126_v49  ;;  %v7631_v1 = vmul.f32 -1.442695, %v13677_v22  ;;  %10055 = vpow2.f32 %v7627_v40 }
 0x87d   : > { %v5165_v9 = vmul.f32 %v13556_v36, %v5127_v10  ;;  %v13704_v50 = vadd.f32 %v13576_v61, %v5161_v58  ;;  %v7632_v5 = vmul.f32 -1.442695, %v13682_v20  ;;  %10057 = vpow2.f32 %v7628_v16  ;;  %v9876_v16 = vld [vmem:[%s15403_s9] sm:$0xff]  }
 0x87e   : > { %v5166_v33 = vmul.f32 %v13556_v36, %v5128_v52  ;;  %v13709_v56 = vadd.f32 %v13576_v61, %v5162_v30  ;;  %v7633_v57 = vmul.f32 -1.442695, %v13687_v41  ;;  %10059 = vpow2.f32 %v7629_v42 }
 0x87f   : > { %v5167_v49 = vmul.f32 %v13556_v36, %v5129_v60  ;;  %v5168_v38 = vmul.f32 %v13556_v36, %v5130_v32  ;;  %v13715_v10 = vadd.f32 %v13576_v61, %v5163_v19  ;;  %10061 = vpow2.f32 %v7630_v62 }
 0x880   : > { %v10046_v29 = vpop.eup %10045  ;;  %v5169_v27 = vmul.f32 %v13556_v36, %v5131_v25  ;;  %v5170_v26 = vmul.f32 %v13556_v36, %v5132_v11  ;;  %v13720_v52 = vadd.f32 %v13576_v61, %v5164_v7  ;;  %10063 = vpow2.f32 %v7631_v1 }
 0x881   : > { %v10048_v6 = vpop.eup %10047  ;;  %v13723_v59 = vadd.f32 %v13576_v61, %v5165_v9  ;;  %v5315_v60 = vadd.f32 1.0, %v10046_v29  ;;  %v7634_v32 = vmul.f32 -1.442695, %v13704_v50  ;;  %10065 = vpow2.f32 %v7632_v5 }
 0x882   : > { %v13727_v51 = vadd.f32 %v13576_v61, %v5166_v33  ;;  %v5316_v34 = vadd.f32 1.0, %v10048_v6  ;;  %v7635_v25 = vmul.f32 -1.442695, %v13709_v56  ;;  %10067 = vpow2.f32 %v7633_v57 }
 0x883   : > { %v13730_v11 = vpop.eup %10049  ;;  %v5171_v12 = vmul.f32 %v13556_v36, %v13618_v37  ;;  %v13735_v47 = vadd.f32 %v13576_v61, %v5167_v49  ;;  %10069 = vrcp.f32 %v5315_v60  ;;  %v7636_v48 = vmul.f32 -1.442695, %v13715_v10  ;;  %v9875_v37 = vld [vmem:[%s15403_s9 + $0x40] sm:$0xff]  }
 0x884   : > { %v13738_v54 = vpop.eup %10051  ;;  %v5172_v46 = vmul.f32 %v13556_v36, %v13622_v0  ;;  %v13743_v63 = vadd.f32 %v13576_v61, %v5168_v38  ;;  %10071 = vrcp.f32 %v5316_v34  ;;  %v7637_v55 = vmul.f32 -1.442695, %v13720_v52  ;;  %8014 = vmatprep.subr.bf16.mxu1 %v9875_v37  ;;  %v9878_v38 = vld [vmem:[%s15403_s9 + $0x8] sm:$0xff]  }
 0x885   : > { %v13749_v2 = vpop.eup %10053  ;;  %v5173_v40 = vmul.f32 %v13556_v36, %v13630_v44  ;;  %v13754_v58 = vadd.f32 %v13576_v61, %v5169_v27  ;;  %v7638_v0 = vmul.f32 -1.442695, %v13723_v59  ;;  %10073 = vpow2.f32 %v7634_v32  ;;  %8015 = vmatpush3.bf16.msra.mxu1 %v9876_v16 }
 0x886   : > { %v13760_v30 = vpop.eup %10055  ;;  %v5174_v42 = vmul.f32 %v13556_v36, %v13634_v17  ;;  %v13765_v53 = vadd.f32 %v13576_v61, %v5170_v26  ;;  %v7639_v44 = vmul.f32 -1.442695, %v13727_v51  ;;  %10075 = vpow2.f32 %v7635_v25 }
 0x887   : > { %v13768_v19 = vpop.eup %10057  ;;  %v5175_v62 = vmul.f32 %v13556_v36, %v13648_v14  ;;  %v13773_v13 = vadd.f32 %v13576_v61, %v5171_v12  ;;  %v7640_v7 = vmul.f32 -1.442695, %v13735_v47  ;;  %10077 = vpow2.f32 %v7636_v48  ;;  %v9877_v14 = vld [vmem:[%s15403_s9 + $0x48] sm:$0xff]   ;;  %v9879_v48 = vld [vmem:[%s15403_s9 + $0x50] sm:$0xff]  }
 0x888   : > { %v13776_v17 = vpop.eup %10059  ;;  %v5176_v1 = vmul.f32 %v13556_v36, %v13662_v18  ;;  %v13781_v9 = vadd.f32 %v13576_v61, %v5172_v46  ;;  %v7641_v5 = vmul.f32 -1.442695, %v13743_v63  ;;  %10079 = vpow2.f32 %v7637_v55  ;;  %8016 = vmatprep.subr.bf16.mxu1 %v9877_v14 }
 0x889   : > { %v13787_v33 = vpop.eup %10061  ;;  %v5177_v57 = vmul.f32 %v13556_v36, %v13670_v21  ;;  %v13792_v49 = vadd.f32 %v13576_v61, %v5173_v40  ;;  %v7642_v18 = vmul.f32 -1.442695, %v13754_v58  ;;  %10081 = vpow2.f32 %v7638_v0  ;;  %8017 = vmatpush3.bf16.msra.mxu1 %v9878_v38  ;;  %v9880_v40 = vld [vmem:[%s15403_s9 + $0x10] sm:$0xff]  }
 0x88a   : > { %v13798_v29 = vpop.eup %10063  ;;  %v5178_v27 = vmul.f32 %v13556_v36, %v13674_v24  ;;  %v13803_v26 = vadd.f32 %v13576_v61, %v5174_v42  ;;  %v7643_v21 = vmul.f32 -1.442695, %v13765_v53  ;;  %10083 = vpow2.f32 %v7639_v44  ;;  %8018 = vmatprep.subr.bf16.mxu1 %v9879_v48 }
 0x88b   : > { %v13806_v6 = vpop.eup %10065  ;;  %v5179_v60 = vmul.f32 %v13556_v36, %v13692_v39  ;;  %v13811_v32 = vadd.f32 %v13576_v61, %v5175_v62  ;;  %v7644_v34 = vmul.f32 -1.442695, %v13773_v13  ;;  %10085 = vpow2.f32 %v7640_v7 }
 0x88c   : > { %v13814_v24 = vpop.eup %10067  ;;  %v13817_v25 = vadd.f32 %v13576_v61, %v5176_v1  ;;  %v7645_v12 = vmul.f32 -1.442695, %v13781_v9  ;;  %10087 = vpow2.f32 %v7641_v5  ;;  %v5180_v46 = vmul.f32 %v13556_v36, %v13698_v31  ;;  %v9881_v5 = vld [vmem:[%s15403_s9 + $0x58] sm:$0xff]  }
 0x88d   : > { %v10070_v39 = vpop.eup %10069  ;;  %v13826_v55 = vadd.f32 %v13576_v61, %v5177_v57  ;;  %v7646_v37 = vmul.f32 -1.442695, %v13792_v49  ;;  %10089 = vpow2.f32 %v7642_v18  ;;  %v13833_v16 = vadd.f32 %v13576_v61, %v5178_v27  ;;  %8019 = vmatpush3.bf16.msra.mxu1 %v9880_v40  ;;  %v9882_v18 = vld [vmem:[%s15403_s9 + $0x18] sm:$0xff]  }
 0x88e   : > { %v10072_v0 = vpop.eup %10071  ;;  %v5411_v42 = vmul.f32 %v10070_v39, %v13603_v3  ;;  %v7647_v44 = vmul.f32 -1.442695, %v13803_v26  ;;  %10091 = vpow2.f32 %v7643_v21  ;;  %v13840_v31 = vadd.f32 %v13576_v61, %v5179_v60  ;;  %8020 = vmatprep.subr.bf16.mxu1 %v9881_v5 }
 0x88f   : > { %v13837_v36 = vpop.eup %10073  ;;  %v5412_v62 = vmul.f32 %v10072_v0, %v13606_v35  ;;  %v7648_v7 = vmul.f32 -1.442695, %v13811_v32  ;;  %10093 = vpow2.f32 %v7644_v34  ;;  %v7649_v3 = vmul.f32 -1.442695, %v13817_v25 }
 0x890   : > { %v13844_v1 = vpop.eup %10075  ;;  %5499 = vst.msk [vmem:[#allocation3 + $0x19] sm:$0xff] %vm3047_vm5, %v5411_v42  ;;  %10095 = vpow2.f32 %v7645_v12  ;;  %v13854_v57 = vadd.f32 %v13576_v61, %v5180_v46  ;;  %v7650_v35 = vmul.f32 -1.442695, %v13826_v55  ;;  %v7651_v27 = vmul.f32 -1.442695, %v13833_v16  ;;  %v9883_v12 = vld [vmem:[%s15403_s9 + $0x60] sm:$0xff]  }
 0x891   : > { %v13851_v14 = vpop.eup %10077  ;;  %5500 = vst.msk [vmem:[#allocation3 + $0x21] sm:$0xff] %vm3047_vm5, %v5412_v62  ;;  %10097 = vpow2.f32 %v7646_v37  ;;  %v7652_v61 = vmul.f32 -1.442695, %v13840_v31  ;;  %8021 = vmatpush3.bf16.msra.mxu1 %v9882_v18  ;;  %v5317_v34 = vadd.f32 1.0, %v13730_v11  ;;  %v9884_v46 = vld [vmem:[%s15403_s9 + $0x20] sm:$0xff]   ;;  %v5318_v40 = vadd.f32 1.0, %v13738_v54 }
 0x892   : > { %v13861_v38 = vpop.eup %10079  ;;  %10099 = vpow2.f32 %v7647_v44  ;;  %v7653_v39 = vmul.f32 -1.442695, %v13854_v57  ;;  %8022 = vmatprep.subr.bf16.mxu1 %v9883_v12  ;;  %v5319_v42 = vadd.f32 1.0, %v13749_v2  ;;  %v5320_v54 = vadd.f32 1.0, %v13760_v30  ;;  %v9886_v30 = vld [vmem:[%s15403_s9 + $0x28] sm:$0xff]  }
 0x893   : > { %v13864_v21 = vpop.eup %10081  ;;  %10101 = vpow2.f32 %v7648_v7  ;;  %v5321_v5 = vadd.f32 1.0, %v13768_v19  ;;  %v5322_v19 = vadd.f32 1.0, %v13776_v17  ;;  %v5324_v17 = vadd.f32 1.0, %v13798_v29 }
 0x894   : > { %v13867_v60 = vpop.eup %10083  ;;  %10103 = vpow2.f32 %v7649_v3  ;;  %v5326_v29 = vadd.f32 1.0, %v13814_v24  ;;  %v5329_v24 = vadd.f32 1.0, %v13851_v14 }
 0x895   : > { %v13873_v48 = vpop.eup %10085  ;;  %10105 = vpow2.f32 %v7650_v35  ;;  %8023 = vmatpush3.bf16.msra.mxu1 %v9884_v46  ;;  %v5332_v14 = vadd.f32 1.0, %v13867_v60  ;;  %v9893_v60 = vld [vmem:[%s15403_s9 + $0x80] sm:$0xff]  }
 0x896   : > { %v13879_v37 = vpop.eup %10087  ;;  %10107 = vpow2.f32 %v7651_v27 }
 0x897   : > { %v13882_v11 = vpop.eup %10089  ;;  %v13884_v0 = vld [vmem:[#allocation3 + $0x18] sm:$0xff]  ;;  %10109 = vpow2.f32 %v7652_v61 }
 0x898   : > { %v13887_v44 = vpop.eup %10091  ;;  %v13889_v62 = vld [vmem:[#allocation3 + $0x20] sm:$0xff]  ;;  %v5638_v7 = vrot.slane %v13884_v0, 1  ;;  %v13892_v3 = vld [vmem:[#allocation3 + $0x28] sm:$0x3]  ;;  %10111 = vrcp.f32 %v5317_v34  ;;  %v9885_v61 = vld [vmem:[%s15403_s9 + $0x68] sm:$0xff]  }
 0x899   : > { %15733 = vst [vmem:[#allocation36_spill] sm:$0xff] %v13889_v62  ;;  %15734 = vst [vmem:[#allocation31_spill] sm:$0xff] %v13892_v3  ;;  %v13896_v35 = vpop.eup %10093  ;;  %v5639_v18 = vrot.slane %v13889_v62, 1  ;;  %v9527_v2 = vpack.i.bf16 %v13889_v62, %v13884_v0  ;;  %v5641_v27 = vrot.slane %v13892_v3, 1  ;;  %10113 = vpow2.f32 %v7653_v39  ;;  %8024 = vmatprep.subr.bf16.mxu1 %v9885_v61 }
 0x89a   : > { %v13908_v34 = vpop.eup %10095  ;;  %10115 = vrcp.f32 %v5318_v40  ;;  %v5323_v3 = vadd.f32 1.0, %v13787_v33  ;;  %8025 = vmatpush3.bf16.msra.mxu1 %v9886_v30  ;;  %v9888_v33 = vld [vmem:[%s15403_s9 + $0x30] sm:$0xff]  }
 0x89b   : > { %v13911_v12 = vpop.eup %10097  ;;  %9528 = vrot.lane.b32.xlu0 %v9527_v2, %s10443_s23  ;;  %v13915_v46 = vsel %vm2187_vm3, %v5638_v7, %v5639_v18  ;;  %v13918_v39 = vsel %vm2187_vm3, %v5639_v18, %v5641_v27  ;;  %10117 = vrcp.f32 %v5319_v42  ;;  %v9887_v7 = vld [vmem:[%s15403_s9 + $0x70] sm:$0xff]   ;;  %v5325_v18 = vadd.f32 1.0, %v13806_v6 }
 0x89c   : > { %v13921_v62 = vpop.eup %10099  ;;  %v9542_v40 = vpack.i.bf16 %v13918_v39, %v13915_v46  ;;  %10119 = vrcp.f32 %v5320_v54  ;;  %8026 = vmatprep.subr.bf16.mxu1 %v9887_v7  ;;  %v5327_v27 = vadd.f32 1.0, %v13837_v36  ;;  %v5328_v6 = vadd.f32 1.0, %v13844_v1  ;;  %v9890_v36 = vld [vmem:[%s15403_s9 + $0x38] sm:$0xff]  }
 0x89d   : > { %v13929_v2 = vpop.eup %10101  ;;  %10121 = vrcp.f32 %v5321_v5  ;;  %v9889_v5 = vld [vmem:[%s15403_s9 + $0x78] sm:$0xff]  }
 0x89e   : > { %v13935_v42 = vpop.eup %10103  ;;  %9543 = vrot.lane.b32.xlu1 %v9542_v40, %s10443_s23  ;;  %10123 = vrcp.f32 %v5322_v19  ;;  %8027 = vmatpush3.bf16.msra.mxu1 %v9888_v33  ;;  %v5330_v19 = vadd.f32 1.0, %v13861_v38  ;;  %v13966_v38 = vld [vmem:[%s15403_s9 + $0x100] sm:$0xff]  }
 0x89f   : > { %v13939_v54 = vpop.eup %10105  ;;  %10125 = vrcp.f32 %v5323_v3  ;;  %8028 = vmatprep.subr.bf16.mxu1 %v9889_v5 }
 0x8a0   : > { %v13942_v61 = vpop.eup %10107  ;;  %10127 = vrcp.f32 %v5324_v17  ;;  %v5331_v17 = vadd.f32 1.0, %v13864_v21  ;;  %v5333_v21 = vadd.f32 1.0, %v13873_v48 }
 0x8a1   : > { %v13948_v30 = vpop.eup %10109  ;;  %10129 = vrcp.f32 %v5325_v18  ;;  %v9891_v18 = vld [vmem:[%s15403_s9 + $0xc0] sm:$0xff]  }
 0x8a2   : > { %v10112_v3 = vpop.eup %10111  ;;  %10131 = vrcp.f32 %v5326_v29  ;;  %8029 = vmatpush3.bf16.msra.mxu1 %v9890_v36  ;;  %8126 = vmatprep.subr.bf16.mxu0 %v9891_v18  ;;  %v5336_v36 = vadd.f32 1.0, %v13887_v44 }
 0x8a3   : > { %v13955_v1 = vpop.eup %10113  ;;  %v5413_v40 = vmul.f32 %v10112_v3, %v13614_v28  ;;  %10133 = vrcp.f32 %v5327_v27  ;;  %v5334_v27 = vadd.f32 1.0, %v13879_v37  ;;  %8656 = vmatprep.subr.bf16.mxu1 %v13966_v38  ;;  %8127 = vmatpush3.bf16.msra.mxu0 %v9893_v60  ;;  %v9894_v37 = vld [vmem:[%s15403_s9 + $0xc8] sm:$0xff]   ;;  %v5345_v60 = vadd.f32 1.0, %v13948_v30 }
 0x8a4   : > { %v10116_v7 = vpop.eup %10115  ;;  %10135 = vrcp.f32 %v5328_v6  ;;  %8128 = vmatprep.subr.bf16.mxu0 %v9894_v37  ;;  %v9898_v37 = vld [vmem:[%s15403_s9 + $0xd8] sm:$0xff]  }
 0x8a5   : > { %v10118_v33 = vpop.eup %10117  ;;  %v5414_v28 = vmul.f32 %v10116_v7, %v13626_v23  ;;  %5501 = vst.msk [vmem:[#allocation3 + $0x31] sm:$0xff] %vm3047_vm5, %v5413_v40  ;;  %10137 = vrcp.f32 %v5329_v24  ;;  %v5335_v23 = vadd.f32 1.0, %v13882_v11  ;;  %v9895_v11 = vld [vmem:[%s15403_s9 + $0x88] sm:$0xff]   ;;  %v5338_v40 = vadd.f32 1.0, %v13908_v34 }
 0x8a6   : > { %v10120_v29 = vpop.eup %10119  ;;  %10139 = vrcp.f32 %v5330_v19  ;;  %v5415_v6 = vmul.f32 %v10118_v33, %v13638_v45  ;;  %v5337_v19 = vadd.f32 1.0, %v13896_v35  ;;  %v5340_v7 = vadd.f32 1.0, %v13921_v62  ;;  %v9896_v62 = vld [vmem:[%s15403_s9 + $0xd0] sm:$0xff]  }
 0x8a7   : > { %v10122_v5 = vpop.eup %10121  ;;  %5502 = vst.msk [vmem:[#allocation3 + $0x39] sm:$0xff] %vm3047_vm5, %v5414_v28  ;;  %10141 = vrcp.f32 %v5331_v17  ;;  %v5416_v48 = vmul.f32 %v10120_v29, %v13642_v15  ;;  %8129 = vmatpush3.bf16.msra.mxu0 %v9895_v11  ;;  %v14020_v29 = vadd.f32 1.0, %v13955_v1  ;;  %v9899_v11 = vld [vmem:[%s15403_s9 + $0x98] sm:$0xff]  }
 0x8a8   : > { %v10124_v24 = vpop.eup %10123  ;;  %10143 = vrcp.f32 %v5332_v14  ;;  %5503 = vst.msk [vmem:[#allocation3 + $0x49] sm:$0xff] %vm3047_vm5, %v5415_v6  ;;  %v5417_v45 = vmul.f32 %v10122_v5, %v13652_v43  ;;  %v5339_v43 = vadd.f32 1.0, %v13911_v12  ;;  %v5342_v12 = vadd.f32 1.0, %v13935_v42  ;;  %8130 = vmatprep.subr.bf16.mxu0 %v9896_v62 }
 0x8a9   : > { %v10126_v3 = vpop.eup %10125  ;;  %10145 = vrcp.f32 %v5333_v21  ;;  %5504 = vst.msk [vmem:[#allocation3 + $0x51] sm:$0xff] %vm3047_vm5, %v5416_v48  ;;  %v5418_v15 = vmul.f32 %v10124_v24, %v13657_v4  ;;  %v5341_v4 = vadd.f32 1.0, %v13929_v2  ;;  %v5344_v2 = vadd.f32 1.0, %v13942_v61 }
 0x8aa   : > { %v10128_v44 = vpop.eup %10127  ;;  %10147 = vrcp.f32 %v5334_v27  ;;  %v5419_v17 = vmul.f32 %v10126_v3, %v13665_v8  ;;  %5505 = vst.msk [vmem:[#allocation3 + $0x61] sm:$0xff] %vm3047_vm5, %v5417_v45  ;;  %v5343_v8 = vadd.f32 1.0, %v13939_v54 }
 0x8ab   : > { %v10130_v35 = vpop.eup %10129  ;;  %10149 = vrcp.f32 %v5335_v23  ;;  %v5420_v14 = vmul.f32 %v10128_v44, %v13677_v22  ;;  %5506 = vst.msk [vmem:[#allocation3 + $0x69] sm:$0xff] %vm3047_vm5, %v5418_v15 }
 0x8ac   : > { %v10132_v34 = vpop.eup %10131  ;;  %v14000_v18 = vld [vmem:[#allocation3 + $0x30] sm:$0xff]  ;;  %10151 = vrcp.f32 %v5336_v36  ;;  %v5421_v33 = vmul.f32 %v10130_v35, %v13682_v20  ;;  %5507 = vst.msk [vmem:[#allocation3 + $0x79] sm:$0xff] %vm3047_vm5, %v5419_v17  ;;  %v9897_v20 = vld [vmem:[%s15403_s9 + $0x90] sm:$0xff]  }
 0x8ad   : > { %v10134_v22 = vpop.eup %10133  ;;  %v5643_v28 = vrot.slane %v14000_v18, 1  ;;  %10153 = vrcp.f32 %v5337_v19  ;;  %v5422_v21 = vmul.f32 %v10132_v34, %v13687_v41  ;;  %5508 = vst.msk [vmem:[#allocation3 + $0x81] sm:$0xff] %vm3047_vm5, %v5420_v14  ;;  %8131 = vmatpush3.bf16.msra.mxu0 %v9897_v20  ;;  %v9901_v20 = vld [vmem:[%s15403_s9 + $0xa0] sm:$0xff]  }
 0x8ae   : > { %v10136_v42 = vpop.eup %10135  ;;  %v14016_v54 = vld [vmem:[#allocation3 + $0x38] sm:$0xff]  ;;  %v14022_v61 = vld [vmem:[#allocation3 + $0x40] sm:$0x3]  ;;  %10155 = vrcp.f32 %v5338_v40  ;;  %v5423_v27 = vmul.f32 %v10134_v22, %v13704_v50  ;;  %5509 = vst.msk [vmem:[#allocation3 + $0x91] sm:$0xff] %vm3047_vm5, %v5421_v33  ;;  %8132 = vmatprep.subr.bf16.mxu0 %v9898_v37  ;;  %v9900_v33 = vld [vmem:[%s15403_s9 + $0xe0] sm:$0xff]  }
 0x8af   : > { %v10138_v41 = vpop.eup %10137  ;;  %v9537_v6 = vpack.i.bf16 %v14016_v54, %v14000_v18  ;;  %v5644_v5 = vrot.slane %v14016_v54, 1  ;;  %v5646_v23 = vrot.slane %v14022_v61, 1  ;;  %10157 = vrcp.f32 %v5339_v43  ;;  %v14030_v30 = vld [vmem:[#allocation3 + $0x48] sm:$0xff]  ;;  %5510 = vst.msk [vmem:[#allocation3 + $0x99] sm:$0xff] %vm3047_vm5, %v5422_v21 }
 0x8b0   : > { %v10140_v1 = vpop.eup %10139  ;;  %10159 = vrcp.f32 %v5340_v7  ;;  %v14033_v50 = vld [vmem:[#allocation3 + $0x50] sm:$0xff]  ;;  %v5424_v48 = vmul.f32 %v10136_v42, %v13709_v56  ;;  %v5425_v24 = vmul.f32 %v10138_v41, %v13715_v10  ;;  %v14037_v36 = vld [vmem:[#allocation3 + $0x58] sm:$0x3]  ;;  %v5648_v45 = vrot.slane %v14030_v30, 1  ;;  %5511 = vst.msk [vmem:[#allocation3 + $0xa9] sm:$0xff] %vm3047_vm5, %v5423_v27 }
 0x8b1   : > { %v10142_v3 = vpop.eup %10141  ;;  %9538 = vrot.lane.b32.xlu0 %v9537_v6, %s10443_s23  ;;  %v14046_v19 = vsel %vm2187_vm3, %v5643_v28, %v5644_v5  ;;  %v14049_v56 = vsel %vm2187_vm3, %v5644_v5, %v5646_v23  ;;  %10161 = vrcp.f32 %v5341_v4  ;;  %v9547_v10 = vpack.i.bf16 %v14033_v50, %v14030_v30  ;;  %v14053_v15 = vld [vmem:[#allocation3 + $0x60] sm:$0xff]  ;;  %8133 = vmatpush3.bf16.msra.mxu0 %v9899_v11 }
 0x8b2   : > { %v10144_v44 = vpop.eup %10143  ;;  %v9552_v40 = vpack.i.bf16 %v14049_v56, %v14046_v19  ;;  %10163 = vrcp.f32 %v5342_v12  ;;  %v5426_v43 = vmul.f32 %v10140_v1, %v13720_v52  ;;  %v5427_v17 = vmul.f32 %v10142_v3, %v13723_v59  ;;  %5512 = vst.msk [vmem:[#allocation3 + $0xb1] sm:$0xff] %vm3047_vm5, %v5424_v48  ;;  %5513 = vst.msk [vmem:[#allocation3 + $0xc1] sm:$0xff] %vm3047_vm5, %v5425_v24  ;;  %v14067_v34 = vld [vmem:[#allocation3 + $0x68] sm:$0xff]  ;;  %v14073_v59 = vld [vmem:[#allocation3 + $0x70] sm:$0x3] }
 0x8b3   : > { %v10146_v35 = vpop.eup %10145  ;;  %10165 = vrcp.f32 %v5343_v8  ;;  %v5428_v7 = vmul.f32 %v10144_v44, %v13727_v51  ;;  %v5649_v4 = vrot.slane %v14033_v50, 1  ;;  %v5651_v14 = vrot.slane %v14037_v36, 1  ;;  %v14076_v8 = vld [vmem:[#allocation3 + $0x78] sm:$0xff]  ;;  %8134 = vmatprep.subr.bf16.mxu0 %v9900_v33 }
 0x8b4   : > { %v10148_v12 = vpop.eup %10147  ;;  %9553 = vrot.lane.b32.xlu1 %v9552_v40, %s10443_s23  ;;  %10167 = vrcp.f32 %v5344_v2  ;;  %v5429_v52 = vmul.f32 %v10146_v35, %v13735_v47  ;;  %5514 = vst.msk [vmem:[#allocation3 + $0xc9] sm:$0xff] %vm3047_vm5, %v5426_v43  ;;  %5515 = vst.msk [vmem:[#allocation3 + $0xd9] sm:$0xff] %vm3047_vm5, %v5427_v17  ;;  %v5653_v51 = vrot.slane %v14053_v15, 1  ;;  %v14090_v28 = vld [vmem:[#allocation3 + $0x80] sm:$0xff]  ;;  %v14092_v21 = vld [vmem:[#allocation3 + $0x88] sm:$0x3]  ;;  %v9557_v5 = vpack.i.bf16 %v14067_v34, %v14053_v15 }
 0x8b5   : > { %v10150_v62 = vpop.eup %10149  ;;  %10169 = vrcp.f32 %v5345_v60  ;;  %9548 = vrot.lane.b32.xlu0 %v9547_v10, %s10443_s23  ;;  %v5430_v47 = vmul.f32 %v10148_v12, %v13743_v63  ;;  %v14084_v22 = vsel %vm2187_vm3, %v5648_v45, %v5649_v4  ;;  %v14087_v2 = vsel %vm2187_vm3, %v5649_v4, %v5651_v14  ;;  %5516 = vst.msk [vmem:[#allocation3 + $0xe1] sm:$0xff] %vm3047_vm5, %v5428_v7  ;;  %v14109_v23 = vld [vmem:[#allocation3 + $0x90] sm:$0xff]  ;;  %v9902_v10 = vld [vmem:[%s15403_s9 + $0xe8] sm:$0xff]  }
 0x8b6   : > { %15735 = vst [vmem:[#allocation30_spill] sm:$0xff] %v14084_v22  ;;  %15736 = vst [vmem:[#allocation39_spill] sm:$0xff] %v14087_v2  ;;  %v10152_v42 = vpop.eup %10151  ;;  %10171 = vrcp.f32 %v14020_v29  ;;  %v5431_v63 = vmul.f32 %v10150_v62, %v13754_v58  ;;  %v9562_v60 = vpack.i.bf16 %v14087_v2, %v14084_v22  ;;  %v5654_v27 = vrot.slane %v14067_v34, 1  ;;  %v14111_v1 = vld [vmem:[#allocation3 + $0x98] sm:$0xff]  ;;  %8135 = vmatpush3.bf16.msra.mxu0 %v9901_v20  ;;  %v14121_v3 = vld [vmem:[#allocation3 + $0xa0] sm:$0x3] }
 0x8b7   : > { %5517 = vst.msk [vmem:[#allocation3 + $0xf1] sm:$0xff] %vm3047_vm5, %v5429_v52  ;;  %v10154_v41 = vpop.eup %10153  ;;  %v5432_v6 = vmul.f32 %v10152_v42, %v13765_v53  ;;  %5518 = vst.msk [vmem:[#allocation3 + $0xf9] sm:$0xff] %vm3047_vm5, %v5430_v47  ;;  %v5656_v29 = vrot.slane %v14073_v59, 1  ;;  %v5658_v58 = vrot.slane %v14076_v8, 1  ;;  %v5659_v45 = vrot.slane %v14090_v28, 1  ;;  %8136 = vmatprep.subr.bf16.mxu0 %v9902_v10  ;;  %v14152_v33 = vld [vmem:[#allocation3 + $0xa8] sm:$0xff] }
 0x8b8   : > { %15737 = vst [vmem:[#allocation40_spill] sm:$0xff] %v14111_v1  ;;  %v10156_v48 = vpop.eup %10155  ;;  %v5433_v24 = vmul.f32 %v10154_v41, %v13773_v13  ;;  %9563 = vrot.lane.b32.xlu1 %v9562_v60, %s10443_s23  ;;  %5519 = vst.msk [vmem:[#allocation3 + $0x109] sm:$0xff] %vm3047_vm5, %v5431_v63  ;;  %v14117_v53 = vsel %vm2187_vm3, %v5653_v51, %v5654_v27  ;;  %v5661_v37 = vrot.slane %v14092_v21, 1  ;;  %v9903_v13 = vld [vmem:[%s15403_s9 + $0xa8] sm:$0xff]   ;;  %v5663_v4 = vrot.slane %v14109_v23, 1 }
 0x8b9   : > { %15738 = vst [vmem:[#allocation38_spill] sm:$0xff] %v14117_v53  ;;  %v10158_v11 = vpop.eup %10157  ;;  %v5434_v44 = vmul.f32 %v10156_v48, %v13781_v9  ;;  %5520 = vst.msk [vmem:[#allocation3 + $0x111] sm:$0xff] %vm3047_vm5, %v5432_v6  ;;  %9558 = vrot.lane.b32.xlu0 %v9557_v5, %s10443_s23  ;;  %v14133_v40 = vsel %vm2187_vm3, %v5654_v27, %v5656_v29  ;;  %v9567_v43 = vpack.i.bf16 %v14090_v28, %v14076_v8  ;;  %v14154_v62 = vld [vmem:[#allocation3 + $0xb0] sm:$0xff]  ;;  %v9906_v27 = vld [vmem:[%s15403_s9 + $0xb0] sm:$0xff]  }
 0x8ba   : > { %15739 = vst [vmem:[#allocation37_spill] sm:$0xff] %v14133_v40  ;;  %v10160_v17 = vpop.eup %10159  ;;  %v5435_v35 = vmul.f32 %v10158_v11, %v13792_v49  ;;  %5521 = vst.msk [vmem:[#allocation3 + $0x121] sm:$0xff] %vm3047_vm5, %v5433_v24  ;;  %v9572_v7 = vpack.i.bf16 %v14133_v40, %v14117_v53  ;;  %v14142_v9 = vsel %vm2187_vm3, %v5658_v58, %v5659_v45  ;;  %v5664_v49 = vrot.slane %v14111_v1, 1 }
 0x8bb   : > { %15740 = vst [vmem:[#allocation46_spill] sm:$0xff] %v14142_v9  ;;  %v10162_v14 = vpop.eup %10161  ;;  %v5436_v12 = vmul.f32 %v10160_v17, %v13803_v26  ;;  %5522 = vst.msk [vmem:[#allocation3 + $0x129] sm:$0xff] %vm3047_vm5, %v5434_v44  ;;  %v14148_v52 = vsel %vm2187_vm3, %v5659_v45, %v5661_v37  ;;  %v5666_v51 = vrot.slane %v14121_v3, 1  ;;  %8137 = vmatpush3.bf16.msra.mxu0 %v9903_v13  ;;  %v14159_v26 = vld [vmem:[#allocation3 + $0xb8] sm:$0x3]  ;;  %v5668_v5 = vrot.slane %v14152_v33, 1 }
 0x8bc   : > { %15741 = vst [vmem:[#allocation48_spill] sm:$0xff] %v14148_v52  ;;  %15742 = vst [vmem:[#allocation47_spill] sm:$0xff] %v14152_v33  ;;  %v10164_v47 = vpop.eup %10163  ;;  %v5437_v20 = vmul.f32 %v10162_v14, %v13811_v32  ;;  %9573 = vrot.lane.b32.xlu1 %v9572_v7, %s10443_s23  ;;  %v9577_v60 = vpack.i.bf16 %v14111_v1, %v14109_v23  ;;  %v9905_v32 = vld [vmem:[%s15403_s9 + $0xf0] sm:$0xff]   ;;  %v5669_v29 = vrot.slane %v14154_v62, 1  ;;  %v5718_v13 = vrot.slane %v13884_v0, 2  ;;  %v9907_v0 = vld [vmem:[%s15403_s9 + $0xf8] sm:$0xff]  }
 0x8bd   : > { %15743 = vst [vmem:[#allocation44_spill] sm:$0xff] %v14154_v62  ;;  %5523 = vst.msk [vmem:[#allocation3 + $0x139] sm:$0xff] %vm3047_vm5, %v5435_v35  ;;  %v10166_v42 = vpop.eup %10165  ;;  %v5438_v63 = vmul.f32 %v10164_v47, %v13817_v25  ;;  %9568 = vrot.lane.b32.xlu0 %v9567_v43, %s10443_s23  ;;  %v9582_v25 = vpack.i.bf16 %v14148_v52, %v14142_v9  ;;  %v14181_v24 = vsel %vm2187_vm3, %v5663_v4, %v5664_v49  ;;  %v15746_v44 = vld [vmem:[#allocation36_spill] sm:$0xff]  ;;  %v15751_v14 = vld [vmem:[#allocation31_spill] sm:$0xff] }
 0x8be   : > { %5524 = vst.msk [vmem:[#allocation3 + $0x141] sm:$0xff] %vm3047_vm5, %v5436_v12  ;;  %v10168_v41 = vpop.eup %10167  ;;  %v5439_v6 = vmul.f32 %v10166_v42, %v13826_v55  ;;  %5525 = vst.msk [vmem:[#allocation3 + $0x151] sm:$0xff] %vm3047_vm5, %v5437_v20  ;;  %v14184_v45 = vsel %vm2187_vm3, %v5664_v49, %v5666_v51  ;;  %v5671_v55 = vrot.slane %v14159_v26, 1  ;;  %8138 = vmatprep.subr.bf16.mxu0 %v9905_v32  ;;  %v9908_v35 = vld [vmem:[%s15403_s9 + $0xb8] sm:$0xff]   ;;  %v14214_v7 = vld [vmem:[#allocation3 + $0xc0] sm:$0xff]  ;;  %v5721_v12 = vrot.slane %v15751_v14, 2 }
 0x8bf   : > { %v10170_v58 = vpop.eup %10169  ;;  %v5440_v48 = vmul.f32 %v10168_v41, %v13833_v16  ;;  %5526 = vst.msk [vmem:[#allocation3 + $0x159] sm:$0xff] %vm3047_vm5, %v5438_v63  ;;  %15744 = vst [vmem:[#allocation43_spill] sm:$0xff] %v14181_v24  ;;  %8139 = vmatpush3.bf16.msra.mxu0 %v9906_v27  ;;  %v9592_v11 = vpack.i.bf16 %v14184_v45, %v14181_v24  ;;  %v9587_v43 = vpack.i.bf16 %v14154_v62, %v14152_v33  ;;  %v14216_v4 = vld [vmem:[#allocation3 + $0xc8] sm:$0xff]  ;;  %v14220_v49 = vld [vmem:[#allocation3 + $0xd0] sm:$0x3] }
 0x8c0   : > { %15745 = vst [vmem:[#allocation42_spill] sm:$0xff] %v14184_v45  ;;  %v10172_v37 = vpop.eup %10171  ;;  %v5441_v10 = vmul.f32 %v10170_v58, %v13840_v31  ;;  %5527 = vst.msk [vmem:[#allocation3 + $0x169] sm:$0xff] %vm3047_vm5, %v5439_v6  ;;  %9583 = vrot.lane.b32.xlu1 %v9582_v25, %s10443_s23  ;;  %v5719_v31 = vrot.slane %v15746_v44, 2  ;;  %v14205_v17 = vsel %vm2187_vm3, %v5669_v29, %v5671_v55  ;;  %8140 = vmatprep.subr.bf16.mxu0 %v9907_v0  ;;  %v14227_v42 = vld [vmem:[#allocation3 + $0xd8] sm:$0xff]  ;;  %v14229_v63 = vld [vmem:[#allocation3 + $0xe0] sm:$0xff] }
 0x8c1   : > { %v5442_v16 = vmul.f32 %v10172_v37, %v13854_v57  ;;  %5528 = vst.msk [vmem:[#allocation3 + $0x171] sm:$0xff] %vm3047_vm5, %v5440_v48  ;;  %9578 = vrot.lane.b32.xlu0 %v9577_v60, %s10443_s23  ;;  %v14202_v57 = vsel %vm2187_vm3, %v5668_v5, %v5669_v29  ;;  %15748 = vst [vmem:[#allocation45_spill] sm:$0xff] %v14205_v17  ;;  %v5723_v47 = vrot.slane %v14000_v18, 2  ;;  %v5724_v32 = vrot.slane %v14016_v54, 2  ;;  %v14236_v41 = vld [vmem:[#allocation3 + $0xe8] sm:$0x3] }
 0x8c2   : > { %5529 = vst.msk [vmem:[#allocation3 + $0x181] sm:$0xff] %vm3047_vm5, %v5441_v10  ;;  %15747 = vst [vmem:[#allocation41_spill] sm:$0xff] %v14202_v57  ;;  %v9602_v51 = vpack.i.bf16 %v14205_v17, %v14202_v57  ;;  %v9597_v20 = vpack.i.bf16 %v14216_v4, %v14214_v7  ;;  %v14232_v60 = vsel %vm2268_vm4, %v5718_v13, %v5719_v31  ;;  %v5726_v27 = vrot.slane %v14022_v61, 2  ;;  %v14275_v0 = vld [vmem:[#allocation3 + $0xf0] sm:$0xff] }
 0x8c3   : > { %5530 = vst.msk [vmem:[#allocation3 + $0x189] sm:$0xff] %vm3047_vm5, %v5442_v16  ;;  %15749 = vst [vmem:[#allocation28_spill] sm:$0xff] %v14214_v7  ;;  %8141 = vmatpush3.bf16.msra.mxu0 %v9908_v35  ;;  %v14240_v6 = vsel %vm2268_vm4, %v5719_v31, %v5721_v12  ;;  %v5673_v25 = vrot.slane %v14214_v7, 1  ;;  %v5674_v5 = vrot.slane %v14216_v4, 1  ;;  %v5676_v29 = vrot.slane %v14220_v49, 1  ;;  %v14277_v35 = vld [vmem:[#allocation3 + $0xf8] sm:$0xff] }
 0x8c4   : > { %9593 = vrot.lane.b32.xlu1 %v9592_v11, %s10443_s23  ;;  %15750 = vst [vmem:[#allocation24_spill] sm:$0xff] %v14216_v4  ;;  %15752 = vst [vmem:[#allocation23_spill] sm:$0xff] %v14227_v42  ;;  %v9607_v58 = vpack.i.bf16 %v14229_v63, %v14227_v42  ;;  %v5678_v61 = vrot.slane %v14227_v42, 1  ;;  %v5679_v48 = vrot.slane %v14229_v63, 1  ;;  %v5681_v55 = vrot.slane %v14236_v41, 1 }
 0x8c5   : > { %9588 = vrot.lane.b32.xlu0 %v9587_v43, %s10443_s23  ;;  %15753 = vst [vmem:[#allocation35_spill] sm:$0xff] %v14229_v63  ;;  %v9612_v37 = vpack.i.bf16 %v14240_v6, %v14232_v60  ;;  %v14254_v10 = vsel %vm2268_vm4, %v5723_v47, %v5724_v32  ;;  %v14257_v16 = vsel %vm2268_vm4, %v5724_v32, %v5726_v27  ;;  %15758 = vst [vmem:[#allocation34_spill] sm:$0xff] %v14275_v0  ;;  %v14375_v24 = vld [vmem:[#allocation3 + $0x148] sm:$0x3] }
 0x8c6   : > { %v14261_v13 = vsel %vm2187_vm3, %v5673_v25, %v5674_v5  ;;  %v14264_v11 = vsel %vm2187_vm3, %v5674_v5, %v5676_v29  ;;  %v9627_v44 = vpack.i.bf16 %v14257_v16, %v14254_v10  ;;  %v14270_v31 = vsel %vm2187_vm3, %v5678_v61, %v5679_v48  ;;  %15759 = vst [vmem:[#allocation25_spill] sm:$0xff] %v14277_v35  ;;  %v14292_v25 = vld [vmem:[#allocation3 + $0x108] sm:$0xff]  ;;  %v14294_v5 = vld [vmem:[#allocation3 + $0x110] sm:$0xff] }
 0x8c7   : > { %15754 = vst [vmem:[#allocation26_spill] sm:$0xff] %v14261_v13  ;;  %15755 = vst [vmem:[#allocation22_spill] sm:$0xff] %v14264_v11  ;;  %v14273_v43 = vsel %vm2187_vm3, %v5679_v48, %v5681_v55  ;;  %v9617_v14 = vpack.i.bf16 %v14264_v11, %v14261_v13  ;;  %v5728_v12 = vrot.slane %v14030_v30, 2  ;;  %v5731_v47 = vrot.slane %v14037_v36, 2 }
 0x8c8   : > { %9603 = vrot.lane.b32.xlu1 %v9602_v51, %s10443_s23  ;;  %15756 = vst [vmem:[#allocation27_spill] sm:$0xff] %v14270_v31  ;;  %15757 = vst [vmem:[#allocation32_spill] sm:$0xff] %v14273_v43  ;;  %v5729_v51 = vrot.slane %v14033_v50, 2  ;;  %v9632_v32 = vpack.i.bf16 %v14273_v43, %v14270_v31  ;;  %v9622_v27 = vpack.i.bf16 %v14277_v35, %v14275_v0  ;;  %v5733_v29 = vrot.slane %v14053_v15, 2 }
 0x8c9   : > { %9598 = vrot.lane.b32.xlu0 %v9597_v20, %s10443_s23  ;;  %v14285_v20 = vld [vmem:[#allocation3 + $0x100] sm:$0x3]  ;;  %15760 = vst [vmem:[#allocation29_spill] sm:$0xff] %v14292_v25  ;;  %15761 = vst [vmem:[#allocation33_spill] sm:$0xff] %v14294_v5  ;;  %v5734_v36 = vrot.slane %v14067_v34, 2  ;;  %v5683_v61 = vrot.slane %v14275_v0, 1 }
 0x8ca   : > { %v14301_v48 = vsel %vm2268_vm4, %v5728_v12, %v5729_v51  ;;  %v14304_v55 = vsel %vm2268_vm4, %v5729_v51, %v5731_v47  ;;  %v5688_v47 = vrot.slane %v14292_v25, 1  ;;  %v5741_v13 = vrot.slane %v14092_v21, 2 }
 0x8cb   : > { %v9642_v12 = vpack.i.bf16 %v14304_v55, %v14301_v48  ;;  %v14317_v43 = vsel %vm2268_vm4, %v5733_v29, %v5734_v36  ;;  %v5744_v21 = vrot.slane %v14111_v1, 2  ;;  %v5701_v9 = vrot.slane %v14375_v24, 1 }
 0x8cc   : > { %9608 = vrot.lane.b32.xlu1 %v9607_v58, %s10443_s23  ;;  %v5736_v58 = vrot.slane %v14073_v59, 2  ;;  %v9637_v59 = vpack.i.bf16 %v14294_v5, %v14292_v25 }
 0x8cd   : > { %9613 = vrot.lane.b32.xlu0 %v9612_v37, %s10443_s23  ;;  %v5684_v37 = vrot.slane %v14277_v35, 1 }
 0x8ce   : > { %v14320_v51 = vsel %vm2268_vm4, %v5734_v36, %v5736_v58 }
 0x8cf   : > { %v9657_v29 = vpack.i.bf16 %v14320_v51, %v14317_v43 }
 0x8d0   : > { %9628 = vrot.lane.b32.xlu1 %v9627_v44, %s10443_s23  ;;  %v5686_v44 = vrot.slane %v14285_v20, 1 }
 0x8d1   : > { %9618 = vrot.lane.b32.xlu0 %v9617_v14, %s10443_s23  ;;  %v14309_v14 = vld [vmem:[#allocation3 + $0x118] sm:$0x3] }
 0x8d2   : > { %v14327_v31 = vsel %vm2187_vm3, %v5684_v37, %v5686_v44  ;;  %v5691_v11 = vrot.slane %v14309_v14, 1  ;;  %v14345_v44 = vld [vmem:[#allocation3 + $0x128] sm:$0xff] }
 0x8d3   : > { %15763 = vst [vmem:[#allocation31_spill] sm:$0xff] %v14327_v31  ;;  %15767 = vst [vmem:[#allocation52_spill] sm:$0xff] %v14345_v44  ;;  %v5694_v57 = vrot.slane %v14345_v44, 1 }
 0x8d4   : > { %9633 = vrot.lane.b32.xlu1 %v9632_v32, %s10443_s23  ;;  %v14324_v32 = vsel %vm2187_vm3, %v5683_v61, %v5684_v37  ;;  %v14343_v37 = vld [vmem:[#allocation3 + $0x120] sm:$0xff] }
 0x8d5   : > { %9623 = vrot.lane.b32.xlu0 %v9622_v27, %s10443_s23  ;;  %15762 = vst [vmem:[#allocation36_spill] sm:$0xff] %v14324_v32  ;;  %v5689_v27 = vrot.slane %v14294_v5, 1  ;;  %v9647_v36 = vpack.i.bf16 %v14327_v31, %v14324_v32  ;;  %15766 = vst [vmem:[#allocation51_spill] sm:$0xff] %v14343_v37  ;;  %v14352_v31 = vld [vmem:[#allocation3 + $0x130] sm:$0x3]  ;;  %v14360_v32 = vld [vmem:[#allocation3 + $0x140] sm:$0xff] }
 0x8d6   : > { %15769 = vst [vmem:[#allocation54_spill] sm:$0xff] %v14360_v32  ;;  %v5696_v45 = vrot.slane %v14352_v31, 1 }
 0x8d7   : > { %v14338_v58 = vsel %vm2187_vm3, %v5688_v47, %v5689_v27  ;;  %v14341_v61 = vsel %vm2187_vm3, %v5689_v27, %v5691_v11  ;;  %v9652_v47 = vpack.i.bf16 %v14345_v44, %v14343_v37  ;;  %v14358_v27 = vld [vmem:[#allocation3 + $0x138] sm:$0xff] }
 0x8d8   : > { %9638 = vrot.lane.b32.xlu1 %v9637_v59, %s10443_s23  ;;  %15764 = vst [vmem:[#allocation49_spill] sm:$0xff] %v14338_v58  ;;  %15765 = vst [vmem:[#allocation50_spill] sm:$0xff] %v14341_v61  ;;  %v5738_v59 = vrot.slane %v14076_v8, 2  ;;  %v9662_v11 = vpack.i.bf16 %v14341_v61, %v14338_v58  ;;  %v5693_v58 = vrot.slane %v14343_v37, 1  ;;  %v14396_v40 = vsel %vm2187_vm3, %v5694_v57, %v5696_v45 }
 0x8d9   : > { %9643 = vrot.lane.b32.xlu0 %v9642_v12, %s10443_s23  ;;  %v5739_v12 = vrot.slane %v14090_v28, 2  ;;  %15768 = vst [vmem:[#allocation53_spill] sm:$0xff] %v14358_v27  ;;  %15771 = vst [vmem:[#allocation56_spill] sm:$0xff] %v14396_v40  ;;  %v5751_v45 = vrot.slane %v14159_v26, 2 }
 0x8db   : > { %v14363_v17 = vsel %vm2268_vm4, %v5738_v59, %v5739_v12  ;;  %v14370_v61 = vsel %vm2268_vm4, %v5739_v12, %v5741_v13  ;;  %v9667_v59 = vpack.i.bf16 %v14360_v32, %v14358_v27 }
 0x8dc   : > { %9658 = vrot.lane.b32.xlu1 %v9657_v29, %s10443_s23  ;;  %v5743_v29 = vrot.slane %v14109_v23, 2  ;;  %v9672_v13 = vpack.i.bf16 %v14370_v61, %v14363_v17 }
 0x8dd   : > { %9648 = vrot.lane.b32.xlu0 %v9647_v36, %s10443_s23  ;;  %v5746_v36 = vrot.slane %v14121_v3, 2  ;;  %v5698_v3 = vrot.slane %v14358_v27, 1 }
 0x8de   : > { %v14385_v12 = vsel %vm2268_vm4, %v5743_v29, %v5744_v21 }
 0x8df   : > { %v14388_v52 = vsel %vm2268_vm4, %v5744_v21, %v5746_v36  ;;  %v5748_v21 = vrot.slane %v14152_v33, 2  ;;  %v5756_v33 = vrot.slane %v14220_v49, 2 }
 0x8e0   : > { %9663 = vrot.lane.b32.xlu1 %v9662_v11, %s10443_s23  ;;  %v5699_v11 = vrot.slane %v14360_v32, 1  ;;  %v9687_v53 = vpack.i.bf16 %v14388_v52, %v14385_v12 }
 0x8e1   : > { %9653 = vrot.lane.b32.xlu0 %v9652_v47, %s10443_s23  ;;  %v14393_v47 = vsel %vm2187_vm3, %v5693_v58, %v5694_v57  ;;  %v5749_v58 = vrot.slane %v14154_v62, 2  ;;  %v14413_v57 = vld [vmem:[#allocation3 + $0x150] sm:$0xff] }
 0x8e2   : > { %15770 = vst [vmem:[#allocation55_spill] sm:$0xff] %v14393_v47  ;;  %v14402_v29 = vsel %vm2187_vm3, %v5698_v3, %v5699_v11  ;;  %v9677_v36 = vpack.i.bf16 %v14396_v40, %v14393_v47  ;;  %v14418_v3 = vld [vmem:[#allocation3 + $0x160] sm:$0x3]  ;;  %v14426_v47 = vld [vmem:[#allocation3 + $0x168] sm:$0xff] }
 0x8e3   : > { %15772 = vst [vmem:[#allocation57_spill] sm:$0xff] %v14402_v29  ;;  %v14431_v62 = vsel %vm2268_vm4, %v5748_v21, %v5749_v58 }
 0x8e4   : > { %9668 = vrot.lane.b32.xlu1 %v9667_v59, %s10443_s23  ;;  %v14408_v59 = vsel %vm2187_vm3, %v5699_v11, %v5701_v9  ;;  %v5753_v9 = vrot.slane %v14214_v7, 2  ;;  %v5754_v11 = vrot.slane %v14216_v4, 2  ;;  %v5706_v4 = vrot.slane %v14418_v3, 1  ;;  %v14441_v7 = vld [vmem:[#allocation3 + $0x178] sm:$0x3] }
 0x8e5   : > { %9673 = vrot.lane.b32.xlu0 %v9672_v13, %s10443_s23  ;;  %15773 = vst [vmem:[#allocation58_spill] sm:$0xff] %v14408_v59  ;;  %v14415_v13 = vld [vmem:[#allocation3 + $0x158] sm:$0xff]  ;;  %v9692_v40 = vpack.i.bf16 %v14408_v59, %v14402_v29  ;;  %v5703_v59 = vrot.slane %v14413_v57, 1  ;;  %v5711_v22 = vrot.slane %v14441_v7, 1 }
 0x8e6   : > { %v9682_v26 = vpack.i.bf16 %v14415_v13, %v14413_v57  ;;  %v5704_v29 = vrot.slane %v14415_v13, 1  ;;  %v14449_v49 = vsel %vm2268_vm4, %v5753_v9, %v5754_v11 }
 0x8e8   : > { %9688 = vrot.lane.b32.xlu1 %v9687_v53, %s10443_s23  ;;  %v14428_v53 = vld [vmem:[#allocation3 + $0x170] sm:$0xff]  ;;  %v14462_v1 = vsel %vm2187_vm3, %v5704_v29, %v5706_v4  ;;  %v14476_v4 = vld [vmem:[#allocation3 + $0x180] sm:$0xff] }
 0x8e9   : > { %9678 = vrot.lane.b32.xlu0 %v9677_v36, %s10443_s23  ;;  %v14434_v36 = vsel %vm2268_vm4, %v5749_v58, %v5751_v45  ;;  %v9697_v21 = vpack.i.bf16 %v14428_v53, %v14426_v47  ;;  %v5708_v45 = vrot.slane %v14426_v47, 1  ;;  %v5709_v2 = vrot.slane %v14428_v53, 1  ;;  %15775 = vst [vmem:[#allocation60_spill] sm:$0xff] %v14462_v1 }
 0x8ea   : > { %v9702_v58 = vpack.i.bf16 %v14434_v36, %v14431_v62 }
 0x8ec   : > { %9693 = vrot.lane.b32.xlu1 %v9692_v40, %s10443_s23  ;;  %v14452_v40 = vsel %vm2268_vm4, %v5754_v11, %v5756_v33  ;;  %v14470_v11 = vsel %vm2187_vm3, %v5708_v45, %v5709_v2 }
 0x8ed   : > { %9683 = vrot.lane.b32.xlu0 %v9682_v26, %s10443_s23  ;;  %v14459_v26 = vsel %vm2187_vm3, %v5703_v59, %v5704_v29  ;;  %v9717_v33 = vpack.i.bf16 %v14452_v40, %v14449_v49  ;;  %15776 = vst [vmem:[#allocation61_spill] sm:$0xff] %v14470_v11  ;;  %v14478_v29 = vld [vmem:[#allocation3 + $0x188] sm:$0xff]  ;;  %v5758_v59 = vrot.slane %v14227_v42, 2 }
 0x8ee   : > { %15774 = vst [vmem:[#allocation59_spill] sm:$0xff] %v14459_v26  ;;  %v9707_v9 = vpack.i.bf16 %v14462_v1, %v14459_v26  ;;  %v5761_v1 = vrot.slane %v14236_v41, 2  ;;  %v5766_v26 = vrot.slane %v14285_v20, 2  ;;  %v10208_v41 = vld [vmem:[%s10758_s25 + $0x8] sm:$0xff] }
 0x8f0   : > { %9698 = vrot.lane.b32.xlu1 %v9697_v21, %s10443_s23  ;;  %v14473_v21 = vsel %vm2187_vm3, %v5709_v2, %v5711_v22  ;;  %v9712_v22 = vpack.i.bf16 %v14478_v29, %v14476_v4  ;;  %v5763_v2 = vrot.slane %v14275_v0, 2  ;;  %v5773_v0 = vrot.slane %v14343_v37, 2  ;;  %v10220_v37 = vld [vmem:[#allocation3] sm:$0xff] }
 0x8f1   : > { %9703 = vrot.lane.b32.xlu0 %v9702_v58, %s10443_s23  ;;  %15777 = vst [vmem:[#allocation62_spill] sm:$0xff] %v14473_v21  ;;  %v5759_v58 = vrot.slane %v14229_v63, 2  ;;  %v9722_v45 = vpack.i.bf16 %v14473_v21, %v14470_v11  ;;  %v10207_v63 = vld [vmem:[%s10758_s25] sm:$0xff] }
 0x8f3   : > { %v14495_v21 = vsel %vm2268_vm4, %v5758_v59, %v5759_v58  ;;  %v14498_v11 = vsel %vm2268_vm4, %v5759_v58, %v5761_v1  ;;  %v10210_v1 = vld [vmem:[%s10758_s25 + $0x18] sm:$0xff] }
 0x8f4   : > { %9718 = vrot.lane.b32.xlu1 %v9717_v33, %s10443_s23  ;;  %v5764_v33 = vrot.slane %v14277_v35, 2  ;;  %15778 = vst [vmem:[#allocation63_spill] sm:$0xff] %v14498_v11  ;;  %v9732_v35 = vpack.i.bf16 %v14498_v11, %v14495_v21 }
 0x8f5   : > { %9708 = vrot.lane.b32.xlu0 %v9707_v9, %s10443_s23  ;;  %v9727_v9 = vpack.i.bf16 %v10208_v41, %v10207_v63  ;;  %v10209_v63 = vld [vmem:[%s10758_s25 + $0x10] sm:$0xff] }
 0x8f6   : > { %v14504_v20 = vsel %vm2268_vm4, %v5763_v2, %v5764_v33  ;;  %v9737_v59 = vpack.i.bf16 %v10210_v1, %v10209_v63  ;;  %v10212_v2 = vld [vmem:[%s10758_s25 + $0x38] sm:$0xff]  ;;  %v10214_v63 = vld [vmem:[%s10758_s25 + $0x28] sm:$0xff] }
 0x8f7   : > { %15779 = vst [vmem:[#allocation64_spill] sm:$0xff] %v14504_v20 }
 0x8f8   : > { %9723 = vrot.lane.b32.xlu1 %v9722_v45, %s10443_s23  ;;  %v14507_v45 = vsel %vm2268_vm4, %v5764_v33, %v5766_v26  ;;  %v5768_v26 = vrot.slane %v14292_v25, 2  ;;  %v5769_v33 = vrot.slane %v14294_v5, 2  ;;  %v10221_v25 = vld [vmem:[#allocation3 + $0x8] sm:$0xff] }
 0x8f9   : > { %9713 = vrot.lane.b32.xlu0 %v9712_v22, %s10443_s23  ;;  %15780 = vst [vmem:[#allocation65_spill] sm:$0xff] %v14507_v45  ;;  %v9747_v58 = vpack.i.bf16 %v14507_v45, %v14504_v20  ;;  %v10211_v22 = vld [vmem:[%s10758_s25 + $0x30] sm:$0xff]  ;;  %v5774_v45 = vrot.slane %v14345_v44, 2 }
 0x8fa   : > { %v9752_v41 = vpack.i.bf16 %v10212_v2, %v10211_v22  ;;  %v10215_v22 = vld [vmem:[%s10758_s25 + $0x40] sm:$0xff]  ;;  %v10216_v2 = vld [vmem:[%s10758_s25 + $0x48] sm:$0xff] }
 0x8fb   : > { %v9757_v5 = vpack.i.bf16 %v10216_v2, %v10215_v22  ;;  %v10219_v2 = vld [vmem:[%s10758_s25 + $0x58] sm:$0xff] }
 0x8fc   : > { %9728 = vrot.lane.b32.xlu1 %v9727_v9, %s10443_s23  ;;  %v5771_v9 = vrot.slane %v14309_v14, 2  ;;  %v14531_v14 = vsel %vm2268_vm4, %v5768_v26, %v5769_v33 }
 0x8fd   : > { %9733 = vrot.lane.b32.xlu0 %v9732_v35, %s10443_s23  ;;  %v10213_v35 = vld [vmem:[%s10758_s25 + $0x20] sm:$0xff]  ;;  %15781 = vst [vmem:[#allocation66_spill] sm:$0xff] %v14531_v14 }
 0x8fe   : > { %v9742_v1 = vpack.i.bf16 %v10214_v63, %v10213_v35  ;;  %v9534_v35 = vpop.permute.xlu1 %9533 }
 0x8ff   : > { %v9536_v22 = vunpack.i.h.bf16 %v9534_v35  ;;  %v9535_v26 = vunpack.i.l.bf16 %v9534_v35 }
 0x900   : > { %9748 = vrot.lane.b32.xlu1 %v9747_v58, %s10443_s23  ;;  %v5776_v58 = vrot.slane %v14352_v31, 2  ;;  %v14540_v31 = vsel %vm2268_vm4, %v5773_v0, %v5774_v45  ;;  %v5713_v0 = vrot.slane %v10220_v37, 2 }
 0x901   : > { %9738 = vrot.lane.b32.xlu0 %v9737_v59, %s10443_s23  ;;  %v14534_v59 = vsel %vm2268_vm4, %v5769_v33, %v5771_v9  ;;  %15783 = vst [vmem:[#allocation68_spill] sm:$0xff] %v14540_v31  ;;  %v10217_v33 = vld [vmem:[#allocation3 + $0x10] sm:$0x3] }
 0x902   : > { %15782 = vst [vmem:[#allocation67_spill] sm:$0xff] %v14534_v59  ;;  %v9762_v63 = vpack.i.bf16 %v14534_v59, %v14531_v14  ;;  %v5716_v9 = vrot.slane %v10217_v33, 2  ;;  %v5714_v59 = vrot.slane %v10221_v25, 2  ;;  %v6188_v33 = vsel %vm3047_vm5, %v10221_v25, %v9536_v22  ;;  %v10226_v22 = vld [vmem:[%s10758_s25 + $0x80] sm:$0xff] }
 0x903   : > { %v6187_v14 = vsel %vm3047_vm5, %v10220_v37, %v9535_v26  ;;  %v5786_v37 = vrot.slane %v14418_v3, 2  ;;  %v9904_v3 = vld [vmem:[%s15403_s9 + $0x108] sm:$0xff]  }
 0x904   : > { %9753 = vrot.lane.b32.xlu1 %v9752_v41, %s10443_s23  ;;  %v14543_v41 = vsel %vm2268_vm4, %v5774_v45, %v5776_v58  ;;  %v10222_v58 = vld [vmem:[%s10758_s25 + $0x70] sm:$0xff]  ;;  %v5717_v25 = vsel %vm2268_vm4, %v5714_v59, %v5716_v9 }
 0x905   : > { %9743 = vrot.lane.b32.xlu0 %v9742_v1, %s10443_s23  ;;  %15784 = vst [vmem:[#allocation69_spill] sm:$0xff] %v14543_v41  ;;  %v10218_v1 = vld [vmem:[%s10758_s25 + $0x50] sm:$0xff]  ;;  %v9777_v45 = vpack.i.bf16 %v14543_v41, %v14540_v31  ;;  %v10224_v41 = vld [vmem:[%s10758_s25 + $0x60] sm:$0xff]  ;;  %v10225_v31 = vld [vmem:[%s10758_s25 + $0x68] sm:$0xff] }
 0x906   : > { %v9767_v44 = vpack.i.bf16 %v10219_v2, %v10218_v1  ;;  %v5779_v1 = vrot.slane %v14360_v32, 2  ;;  %v5781_v2 = vrot.slane %v14375_v24, 2  ;;  %v9772_v20 = vpack.i.bf16 %v10225_v31, %v10224_v41 }
 0x907   : > { %v5783_v32 = vrot.slane %v14413_v57, 2  ;;  %v5784_v24 = vrot.slane %v14415_v13, 2 }
 0x908   : > { %9758 = vrot.lane.b32.xlu1 %v9757_v5, %s10443_s23  ;;  %v10223_v5 = vld [vmem:[%s10758_s25 + $0x78] sm:$0xff] }
 0x909   : > { %9763 = vrot.lane.b32.xlu0 %v9762_v63, %s10443_s23  ;;  %v9782_v35 = vpack.i.bf16 %v10223_v5, %v10222_v58  ;;  %v5778_v63 = vrot.slane %v14358_v27, 2  ;;  %v5715_v58 = vsel %vm2268_vm4, %v5713_v0, %v5714_v59  ;;  %v14574_v59 = vsel %vm2268_vm4, %v5779_v1, %v5781_v2 }
 0x90a   : > { %v14585_v9 = vsel %vm2268_vm4, %v5783_v32, %v5784_v24  ;;  %v14588_v0 = vsel %vm2268_vm4, %v5784_v24, %v5786_v37  ;;  %v5791_v2 = vrot.slane %v14441_v7, 2  ;;  %v10232_v24 = vld [vmem:[%s10758_s25 + $0xa0] sm:$0xff]  ;;  %v10233_v37 = vld [vmem:[%s10758_s25 + $0xa8] sm:$0xff]  ;;  %v9910_v7 = vld [vmem:[%s15403_s9 + $0x118] sm:$0xff]  }
 0x90b   : > { %v14571_v31 = vsel %vm2268_vm4, %v5778_v63, %v5779_v1  ;;  %15785 = vst [vmem:[#allocation70_spill] sm:$0xff] %v14585_v9  ;;  %v9807_v32 = vpack.i.bf16 %v14588_v0, %v14585_v9  ;;  %v5788_v63 = vrot.slane %v14426_v47, 2  ;;  %v5789_v1 = vrot.slane %v14428_v53, 2 }
 0x90c   : > { %9778 = vrot.lane.b32.xlu1 %v9777_v45, %s10443_s23  ;;  %v10227_v45 = vld [vmem:[%s10758_s25 + $0x88] sm:$0xff] }
 0x90d   : > { %9768 = vrot.lane.b32.xlu0 %v9767_v44, %s10443_s23  ;;  %v9529_v42 = vpop.permute.xlu0 %9528  ;;  %v9787_v5 = vpack.i.bf16 %v10227_v45, %v10226_v22  ;;  %v6447_v44 = vpack.c.bf16 %v6188_v33, %v6187_v14  ;;  %v9792_v14 = vpack.i.bf16 %v14574_v59, %v14571_v31  ;;  %v9909_v33 = vld [vmem:[%s15403_s9 + $0x110] sm:$0xff]   ;;  %v5828_v22 = vrot.slane %v14476_v4, 1 }
 0x90e   : > { %v9531_v27 = vunpack.i.h.bf16 %v9529_v42  ;;  %v9530_v11 = vunpack.i.l.bf16 %v9529_v42  ;;  %v5829_v45 = vrot.slane %v14478_v29, 1 }
 0x910   : > { %9783 = vrot.lane.b32.xlu1 %v9782_v35, %s10443_s23  ;;  %v6219_v41 = vsel %vm3047_vm5, %v5715_v58, %v9530_v11  ;;  %v6220_v42 = vsel %vm3047_vm5, %v5717_v25, %v9531_v27  ;;  %v10228_v27 = vld [vmem:[%s10758_s25 + $0x90] sm:$0xff]  ;;  %v10229_v11 = vld [vmem:[%s10758_s25 + $0x98] sm:$0xff]  ;;  %v5581_v35 = vld [vmem:[#allocation3 + $0x190] sm:$0x3] }
 0x911   : > { %9773 = vrot.lane.b32.xlu0 %v9772_v20, %s10443_s23  ;;  %v6448_v26 = vpack.c.bf16 %v6220_v42, %v6219_v41  ;;  %v9797_v20 = vpack.i.bf16 %v10229_v11, %v10228_v27  ;;  %v10230_v58 = vld [vmem:[%s10758_s25 + $0xb0] sm:$0xff]  ;;  %v10231_v25 = vld [vmem:[%s10758_s25 + $0xb8] sm:$0xff]  ;;  %v14615_v41 = vsel %vm2268_vm4, %v5788_v63, %v5789_v1  ;;  %v14618_v42 = vsel %vm2268_vm4, %v5789_v1, %v5791_v2 }
 0x912   : > { %v14624_v27 = vld [vmem:[#allocation3 + $0x1a8] sm:$0x3] }
 0x913   : > { %6897 = vmatprep.mubr.bf16.mxu1 %v6448_v26  ;;  %v14620_v26 = vld [vmem:[#allocation3 + $0x198] sm:$0xff]  ;;  %15788 = vst [vmem:[#allocation73_spill] sm:$0xff] %v14624_v27  ;;  %v5876_v2 = vrot.slane %v14624_v27, 1  ;;  %v10236_v27 = vld [vmem:[%s10758_s25 + $0xc0] sm:$0xff] }
 0x914   : > { %9788 = vrot.lane.b32.xlu1 %v9787_v5, %s10443_s23  ;;  %6898 = vmatmul.mubr.bf16.vlgmr.msra.gmra.mrb[40].mxu1 %v6447_v44  ;;  %v5831_v5 = vrot.slane %v5581_v35, 1  ;;  %v9802_v44 = vpack.i.bf16 %v10233_v37, %v10232_v24  ;;  %15786 = vst [vmem:[#allocation71_spill] sm:$0xff] %v14620_v26  ;;  %v5873_v63 = vrot.slane %v14620_v26, 1 }
 0x915   : > { %9793 = vrot.lane.b32.xlu0 %v9792_v14, %s10443_s23  ;;  %8657 = vmatpush3.bf16.msra.mxu1 %v13966_v38  ;;  %v9812_v38 = vpack.i.bf16 %v10231_v25, %v10230_v58  ;;  %v14622_v14 = vld [vmem:[#allocation3 + $0x1a0] sm:$0xff]  ;;  %v9911_v58 = vld [vmem:[%s15403_s9 + $0x120] sm:$0xff]   ;;  %v5865_v25 = vrot.slane %v14476_v4, 2 }
 0x916   : > { %8658 = vmatprep.subr.bf16.mxu1 %v9904_v3  ;;  %15787 = vst [vmem:[#allocation72_spill] sm:$0xff] %v14622_v14  ;;  %v14631_v11 = vsel %vm2187_vm3, %v5829_v45, %v5831_v5  ;;  %v5874_v1 = vrot.slane %v14622_v14, 1  ;;  %v10235_v5 = vld [vmem:[%s10758_s25 + $0xd8] sm:$0xff]  ;;  %v10237_v14 = vld [vmem:[%s10758_s25 + $0xc8] sm:$0xff] }
 0x917   : > { %15789 = vst [vmem:[#allocation74_spill] sm:$0xff] %v14631_v11  ;;  %v9822_v26 = vpack.i.bf16 %v10237_v14, %v10236_v27  ;;  %v10238_v14 = vld [vmem:[#allocation3 + $0x18] sm:$0xff] }
 0x918   : > { %9808 = vrot.lane.b32.xlu1 %v9807_v32, %s10443_s23  ;;  %v9544_v32 = vpop.permute.xlu1 %9543  ;;  %v5877_v4 = vsel %vm2187_vm3, %v5874_v1, %v5876_v2 }
 0x919   : > { %9798 = vrot.lane.b32.xlu0 %v9797_v20, %s10443_s23  ;;  %8659 = vmatpush3.bf16.msra.mxu1 %v9904_v3  ;;  %v14628_v3 = vsel %vm2187_vm3, %v5828_v22, %v5829_v45  ;;  %v9827_v20 = vpack.i.bf16 %v14618_v42, %v14615_v41  ;;  %v5868_v22 = vrot.slane %v5581_v35, 2  ;;  %v10234_v45 = vld [vmem:[%s10758_s25 + $0xd0] sm:$0xff]  ;;  %v9546_v37 = vunpack.i.h.bf16 %v9544_v32 }
 0x91a   : > { %8660 = vmatprep.subr.bf16.mxu1 %v9909_v33  ;;  %v9832_v24 = vpack.i.bf16 %v10235_v5, %v10234_v45 }
 0x91c   : > { %9813 = vrot.lane.b32.xlu1 %v9812_v38, %s10443_s23  ;;  %v5866_v38 = vrot.slane %v14478_v29, 2  ;;  %v9912_v29 = vld [vmem:[%s15403_s9 + $0x128] sm:$0xff]  }
 0x91d   : > { %9803 = vrot.lane.b32.xlu0 %v9802_v44, %s10443_s23  ;;  %8661 = vmatpush3.bf16.msra.mxu1 %v9909_v33  ;;  %v9817_v33 = vpack.i.bf16 %v14631_v11, %v14628_v3  ;;  %v9545_v44 = vunpack.i.l.bf16 %v9544_v32  ;;  %v5875_v11 = vsel %vm2187_vm3, %v5873_v63, %v5874_v1  ;;  %v10239_v63 = vld [vmem:[#allocation3 + $0x20] sm:$0xff] }
 0x91e   : > { %8662 = vmatprep.subr.bf16.mxu1 %v9910_v7  ;;  %v6190_v1 = vsel %vm3047_vm5, %v10239_v63, %v9546_v37 }
 0x91f   : > { %v6189_v27 = vsel %vm3047_vm5, %v10238_v14, %v9545_v44 }
 0x920   : > { %9828 = vrot.lane.b32.xlu1 %v9827_v20, %s10443_s23  ;;  %v14658_v20 = vsel %vm2268_vm4, %v5865_v25, %v5866_v38 }
 0x921   : > { %9818 = vrot.lane.b32.xlu0 %v9817_v33, %s10443_s23  ;;  %8663 = vmatpush3.bf16.msra.mxu1 %v9910_v7  ;;  %15790 = vst [vmem:[#allocation75_spill] sm:$0xff] %v14658_v20  ;;  %v14661_v33 = vsel %vm2268_vm4, %v5866_v38, %v5868_v22  ;;  %v9837_v7 = vpack.i.bf16 %v5877_v4, %v5875_v11  ;;  %v10240_v4 = vld [vmem:[%s10758_s25 + $0xf0] sm:$0xff] }
 0x922   : > { %8664 = vmatprep.subr.bf16.mxu1 %v9911_v58  ;;  %15791 = vst [vmem:[#allocation76_spill] sm:$0xff] %v14661_v33  ;;  %v9842_v25 = vpack.i.bf16 %v14661_v33, %v14658_v20 }
 0x923   : > { %v9539_v35 = vpop.permute.xlu0 %9538 }
 0x924   : > { %v9541_v32 = vunpack.i.h.bf16 %v9539_v35  ;;  %v9540_v45 = vunpack.i.l.bf16 %v9539_v35  ;;  %9833 = vrot.lane.b32.xlu1 %v9832_v24, %s10443_s23  ;;  %v10241_v35 = vld [vmem:[%s10758_s25 + $0xf8] sm:$0xff] }
 0x925   : > { %9823 = vrot.lane.b32.xlu0 %v9822_v26, %s10443_s23  ;;  %8665 = vmatpush3.bf16.msra.mxu1 %v9911_v58  ;;  %v6452_v58 = vpack.c.bf16 %v6190_v1, %v6189_v27  ;;  %v9852_v14 = vpack.i.bf16 %v10241_v35, %v10240_v4 }
 0x926   : > { %v9554_v2 = vpop.permute.xlu1 %9553  ;;  %v6221_v38 = vsel %vm3047_vm5, %v14232_v60, %v9540_v45  ;;  %v6222_v26 = vsel %vm3047_vm5, %v14240_v6, %v9541_v32  ;;  %8666 = vmatprep.subr.bf16.mxu1 %v9912_v29  ;;  %v10242_v32 = vld [vmem:[%s10758_s25 + $0xe0] sm:$0xff]  ;;  %v10243_v45 = vld [vmem:[%s10758_s25 + $0xe8] sm:$0xff]  ;;  %s430_s25 = sand.u32 1, %s10424_s18  }
 0x927   : > { %v9556_v11 = vunpack.i.h.bf16 %v9554_v2  ;;  %v9555_v22 = vunpack.i.l.bf16 %v9554_v2  ;;  %v9549_v5 = vpop.permute.xlu0 %9548  ;;  %v6453_v24 = vpack.c.bf16 %v6222_v26, %v6221_v38  ;;  %v9847_v63 = vpack.i.bf16 %v10243_v45, %v10242_v32  ;;  %s15353_s21 = scalar_lea.sflag [#allocation6], %s430_s25 }
 0x928   : > { %v9551_v37 = vunpack.i.h.bf16 %v9549_v5  ;;  %v9550_v44 = vunpack.i.l.bf16 %v9549_v5  ;;  %9843 = vrot.lane.b32.xlu1 %v9842_v25, %s10443_s23 }
 0x929   : > { %9838 = vrot.lane.b32.xlu0 %v9837_v7, %s10443_s23  ;;  %6905 = vmatprep.mubr.bf16.mxu1 %v6453_v24  ;;  %v6191_v60 = vsel %vm3047_vm5, %v14000_v18, %v9555_v22  ;;  %v6192_v6 = vsel %vm3047_vm5, %v14016_v54, %v9556_v11 }
 0x92a   : > { %v9564_v2 = vpop.permute.xlu1 %9563  ;;  %v6450_v38 = vpack.c.bf16 %v6192_v6, %v6191_v60  ;;  %6906 = vmatmul.mubr.bf16.gmra.mrb[44].mxu1 %v6452_v58  ;;  %v6223_v27 = vsel %vm3047_vm5, %v14254_v10, %v9550_v44  ;;  %v6224_v1 = vsel %vm3047_vm5, %v14257_v16, %v9551_v37 }
 0x92b   : > { %v9559_v7 = vpop.permute.xlu0 %9558  ;;  %v6457_v25 = vpack.c.bf16 %v6224_v1, %v6223_v27  ;;  %8667 = vmatpush3.bf16.msra.mxu1 %v9912_v29  ;;  %v9566_v24 = vunpack.i.h.bf16 %v9564_v2  ;;  %v9565_v37 = vunpack.i.l.bf16 %v9564_v2 }
 0x92c   : > { %v9561_v26 = vunpack.i.h.bf16 %v9559_v7  ;;  %v9560_v18 = vunpack.i.l.bf16 %v9559_v7  ;;  %7058 = vmatprep.mubr.bf16.mxu0 %v6450_v38  ;;  %9853 = vrot.lane.b32.xlu1 %v9852_v14, %s10443_s23 }
 0x92d   : > { %9848 = vrot.lane.b32.xlu0 %v9847_v63, %s10443_s23  ;;  %6913 = vmatprep.mubr.bf16.mxu1 %v6457_v25  ;;  %v6193_v14 = vsel %vm3047_vm5, %v14030_v30, %v9565_v37  ;;  %v6194_v60 = vsel %vm3047_vm5, %v14033_v50, %v9566_v24  ;;  %s7548_s23 = sshll.u32 %s430_s25, 8 }
 0x92e   : > { %v9574_v54 = vpop.permute.xlu1 %9573  ;;  %v6225_v11 = vsel %vm3047_vm5, %v14301_v48, %v9560_v18  ;;  %v6226_v22 = vsel %vm3047_vm5, %v14304_v55, %v9561_v26  ;;  %v6455_v2 = vpack.c.bf16 %v6194_v60, %v6193_v14  ;;  %s15200_s16 = scalar_lea.vmem [#allocation12], %s7548_s23 }
 0x92f   : > { %v9569_v5 = vpop.permute.xlu0 %9568  ;;  %v6461_v44 = vpack.c.bf16 %v6226_v22, %v6225_v11  ;;  %v9576_v27 = vunpack.i.h.bf16 %v9574_v54  ;;  %s7433_s19 = sshll.u32 %s15200_s16, 4  ;;  %s15342_s19 = int_to_ptr.vmem [resolvable:$true] %s7433_s19 }
 0x930   : > { %v9571_v29 = vunpack.i.h.bf16 %v9569_v5  ;;  %v9570_v58 = vunpack.i.l.bf16 %v9569_v5  ;;  %s10358_s26 = scalar_lea.vmem %s15342_s19, 4096  ;;  %p10365_p8 = scmp.lt.s32.totalorder %s15342_s19, %s10363_s14 }
 0x931   : > { %v6196_v18 = vsel %vm3047_vm5, %v14067_v34, %v9576_v27  ;;  %p10359_p2 = scmp.ne.s32.totalorder %s15342_s19, %s10358_s26  ;;  %p10366_p11 = scmp.lt.s32.totalorder %s10364_s17, %s10358_s26 }
 0x932   : > { %v9584_v4 = vpop.permute.xlu1 %9583  ;;  %6914 = vmatmul.mubr.bf16.gmra.mrb[48].mxu1 %v6450_v38  ;;  %v6227_v32 = vsel %vm3047_vm5, %v14317_v43, %v9570_v58  ;;  %v6228_v45 = vsel %vm3047_vm5, %v14320_v51, %v9571_v29  ;;  %v9575_v38 = vunpack.i.l.bf16 %v9574_v54 }
 0x933   : > { %v9579_v35 = vpop.permute.xlu0 %9578  ;;  %6921 = vmatprep.mubr.bf16.mxu1 %v6461_v44  ;;  %v6465_v1 = vpack.c.bf16 %v6228_v45, %v6227_v32  ;;  %v9586_v29 = vunpack.i.h.bf16 %v9584_v4  ;;  %v9585_v58 = vunpack.i.l.bf16 %v9584_v4  ;;  %p10360_p4 = pnand %p10359_p2, %p15848_p3  ;;  %p10367_p13 = por %p10366_p11, %p10365_p8 }
 0x934   : > { %v9581_v7 = vunpack.i.h.bf16 %v9579_v35  ;;  %v9580_v25 = vunpack.i.l.bf16 %v9579_v35  ;;  %v6195_v50 = vsel %vm3047_vm5, %v14053_v15, %v9575_v38 }
 0x935   : > { %v6459_v44 = vpack.c.bf16 %v6196_v18, %v6195_v50  ;;  %v6197_v4 = vsel %vm3047_vm5, %v14076_v8, %v9585_v58  ;;  %p10361_p7 = pneg %p10360_p4 }
 0x936   : > { %v14697_v6 = vpop.permute.xlu1 %9593  ;;  %v6229_v22 = vsel %vm3047_vm5, %v14363_v17, %v9580_v25  ;;  %v6230_v54 = vsel %vm3047_vm5, %v14370_v61, %v9581_v7 }
 0x937   : > { %v9589_v63 = vpop.permute.xlu0 %9588  ;;  %v6469_v35 = vpack.c.bf16 %v6230_v54, %v6229_v22  ;;  %v9595_v22 = vunpack.i.l.bf16 %v14697_v6  ;;  %p10368_p1 = pnand %p10367_p13, %p10361_p7 }
 0x938   : > { %v9591_v14 = vunpack.i.h.bf16 %v9589_v63  ;;  %v9590_v15 = vunpack.i.l.bf16 %v9589_v63  ;;  %v6198_v63 = vsel %vm3047_vm5, %v14090_v28, %v9586_v29  ;;  %v9596_v28 = vunpack.i.h.bf16 %v14697_v6 }
 0x939   : > { %v6463_v18 = vpack.c.bf16 %v6198_v63, %v6197_v4 }
 0x93a   : > { %v14703_v26 = vpop.permute.xlu1 %9603  ;;  %6922 = vmatmul.mubr.bf16.gmra.mrb[52].mxu1 %v6455_v2 }
 0x93b   : > { %v9599_v30 = vpop.permute.xlu0 %9598  ;;  %6929 = vmatprep.mubr.bf16.mxu1 %v6465_v1  ;;  %v9605_v4 = vunpack.i.l.bf16 %v14703_v26 }
 0x93c   : > { %v9601_v54 = vunpack.i.h.bf16 %v9599_v30 }
 0x93e   : > { %v14709_v11 = vpop.permute.xlu1 %9608 }
 0x93f   : > { %v9614_v5 = vpop.permute.xlu0 %9613  ;;  %v9611_v63 = vunpack.i.h.bf16 %v14709_v11 }
 0x940   : > { %v9616_v24 = vunpack.i.h.bf16 %v9614_v5  ;;  %v9615_v37 = vunpack.i.l.bf16 %v9614_v5  ;;  %v9600_v5 = vunpack.i.l.bf16 %v9599_v30  ;;  %v6234_v30 = vsel %vm3047_vm5, %v14434_v36, %v9601_v54 }
 0x942   : > { %v6252_v34 = vsel %vm3047_vm5, %v13918_v39, %v9616_v24  ;;  %v6251_v60 = vsel %vm3047_vm5, %v13915_v46, %v9615_v37  ;;  %v9629_v32 = vpop.permute.xlu1 %9628  ;;  %6930 = vmatmul.mubr.bf16.gmra.mrb[56].mxu1 %v6459_v44  ;;  %v6231_v46 = vsel %vm3047_vm5, %v14385_v12, %v9590_v15  ;;  %v6232_v39 = vsel %vm3047_vm5, %v14388_v52, %v9591_v14 }
 0x943   : > { %v6449_v45 = vpack.c.bf16 %v6252_v34, %v6251_v60  ;;  %v14719_v27 = vpop.permute.xlu0 %9618  ;;  %6937 = vmatprep.mubr.bf16.mxu1 %v6469_v35  ;;  %v9631_v38 = vunpack.i.h.bf16 %v9629_v32  ;;  %v9630_v1 = vunpack.i.l.bf16 %v9629_v32  ;;  %v6233_v6 = vsel %vm3047_vm5, %v14431_v62, %v9600_v5  ;;  %v15793_v60 = vld [vmem:[#allocation30_spill] sm:$0xff]  ;;  %v15796_v5 = vld [vmem:[#allocation44_spill] sm:$0xff] }
 0x945   : > { %7059 = vmatmul.mubr.bf16.vlgmr.msra.gmra.mrb[68].mxu0 %v6449_v45  ;;  %v6253_v50 = vsel %vm3047_vm5, %v14046_v19, %v9630_v1  ;;  %v6254_v8 = vsel %vm3047_vm5, %v14049_v56, %v9631_v38  ;;  %v6199_v19 = vsel %vm3047_vm5, %v14109_v23, %v9595_v22  ;;  %v15792_v56 = vld [vmem:[#allocation40_spill] sm:$0xff]  ;;  %v15794_v45 = vld [vmem:[#allocation39_spill] sm:$0xff]  ;;  %v9606_v1 = vunpack.i.h.bf16 %v14703_v26 }
 0x946   : > { %v14725_v7 = vpop.permute.xlu1 %9633  ;;  %7066 = vmatprep.mubr.bf16.mxu0 %v6455_v2  ;;  %v6473_v2 = vpack.c.bf16 %v6232_v39, %v6231_v46  ;;  %v6454_v29 = vpack.c.bf16 %v6254_v8, %v6253_v50  ;;  %v6200_v14 = vsel %vm3047_vm5, %v15792_v56, %v9596_v28  ;;  %v9610_v46 = vunpack.i.l.bf16 %v14709_v11  ;;  %v15798_v56 = vld [vmem:[#allocation37_spill] sm:$0xff] }
 0x947   : > { %v14731_v25 = vpop.permute.xlu0 %9623  ;;  %v6467_v23 = vpack.c.bf16 %v6200_v14, %v6199_v19  ;;  %v6202_v26 = vsel %vm3047_vm5, %v15796_v5, %v9606_v1  ;;  %v15802_v5 = vld [vmem:[#allocation46_spill] sm:$0xff] }
 0x948   : > { %v6235_v11 = vsel %vm3047_vm5, %v14449_v49, %v9610_v46 }
 0x94a   : > { %v14739_v24 = vpop.permute.xlu1 %9638  ;;  %6938 = vmatmul.mubr.bf16.gmra.mrb[60].mxu1 %v6463_v18 }
 0x94b   : > { %v9644_v37 = vpop.permute.xlu0 %9643  ;;  %6945 = vmatprep.mubr.bf16.mxu1 %v6473_v2  ;;  %v15795_v2 = vld [vmem:[#allocation47_spill] sm:$0xff] }
 0x94c   : > { %v9646_v58 = vunpack.i.h.bf16 %v9644_v37  ;;  %v9645_v35 = vunpack.i.l.bf16 %v9644_v37  ;;  %v6201_v54 = vsel %vm3047_vm5, %v15795_v2, %v9605_v4 }
 0x94d   : > { %7067 = vmatmul.mubr.bf16.gmra.mrb[72].mxu0 %v6454_v29  ;;  %v6236_v29 = vsel %vm3047_vm5, %v14452_v40, %v9611_v63  ;;  %v15799_v63 = vld [vmem:[#allocation28_spill] sm:$0xff] }
 0x94e   : > { %v9659_v15 = vpop.permute.xlu1 %9658  ;;  %7074 = vmatprep.mubr.bf16.mxu0 %v6459_v44  ;;  %v6255_v32 = vsel %vm3047_vm5, %v15793_v60, %v9645_v35  ;;  %v6256_v38 = vsel %vm3047_vm5, %v15794_v45, %v9646_v58  ;;  %v6477_v44 = vpack.c.bf16 %v6234_v30, %v6233_v6  ;;  %v15797_v35 = vld [vmem:[#allocation38_spill] sm:$0xff]  ;;  %v9621_v6 = vunpack.i.h.bf16 %v14719_v27 }
 0x94f   : > { %v14749_v34 = vpop.permute.xlu0 %9648  ;;  %v6458_v8 = vpack.c.bf16 %v6256_v38, %v6255_v32  ;;  %v9661_v28 = vunpack.i.h.bf16 %v9659_v15  ;;  %v9660_v22 = vunpack.i.l.bf16 %v9659_v15  ;;  %v6471_v15 = vpack.c.bf16 %v6202_v26, %v6201_v54 }
 0x950   : > { %v9620_v30 = vunpack.i.l.bf16 %v14719_v27  ;;  %v6481_v60 = vpack.c.bf16 %v6236_v29, %v6235_v11  ;;  %v9625_v32 = vunpack.i.l.bf16 %v14731_v25  ;;  %v15803_v11 = vld [vmem:[#allocation48_spill] sm:$0xff] }
 0x951   : > { %v6257_v19 = vsel %vm3047_vm5, %v15797_v35, %v9660_v22  ;;  %v6258_v14 = vsel %vm3047_vm5, %v15798_v56, %v9661_v28  ;;  %v15801_v22 = vld [vmem:[#allocation63_spill] sm:$0xff]  ;;  %v9636_v35 = vunpack.i.h.bf16 %v14725_v7  ;;  %v9641_v56 = vunpack.i.h.bf16 %v14739_v24 }
 0x952   : > { %v14759_v39 = vpop.permute.xlu1 %9663  ;;  %6946 = vmatmul.mubr.bf16.gmra.mrb[64].mxu1 %v6467_v23  ;;  %v6462_v1 = vpack.c.bf16 %v6258_v14, %v6257_v19  ;;  %v6203_v46 = vsel %vm3047_vm5, %v15799_v63, %v9620_v30  ;;  %v9635_v19 = vunpack.i.l.bf16 %v14725_v7  ;;  %v9640_v14 = vunpack.i.l.bf16 %v14739_v24 }
 0x953   : > { %v14761_v50 = vpop.permute.xlu0 %9653  ;;  %6953 = vmatprep.mubr.bf16.mxu1 %v6477_v44 }
 0x955   : > { %7075 = vmatmul.mubr.bf16.gmra.mrb[76].mxu0 %v6458_v8  ;;  %v15800_v8 = vld [vmem:[#allocation24_spill] sm:$0xff] }
 0x956   : > { %v14767_v37 = vpop.permute.xlu1 %9668  ;;  %7082 = vmatprep.mubr.bf16.mxu0 %v6463_v18  ;;  %v9626_v18 = vunpack.i.h.bf16 %v14731_v25  ;;  %v6204_v27 = vsel %vm3047_vm5, %v15800_v8, %v9621_v6  ;;  %v6237_v25 = vsel %vm3047_vm5, %v14495_v21, %v9625_v32  ;;  %v15807_v8 = vld [vmem:[#allocation65_spill] sm:$0xff] }
 0x957   : > { %v9674_v58 = vpop.permute.xlu0 %9673 }
 0x958   : > { %v9676_v4 = vunpack.i.h.bf16 %v9674_v58  ;;  %v9675_v44 = vunpack.i.l.bf16 %v9674_v58  ;;  %v6238_v2 = vsel %vm3047_vm5, %v15801_v22, %v9626_v18  ;;  %v6475_v58 = vpack.c.bf16 %v6204_v27, %v6203_v46  ;;  %v15806_v46 = vld [vmem:[#allocation64_spill] sm:$0xff] }
 0x959   : > { %v6239_v24 = vsel %vm3047_vm5, %v15806_v46, %v9640_v14  ;;  %v6240_v27 = vsel %vm3047_vm5, %v15807_v8, %v9641_v56 }
 0x95a   : > { %v9689_v45 = vpop.permute.xlu1 %9688  ;;  %6954 = vmatmul.mubr.bf16.gmra.mrb[68].mxu1 %v6471_v15  ;;  %v6259_v26 = vsel %vm3047_vm5, %v15802_v5, %v9675_v44  ;;  %v6260_v29 = vsel %vm3047_vm5, %v15803_v11, %v9676_v4  ;;  %v15805_v44 = vld [vmem:[#allocation35_spill] sm:$0xff]  ;;  %v15809_v5 = vld [vmem:[#allocation42_spill] sm:$0xff] }
 0x95b   : > { %v14781_v38 = vpop.permute.xlu0 %9678  ;;  %6961 = vmatprep.mubr.bf16.mxu1 %v6481_v60  ;;  %v6466_v60 = vpack.c.bf16 %v6260_v29, %v6259_v26  ;;  %v9691_v18 = vunpack.i.h.bf16 %v9689_v45  ;;  %v9690_v32 = vunpack.i.l.bf16 %v9689_v45  ;;  %v6206_v7 = vsel %vm3047_vm5, %v15805_v44, %v9636_v35  ;;  %v15811_v44 = vld [vmem:[#allocation25_spill] sm:$0xff] }
 0x95c   : > { %v9651_v29 = vunpack.i.h.bf16 %v14749_v34  ;;  %v9650_v35 = vunpack.i.l.bf16 %v14749_v34 }
 0x95d   : > { %7083 = vmatmul.mubr.bf16.gmra.mrb[80].mxu0 %v6462_v1  ;;  %v15804_v1 = vld [vmem:[#allocation23_spill] sm:$0xff]  ;;  %v6262_v26 = vsel %vm3047_vm5, %v15809_v5, %v9691_v18  ;;  %v15810_v18 = vld [vmem:[#allocation34_spill] sm:$0xff]  ;;  %v15814_v5 = vld [vmem:[#allocation41_spill] sm:$0xff] }
 0x95e   : > { %v14787_v28 = vpop.permute.xlu1 %9693  ;;  %7090 = vmatprep.mubr.bf16.mxu0 %v6467_v23  ;;  %v6485_v23 = vpack.c.bf16 %v6238_v2, %v6237_v25  ;;  %v6205_v4 = vsel %vm3047_vm5, %v15804_v1, %v9635_v19  ;;  %v15808_v2 = vld [vmem:[#allocation43_spill] sm:$0xff]  ;;  %v9656_v19 = vunpack.i.h.bf16 %v14761_v50  ;;  %v6208_v34 = vsel %vm3047_vm5, %v15811_v44, %v9651_v29 }
 0x95f   : > { %v14793_v54 = vpop.permute.xlu0 %9683  ;;  %v6261_v45 = vsel %vm3047_vm5, %v15808_v2, %v9690_v32  ;;  %v6479_v11 = vpack.c.bf16 %v6206_v7, %v6205_v4  ;;  %v6207_v4 = vsel %vm3047_vm5, %v15810_v18, %v9650_v35  ;;  %v15812_v7 = vld [vmem:[#allocation66_spill] sm:$0xff]  ;;  %v9670_v18 = vunpack.i.l.bf16 %v14767_v37 }
 0x960   : > { %v6483_v35 = vpack.c.bf16 %v6208_v34, %v6207_v4  ;;  %v15817_v34 = vld [vmem:[#allocation33_spill] sm:$0xff] }
 0x962   : > { %v14803_v6 = vpop.permute.xlu1 %9698  ;;  %6962 = vmatmul.mubr.bf16.gmra.mrb[72].mxu1 %v6475_v58 }
 0x963   : > { %v9704_v30 = vpop.permute.xlu0 %9703  ;;  %6969 = vmatprep.mubr.bf16.mxu1 %v6485_v23  ;;  %v9655_v23 = vunpack.i.l.bf16 %v14761_v50 }
 0x964   : > { %v9706_v32 = vunpack.i.h.bf16 %v9704_v30  ;;  %v9705_v1 = vunpack.i.l.bf16 %v9704_v30 }
 0x965   : > { %7091 = vmatmul.mubr.bf16.gmra.mrb[84].mxu0 %v6466_v60  ;;  %v6470_v60 = vpack.c.bf16 %v6262_v26, %v6261_v45  ;;  %v6241_v50 = vsel %vm3047_vm5, %v15812_v7, %v9655_v23  ;;  %v15815_v26 = vld [vmem:[#allocation45_spill] sm:$0xff]  ;;  %v9671_v23 = vunpack.i.h.bf16 %v14767_v37 }
 0x966   : > { %v9719_v63 = vpop.permute.xlu1 %9718  ;;  %7098 = vmatprep.mubr.bf16.mxu0 %v6471_v15  ;;  %v6489_v15 = vpack.c.bf16 %v6240_v27, %v6239_v24  ;;  %v15813_v24 = vld [vmem:[#allocation67_spill] sm:$0xff]  ;;  %v6263_v30 = vsel %vm3047_vm5, %v15814_v5, %v9705_v1  ;;  %v15819_v37 = vld [vmem:[#allocation69_spill] sm:$0xff] }
 0x967   : > { %v14813_v25 = vpop.permute.xlu0 %9708  ;;  %v6242_v27 = vsel %vm3047_vm5, %v15813_v24, %v9656_v19  ;;  %v9721_v20 = vunpack.i.h.bf16 %v9719_v63  ;;  %v9720_v1 = vunpack.i.l.bf16 %v9719_v63 }
 0x968   : > { %v6493_v29 = vpack.c.bf16 %v6242_v27, %v6241_v50  ;;  %v15818_v50 = vld [vmem:[#allocation68_spill] sm:$0xff] }
 0x969   : > { %v6243_v27 = vsel %vm3047_vm5, %v15818_v50, %v9670_v18  ;;  %v9685_v18 = vunpack.i.l.bf16 %v14793_v54 }
 0x96a   : > { %v14823_v14 = vpop.permute.xlu1 %9723  ;;  %6970 = vmatmul.mubr.bf16.gmra.mrb[76].mxu1 %v6479_v11 }
 0x96b   : > { %v14825_v56 = vpop.permute.xlu0 %9713  ;;  %6977 = vmatprep.mubr.bf16.mxu1 %v6489_v15  ;;  %v6264_v15 = vsel %vm3047_vm5, %v15815_v26, %v9706_v32  ;;  %v15816_v32 = vld [vmem:[#allocation29_spill] sm:$0xff]  ;;  %v6244_v26 = vsel %vm3047_vm5, %v15819_v37, %v9671_v23 }
 0x96c   : > { %v6474_v44 = vpack.c.bf16 %v6264_v15, %v6263_v30  ;;  %v15820_v30 = vld [vmem:[#allocation26_spill] sm:$0xff] }
 0x96d   : > { %7099 = vmatmul.mubr.bf16.gmra.mrb[88].mxu0 %v6470_v60  ;;  %v9666_v60 = vunpack.i.h.bf16 %v14759_v39  ;;  %v6265_v63 = vsel %vm3047_vm5, %v15820_v30, %v9720_v1  ;;  %v15821_v15 = vld [vmem:[#allocation22_spill] sm:$0xff] }
 0x96e   : > { %7106 = vmatprep.mubr.bf16.mxu0 %v6475_v58  ;;  %v14835_v2 = vpop.permute.xlu1 %9728  ;;  %v9665_v58 = vunpack.i.l.bf16 %v14759_v39 }
 0x96f   : > { %v9734_v45 = vpop.permute.xlu0 %9733  ;;  %v6210_v39 = vsel %vm3047_vm5, %v15817_v34, %v9666_v60  ;;  %v9680_v60 = vunpack.i.l.bf16 %v14781_v38 }
 0x970   : > { %v6209_v4 = vsel %vm3047_vm5, %v15816_v32, %v9665_v58  ;;  %v9681_v58 = vunpack.i.h.bf16 %v14781_v38  ;;  %v9686_v32 = vunpack.i.h.bf16 %v14793_v54  ;;  %v9736_v1 = vunpack.i.h.bf16 %v9734_v45 }
 0x971   : > { %v9735_v30 = vunpack.i.l.bf16 %v9734_v45  ;;  %v15825_v45 = vld [vmem:[#allocation32_spill] sm:$0xff] }
 0x972   : > { %6978 = vmatmul.mubr.bf16.gmra.mrb[80].mxu1 %v6483_v35  ;;  %v9749_v5 = vpop.permute.xlu1 %9748  ;;  %v6246_v54 = vsel %vm3047_vm5, %v14574_v59, %v9686_v32  ;;  %v9700_v32 = vunpack.i.l.bf16 %v14803_v6 }
 0x973   : > { %v14845_v19 = vpop.permute.xlu0 %9738  ;;  %6985 = vmatprep.mubr.bf16.mxu1 %v6493_v29  ;;  %v6266_v29 = vsel %vm3047_vm5, %v15821_v15, %v9721_v20  ;;  %v15822_v20 = vld [vmem:[#allocation51_spill] sm:$0xff] }
 0x974   : > { %v6478_v50 = vpack.c.bf16 %v6266_v29, %v6265_v63  ;;  %v15824_v63 = vld [vmem:[#allocation27_spill] sm:$0xff] }
 0x975   : > { %7107 = vmatmul.mubr.bf16.gmra.mrb[92].mxu0 %v6474_v44  ;;  %v6487_v44 = vpack.c.bf16 %v6210_v39, %v6209_v4  ;;  %v6211_v4 = vsel %vm3047_vm5, %v15822_v20, %v9680_v60  ;;  %v15823_v39 = vld [vmem:[#allocation52_spill] sm:$0xff]  ;;  %v6267_v15 = vsel %vm3047_vm5, %v15824_v63, %v9735_v30  ;;  %v9696_v60 = vunpack.i.h.bf16 %v14787_v28  ;;  %v15826_v63 = vld [vmem:[#allocation53_spill] sm:$0xff] }
 0x976   : > { %7114 = vmatprep.mubr.bf16.mxu0 %v6479_v11  ;;  %v6497_v11 = vpack.c.bf16 %v6244_v26, %v6243_v27  ;;  %v14865_v23 = vpop.permute.xlu1 %9753  ;;  %v6212_v38 = vsel %vm3047_vm5, %v15823_v39, %v9681_v58  ;;  %v6245_v27 = vsel %vm3047_vm5, %v14571_v31, %v9685_v18  ;;  %v9695_v58 = vunpack.i.l.bf16 %v14787_v28 }
 0x977   : > { %v14855_v33 = vpop.permute.xlu0 %9743  ;;  %v6491_v29 = vpack.c.bf16 %v6212_v38, %v6211_v4  ;;  %v9701_v18 = vunpack.i.h.bf16 %v14803_v6  ;;  %v9751_v39 = vunpack.i.h.bf16 %v9749_v5  ;;  %v9750_v30 = vunpack.i.l.bf16 %v9749_v5  ;;  %v15827_v4 = vld [vmem:[#allocation54_spill] sm:$0xff] }
 0x978   : > { %v6214_v38 = vsel %vm3047_vm5, %v15827_v4, %v9696_v60  ;;  %v9710_v60 = vunpack.i.l.bf16 %v14813_v25 }
 0x979   : > { %v6248_v6 = vsel %vm3047_vm5, %v14588_v0, %v9701_v18 }
 0x97a   : > { %6986 = vmatmul.mubr.bf16.gmra.mrb[84].mxu1 %v6487_v44 }
 0x97b   : > { %v9764_v34 = vpop.permute.xlu0 %9763  ;;  %6993 = vmatprep.mubr.bf16.mxu1 %v6497_v11  ;;  %v6501_v11 = vpack.c.bf16 %v6246_v54, %v6245_v27  ;;  %v6247_v27 = vsel %vm3047_vm5, %v14585_v9, %v9700_v32  ;;  %v9715_v32 = vunpack.i.l.bf16 %v14825_v56 }
 0x97c   : > { %v9766_v18 = vunpack.i.h.bf16 %v9764_v34  ;;  %v9765_v4 = vunpack.i.l.bf16 %v9764_v34  ;;  %v9725_v34 = vunpack.i.l.bf16 %v14823_v14 }
 0x97d   : > { %7115 = vmatmul.mubr.bf16.gmra.mrb[96].mxu0 %v6478_v50  ;;  %v6268_v50 = vsel %vm3047_vm5, %v15825_v45, %v9736_v1  ;;  %v6213_v1 = vsel %vm3047_vm5, %v15826_v63, %v9695_v58  ;;  %v15829_v45 = vld [vmem:[#allocation31_spill] sm:$0xff] }
 0x97e   : > { %7122 = vmatprep.mubr.bf16.mxu0 %v6483_v35  ;;  %v14883_v35 = vpop.permute.xlu1 %9758  ;;  %v6482_v20 = vpack.c.bf16 %v6268_v50, %v6267_v15  ;;  %v15828_v15 = vld [vmem:[#allocation36_spill] sm:$0xff]  ;;  %v6270_v50 = vsel %vm3047_vm5, %v15829_v45, %v9751_v39  ;;  %v6495_v58 = vpack.c.bf16 %v6214_v38, %v6213_v1  ;;  %v6215_v39 = vsel %vm3047_vm5, %v14413_v57, %v9710_v60 }
 0x97f   : > { %v14875_v26 = vpop.permute.xlu0 %9768  ;;  %v6269_v5 = vsel %vm3047_vm5, %v15828_v15, %v9750_v30  ;;  %v6249_v1 = vsel %vm3047_vm5, %v14615_v41, %v9715_v32  ;;  %v9726_v38 = vunpack.i.h.bf16 %v14823_v14  ;;  %v15831_v15 = vld [vmem:[#allocation50_spill] sm:$0xff] }
 0x980   : > { %v6486_v63 = vpack.c.bf16 %v6270_v50, %v6269_v5  ;;  %v6272_v57 = vsel %vm3047_vm5, %v15831_v15, %v9766_v18 }
 0x981   : > { %v6218_v32 = vsel %vm3047_vm5, %v14428_v53, %v9726_v38 }
 0x982   : > { %6994 = vmatmul.mubr.bf16.gmra.mrb[88].mxu1 %v6491_v29  ;;  %v9779_v54 = vpop.permute.xlu1 %9778 }
 0x983   : > { %7001 = vmatprep.mubr.bf16.mxu1 %v6501_v11  ;;  %v14891_v28 = vpop.permute.xlu0 %9773  ;;  %v9711_v11 = vunpack.i.h.bf16 %v14813_v25  ;;  %v9781_v14 = vunpack.i.h.bf16 %v9779_v54 }
 0x985   : > { %7123 = vmatmul.mubr.bf16.gmra.mrb[100].mxu0 %v6482_v20  ;;  %v6505_v20 = vpack.c.bf16 %v6248_v6, %v6247_v27  ;;  %v6216_v25 = vsel %vm3047_vm5, %v14415_v13, %v9711_v11  ;;  %v15830_v27 = vld [vmem:[#allocation49_spill] sm:$0xff]  ;;  %v9731_v13 = vunpack.i.h.bf16 %v14835_v2 }
 0x986   : > { %7130 = vmatprep.mubr.bf16.mxu0 %v6487_v44  ;;  %v9716_v44 = vunpack.i.h.bf16 %v14825_v56  ;;  %v14905_v30 = vpop.permute.xlu1 %9783  ;;  %v6271_v6 = vsel %vm3047_vm5, %v15830_v27, %v9765_v4  ;;  %v6499_v5 = vpack.c.bf16 %v6216_v25, %v6215_v39  ;;  %v9741_v4 = vunpack.i.h.bf16 %v14845_v19  ;;  %v15832_v25 = vld [vmem:[#allocation55_spill] sm:$0xff] }
 0x987   : > { %v9794_v9 = vpop.permute.xlu0 %9793  ;;  %v6490_v60 = vpack.c.bf16 %v6272_v57, %v6271_v6  ;;  %v9740_v39 = vunpack.i.l.bf16 %v14845_v19 }
 0x988   : > { %v6250_v56 = vsel %vm3047_vm5, %v14618_v42, %v9716_v44  ;;  %v6217_v44 = vsel %vm3047_vm5, %v14426_v47, %v9725_v34  ;;  %v6418_v19 = vsel %vm3047_vm5, %v14304_v55, %v9741_v4  ;;  %v9796_v27 = vunpack.i.h.bf16 %v9794_v9 }
 0x989   : > { %v6509_v45 = vpack.c.bf16 %v6250_v56, %v6249_v1  ;;  %v6503_v18 = vpack.c.bf16 %v6218_v32, %v6217_v44  ;;  %v15833_v1 = vld [vmem:[#allocation56_spill] sm:$0xff]  ;;  %v6417_v34 = vsel %vm3047_vm5, %v14301_v48, %v9740_v39  ;;  %v9795_v6 = vunpack.i.l.bf16 %v9794_v9  ;;  %v15835_v9 = vld [vmem:[#allocation58_spill] sm:$0xff] }
 0x98a   : > { %7002 = vmatmul.mubr.bf16.gmra.mrb[92].mxu1 %v6495_v58  ;;  %v14925_v11 = vpop.permute.xlu1 %9788  ;;  %v6274_v53 = vsel %vm3047_vm5, %v15833_v1, %v9781_v14  ;;  %v9755_v55 = vunpack.i.l.bf16 %v14865_v23  ;;  %v6276_v14 = vsel %vm3047_vm5, %v15835_v9, %v9796_v27  ;;  %v15838_v9 = vld [vmem:[#allocation71_spill] sm:$0xff] }
 0x98b   : > { %7009 = vmatprep.mubr.bf16.mxu1 %v6505_v20  ;;  %v14923_v50 = vpop.permute.xlu0 %9798  ;;  %v9780_v20 = vunpack.i.l.bf16 %v9779_v54 }
 0x98d   : > { %7131 = vmatmul.mubr.bf16.gmra.mrb[104].mxu0 %v6486_v63  ;;  %v6416_v63 = vsel %vm3047_vm5, %v14257_v16, %v9731_v13  ;;  %v6273_v47 = vsel %vm3047_vm5, %v15832_v25, %v9780_v20  ;;  %v9746_v16 = vunpack.i.h.bf16 %v14855_v33 }
 0x98e   : > { %7138 = vmatprep.mubr.bf16.mxu0 %v6491_v29  ;;  %v9730_v29 = vunpack.i.l.bf16 %v14835_v2  ;;  %v9809_v38 = vpop.permute.xlu1 %9808 }
 0x98f   : > { %v14937_v54 = vpop.permute.xlu0 %9803  ;;  %v6420_v15 = vsel %vm3047_vm5, %v14320_v51, %v9746_v16  ;;  %v9761_v51 = vunpack.i.h.bf16 %v14883_v35  ;;  %v9811_v32 = vunpack.i.h.bf16 %v9809_v38  ;;  %v9771_v16 = vunpack.i.h.bf16 %v14875_v26 }
 0x990   : > { %v6415_v2 = vsel %vm3047_vm5, %v14254_v10, %v9730_v29  ;;  %v9745_v10 = vunpack.i.l.bf16 %v14855_v33  ;;  %v9756_v29 = vunpack.i.h.bf16 %v14865_v23  ;;  %v6421_v23 = vsel %vm3047_vm5, %v14363_v17, %v9755_v55 }
 0x991   : > { %v6451_v56 = vpack.c.bf16 %v6416_v63, %v6415_v2  ;;  %v9810_v63 = vunpack.i.l.bf16 %v9809_v38  ;;  %v6424_v4 = vsel %vm3047_vm5, %v14388_v52, %v9761_v51  ;;  %v9770_v52 = vunpack.i.l.bf16 %v14875_v26 }
 0x992   : > { %7010 = vmatmul.mubr.bf16.gmra.mrb[96].mxu1 %v6499_v5  ;;  %v6419_v57 = vsel %vm3047_vm5, %v14317_v43, %v9745_v10  ;;  %v14954_v13 = vpop.permute.xlu1 %9813  ;;  %v9760_v43 = vunpack.i.l.bf16 %v14883_v35  ;;  %v6422_v44 = vsel %vm3047_vm5, %v14370_v61, %v9756_v29  ;;  %v10244_v10 = vld [vmem:[#allocation3 + $0x180] sm:$0xff]  ;;  %v6426_v55 = vsel %vm3047_vm5, %v14434_v36, %v9771_v16 }
 0x993   : > { %7017 = vmatprep.mubr.bf16.mxu1 %v6509_v45  ;;  %v9819_v33 = vpop.permute.xlu0 %9818  ;;  %v6456_v45 = vpack.c.bf16 %v6418_v19, %v6417_v34  ;;  %v6460_v20 = vpack.c.bf16 %v6420_v15, %v6419_v57  ;;  %v6464_v1 = vpack.c.bf16 %v6422_v44, %v6421_v23  ;;  %v9775_v34 = vunpack.i.l.bf16 %v14891_v28  ;;  %v15841_v44 = vld [vmem:[#allocation62_spill] sm:$0xff] }
 0x994   : > { %v6423_v35 = vsel %vm3047_vm5, %v14385_v12, %v9760_v43  ;;  %v9821_v25 = vunpack.i.h.bf16 %v9819_v33  ;;  %v9786_v23 = vunpack.i.h.bf16 %v14905_v30 }
 0x995   : > { %7139 = vmatmul.mubr.bf16.gmra.mrb[108].mxu0 %v6490_v60  ;;  %v15834_v60 = vld [vmem:[#allocation57_spill] sm:$0xff]  ;;  %v6468_v61 = vpack.c.bf16 %v6424_v4, %v6423_v35  ;;  %v9790_v4 = vunpack.i.l.bf16 %v14925_v11 }
 0x996   : > { %7146 = vmatprep.mubr.bf16.mxu0 %v6495_v58  ;;  %v6494_v58 = vpack.c.bf16 %v6274_v53, %v6273_v47  ;;  %v6275_v48 = vsel %vm3047_vm5, %v15834_v60, %v9795_v6  ;;  %v9829_v39 = vpop.permute.xlu1 %9828  ;;  %v9820_v47 = vunpack.i.l.bf16 %v9819_v33  ;;  %v15836_v53 = vld [vmem:[#allocation59_spill] sm:$0xff]  ;;  %v6425_v60 = vsel %vm3047_vm5, %v14431_v62, %v9770_v52 }
 0x997   : > { %v14970_v2 = vpop.permute.xlu0 %9823  ;;  %v6277_v17 = vsel %vm3047_vm5, %v15836_v53, %v9810_v63  ;;  %v9831_v26 = vunpack.i.h.bf16 %v9829_v39  ;;  %v6472_v43 = vpack.c.bf16 %v6426_v55, %v6425_v60  ;;  %v9791_v63 = vunpack.i.h.bf16 %v14925_v11 }
 0x998   : > { %v6283_v12 = vsel %vm3047_vm5, %v10244_v10, %v9820_v47  ;;  %v6431_v11 = vsel %vm3047_vm5, %v15806_v46, %v9790_v4  ;;  %v9806_v52 = vunpack.i.h.bf16 %v14937_v54 }
 0x999   : > { %v6280_v62 = vsel %vm3047_vm5, %v15841_v44, %v9831_v26 }
 0x99a   : > { %7018 = vmatmul.mubr.bf16.gmra.mrb[100].mxu1 %v6503_v18  ;;  %v14987_v6 = vpop.permute.xlu1 %9833 }
 0x99b   : > { %8668 = vmatprep.mubr.msk.bf16.mxu1 %vm3080_vm6, %v6451_v56  ;;  %v15837_v56 = vld [vmem:[#allocation60_spill] sm:$0xff]  ;;  %v9839_v27 = vpop.permute.xlu0 %9838 }
 0x99c   : > { %v6278_v38 = vsel %vm3047_vm5, %v15837_v56, %v9811_v32  ;;  %v9841_v15 = vunpack.i.h.bf16 %v9839_v27  ;;  %v9840_v57 = vunpack.i.l.bf16 %v9839_v27  ;;  %v15842_v56 = vld [vmem:[#allocation74_spill] sm:$0xff]  ;;  %v9826_v27 = vunpack.i.h.bf16 %v14970_v2 }
 0x99d   : > { %7147 = vmatmul.mubr.bf16.gmra.mrb[112].mxu0 %v6494_v58  ;;  %v10245_v58 = vld [vmem:[#allocation3 + $0x188] sm:$0xff]  ;;  %v6502_v33 = vpack.c.bf16 %v6278_v38, %v6277_v17 }
 0x99e   : > { %7154 = vmatprep.mubr.bf16.mxu0 %v6499_v5  ;;  %v6498_v5 = vpack.c.bf16 %v6276_v14, %v6275_v48  ;;  %v6284_v19 = vsel %vm3047_vm5, %v10245_v58, %v9821_v25  ;;  %v6427_v48 = vsel %vm3047_vm5, %v14449_v49, %v9775_v34  ;;  %v6285_v14 = vsel %vm3047_vm5, %v15838_v9, %v9840_v57  ;;  %v9844_v49 = vpop.permute.xlu1 %9843  ;;  %v15844_v57 = vld [vmem:[#allocation70_spill] sm:$0xff] }
 0x99f   : > { %v6507_v29 = vpack.c.bf16 %v6284_v19, %v6283_v12  ;;  %v9846_v25 = vunpack.i.h.bf16 %v9844_v49  ;;  %v9845_v47 = vunpack.i.l.bf16 %v9844_v49  ;;  %v6436_v12 = vsel %vm3047_vm5, %v15819_v37, %v9806_v52 }
 0x9a1   : > { %v6281_v17 = vsel %vm3047_vm5, %v14628_v3, %v9845_v47  ;;  %v6282_v38 = vsel %vm3047_vm5, %v15842_v56, %v9846_v25 }
 0x9a2   : > { %8669 = vmatmul.mubr.msk.bf16.vlgmr.msra.gmra.mrb[104].mxu1 %vm3080_vm6, %v6456_v45  ;;  %v9830_v45 = vunpack.i.l.bf16 %v9829_v39  ;;  %v6510_v46 = vpack.c.bf16 %v6282_v38, %v6281_v17 }
 0x9a3   : > { %8672 = vmatprep.mubr.msk.bf16.mxu1 %vm3080_vm6, %v6460_v20  ;;  %v15839_v20 = vld [vmem:[#allocation72_spill] sm:$0xff] }
 0x9a4   : > { %v6286_v51 = vsel %vm3047_vm5, %v15839_v20, %v9841_v15  ;;  %v6440_v15 = vsel %vm3047_vm5, %v14588_v0, %v9826_v27  ;;  %v15845_v0 = vld [vmem:[#allocation73_spill] sm:$0xff] }
 0x9a5   : > { %7155 = vmatmul.mubr.bf16.gmra.mrb[116].mxu0 %v6498_v5  ;;  %v15840_v5 = vld [vmem:[#allocation61_spill] sm:$0xff]  ;;  %v6511_v35 = vpack.c.bf16 %v6286_v51, %v6285_v14  ;;  %v15846_v51 = vld [vmem:[#allocation76_spill] sm:$0xff] }
 0x9a6   : > { %7162 = vmatprep.mubr.bf16.mxu0 %v6503_v18  ;;  %v9776_v18 = vunpack.i.h.bf16 %v14891_v28  ;;  %v6279_v36 = vsel %vm3047_vm5, %v15840_v5, %v9830_v45  ;;  %v9835_v45 = vunpack.i.l.bf16 %v14987_v6  ;;  %v15847_v5 = vld [vmem:[#allocation75_spill] sm:$0xff] }
 0x9a7   : > { %v6506_v39 = vpack.c.bf16 %v6280_v62, %v6279_v36 }
 0x9a8   : > { %v6428_v28 = vsel %vm3047_vm5, %v14452_v40, %v9776_v18  ;;  %v9785_v40 = vunpack.i.l.bf16 %v14905_v30  ;;  %v9815_v18 = vunpack.i.l.bf16 %v14954_v13 }
 0x9a9   : > { %v6476_v32 = vpack.c.bf16 %v6428_v28, %v6427_v48  ;;  %v5881_v28 = vrot.slane %v15845_v0, 2  ;;  %v9854_v48 = vpop.permute.xlu1 %9853 }
 0x9aa   : > { %8673 = vmatmul.mubr.msk.bf16.gmra.mrb[108].mxu1 %vm3080_vm6, %v6464_v1  ;;  %v6430_v1 = vsel %vm3047_vm5, %v15801_v22, %v9786_v23  ;;  %v6429_v30 = vsel %vm3047_vm5, %v14495_v21, %v9785_v40  ;;  %v9801_v22 = vunpack.i.h.bf16 %v14923_v50  ;;  %v9800_v21 = vunpack.i.l.bf16 %v14923_v50  ;;  %v15843_v50 = vld [vmem:[#allocation68_spill] sm:$0xff] }
 0x9ab   : > { %8676 = vmatprep.mubr.msk.bf16.mxu1 %vm3080_vm6, %v6468_v61  ;;  %v6432_v61 = vsel %vm3047_vm5, %v15807_v8, %v9791_v63  ;;  %v6480_v53 = vpack.c.bf16 %v6430_v1, %v6429_v30  ;;  %v9805_v8 = vunpack.i.l.bf16 %v14937_v54  ;;  %v9816_v54 = vunpack.i.h.bf16 %v14954_v13 }
 0x9ac   : > { %v6484_v16 = vpack.c.bf16 %v6432_v61, %v6431_v11  ;;  %v6434_v3 = vsel %vm3047_vm5, %v15813_v24, %v9801_v22  ;;  %v6433_v10 = vsel %vm3047_vm5, %v15812_v7, %v9800_v21  ;;  %v9825_v24 = vunpack.i.l.bf16 %v14970_v2 }
 0x9ad   : > { %7163 = vmatmul.mubr.bf16.gmra.mrb[120].mxu0 %v6502_v33  ;;  %v6435_v58 = vsel %vm3047_vm5, %v15843_v50, %v9805_v8  ;;  %v6488_v19 = vpack.c.bf16 %v6434_v3, %v6433_v10  ;;  %v6438_v7 = vsel %vm3047_vm5, %v14574_v59, %v9816_v54  ;;  %v6437_v37 = vsel %vm3047_vm5, %v14571_v31, %v9815_v18  ;;  %v9849_v33 = vpop.permute.xlu0 %9848 }
 0x9ae   : > { %7170 = vmatprep.mubr.bf16.mxu0 %v6507_v29  ;;  %v6492_v34 = vpack.c.bf16 %v6436_v12, %v6435_v58  ;;  %v6439_v13 = vsel %vm3047_vm5, %v15844_v57, %v9825_v24  ;;  %v6496_v26 = vpack.c.bf16 %v6438_v7, %v6437_v37  ;;  %v9836_v2 = vunpack.i.h.bf16 %v14987_v6 }
 0x9af   : > { %v6500_v29 = vpack.c.bf16 %v6440_v15, %v6439_v13  ;;  %v9851_v55 = vunpack.i.h.bf16 %v9849_v33  ;;  %v9850_v60 = vunpack.i.l.bf16 %v9849_v33  ;;  %v5878_v31 = vrot.slane %v15838_v9, 2 }
 0x9b0   : > { %v5879_v59 = vrot.slane %v15839_v20, 2  ;;  %v6442_v14 = vsel %vm3047_vm5, %v14618_v42, %v9836_v2  ;;  %v6441_v6 = vsel %vm3047_vm5, %v14615_v41, %v9835_v45  ;;  %v9856_v44 = vunpack.i.h.bf16 %v9854_v48 }
 0x9b1   : > { %v6443_v36 = vsel %vm3047_vm5, %v15847_v5, %v9850_v60  ;;  %v9855_v62 = vunpack.i.l.bf16 %v9854_v48  ;;  %v6504_v9 = vpack.c.bf16 %v6442_v14, %v6441_v6 }
 0x9b2   : > { %8677 = vmatmul.mubr.msk.bf16.gmra.mrb[112].mxu1 %vm3080_vm6, %v6472_v43  ;;  %v6444_v43 = vsel %vm3047_vm5, %v15846_v51, %v9851_v55  ;;  %v5880_v20 = vsel %vm2268_vm4, %v5878_v31, %v5879_v59  ;;  %v5882_v23 = vsel %vm2268_vm4, %v5879_v59, %v5881_v28 }
 0x9b3   : > { %8680 = vmatprep.mubr.msk.bf16.mxu1 %vm3080_vm6, %v6476_v32  ;;  %v6508_v40 = vpack.c.bf16 %v6444_v43, %v6443_v36  ;;  %v6446_v41 = vsel %vm3047_vm5, %v5882_v23, %v9856_v44  ;;  %v6445_v42 = vsel %vm3047_vm5, %v5880_v20, %v9855_v62 }
 0x9b4   : > { %v6512_v32 = vpack.c.bf16 %v6446_v41, %v6445_v42 }
 0x9b5   : > { %7171 = vmatmul.mubr.bf16.gmra.mrb[124].mxu0 %v6506_v39 }
 0x9b6   : > { %7178 = vmatprep.mubr.bf16.mxu0 %v6511_v35 }
 0x9ba   : > { %8681 = vmatmul.mubr.msk.bf16.gmra.mrb[116].mxu1 %vm3080_vm6, %v6480_v53 }
 0x9bb   : > { %8684 = vmatprep.mubr.msk.bf16.mxu1 %vm3080_vm6, %v6484_v16 }
 0x9bd   : > { %7179 = vmatmul.mubr.bf16.gmra.mrb[128].mxu0 %v6510_v46 }
 0x9c2   : > { %8685 = vmatmul.mubr.msk.bf16.gmra.mrb[120].mxu1 %vm3080_vm6, %v6488_v19 }
 0x9c3   : > { %8688 = vmatprep.mubr.msk.bf16.mxu1 %vm3080_vm6, %v6492_v34 }
 0x9ca   : > { %8689 = vmatmul.mubr.msk.bf16.gmra.mrb[124].mxu1 %vm3080_vm6, %v6496_v26 }
 0x9cb   : > { %8692 = vmatprep.mubr.msk.bf16.mxu1 %vm3080_vm6, %v6500_v29 }
 0x9d2   : > { %8693 = vmatmul.mubr.msk.bf16.gmra.mrb[128].mxu1 %vm3080_vm6, %v6504_v9 }
 0x9d3   : > { %8696 = vmatprep.mubr.msk.bf16.mxu1 %vm3080_vm6, %v6508_v40 }
 0x9da   : > { %8697 = vmatmul.mubr.msk.bf16.gmra.mrb[132].mxu1 %vm3080_vm6, %v6512_v32 }
 0x9e7   : > { %v8030_v49 = vpop.f32.mrb[40].mxu1 }
 0x9e8   : > { %v8031_v63 = vpop.f32.mrb[41].mxu1 }
 0x9e9   : > { %v8032_v4 = vadd.f32 %v8031_v63, %v8030_v49  ;;  %v8033_v35 = vpop.f32.mrb[42].mxu1 }
 0x9ea   : > { %v8034_v39 = vpop.f32.mrb[43].mxu1 }
 0x9eb   : > { %v8035_v25 = vadd.f32 %v8034_v39, %v8033_v35 }
 0x9fd   : > { %v8036_v47 = vpop.f32.mrb[44].mxu1 }
 0x9fe   : > { %v8037_v1 = vpop.f32.mrb[45].mxu1 }
 0x9ff   : > { %v8038_v30 = vadd.f32 %v8037_v1, %v8036_v47  ;;  %v8039_v61 = vpop.f32.mrb[46].mxu1 }
 0xa00   : > { %v8040_v11 = vpop.f32.mrb[47].mxu1 }
 0xa01   : > { %v8041_v53 = vadd.f32 %v8040_v11, %v8039_v61 }
 0xa05   : > { %v8042_v17 = vpop.f32.mrb[48].mxu1 }
 0xa06   : > { %v8043_v56 = vpop.f32.mrb[49].mxu1 }
 0xa07   : > { %v8044_v38 = vadd.f32 %v8043_v56, %v8042_v17  ;;  %v8045_v16 = vpop.f32.mrb[50].mxu1 }
 0xa08   : > { %v8046_v22 = vpop.f32.mrb[51].mxu1 }
 0xa09   : > { %v8047_v21 = vadd.f32 %v8046_v22, %v8045_v16 }
 0xa0d   : > { %v8048_v52 = vpop.f32.mrb[52].mxu1 }
 0xa0e   : > { %v8049_v8 = vpop.f32.mrb[53].mxu1 }
 0xa0f   : > { %v8050_v46 = vadd.f32 %v8049_v8, %v8048_v52  ;;  %v8051_v3 = vpop.f32.mrb[54].mxu1 }
 0xa10   : > { %v8052_v10 = vpop.f32.mrb[55].mxu1 }
 0xa11   : > { %v8053_v12 = vadd.f32 %v8052_v10, %v8051_v3 }
 0xa15   : > { %v8054_v50 = vpop.f32.mrb[56].mxu1 }
 0xa16   : > { %v8055_v58 = vpop.f32.mrb[57].mxu1 }
 0xa17   : > { %v15074_v19 = vadd.f32 %v8055_v58, %v8054_v50  ;;  %v8057_v54 = vpop.f32.mrb[58].mxu1 }
 0xa18   : > { %v8142_v18 = vpop.f32.mrb[68].mxu0  ;;  %v8058_v34 = vpop.f32.mrb[59].mxu1 }
 0xa19   : > { %v8143_v27 = vpop.f32.mrb[69].mxu0  ;;  %v15076_v24 = vadd.f32 %v8058_v34, %v8057_v54 }
 0xa1a   : > { %v8144_v7 = vadd.f32 %v8143_v27, %v8142_v18  ;;  %v8145_v37 = vpop.f32.mrb[70].mxu0 }
 0xa1b   : > { %v8146_v15 = vpop.f32.mrb[71].mxu0 }
 0xa1c   : > { %v8147_v57 = vadd.f32 %v8146_v15, %v8145_v37  ;;  %v15078_v13 = vadd.f32 %v8144_v7, %v8032_v4 }
 0xa1d   : > { %v8060_v33 = vpop.f32.mrb[60].mxu1 }
 0xa1e   : > { %v8061_v26 = vpop.f32.mrb[61].mxu1  ;;  %v15080_v2 = vadd.f32 %v8147_v57, %v8035_v25 }
 0xa1f   : > { %v15082_v45 = vadd.f32 %v8061_v26, %v8060_v33  ;;  %v8063_v29 = vpop.f32.mrb[62].mxu1 }
 0xa20   : > { %v8148_v55 = vpop.f32.mrb[72].mxu0  ;;  %v8064_v60 = vpop.f32.mrb[63].mxu1 }
 0xa21   : > { %v8149_v31 = vpop.f32.mrb[73].mxu0  ;;  %v15084_v59 = vadd.f32 %v8064_v60, %v8063_v29 }
 0xa22   : > { %v8150_v0 = vadd.f32 %v8149_v31, %v8148_v55  ;;  %v8151_v28 = vpop.f32.mrb[74].mxu0 }
 0xa23   : > { %v8152_v48 = vpop.f32.mrb[75].mxu0 }
 0xa24   : > { %v8153_v14 = vadd.f32 %v8152_v48, %v8151_v28  ;;  %v15086_v6 = vadd.f32 %v8150_v0, %v8038_v30 }
 0xa25   : > { %v8066_v51 = vpop.f32.mrb[64].mxu1 }
 0xa26   : > { %v8067_v43 = vpop.f32.mrb[65].mxu1  ;;  %v15088_v5 = vadd.f32 %v8153_v14, %v8041_v53 }
 0xa27   : > { %v15090_v36 = vadd.f32 %v8067_v43, %v8066_v51  ;;  %v8069_v44 = vpop.f32.mrb[66].mxu1 }
 0xa28   : > { %v8154_v62 = vpop.f32.mrb[76].mxu0  ;;  %v8070_v9 = vpop.f32.mrb[67].mxu1 }
 0xa29   : > { %v8155_v20 = vpop.f32.mrb[77].mxu0  ;;  %v15092_v23 = vadd.f32 %v8070_v9, %v8069_v44 }
 0xa2a   : > { %v8156_v40 = vadd.f32 %v8155_v20, %v8154_v62  ;;  %v8157_v41 = vpop.f32.mrb[78].mxu0 }
 0xa2b   : > { %v8158_v42 = vpop.f32.mrb[79].mxu0 }
 0xa2c   : > { %v8159_v32 = vadd.f32 %v8158_v42, %v8157_v41  ;;  %v15094_v49 = vadd.f32 %v8156_v40, %v8044_v38 }
 0xa2d   : > { %v8072_v63 = vpop.f32.mrb[68].mxu1 }
 0xa2e   : > { %v8073_v4 = vpop.f32.mrb[69].mxu1  ;;  %v15096_v35 = vadd.f32 %v8159_v32, %v8047_v21 }
 0xa2f   : > { %v15098_v39 = vadd.f32 %v8073_v4, %v8072_v63  ;;  %v8075_v25 = vpop.f32.mrb[70].mxu1 }
 0xa30   : > { %v8160_v47 = vpop.f32.mrb[80].mxu0  ;;  %v8076_v1 = vpop.f32.mrb[71].mxu1 }
 0xa31   : > { %v8161_v30 = vpop.f32.mrb[81].mxu0  ;;  %v15100_v61 = vadd.f32 %v8076_v1, %v8075_v25 }
 0xa32   : > { %v8162_v11 = vadd.f32 %v8161_v30, %v8160_v47  ;;  %v8163_v53 = vpop.f32.mrb[82].mxu0 }
 0xa33   : > { %v8164_v17 = vpop.f32.mrb[83].mxu0 }
 0xa34   : > { %v8165_v56 = vadd.f32 %v8164_v17, %v8163_v53  ;;  %v15102_v16 = vadd.f32 %v8162_v11, %v8050_v46 }
 0xa35   : > { %v8078_v38 = vpop.f32.mrb[72].mxu1 }
 0xa36   : > { %v8079_v22 = vpop.f32.mrb[73].mxu1  ;;  %v15104_v52 = vadd.f32 %v8165_v56, %v8053_v12 }
 0xa37   : > { %v15106_v21 = vadd.f32 %v8079_v22, %v8078_v38  ;;  %v8081_v8 = vpop.f32.mrb[74].mxu1 }
 0xa38   : > { %v8166_v3 = vpop.f32.mrb[84].mxu0  ;;  %v8082_v10 = vpop.f32.mrb[75].mxu1 }
 0xa39   : > { %v8167_v50 = vpop.f32.mrb[85].mxu0  ;;  %v15108_v58 = vadd.f32 %v8082_v10, %v8081_v8 }
 0xa3a   : > { %v8168_v54 = vadd.f32 %v8167_v50, %v8166_v3  ;;  %v8169_v18 = vpop.f32.mrb[86].mxu0 }
 0xa3b   : > { %v8170_v34 = vpop.f32.mrb[87].mxu0 }
 0xa3c   : > { %v8171_v27 = vadd.f32 %v8170_v34, %v8169_v18  ;;  %v15111_v7 = vadd.f32 %v8168_v54, %v15074_v19 }
 0xa3d   : > { %v8084_v46 = vpop.f32.mrb[76].mxu1 }
 0xa3e   : > { %v8085_v37 = vpop.f32.mrb[77].mxu1  ;;  %v15114_v12 = vadd.f32 %v8171_v27, %v15076_v24 }
 0xa3f   : > { %v15116_v15 = vadd.f32 %v8085_v37, %v8084_v46  ;;  %v8087_v57 = vpop.f32.mrb[78].mxu1 }
 0xa40   : > { %v8172_v33 = vpop.f32.mrb[88].mxu0  ;;  %v8088_v26 = vpop.f32.mrb[79].mxu1 }
 0xa41   : > { %v8173_v29 = vpop.f32.mrb[89].mxu0  ;;  %v15118_v55 = vadd.f32 %v8088_v26, %v8087_v57 }
 0xa42   : > { %v8174_v60 = vadd.f32 %v8173_v29, %v8172_v33  ;;  %v8175_v31 = vpop.f32.mrb[90].mxu0 }
 0xa43   : > { %v8176_v0 = vpop.f32.mrb[91].mxu0 }
 0xa44   : > { %v8177_v28 = vadd.f32 %v8176_v0, %v8175_v31  ;;  %v15121_v19 = vadd.f32 %v8174_v60, %v15082_v45 }
 0xa45   : > { %v8090_v48 = vpop.f32.mrb[80].mxu1 }
 0xa46   : > { %v8091_v14 = vpop.f32.mrb[81].mxu1  ;;  %v15124_v24 = vadd.f32 %v8177_v28, %v15084_v59 }
 0xa47   : > { %v15126_v51 = vadd.f32 %v8091_v14, %v8090_v48  ;;  %v8093_v43 = vpop.f32.mrb[82].mxu1 }
 0xa48   : > { %v8178_v44 = vpop.f32.mrb[92].mxu0  ;;  %v8094_v62 = vpop.f32.mrb[83].mxu1 }
 0xa49   : > { %v8179_v9 = vpop.f32.mrb[93].mxu0  ;;  %v15128_v20 = vadd.f32 %v8094_v62, %v8093_v43 }
 0xa4a   : > { %v8180_v40 = vadd.f32 %v8179_v9, %v8178_v44  ;;  %v8181_v41 = vpop.f32.mrb[94].mxu0 }
 0xa4b   : > { %v8182_v42 = vpop.f32.mrb[95].mxu0 }
 0xa4c   : > { %v8183_v32 = vadd.f32 %v8182_v42, %v8181_v41  ;;  %v15131_v45 = vadd.f32 %v8180_v40, %v15090_v36 }
 0xa4d   : > { %v8096_v63 = vpop.f32.mrb[84].mxu1 }
 0xa4e   : > { %v8097_v4 = vpop.f32.mrb[85].mxu1  ;;  %v15134_v59 = vadd.f32 %v8183_v32, %v15092_v23 }
 0xa4f   : > { %v15136_v25 = vadd.f32 %v8097_v4, %v8096_v63  ;;  %v8099_v47 = vpop.f32.mrb[86].mxu1 }
 0xa50   : > { %v8184_v1 = vpop.f32.mrb[96].mxu0  ;;  %v8100_v30 = vpop.f32.mrb[87].mxu1 }
 0xa51   : > { %v8185_v11 = vpop.f32.mrb[97].mxu0  ;;  %v15138_v53 = vadd.f32 %v8100_v30, %v8099_v47 }
 0xa52   : > { %v8186_v17 = vadd.f32 %v8185_v11, %v8184_v1  ;;  %v8187_v56 = vpop.f32.mrb[98].mxu0 }
 0xa53   : > { %v8188_v38 = vpop.f32.mrb[99].mxu0 }
 0xa54   : > { %v8189_v22 = vadd.f32 %v8188_v38, %v8187_v56  ;;  %v15141_v36 = vadd.f32 %v8186_v17, %v15098_v39 }
 0xa55   : > { %v8102_v8 = vpop.f32.mrb[88].mxu1 }
 0xa56   : > { %v8103_v3 = vpop.f32.mrb[89].mxu1  ;;  %v15144_v23 = vadd.f32 %v8189_v22, %v15100_v61 }
 0xa57   : > { %v15146_v10 = vadd.f32 %v8103_v3, %v8102_v8  ;;  %v8105_v50 = vpop.f32.mrb[90].mxu1 }
 0xa58   : > { %v8190_v54 = vpop.f32.mrb[100].mxu0  ;;  %v8106_v18 = vpop.f32.mrb[91].mxu1 }
 0xa59   : > { %v8191_v34 = vpop.f32.mrb[101].mxu0  ;;  %v15148_v27 = vadd.f32 %v8106_v18, %v8105_v50 }
 0xa5a   : > { %v8192_v46 = vadd.f32 %v8191_v34, %v8190_v54  ;;  %v8193_v37 = vpop.f32.mrb[102].mxu0 }
 0xa5b   : > { %v8194_v57 = vpop.f32.mrb[103].mxu0 }
 0xa5c   : > { %v8195_v33 = vadd.f32 %v8194_v57, %v8193_v37  ;;  %v15151_v39 = vadd.f32 %v8192_v46, %v15106_v21 }
 0xa5d   : > { %v8108_v26 = vpop.f32.mrb[92].mxu1 }
 0xa5e   : > { %v8109_v29 = vpop.f32.mrb[93].mxu1  ;;  %v15154_v61 = vadd.f32 %v8195_v33, %v15108_v58 }
 0xa5f   : > { %v15156_v60 = vadd.f32 %v8109_v29, %v8108_v26  ;;  %v8111_v31 = vpop.f32.mrb[94].mxu1  ;;  %v15189_v26 = vld [vmem:[%s15404_s10] ss:$0 sm:$0xff] }
 0xa60   : > { %v8196_v0 = vpop.f32.mrb[104].mxu0  ;;  %v8112_v28 = vpop.f32.mrb[95].mxu1 }
 0xa61   : > { %v8197_v48 = vpop.f32.mrb[105].mxu0  ;;  %v15158_v14 = vadd.f32 %v8112_v28, %v8111_v31 }
 0xa62   : > { %v8198_v43 = vadd.f32 %v8197_v48, %v8196_v0  ;;  %v8199_v44 = vpop.f32.mrb[106].mxu0 }
 0xa63   : > { %v8200_v62 = vpop.f32.mrb[107].mxu0 }
 0xa64   : > { %v8201_v9 = vadd.f32 %v8200_v62, %v8199_v44  ;;  %v15161_v21 = vadd.f32 %v8198_v43, %v15116_v15 }
 0xa65   : > { %v8114_v40 = vpop.f32.mrb[96].mxu1 }
 0xa66   : > { %v8115_v41 = vpop.f32.mrb[97].mxu1  ;;  %v15164_v58 = vadd.f32 %v8201_v9, %v15118_v55 }
 0xa67   : > { %v15166_v42 = vadd.f32 %v8115_v41, %v8114_v40  ;;  %v8117_v32 = vpop.f32.mrb[98].mxu1 }
 0xa68   : > { %v8202_v63 = vpop.f32.mrb[108].mxu0  ;;  %v8118_v4 = vpop.f32.mrb[99].mxu1 }
 0xa69   : > { %v8203_v47 = vpop.f32.mrb[109].mxu0  ;;  %v15168_v1 = vadd.f32 %v8118_v4, %v8117_v32 }
 0xa6a   : > { %v8204_v30 = vadd.f32 %v8203_v47, %v8202_v63  ;;  %v8205_v11 = vpop.f32.mrb[110].mxu0 }
 0xa6b   : > { %v8206_v17 = vpop.f32.mrb[111].mxu0 }
 0xa6c   : > { %v8207_v56 = vadd.f32 %v8206_v17, %v8205_v11  ;;  %v15171_v15 = vadd.f32 %v8204_v30, %v15126_v51 }
 0xa6d   : > { %v8120_v38 = vpop.f32.mrb[100].mxu1 }
 0xa6e   : > { %v8121_v55 = vpop.f32.mrb[101].mxu1  ;;  %v15174_v22 = vadd.f32 %v8207_v56, %v15128_v20 }
 0xa6f   : > { %v15176_v8 = vadd.f32 %v8121_v55, %v8120_v38  ;;  %v8123_v3 = vpop.f32.mrb[102].mxu1 }
 0xa70   : > { %v8208_v50 = vpop.f32.mrb[112].mxu0  ;;  %v8124_v54 = vpop.f32.mrb[103].mxu1 }
 0xa71   : > { %v8209_v18 = vpop.f32.mrb[113].mxu0  ;;  %v15178_v34 = vadd.f32 %v8124_v54, %v8123_v3 }
 0xa72   : > { %v8210_v46 = vadd.f32 %v8209_v18, %v8208_v50  ;;  %v8211_v37 = vpop.f32.mrb[114].mxu0 }
 0xa73   : > { %v8212_v57 = vpop.f32.mrb[115].mxu0 }
 0xa74   : > { %v8213_v33 = vadd.f32 %v8212_v57, %v8211_v37  ;;  %v15184_v51 = vadd.f32 %v8210_v46, %v15136_v25 }
 0xa75   : > { %v8670_v20 = vpop.f32.mrb[104].mxu1 }
 0xa76   : > { %v7230_v29 = vadd.f32 %v8670_v20, %v15086_v6  ;;  %v7221_v31 = vpop.f32.mrb[105].mxu1  ;;  %v15193_v0 = vadd.f32 %v8213_v33, %v15138_v53 }
 0xa77   : > { %v7222_v28 = vadd.f32 %v7221_v31, %v15078_v13  ;;  %v8671_v48 = vpop.f32.mrb[106].mxu1 }
 0xa78   : > { %v8214_v43 = vpop.f32.mrb[116].mxu0  ;;  %v7357_v44 = vadd.f32 %v15189_v26, %v7230_v29  ;;  %v7233_v25 = vadd.f32 %v8671_v48, %v15088_v5  ;;  %v7224_v62 = vpop.f32.mrb[107].mxu1 }
 0xa79   : > { %v8215_v9 = vpop.f32.mrb[117].mxu0  ;;  %v7355_v40 = vadd.f32 %v15189_v26, %v7222_v28  ;;  %v7225_v41 = vadd.f32 %v7224_v62, %v15080_v2 }
 0xa7a   : > { %v8216_v32 = vadd.f32 %v8215_v9, %v8214_v43  ;;  %7389 = vst.msk [vmem:[%s15200_s16 + $0x10] sm:$0xff] %vm3047_vm5, %v7357_v44  ;;  %v8217_v13 = vpop.f32.mrb[118].mxu0  ;;  %v7358_v6 = vadd.f32 %v15189_v26, %v7233_v25 }
 0xa7b   : > { %7387 = vst.msk [vmem:[%s15200_s16] sm:$0xff] %vm3047_vm5, %v7355_v40  ;;  %v8218_v5 = vpop.f32.mrb[119].mxu0  ;;  %v7356_v53 = vadd.f32 %v15189_v26, %v7225_v41 }
 0xa7c   : > { %v8219_v63 = vadd.f32 %v8218_v5, %v8217_v13  ;;  %7390 = vst.msk [vmem:[%s15200_s16 + $0x18] sm:$0xff] %vm3047_vm5, %v7358_v6  ;;  %v15211_v2 = vadd.f32 %v8216_v32, %v15146_v10 }
 0xa7d   : > { %7388 = vst.msk [vmem:[%s15200_s16 + $0x8] sm:$0xff] %vm3047_vm5, %v7356_v53  ;;  %v8674_v4 = vpop.f32.mrb[108].mxu1 }
 0xa7e   : > { %v7246_v47 = vadd.f32 %v8674_v4, %v15102_v16  ;;  %v7237_v30 = vpop.f32.mrb[109].mxu1  ;;  %v15217_v11 = vadd.f32 %v8219_v63, %v15148_v27 }
 0xa7f   : > { %v7238_v17 = vadd.f32 %v7237_v30, %v15094_v49  ;;  %v8675_v56 = vpop.f32.mrb[110].mxu1 }
 0xa80   : > { %v8220_v38 = vpop.f32.mrb[120].mxu0  ;;  %v7361_v55 = vadd.f32 %v15189_v26, %v7246_v47  ;;  %v7249_v10 = vadd.f32 %v8675_v56, %v15104_v52  ;;  %v7240_v3 = vpop.f32.mrb[111].mxu1 }
 0xa81   : > { %v8221_v50 = vpop.f32.mrb[121].mxu0  ;;  %v7359_v54 = vadd.f32 %v15189_v26, %v7238_v17  ;;  %v7241_v16 = vadd.f32 %v7240_v3, %v15096_v35 }
 0xa82   : > { %v8222_v18 = vadd.f32 %v8221_v50, %v8220_v38  ;;  %7393 = vst.msk [vmem:[%s15200_s16 + $0x30] sm:$0xff] %vm3047_vm5, %v7361_v55  ;;  %v8223_v27 = vpop.f32.mrb[122].mxu0  ;;  %v7362_v49 = vadd.f32 %v15189_v26, %v7249_v10 }
 0xa83   : > { %7391 = vst.msk [vmem:[%s15200_s16 + $0x20] sm:$0xff] %vm3047_vm5, %v7359_v54  ;;  %v8224_v46 = vpop.f32.mrb[123].mxu0  ;;  %v7360_v37 = vadd.f32 %v15189_v26, %v7241_v16 }
 0xa84   : > { %v8225_v57 = vadd.f32 %v8224_v46, %v8223_v27  ;;  %7394 = vst.msk [vmem:[%s15200_s16 + $0x38] sm:$0xff] %vm3047_vm5, %v7362_v49  ;;  %v15233_v52 = vadd.f32 %v8222_v18, %v15156_v60 }
 0xa85   : > { %7392 = vst.msk [vmem:[%s15200_s16 + $0x28] sm:$0xff] %vm3047_vm5, %v7360_v37  ;;  %v8678_v35 = vpop.f32.mrb[112].mxu1 }
 0xa86   : > { %v7262_v33 = vadd.f32 %v8678_v35, %v15121_v19  ;;  %v7253_v20 = vpop.f32.mrb[113].mxu1  ;;  %v15239_v29 = vadd.f32 %v8225_v57, %v15158_v14 }
 0xa87   : > { %v7254_v31 = vadd.f32 %v7253_v20, %v15111_v7  ;;  %v8679_v28 = vpop.f32.mrb[114].mxu1 }
 0xa88   : > { %v8226_v48 = vpop.f32.mrb[124].mxu0  ;;  %v7365_v43 = vadd.f32 %v15189_v26, %v7262_v33  ;;  %v7265_v60 = vadd.f32 %v8679_v28, %v15124_v24  ;;  %v7256_v44 = vpop.f32.mrb[115].mxu1 }
 0xa89   : > { %v8227_v25 = vpop.f32.mrb[125].mxu0  ;;  %v7363_v62 = vadd.f32 %v15189_v26, %v7254_v31  ;;  %v7257_v19 = vadd.f32 %v7256_v44, %v15114_v12 }
 0xa8a   : > { %v8228_v9 = vadd.f32 %v8227_v25, %v8226_v48  ;;  %7397 = vst.msk [vmem:[%s15200_s16 + $0x50] sm:$0xff] %vm3047_vm5, %v7365_v43  ;;  %v8229_v14 = vpop.f32.mrb[126].mxu0  ;;  %v7366_v7 = vadd.f32 %v15189_v26, %v7265_v60 }
 0xa8b   : > { %7395 = vst.msk [vmem:[%s15200_s16 + $0x40] sm:$0xff] %vm3047_vm5, %v7363_v62  ;;  %v8230_v40 = vpop.f32.mrb[127].mxu0  ;;  %v7364_v41 = vadd.f32 %v15189_v26, %v7257_v19 }
 0xa8c   : > { %v8231_v32 = vadd.f32 %v8230_v40, %v8229_v14  ;;  %7398 = vst.msk [vmem:[%s15200_s16 + $0x58] sm:$0xff] %vm3047_vm5, %v7366_v7  ;;  %v15255_v24 = vadd.f32 %v8228_v9, %v15166_v42 }
 0xa8d   : > { %7396 = vst.msk [vmem:[%s15200_s16 + $0x48] sm:$0xff] %vm3047_vm5, %v7364_v41  ;;  %v8682_v12 = vpop.f32.mrb[116].mxu1 }
 0xa8e   : > { %v7278_v13 = vadd.f32 %v8682_v12, %v15141_v36  ;;  %v7269_v6 = vpop.f32.mrb[117].mxu1  ;;  %v15261_v5 = vadd.f32 %v8231_v32, %v15168_v1 }
 0xa8f   : > { %v7270_v53 = vadd.f32 %v7269_v6, %v15131_v45  ;;  %v8683_v63 = vpop.f32.mrb[118].mxu1 }
 0xa90   : > { %v8232_v4 = vpop.f32.mrb[128].mxu0  ;;  %v7369_v47 = vadd.f32 %v15189_v26, %v7278_v13  ;;  %v7281_v42 = vadd.f32 %v8683_v63, %v15144_v23  ;;  %v7272_v30 = vpop.f32.mrb[119].mxu1 }
 0xa91   : > { %v8233_v17 = vpop.f32.mrb[129].mxu0  ;;  %v7367_v56 = vadd.f32 %v15189_v26, %v7270_v53  ;;  %v7273_v36 = vadd.f32 %v7272_v30, %v15134_v59 }
 0xa92   : > { %v8234_v38 = vadd.f32 %v8233_v17, %v8232_v4  ;;  %7401 = vst.msk [vmem:[%s15200_s16 + $0x70] sm:$0xff] %vm3047_vm5, %v7369_v47  ;;  %v8235_v1 = vpop.f32.mrb[130].mxu0  ;;  %v7370_v45 = vadd.f32 %v15189_v26, %v7281_v42 }
 0xa93   : > { %7399 = vst.msk [vmem:[%s15200_s16 + $0x60] sm:$0xff] %vm3047_vm5, %v7367_v56  ;;  %v8236_v55 = vpop.f32.mrb[131].mxu0  ;;  %v7368_v10 = vadd.f32 %v15189_v26, %v7273_v36 }
 0xa94   : > { %v8237_v3 = vadd.f32 %v8236_v55, %v8235_v1  ;;  %7402 = vst.msk [vmem:[%s15200_s16 + $0x78] sm:$0xff] %vm3047_vm5, %v7370_v45  ;;  %v7181_v23 = vadd.f32 %v8234_v38, %v15176_v8 }
 0xa95   : > { %7400 = vst.msk [vmem:[%s15200_s16 + $0x68] sm:$0xff] %vm3047_vm5, %v7368_v10  ;;  %v8686_v59 = vpop.f32.mrb[120].mxu1 }
 0xa96   : > { %v7294_v50 = vadd.f32 %v8686_v59, %v15161_v21  ;;  %v7285_v54 = vpop.f32.mrb[121].mxu1  ;;  %v7184_v16 = vadd.f32 %v8237_v3, %v15178_v34 }
 0xa97   : > { %v7286_v18 = vadd.f32 %v7285_v54, %v15151_v39  ;;  %v8687_v27 = vpop.f32.mrb[122].mxu1 }
 0xa98   : > { %v7373_v49 = vadd.f32 %v15189_v26, %v7294_v50  ;;  %v7297_v46 = vadd.f32 %v8687_v27, %v15164_v58  ;;  %v7288_v37 = vpop.f32.mrb[123].mxu1 }
 0xa99   : > { %v7371_v8 = vadd.f32 %v15189_v26, %v7286_v18  ;;  %v7289_v57 = vadd.f32 %v7288_v37, %v15154_v61 }
 0xa9a   : > { %7405 = vst.msk [vmem:[%s15200_s16 + $0x90] sm:$0xff] %vm3047_vm5, %v7373_v49  ;;  %v7374_v21 = vadd.f32 %v15189_v26, %v7297_v46 }
 0xa9b   : > { %7403 = vst.msk [vmem:[%s15200_s16 + $0x80] sm:$0xff] %vm3047_vm5, %v7371_v8  ;;  %v7372_v39 = vadd.f32 %v15189_v26, %v7289_v57 }
 0xa9c   : > { %7406 = vst.msk [vmem:[%s15200_s16 + $0x98] sm:$0xff] %vm3047_vm5, %v7374_v21 }
 0xa9d   : > { %7404 = vst.msk [vmem:[%s15200_s16 + $0x88] sm:$0xff] %vm3047_vm5, %v7372_v39  ;;  %v8690_v58 = vpop.f32.mrb[124].mxu1 }
 0xa9e   : > { %v7310_v34 = vadd.f32 %v8690_v58, %v15184_v51  ;;  %v7301_v61 = vpop.f32.mrb[125].mxu1 }
 0xa9f   : > { %v7302_v35 = vadd.f32 %v7301_v61, %v15171_v15  ;;  %v8691_v33 = vpop.f32.mrb[126].mxu1 }
 0xaa0   : > { %v7377_v20 = vadd.f32 %v15189_v26, %v7310_v34  ;;  %v7313_v31 = vadd.f32 %v8691_v33, %v15193_v0  ;;  %v7304_v28 = vpop.f32.mrb[127].mxu1 }
 0xaa1   : > { %v7375_v48 = vadd.f32 %v15189_v26, %v7302_v35  ;;  %v7305_v43 = vadd.f32 %v7304_v28, %v15174_v22 }
 0xaa2   : > { %7409 = vst.msk [vmem:[%s15200_s16 + $0xb0] sm:$0xff] %vm3047_vm5, %v7377_v20  ;;  %v7378_v60 = vadd.f32 %v15189_v26, %v7313_v31 }
 0xaa3   : > { %7407 = vst.msk [vmem:[%s15200_s16 + $0xa0] sm:$0xff] %vm3047_vm5, %v7375_v48  ;;  %v7376_v15 = vadd.f32 %v15189_v26, %v7305_v43 }
 0xaa4   : > { %7410 = vst.msk [vmem:[%s15200_s16 + $0xb8] sm:$0xff] %vm3047_vm5, %v7378_v60 }
 0xaa5   : > { %7408 = vst.msk [vmem:[%s15200_s16 + $0xa8] sm:$0xff] %vm3047_vm5, %v7376_v15  ;;  %v8694_v51 = vpop.f32.mrb[128].mxu1 }
 0xaa6   : > { %v7326_v0 = vadd.f32 %v8694_v51, %v15233_v52  ;;  %v7317_v22 = vpop.f32.mrb[129].mxu1 }
 0xaa7   : > { %v7318_v44 = vadd.f32 %v7317_v22, %v15211_v2  ;;  %v8695_v25 = vpop.f32.mrb[130].mxu1 }
 0xaa8   : > { %v7381_v62 = vadd.f32 %v15189_v26, %v7326_v0  ;;  %v7329_v19 = vadd.f32 %v8695_v25, %v15239_v29  ;;  %v7320_v9 = vpop.f32.mrb[131].mxu1 }
 0xaa9   : > { %v7379_v14 = vadd.f32 %v15189_v26, %v7318_v44  ;;  %v7321_v7 = vadd.f32 %v7320_v9, %v15217_v11 }
 0xaaa   : > { %7413 = vst.msk [vmem:[%s15200_s16 + $0xd0] sm:$0xff] %vm3047_vm5, %v7381_v62  ;;  %v7382_v40 = vadd.f32 %v15189_v26, %v7329_v19 }
 0xaab   : > { %7411 = vst.msk [vmem:[%s15200_s16 + $0xc0] sm:$0xff] %vm3047_vm5, %v7379_v14  ;;  %v7380_v2 = vadd.f32 %v15189_v26, %v7321_v7 }
 0xaac   : > { %7414 = vst.msk [vmem:[%s15200_s16 + $0xd8] sm:$0xff] %vm3047_vm5, %v7382_v40 }
 0xaad   : > { %7412 = vst.msk [vmem:[%s15200_s16 + $0xc8] sm:$0xff] %vm3047_vm5, %v7380_v2  ;;  %v8698_v52 = vpop.f32.mrb[132].mxu1 }
 0xaae   : > { %v7342_v29 = vadd.f32 %v8698_v52, %v7181_v23  ;;  %v7333_v41 = vpop.f32.mrb[133].mxu1 }
 0xaaf   : > { %v7334_v11 = vadd.f32 %v7333_v41, %v15255_v24  ;;  %v8699_v32 = vpop.f32.mrb[134].mxu1 }
 0xab0   : > { %v7385_v12 = vadd.f32 %v15189_v26, %v7342_v29  ;;  %v7345_v13 = vadd.f32 %v8699_v32, %v7184_v16  ;;  %v7336_v6 = vpop.f32.mrb[135].mxu1 }
 0xab1   : > { %v7383_v53 = vadd.f32 %v15189_v26, %v7334_v11  ;;  %v7337_v63 = vadd.f32 %v7336_v6, %v15261_v5 }
 0xab2   : > { %7417 = vst.msk [vmem:[%s15200_s16 + $0xf0] sm:$0xff] %vm3047_vm5, %v7385_v12  ;;  %v7386_v4 = vadd.f32 %v15189_v26, %v7345_v13 }
 0xab3   : > { %7415 = vst.msk [vmem:[%s15200_s16 + $0xe0] sm:$0xff] %vm3047_vm5, %v7383_v53  ;;  %v7384_v24 = vadd.f32 %v15189_v26, %v7337_v63 }
 0xab4   : > { %7418 = vst.msk [vmem:[%s15200_s16 + $0xf8] sm:$0xff] %vm3047_vm5, %v7386_v4 }
 0xab5   : > { %7416 = vst.msk [vmem:[%s15200_s16 + $0xe8] sm:$0xff] %vm3047_vm5, %v7384_v24 }
 0xab6   : > { %10371 = shalt.err (!%p10368_p1)
}
 0xab7   : > { %s10372_s29 = scalar_lea.hbm %s15340_s28, 4096  ;;  %s10376_s23 = scalar_lea.hbm %s15405_s11, 8192 }
 0xab8   : > { %p10373_p0 = scmp.ne.s32.totalorder %s15340_s28, %s10372_s29  ;;  %p10377_p9 = scmp.lt.u32.totalorder %s15340_s28, %s15405_s11 }
 0xab9   : > { %p10378_p12 = scmp.lt.u32.totalorder %s10376_s23, %s10372_s29  ;;  %p10380_p2 = scmp.lt.u32.totalorder %s10372_s29, %s15340_s28 }
 0xaba   : > { %p10374_p6 = pnand %p10373_p0, %p15848_p3 }
 0xabb   : > { %p10379_p10 = por %p10378_p12, %p10377_p9 }
 0xabc   : > { %p10375_p5 = pneg %p10374_p6 }
 0xabd   : > { %p10381_p4 = por %p10380_p2, %p10379_p10 }
 0xabf   : > { %p10382_p7 = pnand %p10381_p4, %p10375_p5 }
 0xac1   : > { %10385 = shalt.err (!%p10382_p7)
}
 0xac2   : > { %s10447_s16 = smov 128   ;;  %s10448_s24 = smov 8  }
 0xac3   : > { %8973 = dma.vmem_to_hbm [thread:$0]  (%p15848_p3), %s15342_s19, 4096, %s15340_s28, %s15353_s21, %s10447_s16, %s10447_s16, %s10448_s24  }
 0xac4 PF: > { %s15849_s12 = sld [smem:[#allocation17_spill]]  ;;  %s15850_s30 = sld [smem:[#allocation21_spill]] }
 0xac5   : > { %p9000_p8 = scmp.ge.s32.totalorder %s10432_s20, 2 }
 0xaca   : > { %s7448_s26 = sand.u32 1, %s15849_s12   ;;  %p15851_p11 = scmp.ne.s32.totalorder %s15850_s30, 0 }
 0xacb   : > { %s7449_s22 = scalar_lea.sflag [#allocation6], %s7448_s26 }
 0xacc   : > { %p8989_p13 = pnand %p9000_p8, %p15851_p11 }
 0xace   : > { %10415 = dma.done.wait (!%p8989_p13), %s7449_s22, 4096  }
 0xacf   : > { %10417 = vsyncadd (!%p8989_p13), %s7449_s22, 4294963200  ;;  %s15852_s20 = sld [smem:[#allocation19_spill]]  ;;  %s15853_s14 = sld [smem:[#allocation18_spill]] }
 0xad0   : > { %s15854_s19 = sld [smem:[#allocation20_spill]]  ;;  %s15855_s17 = smov %s10424_s18 }
 0xad5   : > { %p24_p1 = scmp.ge.s32.totalorder %s15852_s20, 4   ;;  %s15856_s18 = smov %s15853_s14 }
 0xad7   :  { %26 = sbr.rel (!%p24_p1) target bundleno = 8 (0x8), region = 118 }
 0xade   :  { %7454 = vsyncpa [#allocation5], 1 }
 0xadf   :  { %7456 = vsyncpa [#allocation5 + $0x1], 1 }
 0xae0   :  { %7457 = vsyncpa [#allocation8], 1 }
 0xae1   :  { %7458 = vsyncpa [#allocation11], 1 }
 0xae2   :  { %7459 = vsyncpa [#allocation6], 1 }
 0xae3   :  { %7461 = vsyncpa [#allocation6 + $0x1], 1 }

</bundles_post_ra>
